<compile_context>
chip_gen: v7x
topology: tpu7x:2x2x1
jax: 0.10.0
libtpu: 0.0.40
codegen_flags: <defaults>
</compile_context>

<pallas_src>
import functools

import jax
import jax.numpy as jnp
from jax.experimental import pallas as pl
from jax.experimental.pallas import tpu as pltpu


def _leaky_relu(v, slope=0.2):
    return jnp.where(v > 0, v, slope * v)


def vae_kernel(
    # inputs (per batch tile)
    x_ref, eps_ref,
    # weights (resident, constant index_map)
    w_e1, b_e1, w_e2, b_e2,              # encoder
    w_h, b_h,                             # fused mean|logvar head
    w_d1, b_d1, w_d2, b_d2, w_d3, b_d3,   # decoder
    # outputs (per batch tile)
    xhat_ref, ml_ref,
):
    # ---- encoder: Linear(768->512pad) + LeakyReLU, Linear(512pad->2) + LeakyReLU
    x = x_ref[...].astype(jnp.bfloat16)                      # cast in VMEM
    h = _leaky_relu(
        jnp.dot(x, w_e1[...], preferred_element_type=jnp.float32) + b_e1[...]
    ).astype(jnp.bfloat16)                                    # halve live intermediate
    enc = _leaky_relu(
        jnp.dot(h, w_e2[...], preferred_element_type=jnp.float32) + b_e2[...]
    )                                                         # (tb, 2) f32

    # ---- fused mean/logvar head: latent_dim == 2, so VPU broadcast-FMA (no MXU)
    wh = w_h[...]                                             # (2, 2*latent_out)
    ml = enc[:, 0:1] * wh[0:1, :] + enc[:, 1:2] * wh[1:2, :] + b_h[...]
    half = ml.shape[1] // 2
    mean = ml[:, :half]
    logvar = ml[:, half:]

    # ---- reparameterization (matches reference: mean + logvar * eps)
    z = mean + logvar * eps_ref[...]

    # ---- decoder: Linear(2->2)+LReLU, Linear(2->512pad)+LReLU (both VPU),
    #               Linear(512pad->768)+Sigmoid (MXU)
    wd1 = w_d1[...]                                           # (2, 2)
    d = _leaky_relu(z[:, 0:1] * wd1[0:1, :] + z[:, 1:2] * wd1[1:2, :] + b_d1[...])
    wd2 = w_d2[...]                                           # (2, 512pad)
    d = _leaky_relu(d[:, 0:1] * wd2[0:1, :] + d[:, 1:2] * wd2[1:2, :] + b_d2[...])
    d = d.astype(jnp.bfloat16)
    logits = (
        jnp.dot(d, w_d3[...], preferred_element_type=jnp.float32) + b_d3[...]
    )
    # sigmoid via EUP exp + approximate reciprocal
    xhat = pl.reciprocal(1.0 + jnp.exp(-logits), approx=True)

    xhat_ref[...] = xhat.astype(xhat_ref.dtype)               # bf16 writeback
    ml_ref[...] = ml.astype(ml_ref.dtype)


_KARG_ORDER = (
    "w_e1", "b_e1", "w_e2", "b_e2",
    "w_h", "b_h",
    "w_d1", "b_d1", "w_d2", "b_d2", "w_d3", "b_d3",
)


def prepare_params(p, hidden_pad=512):
    """One-time prep: pad hidden 400->512 (exact), fuse heads, cast big weights to bf16."""
    hidden = p["w_e1"].shape[1]
    pad = hidden_pad - hidden
    kp = {}
    kp["w_e1"] = jnp.pad(p["w_e1"], ((0, 0), (0, pad))).astype(jnp.bfloat16)
    kp["b_e1"] = jnp.pad(p["b_e1"], ((0, 0), (0, pad)))
    kp["w_e2"] = jnp.pad(p["w_e2"], ((0, pad), (0, 0))).astype(jnp.bfloat16)
    kp["b_e2"] = p["b_e2"]
    kp["w_h"] = jnp.concatenate([p["w_mu"], p["w_lv"]], axis=1)
    kp["b_h"] = jnp.concatenate([p["b_mu"], p["b_lv"]], axis=1)
    kp["w_d1"] = p["w_d1"]
    kp["b_d1"] = p["b_d1"]
    kp["w_d2"] = jnp.pad(p["w_d2"], ((0, 0), (0, pad)))
    kp["b_d2"] = jnp.pad(p["b_d2"], ((0, 0), (0, pad)))
    kp["w_d3"] = jnp.pad(p["w_d3"], ((0, pad), (0, 0))).astype(jnp.bfloat16)
    kp["b_d3"] = p["b_d3"]
    return kp


@functools.partial(jax.jit, static_argnames=("tb",))
def vae_forward(x, eps, kparams, tb=256):
    """x: (B, input_dim) f32; eps: (B, latent) f32; kparams: output of prepare_params.

    Returns (x_hat[bf16], mean[f32], logvar[f32]).
    Choose tb so Bp//tb >= 2 (and even on v7x) to use both TensorCores.
    """
    B, input_dim = x.shape
    e_dim = eps.shape[1]
    head_dim = kparams["w_h"].shape[1]          # 2 * latent_out (= 4)
    half = head_dim // 2

    # Pad batch to a multiple of the batch tile.
    Bp = ((B + tb - 1) // tb) * tb
    if Bp != B:
        x = jnp.pad(x, ((0, Bp - B), (0, 0)))
        eps = jnp.pad(eps, ((0, Bp - B), (0, 0)))

    args = [kparams[k] for k in _KARG_ORDER]

    # Batch-tiled specs; weights use a constant index_map -> stay VMEM-resident.
    x_spec = pl.BlockSpec((tb, input_dim), lambda i: (i, 0))
    eps_spec = pl.BlockSpec((tb, e_dim), lambda i: (i, 0))
    weight_specs = [pl.BlockSpec(a.shape, lambda i: (0, 0)) for a in args]

    out_shapes = (
        jax.ShapeDtypeStruct((Bp, input_dim), jnp.bfloat16),   # x_hat (bf16 writeback)
        jax.ShapeDtypeStruct((Bp, head_dim), jnp.float32),     # packed mean|logvar
    )
    out_specs = (
        pl.BlockSpec((tb, input_dim), lambda i: (i, 0)),
        pl.BlockSpec((tb, head_dim), lambda i: (i, 0)),
    )

    xhat, ml = pl.pallas_call(
        vae_kernel,
        out_shape=out_shapes,
        grid=(Bp // tb,),
        in_specs=[x_spec, eps_spec] + weight_specs,
        out_specs=out_specs,
        compiler_params=pltpu.CompilerParams(
            dimension_semantics=("parallel",),
            # Headroom for tb up to ~1024 even under v5e's 16 MiB scoped default,
            # while staying within v7x's 64 MiB physical VMEM.
            vmem_limit_bytes=32 * 1024 * 1024,
        ),
    )(x, eps, *args)

    xhat = xhat[:B]
    mean = ml[:B, :half]
    logvar = ml[:B, half:]
    return xhat, mean, logvar


def init_params(key, input_dim=768, hidden_dim=400, latent_dim=2):
    """Deterministic init mimicking PyTorch's default U(-1/sqrt(fan_in), +...)."""
    def linear(k, fan_in, fan_out):
        kw, kb = jax.random.split(k)
        bound = 1.0 / jnp.sqrt(fan_in)
        w = jax.random.uniform(kw, (fan_in, fan_out), jnp.float32, -bound, bound)
        b = jax.random.uniform(kb, (1, fan_out), jnp.float32, -bound, bound)
        return w, b

    keys = jax.random.split(key, 8)
    p = {}
    p["w_e1"], p["b_e1"] = linear(keys[0], input_dim, hidden_dim)
    p["w_e2"], p["b_e2"] = linear(keys[1], hidden_dim, latent_dim)
    p["w_mu"], p["b_mu"] = linear(keys[2], latent_dim, 2)
    p["w_lv"], p["b_lv"] = linear(keys[3], latent_dim, 2)
    p["w_d1"], p["b_d1"] = linear(keys[4], 2, latent_dim)
    p["w_d2"], p["b_d2"] = linear(keys[5], latent_dim, hidden_dim)
    p["w_d3"], p["b_d3"] = linear(keys[6], hidden_dim, input_dim)
    return p


if __name__ == "__main__":
    INPUT_DIM, HIDDEN_DIM, LATENT_DIM = 768, 400, 2
    B, TB = 512, 256   # 2 parallel grid steps -> both TensorCores on v7x

    root = jax.random.PRNGKey(0)
    k_params, k_x, k_eps = jax.random.split(root, 3)

    params = init_params(k_params, INPUT_DIM, HIDDEN_DIM, LATENT_DIM)
    kparams = prepare_params(params)

    x = jax.random.uniform(k_x, (B, INPUT_DIM), jnp.float32)   # e.g. normalized pixels
    eps = jax.random.normal(k_eps, (B, 2), jnp.float32)        # reparam noise

    x_hat, mean, logvar = vae_forward(x, eps, kparams, tb=TB)
    jax.block_until_ready((x_hat, mean, logvar))

    # pure-JAX f32 reference (original, unpadded, un-quantized weights)
    def ref(x, eps, p):
        lrelu = lambda v: jnp.where(v > 0, v, 0.2 * v)
        h = lrelu(x @ p["w_e1"] + p["b_e1"])
        e = lrelu(h @ p["w_e2"] + p["b_e2"])
        mu = e @ p["w_mu"] + p["b_mu"]
        lv = e @ p["w_lv"] + p["b_lv"]
        z = mu + lv * eps
        d = lrelu(z @ p["w_d1"] + p["b_d1"])
        d = lrelu(d @ p["w_d2"] + p["b_d2"])
        return jax.nn.sigmoid(d @ p["w_d3"] + p["b_d3"]), mu, lv

    r_xhat, r_mu, r_lv = ref(x, eps, params)
    # Tolerances account for bf16 weights/activations on the big layers, the bf16
    # x_hat writeback, and the approximate reciprocal in the sigmoid.
    assert jnp.allclose(x_hat.astype(jnp.float32), r_xhat, atol=3e-2), "x_hat mismatch"
    assert jnp.allclose(mean, r_mu, atol=2e-2), "mean mismatch"
    assert jnp.allclose(logvar, r_lv, atol=2e-2), "logvar mismatch"

    print("KERNEL_OK")
</pallas_src>

<mosaic_0001>
module attributes {stable_mosaic.version = 11 : i64} {
  func.func @vae_kernel(%arg0: i32, %arg1: memref<256x768xf32, #tpu.memory_space<vmem>>, %arg2: memref<256x2xf32, #tpu.memory_space<vmem>>, %arg3: memref<768x512xbf16, #tpu.memory_space<vmem>>, %arg4: memref<1x512xf32, #tpu.memory_space<vmem>>, %arg5: memref<512x2xbf16, #tpu.memory_space<vmem>>, %arg6: memref<1x2xf32, #tpu.memory_space<vmem>>, %arg7: memref<2x4xf32, #tpu.memory_space<vmem>>, %arg8: memref<1x4xf32, #tpu.memory_space<vmem>>, %arg9: memref<2x2xf32, #tpu.memory_space<vmem>>, %arg10: memref<1x2xf32, #tpu.memory_space<vmem>>, %arg11: memref<2x512xf32, #tpu.memory_space<vmem>>, %arg12: memref<1x512xf32, #tpu.memory_space<vmem>>, %arg13: memref<512x768xbf16, #tpu.memory_space<vmem>>, %arg14: memref<1x768xf32, #tpu.memory_space<vmem>>, %arg15: memref<256x768xbf16, #tpu.memory_space<vmem>>, %arg16: memref<256x4xf32, #tpu.memory_space<vmem>>) attributes {dimension_semantics = [#tpu.dimension_semantics<parallel>], iteration_bounds = array<i64: 2>, scalar_prefetch = 0 : i64, scratch_operands = 0 : i64, tpu.core_type = #tpu.core_type<tc>, window_params = [{transform_indices = @transform_0, window_bounds = array<i64: 256, 768>}, {transform_indices = @transform_1, window_bounds = array<i64: 256, 2>}, {pipeline_mode = #tpu.pipeline_mode<synchronous>, transform_indices = @transform_2, window_bounds = array<i64: 768, 512>}, {pipeline_mode = #tpu.pipeline_mode<synchronous>, transform_indices = @transform_3, window_bounds = array<i64: 1, 512>}, {pipeline_mode = #tpu.pipeline_mode<synchronous>, transform_indices = @transform_4, window_bounds = array<i64: 512, 2>}, {pipeline_mode = #tpu.pipeline_mode<synchronous>, transform_indices = @transform_5, window_bounds = array<i64: 1, 2>}, {pipeline_mode = #tpu.pipeline_mode<synchronous>, transform_indices = @transform_6, window_bounds = array<i64: 2, 4>}, {pipeline_mode = #tpu.pipeline_mode<synchronous>, transform_indices = @transform_7, window_bounds = array<i64: 1, 4>}, {pipeline_mode = #tpu.pipeline_mode<synchronous>, transform_indices = @transform_8, window_bounds = array<i64: 2, 2>}, {pipeline_mode = #tpu.pipeline_mode<synchronous>, transform_indices = @transform_9, window_bounds = array<i64: 1, 2>}, {pipeline_mode = #tpu.pipeline_mode<synchronous>, transform_indices = @transform_10, window_bounds = array<i64: 2, 512>}, {pipeline_mode = #tpu.pipeline_mode<synchronous>, transform_indices = @transform_11, window_bounds = array<i64: 1, 512>}, {pipeline_mode = #tpu.pipeline_mode<synchronous>, transform_indices = @transform_12, window_bounds = array<i64: 512, 768>}, {pipeline_mode = #tpu.pipeline_mode<synchronous>, transform_indices = @transform_13, window_bounds = array<i64: 1, 768>}, {transform_indices = @transform_14, window_bounds = array<i64: 256, 768>}, {transform_indices = @transform_15, window_bounds = array<i64: 256, 4>}]} {
    %c0 = arith.constant 0 : index
    %c0_0 = arith.constant 0 : index
    %0 = vector.load %arg1[%c0, %c0_0] : memref<256x768xf32, #tpu.memory_space<vmem>>, vector<256x768xf32>
    %1 = arith.truncf %0 : vector<256x768xf32> to vector<256x768xbf16>
    %c0_1 = arith.constant 0 : index
    %c0_2 = arith.constant 0 : index
    %2 = vector.load %arg3[%c0_1, %c0_2] : memref<768x512xbf16, #tpu.memory_space<vmem>>, vector<768x512xbf16>
    %cst = arith.constant dense<0.000000e+00> : vector<256x512xf32>
    %3 = tpu.matmul %1, %2, %cst {dimension_numbers = #tpu.dot_dimension_numbers<[1], [0], [0], [1], [0, 0, 1, 1], [], []>} : vector<256x768xbf16>, vector<768x512xbf16>, vector<256x512xf32> -> vector<256x512xf32>
    %c0_3 = arith.constant 0 : index
    %c0_4 = arith.constant 0 : index
    %4 = vector.load %arg4[%c0_3, %c0_4] : memref<1x512xf32, #tpu.memory_space<vmem>>, vector<1x512xf32>
    %5 = vector.broadcast %4 : vector<1x512xf32> to vector<256x512xf32>
    %6 = arith.addf %3, %5 : vector<256x512xf32>
    %cst_5 = arith.constant 0.000000e+00 : f32
    %7 = vector.broadcast %cst_5 : f32 to vector<256x512xf32>
    %8 = arith.cmpf ogt, %6, %7 : vector<256x512xf32>
    %cst_6 = arith.constant 2.000000e-01 : f32
    %9 = vector.broadcast %cst_6 : f32 to vector<256x512xf32>
    %10 = arith.mulf %9, %6 : vector<256x512xf32>
    %11 = arith.select %8, %6, %10 : vector<256x512xi1>, vector<256x512xf32>
    %12 = arith.truncf %11 : vector<256x512xf32> to vector<256x512xbf16>
    %c0_7 = arith.constant 0 : index
    %c0_8 = arith.constant 0 : index
    %13 = vector.load %arg5[%c0_7, %c0_8] : memref<512x2xbf16, #tpu.memory_space<vmem>>, vector<512x2xbf16>
    %cst_9 = arith.constant dense<0.000000e+00> : vector<256x2xf32>
    %14 = tpu.matmul %12, %13, %cst_9 {dimension_numbers = #tpu.dot_dimension_numbers<[1], [0], [0], [1], [0, 0, 1, 1], [], []>} : vector<256x512xbf16>, vector<512x2xbf16>, vector<256x2xf32> -> vector<256x2xf32>
    %c0_10 = arith.constant 0 : index
    %c0_11 = arith.constant 0 : index
    %15 = vector.load %arg6[%c0_10, %c0_11] : memref<1x2xf32, #tpu.memory_space<vmem>>, vector<1x2xf32>
    %16 = vector.broadcast %15 : vector<1x2xf32> to vector<256x2xf32>
    %17 = arith.addf %14, %16 : vector<256x2xf32>
    %cst_12 = arith.constant 0.000000e+00 : f32
    %18 = vector.broadcast %cst_12 : f32 to vector<256x2xf32>
    %19 = arith.cmpf ogt, %17, %18 : vector<256x2xf32>
    %cst_13 = arith.constant 2.000000e-01 : f32
    %20 = vector.broadcast %cst_13 : f32 to vector<256x2xf32>
    %21 = arith.mulf %20, %17 : vector<256x2xf32>
    %22 = arith.select %19, %17, %21 : vector<256x2xi1>, vector<256x2xf32>
    %c0_14 = arith.constant 0 : index
    %c0_15 = arith.constant 0 : index
    %23 = vector.load %arg7[%c0_14, %c0_15] : memref<2x4xf32, #tpu.memory_space<vmem>>, vector<2x4xf32>
    %24 = vector.extract_strided_slice %22 {offsets = [0, 0], sizes = [256, 1], strides = [1, 1]} : vector<256x2xf32> to vector<256x1xf32>
    %25 = vector.extract_strided_slice %23 {offsets = [0, 0], sizes = [1, 4], strides = [1, 1]} : vector<2x4xf32> to vector<1x4xf32>
    %26 = vector.broadcast %24 : vector<256x1xf32> to vector<256x4xf32>
    %27 = vector.broadcast %25 : vector<1x4xf32> to vector<256x4xf32>
    %28 = arith.mulf %26, %27 : vector<256x4xf32>
    %29 = vector.extract_strided_slice %22 {offsets = [0, 1], sizes = [256, 1], strides = [1, 1]} : vector<256x2xf32> to vector<256x1xf32>
    %30 = vector.extract_strided_slice %23 {offsets = [1, 0], sizes = [1, 4], strides = [1, 1]} : vector<2x4xf32> to vector<1x4xf32>
    %31 = vector.broadcast %29 : vector<256x1xf32> to vector<256x4xf32>
    %32 = vector.broadcast %30 : vector<1x4xf32> to vector<256x4xf32>
    %33 = arith.mulf %31, %32 : vector<256x4xf32>
    %34 = arith.addf %28, %33 : vector<256x4xf32>
    %c0_16 = arith.constant 0 : index
    %c0_17 = arith.constant 0 : index
    %35 = vector.load %arg8[%c0_16, %c0_17] : memref<1x4xf32, #tpu.memory_space<vmem>>, vector<1x4xf32>
    %36 = vector.broadcast %35 : vector<1x4xf32> to vector<256x4xf32>
    %37 = arith.addf %34, %36 : vector<256x4xf32>
    %38 = vector.extract_strided_slice %37 {offsets = [0, 0], sizes = [256, 2], strides = [1, 1]} : vector<256x4xf32> to vector<256x2xf32>
    %39 = vector.extract_strided_slice %37 {offsets = [0, 2], sizes = [256, 2], strides = [1, 1]} : vector<256x4xf32> to vector<256x2xf32>
    %c0_18 = arith.constant 0 : index
    %c0_19 = arith.constant 0 : index
    %40 = vector.load %arg2[%c0_18, %c0_19] : memref<256x2xf32, #tpu.memory_space<vmem>>, vector<256x2xf32>
    %41 = arith.mulf %39, %40 : vector<256x2xf32>
    %42 = arith.addf %38, %41 : vector<256x2xf32>
    %c0_20 = arith.constant 0 : index
    %c0_21 = arith.constant 0 : index
    %43 = vector.load %arg9[%c0_20, %c0_21] : memref<2x2xf32, #tpu.memory_space<vmem>>, vector<2x2xf32>
    %44 = vector.extract_strided_slice %42 {offsets = [0, 0], sizes = [256, 1], strides = [1, 1]} : vector<256x2xf32> to vector<256x1xf32>
    %45 = vector.extract_strided_slice %43 {offsets = [0, 0], sizes = [1, 2], strides = [1, 1]} : vector<2x2xf32> to vector<1x2xf32>
    %46 = vector.broadcast %44 : vector<256x1xf32> to vector<256x2xf32>
    %47 = vector.broadcast %45 : vector<1x2xf32> to vector<256x2xf32>
    %48 = arith.mulf %46, %47 : vector<256x2xf32>
    %49 = vector.extract_strided_slice %42 {offsets = [0, 1], sizes = [256, 1], strides = [1, 1]} : vector<256x2xf32> to vector<256x1xf32>
    %50 = vector.extract_strided_slice %43 {offsets = [1, 0], sizes = [1, 2], strides = [1, 1]} : vector<2x2xf32> to vector<1x2xf32>
    %51 = vector.broadcast %49 : vector<256x1xf32> to vector<256x2xf32>
    %52 = vector.broadcast %50 : vector<1x2xf32> to vector<256x2xf32>
    %53 = arith.mulf %51, %52 : vector<256x2xf32>
    %54 = arith.addf %48, %53 : vector<256x2xf32>
    %c0_22 = arith.constant 0 : index
    %c0_23 = arith.constant 0 : index
    %55 = vector.load %arg10[%c0_22, %c0_23] : memref<1x2xf32, #tpu.memory_space<vmem>>, vector<1x2xf32>
    %56 = vector.broadcast %55 : vector<1x2xf32> to vector<256x2xf32>
    %57 = arith.addf %54, %56 : vector<256x2xf32>
    %cst_24 = arith.constant 0.000000e+00 : f32
    %58 = vector.broadcast %cst_24 : f32 to vector<256x2xf32>
    %59 = arith.cmpf ogt, %57, %58 : vector<256x2xf32>
    %cst_25 = arith.constant 2.000000e-01 : f32
    %60 = vector.broadcast %cst_25 : f32 to vector<256x2xf32>
    %61 = arith.mulf %60, %57 : vector<256x2xf32>
    %62 = arith.select %59, %57, %61 : vector<256x2xi1>, vector<256x2xf32>
    %c0_26 = arith.constant 0 : index
    %c0_27 = arith.constant 0 : index
    %63 = vector.load %arg11[%c0_26, %c0_27] : memref<2x512xf32, #tpu.memory_space<vmem>>, vector<2x512xf32>
    %64 = vector.extract_strided_slice %62 {offsets = [0, 0], sizes = [256, 1], strides = [1, 1]} : vector<256x2xf32> to vector<256x1xf32>
    %65 = vector.extract_strided_slice %63 {offsets = [0, 0], sizes = [1, 512], strides = [1, 1]} : vector<2x512xf32> to vector<1x512xf32>
    %66 = vector.broadcast %64 : vector<256x1xf32> to vector<256x512xf32>
    %67 = vector.broadcast %65 : vector<1x512xf32> to vector<256x512xf32>
    %68 = arith.mulf %66, %67 : vector<256x512xf32>
    %69 = vector.extract_strided_slice %62 {offsets = [0, 1], sizes = [256, 1], strides = [1, 1]} : vector<256x2xf32> to vector<256x1xf32>
    %70 = vector.extract_strided_slice %63 {offsets = [1, 0], sizes = [1, 512], strides = [1, 1]} : vector<2x512xf32> to vector<1x512xf32>
    %71 = vector.broadcast %69 : vector<256x1xf32> to vector<256x512xf32>
    %72 = vector.broadcast %70 : vector<1x512xf32> to vector<256x512xf32>
    %73 = arith.mulf %71, %72 : vector<256x512xf32>
    %74 = arith.addf %68, %73 : vector<256x512xf32>
    %c0_28 = arith.constant 0 : index
    %c0_29 = arith.constant 0 : index
    %75 = vector.load %arg12[%c0_28, %c0_29] : memref<1x512xf32, #tpu.memory_space<vmem>>, vector<1x512xf32>
    %76 = vector.broadcast %75 : vector<1x512xf32> to vector<256x512xf32>
    %77 = arith.addf %74, %76 : vector<256x512xf32>
    %cst_30 = arith.constant 0.000000e+00 : f32
    %78 = vector.broadcast %cst_30 : f32 to vector<256x512xf32>
    %79 = arith.cmpf ogt, %77, %78 : vector<256x512xf32>
    %cst_31 = arith.constant 2.000000e-01 : f32
    %80 = vector.broadcast %cst_31 : f32 to vector<256x512xf32>
    %81 = arith.mulf %80, %77 : vector<256x512xf32>
    %82 = arith.select %79, %77, %81 : vector<256x512xi1>, vector<256x512xf32>
    %83 = arith.truncf %82 : vector<256x512xf32> to vector<256x512xbf16>
    %c0_32 = arith.constant 0 : index
    %c0_33 = arith.constant 0 : index
    %84 = vector.load %arg13[%c0_32, %c0_33] : memref<512x768xbf16, #tpu.memory_space<vmem>>, vector<512x768xbf16>
    %cst_34 = arith.constant dense<0.000000e+00> : vector<256x768xf32>
    %85 = tpu.matmul %83, %84, %cst_34 {dimension_numbers = #tpu.dot_dimension_numbers<[1], [0], [0], [1], [0, 0, 1, 1], [], []>} : vector<256x512xbf16>, vector<512x768xbf16>, vector<256x768xf32> -> vector<256x768xf32>
    %c0_35 = arith.constant 0 : index
    %c0_36 = arith.constant 0 : index
    %86 = vector.load %arg14[%c0_35, %c0_36] : memref<1x768xf32, #tpu.memory_space<vmem>>, vector<1x768xf32>
    %87 = vector.broadcast %86 : vector<1x768xf32> to vector<256x768xf32>
    %88 = arith.addf %85, %87 : vector<256x768xf32>
    %cst_37 = arith.constant 0.000000e+00 : f32
    %89 = vector.broadcast %cst_37 : f32 to vector<256x768xf32>
    %90 = arith.subf %89, %88 : vector<256x768xf32>
    %91 = math.exp %90 : vector<256x768xf32>
    %cst_38 = arith.constant 1.000000e+00 : f32
    %92 = vector.broadcast %cst_38 : f32 to vector<256x768xf32>
    %93 = arith.addf %92, %91 : vector<256x768xf32>
    %94 = tpu.reciprocal %93 {approx = true} : vector<256x768xf32> -> vector<256x768xf32>
    %95 = arith.truncf %94 : vector<256x768xf32> to vector<256x768xbf16>
    %c0_39 = arith.constant 0 : index
    %c0_40 = arith.constant 0 : index
    %96 = vector.load %arg15[%c0_39, %c0_40] : memref<256x768xbf16, #tpu.memory_space<vmem>>, vector<256x768xbf16>
    tpu.vector_store %arg15[%c0_39, %c0_40], %95 {strides = array<i32>} : memref<256x768xbf16, #tpu.memory_space<vmem>>, vector<256x768xbf16>,
    %c0_41 = arith.constant 0 : index
    %c0_42 = arith.constant 0 : index
    %97 = vector.load %arg16[%c0_41, %c0_42] : memref<256x4xf32, #tpu.memory_space<vmem>>, vector<256x4xf32>
    tpu.vector_store %arg16[%c0_41, %c0_42], %37 {strides = array<i32>} : memref<256x4xf32, #tpu.memory_space<vmem>>, vector<256x4xf32>,
    return
  }
  func.func @transform_0(%arg0: i32) -> (i32, i32) {
    %c0_i32 = arith.constant 0 : i32
    %c0_i32_0 = arith.constant 0 : i32
    return %arg0, %c0_i32 : i32, i32
  }
  func.func @transform_1(%arg0: i32) -> (i32, i32) {
    %c0_i32 = arith.constant 0 : i32
    %c0_i32_0 = arith.constant 0 : i32
    return %arg0, %c0_i32 : i32, i32
  }
  func.func @transform_2(%arg0: i32) -> (i32, i32) {
    %c0_i32 = arith.constant 0 : i32
    %c0_i32_0 = arith.constant 0 : i32
    %c0_i32_1 = arith.constant 0 : i32
    return %c0_i32, %c0_i32_0 : i32, i32
  }
  func.func @transform_3(%arg0: i32) -> (i32, i32) {
    %c0_i32 = arith.constant 0 : i32
    %c0_i32_0 = arith.constant 0 : i32
    %c0_i32_1 = arith.constant 0 : i32
    return %c0_i32, %c0_i32_0 : i32, i32
  }
  func.func @transform_4(%arg0: i32) -> (i32, i32) {
    %c0_i32 = arith.constant 0 : i32
    %c0_i32_0 = arith.constant 0 : i32
    %c0_i32_1 = arith.constant 0 : i32
    return %c0_i32, %c0_i32_0 : i32, i32
  }
  func.func @transform_5(%arg0: i32) -> (i32, i32) {
    %c0_i32 = arith.constant 0 : i32
    %c0_i32_0 = arith.constant 0 : i32
    %c0_i32_1 = arith.constant 0 : i32
    return %c0_i32, %c0_i32_0 : i32, i32
  }
  func.func @transform_6(%arg0: i32) -> (i32, i32) {
    %c0_i32 = arith.constant 0 : i32
    %c0_i32_0 = arith.constant 0 : i32
    %c0_i32_1 = arith.constant 0 : i32
    return %c0_i32, %c0_i32_0 : i32, i32
  }
  func.func @transform_7(%arg0: i32) -> (i32, i32) {
    %c0_i32 = arith.constant 0 : i32
    %c0_i32_0 = arith.constant 0 : i32
    %c0_i32_1 = arith.constant 0 : i32
    return %c0_i32, %c0_i32_0 : i32, i32
  }
  func.func @transform_8(%arg0: i32) -> (i32, i32) {
    %c0_i32 = arith.constant 0 : i32
    %c0_i32_0 = arith.constant 0 : i32
    %c0_i32_1 = arith.constant 0 : i32
    return %c0_i32, %c0_i32_0 : i32, i32
  }
  func.func @transform_9(%arg0: i32) -> (i32, i32) {
    %c0_i32 = arith.constant 0 : i32
    %c0_i32_0 = arith.constant 0 : i32
    %c0_i32_1 = arith.constant 0 : i32
    return %c0_i32, %c0_i32_0 : i32, i32
  }
  func.func @transform_10(%arg0: i32) -> (i32, i32) {
    %c0_i32 = arith.constant 0 : i32
    %c0_i32_0 = arith.constant 0 : i32
    %c0_i32_1 = arith.constant 0 : i32
    return %c0_i32, %c0_i32_0 : i32, i32
  }
  func.func @transform_11(%arg0: i32) -> (i32, i32) {
    %c0_i32 = arith.constant 0 : i32
    %c0_i32_0 = arith.constant 0 : i32
    %c0_i32_1 = arith.constant 0 : i32
    return %c0_i32, %c0_i32_0 : i32, i32
  }
  func.func @transform_12(%arg0: i32) -> (i32, i32) {
    %c0_i32 = arith.constant 0 : i32
    %c0_i32_0 = arith.constant 0 : i32
    %c0_i32_1 = arith.constant 0 : i32
    return %c0_i32, %c0_i32_0 : i32, i32
  }
  func.func @transform_13(%arg0: i32) -> (i32, i32) {
    %c0_i32 = arith.constant 0 : i32
    %c0_i32_0 = arith.constant 0 : i32
    %c0_i32_1 = arith.constant 0 : i32
    return %c0_i32, %c0_i32_0 : i32, i32
  }
  func.func @transform_14(%arg0: i32) -> (i32, i32) {
    %c0_i32 = arith.constant 0 : i32
    %c0_i32_0 = arith.constant 0 : i32
    return %arg0, %c0_i32 : i32, i32
  }
  func.func @transform_15(%arg0: i32) -> (i32, i32) {
    %c0_i32 = arith.constant 0 : i32
    %c0_i32_0 = arith.constant 0 : i32
    return %arg0, %c0_i32 : i32, i32
  }
}

</mosaic_0001>

<bundles_post_ra>
// kernel: vae_forward.1
= control target key start
LH: loop header
LB: loop body
LE: loop exit
PB: predicated region body
PF: predicated region fallthrough
CT: control target
= control target key end

     0   :  { %s19758_s0 = inlined_call_operand.hbm [shape: f32[512,768], index: 0, kind: input, shape index: {}]   ;;  %s19759_s1 = inlined_call_operand.vmem [shape: f32[512,2], index: 1, kind: input, shape index: {}]   ;;  %s19760_s2 = inlined_call_operand.hbm [shape: bf16[768,512], index: 2, kind: input, shape index: {}]   ;;  %s19761_s3 = inlined_call_operand.hbm [shape: f32[1,512], index: 3, kind: input, shape index: {}]   ;;  %s19762_s4 = inlined_call_operand.vmem [shape: bf16[512,2], index: 4, kind: input, shape index: {}]   ;;  %s19763_s5 = inlined_call_operand.hbm [shape: f32[1,2], index: 5, kind: input, shape index: {}]   ;;  %s19764_s6 = inlined_call_operand.hbm [shape: f32[2,4], index: 6, kind: input, shape index: {}]   ;;  %s19765_s7 = inlined_call_operand.hbm [shape: f32[1,4], index: 7, kind: input, shape index: {}]   ;;  %s19766_s8 = inlined_call_operand.hbm [shape: f32[2,2], index: 8, kind: input, shape index: {}]   ;;  %s19767_s9 = inlined_call_operand.hbm [shape: f32[1,2], index: 9, kind: input, shape index: {}]   ;;  %s19768_s10 = inlined_call_operand.hbm [shape: f32[2,512], index: 10, kind: input, shape index: {}]   ;;  %s19769_s11 = inlined_call_operand.hbm [shape: f32[1,512], index: 11, kind: input, shape index: {}]   ;;  %s19770_s12 = inlined_call_operand.hbm [shape: bf16[512,768], index: 12, kind: input, shape index: {}]   ;;  %s19771_s13 = inlined_call_operand.hbm [shape: f32[1,768], index: 13, kind: input, shape index: {}]   ;;  %s19772_s14 = inlined_call_operand.hbm [shape: bf16[512,768], index: 14, kind: output, shape index: {0}]   ;;  %s19773_s15 = inlined_call_operand.vmem [shape: f32[512,4], index: 15, kind: output, shape index: {1}]  }
   0x1   :  { %19890 = sst [smem:[#allocation99_spill]] %s19758_s0 }
   0x2   :  { %19891 = sst [smem:[#allocation100_spill]] %s19759_s1 }
   0x3   :  { %19892 = sst [smem:[#allocation101_spill]] %s19760_s2 }
   0x4   :  { %19893 = sst [smem:[#allocation102_spill]] %s19761_s3 }
   0x5   :  { %19894 = sst [smem:[#allocation103_spill]] %s19762_s4 }
   0x6   :  { %19895 = sst [smem:[#allocation104_spill]] %s19763_s5 }
   0x7   :  { %19896 = sst [smem:[#allocation105_spill]] %s19772_s14 }
   0x8   :  { %19897 = sst [smem:[#allocation106_spill]] %s19773_s15 }
   0x9   :  { %21 = vsyncpa [#allocation3], 0 }
   0xa   :  { %23 = vsyncpa [#allocation3 + $0x1], 0 }
   0xb   :  { %24 = vsyncpa [#allocation6], 0 }
   0xc   :  { %25 = vsyncpa [#allocation9], 0 }
   0xd   :  { %26 = vsyncpa [#allocation12], 0 }
   0xe   :  { %27 = vsyncpa [#allocation15], 0 }
   0xf   :  { %28 = vsyncpa [#allocation18], 0 }
  0x10   :  { %29 = vsyncpa [#allocation21], 0 }
  0x11   :  { %30 = vsyncpa [#allocation4], 0 }
  0x12   :  { %32 = vsyncpa [#allocation4 + $0x1], 0  ;;  %s15214_s18 = smov 0   ;;  %s15216_s19 = smov 0  }
  0x13   :  { %s15218_s20 = smov 0   ;;  %s15220_s21 = smov 0  }
  0x14 LB: > { %s15109_s22 = smov [#allocation5]   ;;  %s15235_s24 = sadd.s32 4294967295, %s15107_s21   ;;  %s15107_s21 = sphi %s15220_s21, %s20285_s21   ;;  %s15103_s20 = sphi %s15218_s20, %s20284_s20   ;;  %s15099_s19 = sphi %s15216_s19, %s20283_s19   ;;  %s15095_s18 = sphi %s15214_s18, %s20282_s18  }
  0x15   : > { %s411_s23 = sshll.u32 %s15109_s22, 4  ;;  %19898 = sst [smem:[#allocation31_spill]] %s15235_s24  ;;  %s15240_s23 = int_to_ptr.vmem [resolvable:$true] %s411_s23 }
  0x16   : > { %p11347_p0 = scmp.ge.s32.totalorder %s15107_s21, 1  ;;  %p19781_p1 = scmp.eq.s32.totalorder %s15235_s24, 0 }
  0x17   : > { %p399_p2 = scmp.lt.s32.totalorder %s15107_s21, 3  ;;  %s15110_s26 = smov [#allocation8]  }
  0x18   : > { %s439_s27 = sshll.u32 %s15110_s26, 4  ;;  %s15111_s29 = smov [#allocation11]   ;;  %s15255_s27 = int_to_ptr.vmem [resolvable:$true] %s439_s27 }
  0x19   : > { %p15242_p3 = pnand %p11347_p0, %p399_p2  ;;  %s461_s30 = sshll.u32 %s15111_s29, 4  ;;  %s15257_s30 = int_to_ptr.vmem [resolvable:$true] %s461_s30 }
  0x1a   : > { %s19902_s2 = sld [smem:[#allocation101_spill]] }
  0x1b   : > { %s19899_s25 = scalar_select %p15242_p3, 1, 0 }
  0x1c   : > { %p13040_p5 = pneg %p15242_p3 }
  0x1d   : > { %19900 = sst [smem:[#allocation32_spill]] %s19899_s25 }
  0x1e   : > { %p15251_p6 = pnand %p13040_p5, %p19781_p1 }
  0x20   : > { %s14679_s22 = scalar_lea.hbm %s19902_s2, 24576  ;;  %p15267_p8 = pneg %p15251_p6 }
  0x21   : > { %p14680_p7 = scmp.ne.s32.totalorder %s19902_s2, %s14679_s22  ;;  %p14686_p11 = scmp.lt.u32.totalorder %s14679_s22, %s19902_s2 }
  0x23   : > { %p14682_p9 = pnand %p15267_p8, %p14680_p7 }
  0x25   : > { %p14683_p10 = pneg %p14682_p9 }
  0x27   : > { %p14688_p12 = pnand %p14686_p11, %p14683_p10 }
  0x29   : > { %14691 = shalt.err (!%p14688_p12)
}
  0x2a   : > { %s14692_s14 = scalar_lea.vmem %s15240_s23, 24576  ;;  %p14700_p5 = scmp.lt.s32.totalorder %s15240_s23, %s15240_s23 }
  0x2b   : > { %p14693_p13 = scmp.ne.s32.totalorder %s15240_s23, %s14692_s14  ;;  %p14701_p4 = scmp.lt.s32.totalorder %s14692_s14, %s14692_s14 }
  0x2d   : > { %p14695_p0 = pnand %p14693_p13, %p15267_p8  ;;  %p14702_p7 = por %p14701_p4, %p14700_p5 }
  0x2f   : > { %p14696_p2 = pneg %p14695_p0 }
  0x31   : > { %p14703_p9 = pnand %p14702_p7, %p14696_p2 }
  0x33   : > { %14706 = shalt.err (!%p14703_p9)
}
  0x34   : > { %s15112_s15 = smov 256   ;;  %s15113_s1 = smov 16  }
  0x35   : > { %13043 = dma.hbm_to_vmem [thread:$0]  (!%p15251_p6), %s19902_s2, 24576, %s15240_s23, [#allocation6], %s15112_s15, %s15112_s15, %s15113_s1  }
  0x36   : > { %s19904_s5 = sld [smem:[#allocation104_spill]] }
  0x3c   : > { %s14707_s4 = scalar_lea.hbm %s19904_s5, 16 }
  0x3d   : > { %p14708_p4 = scmp.ne.s32.totalorder %s19904_s5, %s14707_s4  ;;  %p14714_p12 = scmp.lt.u32.totalorder %s14707_s4, %s19904_s5 }
  0x3f   : > { %p14710_p10 = pnand %p14708_p4, %p15267_p8 }
  0x41   : > { %p14711_p11 = pneg %p14710_p10 }
  0x43   : > { %p14716_p13 = pnand %p14714_p12, %p14711_p11 }
  0x45   : > { %14719 = shalt.err (!%p14716_p13)
}
  0x46   : > { %s14720_s23 = scalar_lea.vmem %s15255_s27, 16  ;;  %s14727_s0 = scalar_lea.vmem %s15255_s27, 32 }
  0x47   : > { %p14721_p0 = scmp.ne.s32.totalorder %s15255_s27, %s14720_s23  ;;  %p14728_p7 = scmp.lt.s32.totalorder %s15255_s27, %s15255_s27 }
  0x48   : > { %p14729_p9 = scmp.lt.s32.totalorder %s14727_s0, %s14720_s23 }
  0x49   : > { %p14723_p2 = pnand %p14721_p0, %p15267_p8 }
  0x4a   : > { %p14730_p4 = por %p14729_p9, %p14728_p7 }
  0x4b   : > { %p14724_p5 = pneg %p14723_p2 }
  0x4d   : > { %p14731_p10 = pnand %p14730_p4, %p14724_p5 }
  0x4f   : > { %14734 = shalt.err (!%p14731_p10)
}
  0x50   : > { %13049 = dma.hbm_to_vmem [thread:$0]  (!%p15251_p6), %s19904_s5, 16, %s15255_s27, [#allocation9]  }
  0x51   : > { %s14735_s1 = scalar_lea.hbm %s19765_s7, 16 }
  0x52   : > { %p14736_p11 = scmp.ne.s32.totalorder %s19765_s7, %s14735_s1  ;;  %p14742_p0 = scmp.lt.u32.totalorder %s14735_s1, %s19765_s7 }
  0x54   : > { %p14738_p12 = pnand %p14736_p11, %p15267_p8 }
  0x56   : > { %p14739_p13 = pneg %p14738_p12 }
  0x58   : > { %p14744_p2 = pnand %p14742_p0, %p14739_p13 }
  0x5a   : > { %14747 = shalt.err (!%p14744_p2)
}
  0x5b   : > { %s14748_s27 = scalar_lea.vmem %s15257_s30, 16  ;;  %s14755_s14 = scalar_lea.vmem %s15257_s30, 32 }
  0x5c   : > { %p14749_p5 = scmp.ne.s32.totalorder %s15257_s30, %s14748_s27  ;;  %p14756_p4 = scmp.lt.s32.totalorder %s15257_s30, %s15257_s30 }
  0x5d   : > { %p14757_p10 = scmp.lt.s32.totalorder %s14755_s14, %s14748_s27 }
  0x5e   : > { %p14751_p7 = pnand %p14749_p5, %p15267_p8 }
  0x5f   : > { %p14758_p11 = por %p14757_p10, %p14756_p4 }
  0x60   : > { %p14752_p9 = pneg %p14751_p7 }
  0x62   : > { %p14759_p12 = pnand %p14758_p11, %p14752_p9 }
  0x64   : > { %14762 = shalt.err (!%p14759_p12)
}
  0x65   : > { %13055 = dma.hbm_to_vmem [thread:$0]  (!%p15251_p6), %s19765_s7, 16, %s15257_s30, [#allocation12]  }
  0x66   : > { %s15114_s4 = smov [#allocation14]   ;;  %s15115_s25 = smov [#allocation17]  }
  0x67   : > { %s483_s24 = sshll.u32 %s15114_s4, 4  ;;  %s505_s15 = sshll.u32 %s15115_s25, 4  ;;  %s484_s24 = int_to_ptr.vmem [resolvable:$true] %s483_s24  ;;  %s506_s15 = int_to_ptr.vmem [resolvable:$true] %s505_s15 }
  0x68   : > { %s14763_s17 = scalar_lea.hbm %s19767_s9, 16 }
  0x69   : > { %p14764_p13 = scmp.ne.s32.totalorder %s19767_s9, %s14763_s17  ;;  %p14770_p5 = scmp.lt.u32.totalorder %s14763_s17, %s19767_s9 }
  0x6b   : > { %p14766_p0 = pnand %p14764_p13, %p15267_p8 }
  0x6d   : > { %p14767_p2 = pneg %p14766_p0 }
  0x6f   : > { %p14772_p7 = pnand %p14770_p5, %p14767_p2 }
  0x71   : > { %14775 = shalt.err (!%p14772_p7)
}
  0x72   : > { %s14776_s30 = scalar_lea.vmem %s484_s24, 16  ;;  %s14783_s23 = scalar_lea.vmem %s484_s24, 32 }
  0x73   : > { %p14777_p9 = scmp.ne.s32.totalorder %s484_s24, %s14776_s30  ;;  %p14784_p11 = scmp.lt.s32.totalorder %s484_s24, %s484_s24 }
  0x74   : > { %p14785_p12 = scmp.lt.s32.totalorder %s14783_s23, %s14776_s30 }
  0x75   : > { %p14779_p4 = pnand %p14777_p9, %p15267_p8 }
  0x76   : > { %p14786_p1 = por %p14785_p12, %p14784_p11 }
  0x77   : > { %p14780_p10 = pneg %p14779_p4 }
  0x79   : > { %p14787_p3 = pnand %p14786_p1, %p14780_p10 }
  0x7b   : > { %14790 = shalt.err (!%p14787_p3)
}
  0x7c   : > { %13061 = dma.hbm_to_vmem [thread:$0]  (!%p15251_p6), %s19767_s9, 16, %s484_s24, [#allocation15]  }
  0x7d   : > { %s14791_s16 = scalar_lea.hbm %s19769_s11, 64 }
  0x7e   : > { %p14792_p13 = scmp.ne.s32.totalorder %s19769_s11, %s14791_s16  ;;  %p14798_p3 = scmp.lt.u32.totalorder %s14791_s16, %s19769_s11 }
  0x80   : > { %p14794_p0 = pnand %p14792_p13, %p15267_p8 }
  0x82   : > { %p14795_p1 = pneg %p14794_p0 }
  0x84   : > { %p14800_p2 = pnand %p14798_p3, %p14795_p1 }
  0x86   : > { %14803 = shalt.err (!%p14800_p2)
}
  0x87   : > { %s14804_s14 = scalar_lea.vmem %s506_s15, 64  ;;  %p14812_p4 = scmp.lt.s32.totalorder %s506_s15, %s506_s15 }
  0x88   : > { %p14805_p5 = scmp.ne.s32.totalorder %s506_s15, %s14804_s14  ;;  %p14813_p10 = scmp.lt.s32.totalorder %s14804_s14, %s14804_s14 }
  0x8a   : > { %p14807_p7 = pnand %p14805_p5, %p15267_p8  ;;  %p14814_p11 = por %p14813_p10, %p14812_p4 }
  0x8c   : > { %p14808_p9 = pneg %p14807_p7 }
  0x8e   : > { %p14815_p12 = pnand %p14814_p11, %p14808_p9 }
  0x90   : > { %14818 = shalt.err (!%p14815_p12)
}
  0x91   : > { %13067 = dma.hbm_to_vmem [thread:$0]  (!%p15251_p6), %s19769_s11, 64, %s506_s15, [#allocation18]  }
  0x92   : > { %s15116_s23 = smov [#allocation7]   ;;  %s15117_s4 = smov [#allocation10]  }
  0x93   : > { %s425_s0 = sshll.u32 %s15116_s23, 4  ;;  %s450_s25 = sshll.u32 %s15117_s4, 4  ;;  %s426_s0 = int_to_ptr.vmem [resolvable:$true] %s425_s0  ;;  %s451_s25 = int_to_ptr.vmem [resolvable:$true] %s450_s25 }
  0x94   : > { %s19905_s3 = sld [smem:[#allocation102_spill]] }
  0x9a   : > { %s14819_s17 = scalar_lea.hbm %s19905_s3, 64 }
  0x9b   : > { %p14820_p13 = scmp.ne.s32.totalorder %s19905_s3, %s14819_s17  ;;  %p14826_p3 = scmp.lt.u32.totalorder %s14819_s17, %s19905_s3 }
  0x9d   : > { %p14822_p0 = pnand %p14820_p13, %p15267_p8 }
  0x9f   : > { %p14823_p1 = pneg %p14822_p0 }
  0xa1   : > { %p14828_p2 = pnand %p14826_p3, %p14823_p1 }
  0xa3   : > { %14831 = shalt.err (!%p14828_p2)
}
  0xa4   : > { %s14832_s15 = scalar_lea.vmem %s426_s0, 64  ;;  %p14840_p4 = scmp.lt.s32.totalorder %s426_s0, %s426_s0 }
  0xa5   : > { %p14833_p5 = scmp.ne.s32.totalorder %s426_s0, %s14832_s15  ;;  %p14841_p10 = scmp.lt.s32.totalorder %s14832_s15, %s14832_s15 }
  0xa7   : > { %p14835_p7 = pnand %p14833_p5, %p15267_p8  ;;  %p14842_p11 = por %p14841_p10, %p14840_p4 }
  0xa9   : > { %p14836_p9 = pneg %p14835_p7 }
  0xab   : > { %p14843_p12 = pnand %p14842_p11, %p14836_p9 }
  0xad   : > { %14846 = shalt.err (!%p14843_p12)
}
  0xae   : > { %13046 = dma.hbm_to_vmem [thread:$0]  (!%p15251_p6), %s19905_s3, 64, %s426_s0, [#allocation6]  }
  0xaf   : > { %s14847_s1 = scalar_lea.hbm %s19764_s6, 32 }
  0xb0   : > { %p14848_p13 = scmp.ne.s32.totalorder %s19764_s6, %s14847_s1  ;;  %p14854_p3 = scmp.lt.u32.totalorder %s14847_s1, %s19764_s6 }
  0xb2   : > { %p14850_p0 = pnand %p14848_p13, %p15267_p8 }
  0xb4   : > { %p14851_p1 = pneg %p14850_p0 }
  0xb6   : > { %p14856_p2 = pnand %p14854_p3, %p14851_p1 }
  0xb8   : > { %14859 = shalt.err (!%p14856_p2)
}
  0xb9   : > { %s14860_s27 = scalar_lea.vmem %s451_s25, 32  ;;  %p14868_p4 = scmp.lt.s32.totalorder %s451_s25, %s451_s25 }
  0xba   : > { %p14861_p5 = scmp.ne.s32.totalorder %s451_s25, %s14860_s27  ;;  %p14869_p10 = scmp.lt.s32.totalorder %s14860_s27, %s14860_s27 }
  0xbc   : > { %p14863_p7 = pnand %p14861_p5, %p15267_p8  ;;  %p14870_p11 = por %p14869_p10, %p14868_p4 }
  0xbe   : > { %p14864_p9 = pneg %p14863_p7 }
  0xc0   : > { %p14871_p12 = pnand %p14870_p11, %p14864_p9 }
  0xc2   : > { %14874 = shalt.err (!%p14871_p12)
}
  0xc3   : > { %13052 = dma.hbm_to_vmem [thread:$0]  (!%p15251_p6), %s19764_s6, 32, %s451_s25, [#allocation9]  }
  0xc4   : > { %s15118_s15 = smov [#allocation13]   ;;  %s15119_s30 = smov [#allocation16]  }
  0xc5   : > { %s472_s24 = sshll.u32 %s15118_s15, 4  ;;  %s494_s23 = sshll.u32 %s15119_s30, 4  ;;  %s473_s24 = int_to_ptr.vmem [resolvable:$true] %s472_s24  ;;  %s495_s23 = int_to_ptr.vmem [resolvable:$true] %s494_s23 }
  0xc6   : > { %s14875_s16 = scalar_lea.hbm %s19766_s8, 32 }
  0xc7   : > { %p14876_p13 = scmp.ne.s32.totalorder %s19766_s8, %s14875_s16  ;;  %p14882_p3 = scmp.lt.u32.totalorder %s14875_s16, %s19766_s8 }
  0xc9   : > { %p14878_p0 = pnand %p14876_p13, %p15267_p8 }
  0xcb   : > { %p14879_p1 = pneg %p14878_p0 }
  0xcd   : > { %p14884_p2 = pnand %p14882_p3, %p14879_p1 }
  0xcf   : > { %14887 = shalt.err (!%p14884_p2)
}
  0xd0   : > { %s14888_s25 = scalar_lea.vmem %s473_s24, 32  ;;  %p14896_p4 = scmp.lt.s32.totalorder %s473_s24, %s473_s24 }
  0xd1   : > { %p14889_p5 = scmp.ne.s32.totalorder %s473_s24, %s14888_s25  ;;  %p14897_p10 = scmp.lt.s32.totalorder %s14888_s25, %s14888_s25 }
  0xd3   : > { %p14891_p7 = pnand %p14889_p5, %p15267_p8  ;;  %p14898_p11 = por %p14897_p10, %p14896_p4 }
  0xd5   : > { %p14892_p9 = pneg %p14891_p7 }
  0xd7   : > { %p14899_p12 = pnand %p14898_p11, %p14892_p9 }
  0xd9   : > { %14902 = shalt.err (!%p14899_p12)
}
  0xda   : > { %13058 = dma.hbm_to_vmem [thread:$0]  (!%p15251_p6), %s19766_s8, 32, %s473_s24, [#allocation12]  }
  0xdb   : > { %s14903_s4 = scalar_lea.hbm %s19768_s10, 128 }
  0xdc   : > { %p14904_p13 = scmp.ne.s32.totalorder %s19768_s10, %s14903_s4  ;;  %p14910_p3 = scmp.lt.u32.totalorder %s14903_s4, %s19768_s10 }
  0xde   : > { %p14906_p0 = pnand %p14904_p13, %p15267_p8 }
  0xe0   : > { %p14907_p1 = pneg %p14906_p0 }
  0xe2   : > { %p14912_p2 = pnand %p14910_p3, %p14907_p1 }
  0xe4   : > { %14915 = shalt.err (!%p14912_p2)
}
  0xe5   : > { %s14916_s29 = scalar_lea.vmem %s495_s23, 128  ;;  %p14924_p4 = scmp.lt.s32.totalorder %s495_s23, %s495_s23 }
  0xe6   : > { %p14917_p5 = scmp.ne.s32.totalorder %s495_s23, %s14916_s29  ;;  %p14925_p10 = scmp.lt.s32.totalorder %s14916_s29, %s14916_s29 }
  0xe8   : > { %p14919_p7 = pnand %p14917_p5, %p15267_p8  ;;  %p14926_p11 = por %p14925_p10, %p14924_p4 }
  0xea   : > { %p14920_p9 = pneg %p14919_p7 }
  0xec   : > { %p14927_p12 = pnand %p14926_p11, %p14920_p9 }
  0xee   : > { %14930 = shalt.err (!%p14927_p12)
}
  0xef   : > { %13064 = dma.hbm_to_vmem [thread:$0]  (!%p15251_p6), %s19768_s10, 128, %s495_s23, [#allocation15]  }
  0xf0   : > { %s15120_s25 = smov [#allocation19]   ;;  %s14931_s30 = scalar_lea.hbm %s19770_s12, 24576 }
  0xf1   : > { %s515_s0 = sshll.u32 %s15120_s25, 4  ;;  %p14932_p13 = scmp.ne.s32.totalorder %s19770_s12, %s14931_s30  ;;  %s516_s0 = int_to_ptr.vmem [resolvable:$true] %s515_s0 }
  0xf2   : > { %p14938_p3 = scmp.lt.u32.totalorder %s14931_s30, %s19770_s12 }
  0xf3   : > { %p14934_p0 = pnand %p14932_p13, %p15267_p8 }
  0xf5   : > { %p14935_p1 = pneg %p14934_p0 }
  0xf7   : > { %p14940_p2 = pnand %p14938_p3, %p14935_p1 }
  0xf9   : > { %14943 = shalt.err (!%p14940_p2)
}
  0xfa   : > { %s14944_s23 = scalar_lea.vmem %s516_s0, 24576  ;;  %p14952_p4 = scmp.lt.s32.totalorder %s516_s0, %s516_s0 }
  0xfb   : > { %p14945_p5 = scmp.ne.s32.totalorder %s516_s0, %s14944_s23  ;;  %p14953_p10 = scmp.lt.s32.totalorder %s14944_s23, %s14944_s23 }
  0xfd   : > { %p14947_p7 = pnand %p14945_p5, %p15267_p8  ;;  %p14954_p11 = por %p14953_p10, %p14952_p4 }
  0xff   : > { %p14948_p9 = pneg %p14947_p7 }
 0x101   : > { %p14955_p12 = pnand %p14954_p11, %p14948_p9 }
 0x103   : > { %14958 = shalt.err (!%p14955_p12)
}
 0x104   : > { %s15121_s22 = smov 384   ;;  %s15122_s29 = smov 24  }
 0x105   : > { %13070 = dma.hbm_to_vmem [thread:$0]  (!%p15251_p6), %s19770_s12, 24576, %s516_s0, [#allocation18], %s15121_s22, %s15121_s22, %s15122_s29  }
 0x106   : > { %s15123_s25 = smov [#allocation20]   ;;  %s14959_s4 = scalar_lea.hbm %s19771_s13, 96 }
 0x107   : > { %s529_s14 = sshll.u32 %s15123_s25, 4  ;;  %p14960_p13 = scmp.ne.s32.totalorder %s19771_s13, %s14959_s4  ;;  %s530_s14 = int_to_ptr.vmem [resolvable:$true] %s529_s14 }
 0x108   : > { %p14966_p3 = scmp.lt.u32.totalorder %s14959_s4, %s19771_s13 }
 0x109   : > { %p14962_p0 = pnand %p14960_p13, %p15267_p8 }
 0x10b   : > { %p14963_p1 = pneg %p14962_p0 }
 0x10d   : > { %p14968_p2 = pnand %p14966_p3, %p14963_p1 }
 0x10f   : > { %14971 = shalt.err (!%p14968_p2)
}
 0x110   : > { %s14972_s0 = scalar_lea.vmem %s530_s14, 96  ;;  %p14980_p4 = scmp.lt.s32.totalorder %s530_s14, %s530_s14 }
 0x111   : > { %p14973_p5 = scmp.ne.s32.totalorder %s530_s14, %s14972_s0  ;;  %p14981_p10 = scmp.lt.s32.totalorder %s14972_s0, %s14972_s0 }
 0x113   : > { %p14975_p7 = pnand %p14973_p5, %p15267_p8  ;;  %p14982_p11 = por %p14981_p10, %p14980_p4 }
 0x115   : > { %p14976_p9 = pneg %p14975_p7 }
 0x117   : > { %p14983_p12 = pnand %p14982_p11, %p14976_p9 }
 0x119   : > { %14986 = shalt.err (!%p14983_p12)
}
 0x11a   : > { %s19906_s26 = sld [smem:[#allocation31_spill]]  ;;  %s11346_s24 = sadd.s32 4294967294, %s15107_s21  }
 0x11b   : > { %13073 = dma.hbm_to_vmem [thread:$0]  (!%p15251_p6), %s19771_s13, 96, %s530_s14, [#allocation21]  }
 0x11c   : > { %s15482_s28 = sadd.s32 1, %s15107_s21   ;;  %s45_s27 = sadd.s32 1, %s15103_s20 }
 0x11d   : > { %s42_s25 = ssub.s32 %s15107_s21, %s15482_s28  ;;  %p52_p8 = scmp.ne.s32.totalorder %s15103_s20, %s15099_s19 }
 0x11e   : > { %p43_p13 = scmp.eq.s32.totalorder %s42_s25, 0  ;;  %p53_p0 = scmp.eq.s32.totalorder %s15107_s21, 0 }
 0x11f   : > { %p58_p1 = scmp.ne.s32.totalorder %s15099_s19, %s15095_s18  ;;  %p366_p9 = scmp.eq.s32.totalorder %s11346_s24, 1 }
 0x120   : > { %p360_p3 = scmp.eq.s32.totalorder %s19906_s26, 1  ;;  %p54_p2 = por %p53_p0, %p52_p8 }
 0x121   : > { %s15494_s15 = scalar_select %p43_p13, %s15103_s20, %s45_s27  }
 0x122   : > { %p19907_p5 = scmp.eq.s32.totalorder %s19906_s26, 0  ;;  %p15502_p6 = por %p360_p3, %p52_p8 }
 0x123   : > { %p13093_p4 = scmp.lt.s32.totalorder %s15107_s21, 2  ;;  %s540_s4 = sand.u32 1, %s15103_s20  }
 0x124   : > { %p15498_p7 = por %p19907_p5, %p58_p1  ;;  %p15508_p10 = por %p366_p9, %p58_p1 }
 0x125   : > { %s19909_s14 = scalar_select %p15502_p6, 1, 0 }
 0x126   : > { %s19910_s1 = scalar_select %p15508_p10, 1, 0 }
 0x127   : > { %s12987_s16 = smul.u32 1536, %s540_s4  ;;  %p15512_p11 = pnand %p13093_p4, %p54_p2 }
 0x128   : > { %s12988_s23 = smul.u32 24576, %s15107_s21  ;;  %s19912_s29 = sld [smem:[#allocation99_spill]] }
 0x129   : > { %s544_s24 = scalar_lea.vmem [#allocation2], %s12987_s16  ;;  %s15524_s25 = scalar_lea.sflag [#allocation3], %s540_s4 }
 0x12a   : > { %s552_s27 = sshll.u32 %s544_s24, 4  ;;  %p14989_p8 = pneg %p15512_p11  ;;  %s15522_s27 = int_to_ptr.vmem [resolvable:$true] %s552_s27 }
 0x12e   : > { %s15520_s26 = scalar_lea.hbm %s19912_s29, %s12988_s23  ;;  %s14992_s22 = scalar_lea.hbm %s19912_s29, 49152 }
 0x12f   : > { %s14987_s2 = scalar_lea.hbm %s15520_s26, 24576  ;;  %p14993_p1 = scmp.lt.u32.totalorder %s15520_s26, %s19912_s29 }
 0x130   : > { %p14988_p12 = scmp.ne.s32.totalorder %s15520_s26, %s14987_s2  ;;  %p14994_p3 = scmp.lt.u32.totalorder %s14992_s22, %s14987_s2 }
 0x131   : > { %p14996_p5 = scmp.lt.u32.totalorder %s14987_s2, %s15520_s26 }
 0x132   : > { %p14990_p13 = pnand %p14989_p8, %p14988_p12  ;;  %p14995_p2 = por %p14994_p3, %p14993_p1 }
 0x134   : > { %p14991_p0 = pneg %p14990_p13  ;;  %p14997_p9 = por %p14996_p5, %p14995_p2 }
 0x136   : > { %p14998_p4 = pnand %p14997_p9, %p14991_p0 }
 0x138   : > { %15001 = shalt.err (!%p14998_p4)
}
 0x139   : > { %s15002_s4 = scalar_lea.vmem %s15522_s27, 24576  ;;  %s15124_s16 = smov [#allocation2]  }
 0x13a   : > { %p15003_p12 = scmp.ne.s32.totalorder %s15522_s27, %s15002_s4  ;;  %s15007_s24 = sshll.u32 %s15124_s16, 4  ;;  %s15008_s24 = int_to_ptr.vmem [resolvable:$false] %s15007_s24 }
 0x13b   : > { %s15009_s3 = scalar_lea.vmem %s15008_s24, 49152  ;;  %p15010_p6 = scmp.lt.s32.totalorder %s15522_s27, %s15008_s24 }
 0x13c   : > { %p15005_p13 = pnand %p15003_p12, %p14989_p8  ;;  %p15011_p1 = scmp.lt.s32.totalorder %s15009_s3, %s15002_s4 }
 0x13e   : > { %p15006_p10 = pneg %p15005_p13  ;;  %p15012_p3 = por %p15011_p1, %p15010_p6 }
 0x140   : > { %p15013_p2 = pnand %p15012_p3, %p15006_p10 }
 0x142   : > { %15016 = shalt.err (!%p15013_p2)
}
 0x143   : > { %s15125_s2 = smov 768   ;;  %s15126_s5 = smov 48  }
 0x144   : > { %13077 = dma.hbm_to_vmem [thread:$0]  (!%p15512_p11), %s15520_s26, 24576, %s15522_s27, %s15524_s25, %s15125_s2, %s15125_s2, %s15126_s5  }
 0x145   : > { %s19913_s23 = sld [smem:[#allocation32_spill]] }
 0x14b   : > { %p19914_p8 = scmp.ne.s32.totalorder %s19913_s23, 0 }
 0x14d   : > { %573 = sbr.rel (%p19914_p8) target bundleno = 2759 (0xac7), region = 76 }
 0x154   : > { %s15555_s0 = sand.u32 1, %s15099_s19  }
 0x155   : > { %s12989_s22 = smul.u32 1536, %s15555_s0  ;;  %s576_s4 = scalar_lea.sflag [#allocation3], %s15555_s0 }
 0x157   : > { %s15559_s16 = scalar_lea.vmem [#allocation2], %s12989_s22 }
 0x158   : > { %15062 = dma.done.wait (%p15498_p7), %s576_s4, 24576  }
 0x159   : > { %15064 = vsyncadd (%p15498_p7), %s576_s4, 4294942720  ;;  %s19915_s17 = sld [smem:[#allocation31_spill]] }
 0x15f   : > { %p19916_p6 = scmp.eq.s32.totalorder %s19915_s17, 0 }
 0x161   : > { %15066 = dma.done.wait (%p19916_p6), [#allocation6], 24640   ;;  %p19917_p10 = pmov %p19916_p6 }
 0x162   : > { %p19918_p11 = pmov %p19916_p6 }
 0x163   : > { %15068 = vsyncadd (%p19917_p10), [#allocation6], 4294942656 }
 0x164   : > { %15070 = dma.done.wait (%p19918_p11), [#allocation9], 48   ;;  %p19919_p0 = pmov %p19916_p6 }
 0x166   : > { %15072 = vsyncadd (%p19919_p0), [#allocation9], 4294967248  ;;  %p19920_p5 = pmov %p19919_p0 }
 0x167   : > { %p19921_p9 = pmov %p19919_p0 }
 0x168   : > { %15074 = dma.done.wait (%p19920_p5), [#allocation12], 48  }
 0x169   : > { %15076 = vsyncadd (%p19921_p9), [#allocation12], 4294967248  ;;  %p19922_p7 = pmov %p19919_p0 }
 0x16a   : > { %p19923_p4 = pmov %p19919_p0 }
 0x16b   : > { %15078 = dma.done.wait (%p19922_p7), [#allocation15], 144  }
 0x16c   : > { %15080 = vsyncadd (%p19923_p4), [#allocation15], 4294967152  ;;  %p19924_p12 = pmov %p19919_p0 }
 0x16d   : > { %p19925_p13 = pmov %p19919_p0 }
 0x16e   : > { %15082 = dma.done.wait (%p19924_p12), [#allocation18], 24640  }
 0x16f   : > { %15084 = vsyncadd (%p19925_p13), [#allocation18], 4294942656  ;;  %p19926_p1 = pmov %p19919_p0 }
 0x170   : > { %p19927_p3 = pmov %p19919_p0 }
 0x171   : > { %15086 = dma.done.wait (%p19926_p1), [#allocation21], 96  }
 0x172   : > { %15088 = vsyncadd (%p19927_p3), [#allocation21], 4294967200  ;;  %v13300_v0 = vld [vmem:[#allocation5 + $0x4] ss:$16 sps:$4 sm:$0xff]   ;;  %v13304_v2 = vld [vmem:[#allocation5] ss:$16 sps:$4 sm:$0xff]  }
 0x173   : > { %v13302_v1 = vld [vmem:[#allocation5 + $0x204] ss:$16 sps:$4 sm:$0xff]   ;;  %2157 = vmatprep.subr.bf16.mxu1 %v13300_v0  ;;  %v13305_v3 = vld [vmem:[#allocation5 + $0x200] ss:$16 sps:$4 sm:$0xff]   ;;  %v696_v46 = vld [vmem:[%s15559_s16 + $0x8] sm:$0xff]  ;;  %s19954_s27 = sld [smem:[#allocation103_spill]] }
 0x174   : > { %2350 = vmatprep.subr.bf16.mxu0 %v13302_v1  ;;  %v13306_v4 = vld [vmem:[#allocation5 + $0x24] ss:$16 sps:$4 sm:$0xff]   ;;  %2158 = vmatpush1.bf16.msra.mxu1 %v13304_v2  ;;  %v13310_v6 = vld [vmem:[#allocation5 + $0x20] ss:$16 sps:$4 sm:$0xff]   ;;  %v702_v47 = vld [vmem:[%s15559_s16 + $0x38] sm:$0xff]  ;;  %s11375_s26 = sshll.u32 %s19915_s17, 5 }
 0x175   : > { %2351 = vmatpush1.bf16.msra.mxu0 %v13305_v3  ;;  %v13308_v5 = vld [vmem:[#allocation5 + $0x224] ss:$16 sps:$4 sm:$0xff]   ;;  %2159 = vmatprep.subr.bf16.mxu1 %v13306_v4  ;;  %v13311_v7 = vld [vmem:[#allocation5 + $0x220] ss:$16 sps:$4 sm:$0xff]   ;;  %v698_v48 = vld [vmem:[%s15559_s16 + $0x18] sm:$0xff]  ;;  %v15593_v53 = vpack.c.bf16 %v702_v47, %v696_v46  ;;  %p682_p2 = scmp.lt.s32.totalorder %s11375_s26, 63 }
 0x176   : > { %2352 = vmatprep.subr.bf16.mxu0 %v13308_v5  ;;  %v13312_v8 = vld [vmem:[#allocation5 + $0x44] ss:$16 sps:$4 sm:$0xff]   ;;  %v13316_v10 = vld [vmem:[#allocation5 + $0x40] ss:$16 sps:$4 sm:$0xff]   ;;  %v704_v49 = vld [vmem:[%s15559_s16 + $0x48] sm:$0xff]  ;;  %s20067_s3 = sld [smem:[#allocation100_spill]] }
 0x177   : > { %v13314_v9 = vld [vmem:[#allocation5 + $0x244] ss:$16 sps:$4 sm:$0xff]   ;;  %v13317_v11 = vld [vmem:[#allocation5 + $0x240] ss:$16 sps:$4 sm:$0xff]   ;;  %v15595_v54 = vpack.c.bf16 %v704_v49, %v698_v48  ;;  %2189 = vmatprep.mubr.bf16.mxu1 %v15593_v53  ;;  %v13410_v46 = vld [vmem:[#allocation5 + $0x8c] ss:$16 sps:$4 sm:$0xff]  }
 0x178   : > { %2160 = vmatpush1.bf16.msra.mxu1 %v13310_v6  ;;  %v13318_v12 = vld [vmem:[#allocation5 + $0x64] ss:$16 sps:$4 sm:$0xff]   ;;  %v13322_v14 = vld [vmem:[#allocation5 + $0x60] ss:$16 sps:$4 sm:$0xff]   ;;  %s20287_s26 = smov (!%p682_p2, %s11375_s26), 63  ;;  %s15127_s5 = smov 2  }
 0x179   : > { %2353 = vmatpush1.bf16.msra.mxu0 %v13311_v7  ;;  %2161 = vmatprep.subr.bf16.mxu1 %v13312_v8  ;;  %v13320_v13 = vld [vmem:[#allocation5 + $0x264] ss:$16 sps:$4 sm:$0xff]   ;;  %v13323_v15 = vld [vmem:[#allocation5 + $0x260] ss:$16 sps:$4 sm:$0xff]   ;;  %s20070_s4 = sld [smem:[#allocation106_spill]]  ;;  %s12991_s24 = smul.u32 12288, %s19915_s17 }
 0x17a   : > { %2354 = vmatprep.subr.bf16.mxu0 %v13314_v9  ;;  %v13324_v16 = vld [vmem:[#allocation5 + $0x84] ss:$16 sps:$4 sm:$0xff]   ;;  %v13328_v18 = vld [vmem:[#allocation5 + $0x80] ss:$16 sps:$4 sm:$0xff]   ;;  %2382 = vmatprep.mubr.bf16.mxu0 %v15595_v54  ;;  %s20278_s23 = sld [smem:[#allocation105_spill]]  ;;  %p20279_p6 = scmp.ne.s32.totalorder %s19909_s14, 0 }
 0x17b   : > { %v13326_v17 = vld [vmem:[#allocation5 + $0x284] ss:$16 sps:$4 sm:$0xff]   ;;  %v13329_v19 = vld [vmem:[#allocation5 + $0x280] ss:$16 sps:$4 sm:$0xff]  }
 0x17c   : > { %2162 = vmatpush1.bf16.msra.mxu1 %v13316_v10  ;;  %v13330_v20 = vld [vmem:[#allocation5 + $0xa4] ss:$16 sps:$4 sm:$0xff]   ;;  %v13334_v22 = vld [vmem:[#allocation5 + $0xa0] ss:$16 sps:$4 sm:$0xff]   ;;  %v13398_v10 = vld [vmem:[#allocation5 + $0xc] ss:$16 sps:$4 sm:$0xff]  }
 0x17d   : > { %2355 = vmatpush1.bf16.msra.mxu0 %v13317_v11  ;;  %2163 = vmatprep.subr.bf16.mxu1 %v13318_v12  ;;  %v13332_v21 = vld [vmem:[#allocation5 + $0x2a4] ss:$16 sps:$4 sm:$0xff]   ;;  %v13335_v23 = vld [vmem:[#allocation5 + $0x2a0] ss:$16 sps:$4 sm:$0xff]   ;;  %v708_v11 = vld [vmem:[%s15559_s16 + $0x68] sm:$0xff] }
 0x17e   : > { %2356 = vmatprep.subr.bf16.mxu0 %v13320_v13  ;;  %v13336_v24 = vld [vmem:[#allocation5 + $0xc4] ss:$16 sps:$4 sm:$0xff]   ;;  %v13340_v26 = vld [vmem:[#allocation5 + $0xc0] ss:$16 sps:$4 sm:$0xff]   ;;  %v714_v12 = vld [vmem:[%s15559_s16 + $0x98] sm:$0xff] }
 0x17f   : > { %v13338_v25 = vld [vmem:[#allocation5 + $0x2c4] ss:$16 sps:$4 sm:$0xff]   ;;  %v13341_v27 = vld [vmem:[#allocation5 + $0x2c0] ss:$16 sps:$4 sm:$0xff]   ;;  %v710_v13 = vld [vmem:[%s15559_s16 + $0x78] sm:$0xff] }
 0x180   : > { %2164 = vmatpush1.bf16.msra.mxu1 %v13322_v14  ;;  %v13342_v28 = vld [vmem:[#allocation5 + $0xe4] ss:$16 sps:$4 sm:$0xff]   ;;  %v13346_v30 = vld [vmem:[#allocation5 + $0xe0] ss:$16 sps:$4 sm:$0xff]   ;;  %v716_v14 = vld [vmem:[%s15559_s16 + $0xa8] sm:$0xff]  ;;  %s19710_s22 = scalar_lea.hbm %s20278_s23, %s12991_s24 }
 0x181   : > { %2357 = vmatpush1.bf16.msra.mxu0 %v13323_v15  ;;  %2165 = vmatprep.subr.bf16.mxu1 %v13324_v16  ;;  %v13344_v29 = vld [vmem:[#allocation5 + $0x2e4] ss:$16 sps:$4 sm:$0xff]   ;;  %v13347_v31 = vld [vmem:[#allocation5 + $0x2e0] ss:$16 sps:$4 sm:$0xff]  }
 0x182   : > { %2358 = vmatprep.subr.bf16.mxu0 %v13326_v17  ;;  %v13348_v32 = vld [vmem:[#allocation5 + $0x104] ss:$16 sps:$4 sm:$0xff]   ;;  %v13352_v34 = vld [vmem:[#allocation5 + $0x100] ss:$16 sps:$4 sm:$0xff]   ;;  %v13396_v17 = vld [vmem:[#allocation5 + $0x8] ss:$16 sps:$4 sm:$0xff]  }
 0x183   : > { %v13350_v33 = vld [vmem:[#allocation5 + $0x304] ss:$16 sps:$4 sm:$0xff]   ;;  %v13353_v35 = vld [vmem:[#allocation5 + $0x300] ss:$16 sps:$4 sm:$0xff]  }
 0x184   : > { %2166 = vmatpush1.bf16.msra.mxu1 %v13328_v18  ;;  %v13354_v36 = vld [vmem:[#allocation5 + $0x124] ss:$16 sps:$4 sm:$0xff]   ;;  %v13358_v38 = vld [vmem:[#allocation5 + $0x120] ss:$16 sps:$4 sm:$0xff]   ;;  %v15611_v18 = vpack.c.bf16 %v714_v12, %v708_v11  ;;  %v13414_v11 = vld [vmem:[#allocation5 + $0xc8] ss:$16 sps:$4 sm:$0xff]  }
 0x185   : > { %2359 = vmatpush1.bf16.msra.mxu0 %v13329_v19  ;;  %2167 = vmatprep.subr.bf16.mxu1 %v13330_v20  ;;  %v13356_v37 = vld [vmem:[#allocation5 + $0x324] ss:$16 sps:$4 sm:$0xff]   ;;  %v13359_v39 = vld [vmem:[#allocation5 + $0x320] ss:$16 sps:$4 sm:$0xff]   ;;  %v15613_v19 = vpack.c.bf16 %v716_v14, %v710_v13  ;;  %v13401_v20 = vld [vmem:[#allocation5 + $0x2c] ss:$16 sps:$4 sm:$0xff]  }
 0x186   : > { %2360 = vmatprep.subr.bf16.mxu0 %v13332_v21  ;;  %v13360_v40 = vld [vmem:[#allocation5 + $0x144] ss:$16 sps:$4 sm:$0xff]   ;;  %v13364_v42 = vld [vmem:[#allocation5 + $0x140] ss:$16 sps:$4 sm:$0xff]  }
 0x187   : > { %v13362_v41 = vld [vmem:[#allocation5 + $0x344] ss:$16 sps:$4 sm:$0xff]   ;;  %v13365_v43 = vld [vmem:[#allocation5 + $0x340] ss:$16 sps:$4 sm:$0xff]  }
 0x188   : > { %2168 = vmatpush1.bf16.msra.mxu1 %v13334_v22  ;;  %v13366_v44 = vld [vmem:[#allocation5 + $0x164] ss:$16 sps:$4 sm:$0xff]   ;;  %v13370_v50 = vld [vmem:[#allocation5 + $0x160] ss:$16 sps:$4 sm:$0xff]  }
 0x189   : > { %2361 = vmatpush1.bf16.msra.mxu0 %v13335_v23  ;;  %2169 = vmatprep.subr.bf16.mxu1 %v13336_v24  ;;  %v13368_v45 = vld [vmem:[#allocation5 + $0x364] ss:$16 sps:$4 sm:$0xff]   ;;  %v13371_v51 = vld [vmem:[#allocation5 + $0x360] ss:$16 sps:$4 sm:$0xff]  }
 0x18a   : > { %2362 = vmatprep.subr.bf16.mxu0 %v13338_v25  ;;  %v13372_v52 = vld [vmem:[#allocation5 + $0x184] ss:$16 sps:$4 sm:$0xff]   ;;  %v13376_v56 = vld [vmem:[#allocation5 + $0x180] ss:$16 sps:$4 sm:$0xff]   ;;  %v13399_v25 = vld [vmem:[#allocation5 + $0x28] ss:$16 sps:$4 sm:$0xff]  }
 0x18b   : > { %v13374_v55 = vld [vmem:[#allocation5 + $0x384] ss:$16 sps:$4 sm:$0xff]   ;;  %v13377_v57 = vld [vmem:[#allocation5 + $0x380] ss:$16 sps:$4 sm:$0xff]  }
 0x18c   : > { %2170 = vmatpush1.bf16.msra.mxu1 %v13340_v26  ;;  %v13378_v58 = vld [vmem:[#allocation5 + $0x1a4] ss:$16 sps:$4 sm:$0xff]   ;;  %v13382_v60 = vld [vmem:[#allocation5 + $0x1a0] ss:$16 sps:$4 sm:$0xff]   ;;  %v720_v26 = vld [vmem:[%s15559_s16 + $0xc8] sm:$0xff] }
 0x18d   : > { %2363 = vmatpush1.bf16.msra.mxu0 %v13341_v27  ;;  %2171 = vmatprep.subr.bf16.mxu1 %v13342_v28  ;;  %v13380_v59 = vld [vmem:[#allocation5 + $0x3a4] ss:$16 sps:$4 sm:$0xff]   ;;  %v13383_v61 = vld [vmem:[#allocation5 + $0x3a0] ss:$16 sps:$4 sm:$0xff]   ;;  %v726_v27 = vld [vmem:[%s15559_s16 + $0xf8] sm:$0xff] }
 0x18e   : > { %2364 = vmatprep.subr.bf16.mxu0 %v13344_v29  ;;  %v13384_v62 = vld [vmem:[#allocation5 + $0x1c4] ss:$16 sps:$4 sm:$0xff]   ;;  %v13388_v0 = vld [vmem:[#allocation5 + $0x1c0] ss:$16 sps:$4 sm:$0xff]   ;;  %v722_v28 = vld [vmem:[%s15559_s16 + $0xd8] sm:$0xff] }
 0x18f   : > { %v13386_v63 = vld [vmem:[#allocation5 + $0x3c4] ss:$16 sps:$4 sm:$0xff]   ;;  %v13389_v1 = vld [vmem:[#allocation5 + $0x3c0] ss:$16 sps:$4 sm:$0xff]   ;;  %v728_v29 = vld [vmem:[%s15559_s16 + $0x108] sm:$0xff] }
 0x190   : > { %2172 = vmatpush1.bf16.msra.mxu1 %v13346_v30  ;;  %v13390_v2 = vld [vmem:[#allocation5 + $0x1e4] ss:$16 sps:$4 sm:$0xff]   ;;  %v13394_v4 = vld [vmem:[#allocation5 + $0x1e0] ss:$16 sps:$4 sm:$0xff]   ;;  %v13404_v30 = vld [vmem:[#allocation5 + $0x4c] ss:$16 sps:$4 sm:$0xff]  }
 0x191   : > { %2365 = vmatpush1.bf16.msra.mxu0 %v13347_v31  ;;  %2173 = vmatprep.subr.bf16.mxu1 %v13348_v32  ;;  %v13392_v3 = vld [vmem:[#allocation5 + $0x3e4] ss:$16 sps:$4 sm:$0xff]   ;;  %v13395_v5 = vld [vmem:[#allocation5 + $0x3e0] ss:$16 sps:$4 sm:$0xff]  }
 0x192   : > { %2366 = vmatprep.subr.bf16.mxu0 %v13350_v33  ;;  %v695_v6 = vld [vmem:[%s15559_s16] sm:$0xff]  ;;  %v701_v7 = vld [vmem:[%s15559_s16 + $0x30] sm:$0xff]  ;;  %v15631_v33 = vpack.c.bf16 %v726_v27, %v720_v26  ;;  %v764_v27 = vld [vmem:[%s15559_s16 + $0x228] sm:$0xff] }
 0x193   : > { %v697_v8 = vld [vmem:[%s15559_s16 + $0x10] sm:$0xff]  ;;  %v703_v9 = vld [vmem:[%s15559_s16 + $0x40] sm:$0xff]  ;;  %v15607_v15 = vpack.c.bf16 %v701_v7, %v695_v6 }
 0x194   : > { %2174 = vmatpush1.bf16.msra.mxu1 %v13352_v34  ;;  %v15609_v16 = vpack.c.bf16 %v703_v9, %v697_v8  ;;  %v707_v21 = vld [vmem:[%s15559_s16 + $0x60] sm:$0xff]  ;;  %v713_v22 = vld [vmem:[%s15559_s16 + $0x90] sm:$0xff]  ;;  %v15633_v34 = vpack.c.bf16 %v728_v29, %v722_v28  ;;  %v13417_v28 = vld [vmem:[#allocation5 + $0xe8] ss:$16 sps:$4 sm:$0xff]  }
 0x195   : > { %2367 = vmatpush1.bf16.msra.mxu0 %v13353_v35  ;;  %2175 = vmatprep.subr.bf16.mxu1 %v13354_v36  ;;  %v709_v23 = vld [vmem:[%s15559_s16 + $0x70] sm:$0xff]  ;;  %v715_v24 = vld [vmem:[%s15559_s16 + $0xa0] sm:$0xff]  ;;  %v15627_v31 = vpack.c.bf16 %v713_v22, %v707_v21  ;;  %v13402_v35 = vld [vmem:[#allocation5 + $0x48] ss:$16 sps:$4 sm:$0xff]  }
 0x196   : > { %2368 = vmatprep.subr.bf16.mxu0 %v13356_v37  ;;  %v15629_v32 = vpack.c.bf16 %v715_v24, %v709_v23  ;;  %v719_v36 = vld [vmem:[%s15559_s16 + $0xc0] sm:$0xff]  ;;  %v725_v37 = vld [vmem:[%s15559_s16 + $0xf0] sm:$0xff]  ;;  %v13419_v21 = vld [vmem:[#allocation5 + $0xec] ss:$16 sps:$4 sm:$0xff]  }
 0x197   : > { %v13420_v47 = vld [vmem:[#allocation5 + $0x400] ss:$16 sps:$4 sm:$0xff]   ;;  %v13422_v48 = vld [vmem:[#allocation5 + $0x404] ss:$16 sps:$4 sm:$0xff]   ;;  %v15647_v49 = vpack.c.bf16 %v725_v37, %v719_v36  ;;  %v756_v23 = vld [vmem:[%s15559_s16 + $0x1e8] sm:$0xff] }
 0x198   : > { %2176 = vmatpush1.bf16.msra.mxu1 %v13358_v38  ;;  %v721_v38 = vld [vmem:[%s15559_s16 + $0xd0] sm:$0xff]  ;;  %v743_v13 = vld [vmem:[%s15559_s16 + $0x180] sm:$0xff]  ;;  %v762_v24 = vld [vmem:[%s15559_s16 + $0x218] sm:$0xff] }
 0x199   : > { %2369 = vmatpush1.bf16.msra.mxu0 %v13359_v39  ;;  %2177 = vmatprep.subr.bf16.mxu1 %v13360_v40  ;;  %v13407_v39 = vld [vmem:[#allocation5 + $0x6c] ss:$16 sps:$4 sm:$0xff]   ;;  %v727_v40 = vld [vmem:[%s15559_s16 + $0x100] sm:$0xff]  ;;  %v749_v14 = vld [vmem:[%s15559_s16 + $0x1b0] sm:$0xff]  ;;  %v15691_v37 = vpack.c.bf16 %v762_v24, %v756_v23 }
 0x19a   : > { %2370 = vmatprep.subr.bf16.mxu0 %v13362_v41  ;;  %v732_v41 = vld [vmem:[%s15559_s16 + $0x128] sm:$0xff]  ;;  %v13429_v6 = vld [vmem:[#allocation5 + $0x440] ss:$16 sps:$4 sm:$0xff]   ;;  %v13437_v12 = vld [vmem:[#allocation5 + $0x464] ss:$16 sps:$4 sm:$0xff]  }
 0x19b   : > { %v13435_v22 = vld [vmem:[#allocation5 + $0x460] ss:$16 sps:$4 sm:$0xff]   ;;  %v13440_v26 = vld [vmem:[#allocation5 + $0x484] ss:$16 sps:$4 sm:$0xff]   ;;  %v13425_v29 = vld [vmem:[#allocation5 + $0x10c] ss:$16 sps:$4 sm:$0xff]  }
 0x19c   : > { %2178 = vmatpush1.bf16.msra.mxu1 %v13364_v42  ;;  %v738_v42 = vld [vmem:[%s15559_s16 + $0x158] sm:$0xff]  ;;  %v13456_v23 = vld [vmem:[#allocation5 + $0x500] ss:$16 sps:$4 sm:$0xff]  }
 0x19d   : > { %2371 = vmatpush1.bf16.msra.mxu0 %v13365_v43  ;;  %2179 = vmatprep.subr.bf16.mxu1 %v13366_v44  ;;  %v734_v43 = vld [vmem:[%s15559_s16 + $0x138] sm:$0xff]  ;;  %v740_v44 = vld [vmem:[%s15559_s16 + $0x168] sm:$0xff] }
 0x19e   : > { %2372 = vmatprep.subr.bf16.mxu0 %v13368_v45  ;;  %v13405_v45 = vld [vmem:[#allocation5 + $0x68] ss:$16 sps:$4 sm:$0xff]   ;;  %v13461_v24 = vld [vmem:[#allocation5 + $0x18c] ss:$16 sps:$4 sm:$0xff]  }
 0x1a0   : > { %2180 = vmatpush1.bf16.msra.mxu1 %v13370_v50  ;;  %v15649_v50 = vpack.c.bf16 %v727_v40, %v721_v38  ;;  %v13446_v40 = vld [vmem:[#allocation5 + $0x4a4] ss:$16 sps:$4 sm:$0xff]  }
 0x1a1   : > { %2373 = vmatpush1.bf16.msra.mxu0 %v13371_v51  ;;  %2181 = vmatprep.subr.bf16.mxu1 %v13372_v52  ;;  %v15651_v51 = vpack.c.bf16 %v738_v42, %v732_v41  ;;  %v15653_v52 = vpack.c.bf16 %v740_v44, %v734_v43  ;;  %v755_v41 = vld [vmem:[%s15559_s16 + $0x1e0] sm:$0xff]  ;;  %v761_v42 = vld [vmem:[%s15559_s16 + $0x210] sm:$0xff] }
 0x1a2   : > { %2374 = vmatprep.subr.bf16.mxu0 %v13374_v55  ;;  %v13408_v55 = vld [vmem:[#allocation5 + $0x88] ss:$16 sps:$4 sm:$0xff]   ;;  %v757_v43 = vld [vmem:[%s15559_s16 + $0x1f0] sm:$0xff]  ;;  %v763_v44 = vld [vmem:[%s15559_s16 + $0x220] sm:$0xff] }
 0x1a4   : > { %2182 = vmatpush1.bf16.msra.mxu1 %v13376_v56  ;;  %v13428_v56 = vld [vmem:[#allocation5 + $0x424] ss:$16 sps:$4 sm:$0xff]  }
 0x1a5   : > { %2375 = vmatpush1.bf16.msra.mxu0 %v13377_v57  ;;  %2183 = vmatprep.subr.bf16.mxu1 %v13378_v58  ;;  %v731_v57 = vld [vmem:[%s15559_s16 + $0x120] sm:$0xff]  ;;  %v737_v58 = vld [vmem:[%s15559_s16 + $0x150] sm:$0xff] }
 0x1a6   : > { %2376 = vmatprep.subr.bf16.mxu0 %v13380_v59  ;;  %v733_v59 = vld [vmem:[%s15559_s16 + $0x130] sm:$0xff]  ;;  %v15667_v7 = vpack.c.bf16 %v737_v58, %v731_v57  ;;  %v776_v57 = vld [vmem:[%s15559_s16 + $0x288] sm:$0xff] }
 0x1a7   : > { %v13432_v58 = vld [vmem:[#allocation5 + $0x128] ss:$16 sps:$4 sm:$0xff]  }
 0x1a8   : > { %2184 = vmatpush1.bf16.msra.mxu1 %v13382_v60  ;;  %v739_v60 = vld [vmem:[%s15559_s16 + $0x160] sm:$0xff] }
 0x1a9   : > { %2377 = vmatpush1.bf16.msra.mxu0 %v13383_v61  ;;  %2185 = vmatprep.subr.bf16.mxu1 %v13384_v62  ;;  %v13413_v61 = vld [vmem:[#allocation5 + $0xac] ss:$16 sps:$4 sm:$0xff]   ;;  %v13426_v62 = vld [vmem:[#allocation5 + $0x420] ss:$16 sps:$4 sm:$0xff]   ;;  %v15669_v8 = vpack.c.bf16 %v739_v60, %v733_v59 }
 0x1aa   : > { %2378 = vmatprep.subr.bf16.mxu0 %v13386_v63  ;;  %v744_v63 = vld [vmem:[%s15559_s16 + $0x188] sm:$0xff]  ;;  %v13447_v60 = vld [vmem:[#allocation5 + $0x4c0] ss:$16 sps:$4 sm:$0xff]  }
 0x1ab   : > { %v13443_v59 = vld [vmem:[#allocation5 + $0x14c] ss:$16 sps:$4 sm:$0xff]  }
 0x1ac   : > { %2186 = vmatpush1.bf16.msra.mxu1 %v13388_v0  ;;  %v750_v0 = vld [vmem:[%s15559_s16 + $0x1b8] sm:$0xff] }
 0x1ad   : > { %2379 = vmatpush1.bf16.msra.mxu0 %v13389_v1  ;;  %2187 = vmatprep.subr.bf16.mxu1 %v13390_v2  ;;  %v746_v1 = vld [vmem:[%s15559_s16 + $0x198] sm:$0xff]  ;;  %v752_v2 = vld [vmem:[%s15559_s16 + $0x1c8] sm:$0xff]  ;;  %v15671_v9 = vpack.c.bf16 %v750_v0, %v744_v63 }
 0x1ae   : > { %2380 = vmatprep.subr.bf16.mxu0 %v13392_v3  ;;  %v13411_v3 = vld [vmem:[#allocation5 + $0xa8] ss:$16 sps:$4 sm:$0xff]  }
 0x1b0   : > { %2188 = vmatpush1.bf16.msra.mxu1 %v13394_v4  ;;  %v13431_v4 = vld [vmem:[#allocation5 + $0x444] ss:$16 sps:$4 sm:$0xff]  }
 0x1b1   : > { %2381 = vmatpush1.bf16.msra.mxu0 %v13395_v5  ;;  %2736 = vmatprep.subr.bf16.mxu1 %v13398_v10  ;;  %v13416_v5 = vld [vmem:[#allocation5 + $0xcc] ss:$16 sps:$4 sm:$0xff]   ;;  %v15673_v10 = vpack.c.bf16 %v752_v2, %v746_v1  ;;  %v13441_v1 = vld [vmem:[#allocation5 + $0x148] ss:$16 sps:$4 sm:$0xff]   ;;  %v13455_v2 = vld [vmem:[#allocation5 + $0x4e4] ss:$16 sps:$4 sm:$0xff]  }
 0x1b2   : > { %2543 = vmatprep.subr.bf16.mxu0 %v13422_v48  ;;  %v13449_v48 = vld [vmem:[#allocation5 + $0x4c4] ss:$16 sps:$4 sm:$0xff]  }
 0x1b3   : > { %2190 = vmatmul.mubr.bf16.vlgmr.msra.gmra.mrb[0].mxu1 %v15607_v15 }
 0x1b4   : > { %2383 = vmatmul.mubr.bf16.vlgmr.msra.gmra.mrb[0].mxu0 %v15609_v16  ;;  %2737 = vmatpush1.bf16.msra.mxu1 %v13396_v17  ;;  %v745_v17 = vld [vmem:[%s15559_s16 + $0x190] sm:$0xff] }
 0x1b5   : > { %2199 = vmatprep.mubr.bf16.mxu1 %v15611_v18  ;;  %2392 = vmatprep.mubr.bf16.mxu0 %v15613_v19 }
 0x1b6   : > { %2738 = vmatprep.subr.bf16.mxu1 %v13401_v20  ;;  %2544 = vmatpush1.bf16.msra.mxu0 %v13420_v47  ;;  %v751_v20 = vld [vmem:[%s15559_s16 + $0x1c0] sm:$0xff]  ;;  %v768_v47 = vld [vmem:[%s15559_s16 + $0x248] sm:$0xff] }
 0x1b7   : > { %2545 = vmatprep.subr.bf16.mxu0 %v13428_v56  ;;  %v15689_v36 = vpack.c.bf16 %v751_v20, %v745_v17  ;;  %v770_v56 = vld [vmem:[%s15559_s16 + $0x258] sm:$0xff] }
 0x1b8   : > { %2739 = vmatpush1.bf16.msra.mxu1 %v13399_v25  ;;  %v758_v25 = vld [vmem:[%s15559_s16 + $0x1f8] sm:$0xff]  ;;  %v15713_v0 = vpack.c.bf16 %v776_v57, %v770_v56  ;;  %v13465_v57 = vld [vmem:[#allocation5 + $0x540] ss:$16 sps:$4 sm:$0xff]  }
 0x1b9   : > { %2740 = vmatprep.subr.bf16.mxu1 %v13404_v30  ;;  %v13438_v30 = vld [vmem:[#allocation5 + $0x480] ss:$16 sps:$4 sm:$0xff]   ;;  %v15693_v38 = vpack.c.bf16 %v764_v27, %v758_v25  ;;  %v786_v17 = vld [vmem:[%s15559_s16 + $0x2d8] sm:$0xff] }
 0x1ba   : > { %2546 = vmatpush1.bf16.msra.mxu0 %v13426_v62  ;;  %v15709_v62 = vpack.c.bf16 %v763_v44, %v757_v43  ;;  %v782_v20 = vld [vmem:[%s15559_s16 + $0x2b8] sm:$0xff]  ;;  %v787_v44 = vld [vmem:[%s15559_s16 + $0x2e0] sm:$0xff] }
 0x1bb   : > { %2200 = vmatmul.mubr.bf16.gmra.mrb[4].mxu1 %v15627_v31  ;;  %2547 = vmatprep.subr.bf16.mxu0 %v13431_v4  ;;  %v773_v4 = vld [vmem:[%s15559_s16 + $0x270] sm:$0xff]  ;;  %v13470_v43 = vld [vmem:[#allocation5 + $0x1ac] ss:$16 sps:$4 sm:$0xff]   ;;  %v13468_v56 = vld [vmem:[#allocation5 + $0x1a8] ss:$16 sps:$4 sm:$0xff]  }
 0x1bc   : > { %2393 = vmatmul.mubr.bf16.gmra.mrb[4].mxu0 %v15629_v32  ;;  %2209 = vmatprep.mubr.bf16.mxu1 %v15631_v33 }
 0x1bd   : > { %2402 = vmatprep.mubr.bf16.mxu0 %v15633_v34  ;;  %2741 = vmatpush1.bf16.msra.mxu1 %v13402_v35  ;;  %v15687_v35 = vpack.c.bf16 %v749_v14, %v743_v13  ;;  %v775_v13 = vld [vmem:[%s15559_s16 + $0x280] sm:$0xff]  ;;  %v780_v14 = vld [vmem:[%s15559_s16 + $0x2a8] sm:$0xff] }
 0x1be   : > { %2742 = vmatprep.subr.bf16.mxu1 %v13407_v39  ;;  %2548 = vmatpush1.bf16.msra.mxu0 %v13429_v6  ;;  %v13423_v39 = vld [vmem:[#allocation5 + $0x108] ss:$16 sps:$4 sm:$0xff]   ;;  %v13453_v6 = vld [vmem:[#allocation5 + $0x4e0] ss:$16 sps:$4 sm:$0xff]   ;;  %v15731_v27 = vpack.c.bf16 %v786_v17, %v780_v14 }
 0x1bf   : > { %2549 = vmatprep.subr.bf16.mxu0 %v13437_v12  ;;  %v13458_v12 = vld [vmem:[#allocation5 + $0x504] ss:$16 sps:$4 sm:$0xff]   ;;  %v804_v14 = vld [vmem:[%s15559_s16 + $0x368] sm:$0xff]  ;;  %v810_v17 = vld [vmem:[%s15559_s16 + $0x398] sm:$0xff] }
 0x1c1   : > { %2743 = vmatpush1.bf16.msra.mxu1 %v13405_v45  ;;  %v13434_v45 = vld [vmem:[#allocation5 + $0x12c] ss:$16 sps:$4 sm:$0xff]  }
 0x1c2   : > { %2744 = vmatprep.subr.bf16.mxu1 %v13410_v46  ;;  %2550 = vmatpush1.bf16.msra.mxu0 %v13435_v22  ;;  %v13444_v46 = vld [vmem:[#allocation5 + $0x4a0] ss:$16 sps:$4 sm:$0xff]   ;;  %v13450_v22 = vld [vmem:[#allocation5 + $0x168] ss:$16 sps:$4 sm:$0xff]  }
 0x1c3   : > { %2210 = vmatmul.mubr.bf16.gmra.mrb[8].mxu1 %v15647_v49  ;;  %2551 = vmatprep.subr.bf16.mxu0 %v13440_v26 }
 0x1c4   : > { %2403 = vmatmul.mubr.bf16.gmra.mrb[8].mxu0 %v15649_v50  ;;  %2219 = vmatprep.mubr.bf16.mxu1 %v15651_v51 }
 0x1c5   : > { %2412 = vmatprep.mubr.bf16.mxu0 %v15653_v52  ;;  %2745 = vmatpush1.bf16.msra.mxu1 %v13408_v55  ;;  %v774_v55 = vld [vmem:[%s15559_s16 + $0x278] sm:$0xff] }
 0x1c6   : > { %2746 = vmatprep.subr.bf16.mxu1 %v13413_v61  ;;  %2552 = vmatpush1.bf16.msra.mxu0 %v13438_v30  ;;  %v15707_v61 = vpack.c.bf16 %v761_v42, %v755_v41  ;;  %v15711_v63 = vpack.c.bf16 %v774_v55, %v768_v47  ;;  %v13464_v30 = vld [vmem:[#allocation5 + $0x524] ss:$16 sps:$4 sm:$0xff]   ;;  %v13462_v42 = vld [vmem:[#allocation5 + $0x520] ss:$16 sps:$4 sm:$0xff]   ;;  %v798_v47 = vld [vmem:[%s15559_s16 + $0x338] sm:$0xff] }
 0x1c7   : > { %2553 = vmatprep.subr.bf16.mxu0 %v13446_v40  ;;  %v785_v40 = vld [vmem:[%s15559_s16 + $0x2d0] sm:$0xff]  ;;  %v800_v55 = vld [vmem:[%s15559_s16 + $0x348] sm:$0xff] }
 0x1c8   : > { %v781_v41 = vld [vmem:[%s15559_s16 + $0x2b0] sm:$0xff] }
 0x1c9   : > { %2747 = vmatpush1.bf16.msra.mxu1 %v13411_v3  ;;  %v767_v3 = vld [vmem:[%s15559_s16 + $0x240] sm:$0xff] }
 0x1ca   : > { %2748 = vmatprep.subr.bf16.mxu1 %v13416_v5  ;;  %2554 = vmatpush1.bf16.msra.mxu0 %v13444_v46  ;;  %v13452_v5 = vld [vmem:[#allocation5 + $0x16c] ss:$16 sps:$4 sm:$0xff]   ;;  %v15727_v25 = vpack.c.bf16 %v773_v4, %v767_v3  ;;  %v13467_v46 = vld [vmem:[#allocation5 + $0x544] ss:$16 sps:$4 sm:$0xff]   ;;  %v13477_v4 = vld [vmem:[#allocation5 + $0x1c8] ss:$16 sps:$4 sm:$0xff]  }
 0x1cb   : > { %2220 = vmatmul.mubr.bf16.gmra.mrb[12].mxu1 %v15667_v7  ;;  %2555 = vmatprep.subr.bf16.mxu0 %v13449_v48  ;;  %v794_v48 = vld [vmem:[%s15559_s16 + $0x318] sm:$0xff]  ;;  %v13473_v3 = vld [vmem:[#allocation5 + $0x564] ss:$16 sps:$4 sm:$0xff]  }
 0x1cc   : > { %2413 = vmatmul.mubr.bf16.gmra.mrb[12].mxu0 %v15669_v8  ;;  %2229 = vmatprep.mubr.bf16.mxu1 %v15671_v9 }
 0x1cd   : > { %2422 = vmatprep.mubr.bf16.mxu0 %v15673_v10  ;;  %2749 = vmatpush1.bf16.msra.mxu1 %v13414_v11  ;;  %v769_v11 = vld [vmem:[%s15559_s16 + $0x250] sm:$0xff] }
 0x1ce   : > { %2750 = vmatprep.subr.bf16.mxu1 %v13419_v21  ;;  %2556 = vmatpush1.bf16.msra.mxu0 %v13447_v60  ;;  %v788_v21 = vld [vmem:[%s15559_s16 + $0x2e8] sm:$0xff]  ;;  %v15729_v26 = vpack.c.bf16 %v775_v13, %v769_v11  ;;  %v793_v11 = vld [vmem:[%s15559_s16 + $0x310] sm:$0xff] }
 0x1cf   : > { %2557 = vmatprep.subr.bf16.mxu0 %v13455_v2  ;;  %v13479_v60 = vld [vmem:[#allocation5 + $0x1cc] ss:$16 sps:$4 sm:$0xff]   ;;  %v15753_v2 = vpack.c.bf16 %v800_v55, %v794_v48  ;;  %v13471_v13 = vld [vmem:[#allocation5 + $0x560] ss:$16 sps:$4 sm:$0xff]   ;;  %v13485_v55 = vld [vmem:[#allocation5 + $0x5c4] ss:$16 sps:$4 sm:$0xff]  }
 0x1d0   : > { %v811_v48 = vld [vmem:[%s15559_s16 + $0x3a0] sm:$0xff] }
 0x1d1   : > { %2751 = vmatpush1.bf16.msra.mxu1 %v13417_v28  ;;  %v15733_v28 = vpack.c.bf16 %v788_v21, %v782_v20  ;;  %v806_v20 = vld [vmem:[%s15559_s16 + $0x378] sm:$0xff]  ;;  %v13476_v21 = vld [vmem:[#allocation5 + $0x584] ss:$16 sps:$4 sm:$0xff]  }
 0x1d2   : > { %2752 = vmatprep.subr.bf16.mxu1 %v13425_v29  ;;  %2558 = vmatpush1.bf16.msra.mxu0 %v13453_v6  ;;  %v13459_v29 = vld [vmem:[#allocation5 + $0x188] ss:$16 sps:$4 sm:$0xff]   ;;  %v797_v6 = vld [vmem:[%s15559_s16 + $0x330] sm:$0xff] }
 0x1d3   : > { %2230 = vmatmul.mubr.bf16.gmra.mrb[16].mxu1 %v15687_v35  ;;  %2559 = vmatprep.subr.bf16.mxu0 %v13458_v12  ;;  %v799_v12 = vld [vmem:[%s15559_s16 + $0x340] sm:$0xff] }
 0x1d4   : > { %2423 = vmatmul.mubr.bf16.gmra.mrb[16].mxu0 %v15689_v36  ;;  %2239 = vmatprep.mubr.bf16.mxu1 %v15691_v37 }
 0x1d5   : > { %2432 = vmatprep.mubr.bf16.mxu0 %v15693_v38  ;;  %2753 = vmatpush1.bf16.msra.mxu1 %v13423_v39  ;;  %v779_v39 = vld [vmem:[%s15559_s16 + $0x2a0] sm:$0xff] }
 0x1d6   : > { %2754 = vmatprep.subr.bf16.mxu1 %v13434_v45  ;;  %2560 = vmatpush1.bf16.msra.mxu0 %v13456_v23  ;;  %v792_v45 = vld [vmem:[%s15559_s16 + $0x308] sm:$0xff]  ;;  %v13474_v23 = vld [vmem:[#allocation5 + $0x580] ss:$16 sps:$4 sm:$0xff]  }
 0x1d7   : > { %2561 = vmatprep.subr.bf16.mxu0 %v13464_v30 }
 0x1d9   : > { %2755 = vmatpush1.bf16.msra.mxu1 %v13432_v58  ;;  %v15747_v58 = vpack.c.bf16 %v785_v40, %v779_v39  ;;  %v15769_v39 = vpack.c.bf16 %v799_v12, %v793_v11  ;;  %v15771_v40 = vpack.c.bf16 %v810_v17, %v804_v14  ;;  %v815_v14 = vld [vmem:[%s15559_s16 + $0x3c0] sm:$0xff] }
 0x1da   : > { %2756 = vmatprep.subr.bf16.mxu1 %v13443_v59  ;;  %2562 = vmatpush1.bf16.msra.mxu0 %v13462_v42  ;;  %v15749_v59 = vpack.c.bf16 %v787_v44, %v781_v41  ;;  %v13482_v42 = vld [vmem:[#allocation5 + $0x5a4] ss:$16 sps:$4 sm:$0xff]   ;;  %v13489_v17 = vld [vmem:[#allocation5 + $0x5e0] ss:$16 sps:$4 sm:$0xff]  }
 0x1db   : > { %2240 = vmatmul.mubr.bf16.gmra.mrb[20].mxu1 %v15707_v61  ;;  %2563 = vmatprep.subr.bf16.mxu0 %v13467_v46  ;;  %v809_v44 = vld [vmem:[%s15559_s16 + $0x390] sm:$0xff]  ;;  %v13494_v46 = vld [vmem:[#allocation5 + $0x20c] ss:$16 sps:$4 sm:$0xff]  }
 0x1dc   : > { %2433 = vmatmul.mubr.bf16.gmra.mrb[20].mxu0 %v15709_v62  ;;  %2249 = vmatprep.mubr.bf16.mxu1 %v15711_v63 }
 0x1dd   : > { %2442 = vmatprep.mubr.bf16.mxu0 %v15713_v0  ;;  %2757 = vmatpush1.bf16.msra.mxu1 %v13441_v1  ;;  %v15751_v1 = vpack.c.bf16 %v798_v47, %v792_v45  ;;  %v13480_v45 = vld [vmem:[#allocation5 + $0x5a0] ss:$16 sps:$4 sm:$0xff]  }
 0x1de   : > { %2758 = vmatprep.subr.bf16.mxu1 %v13452_v5  ;;  %v791_v5 = vld [vmem:[%s15559_s16 + $0x300] sm:$0xff]  ;;  %2564 = vmatpush1.bf16.msra.mxu0 %v13465_v57  ;;  %v805_v47 = vld [vmem:[%s15559_s16 + $0x370] sm:$0xff]  ;;  %v822_v57 = vld [vmem:[%s15559_s16 + $0x3f8] sm:$0xff] }
 0x1df   : > { %2565 = vmatprep.subr.bf16.mxu0 %v13473_v3  ;;  %v15767_v30 = vpack.c.bf16 %v797_v6, %v791_v5  ;;  %v824_v3 = vld [vmem:[%s15559_s16 + $0x408] sm:$0xff]  ;;  %v15789_v6 = vpack.c.bf16 %v811_v48, %v805_v47  ;;  %v827_v47 = vld [vmem:[%s15559_s16 + $0x420] sm:$0xff]  ;;  %v833_v48 = vld [vmem:[%s15559_s16 + $0x450] sm:$0xff] }
 0x1e1   : > { %2759 = vmatpush1.bf16.msra.mxu1 %v13450_v22  ;;  %v812_v22 = vld [vmem:[%s15559_s16 + $0x3a8] sm:$0xff]  ;;  %19929 = vst [vmem:[#allocation34_spill] sm:$0xff] %v15789_v6 }
 0x1e2   : > { %2760 = vmatprep.subr.bf16.mxu1 %v13461_v24  ;;  %2566 = vmatpush1.bf16.msra.mxu0 %v13471_v13  ;;  %v13486_v24 = vld [vmem:[#allocation5 + $0x1e8] ss:$16 sps:$4 sm:$0xff]   ;;  %v15773_v41 = vpack.c.bf16 %v812_v22, %v806_v20  ;;  %v13491_v13 = vld [vmem:[#allocation5 + $0x5e4] ss:$16 sps:$4 sm:$0xff]  }
 0x1e3   : > { %2250 = vmatmul.mubr.bf16.gmra.mrb[24].mxu1 %v15727_v25  ;;  %2567 = vmatprep.subr.bf16.mxu0 %v13476_v21  ;;  %v821_v20 = vld [vmem:[%s15559_s16 + $0x3f0] sm:$0xff]  ;;  %v823_v22 = vld [vmem:[%s15559_s16 + $0x400] sm:$0xff] }
 0x1e4   : > { %2443 = vmatmul.mubr.bf16.gmra.mrb[24].mxu0 %v15729_v26  ;;  %2259 = vmatprep.mubr.bf16.mxu1 %v15731_v27  ;;  %19928 = vst [vmem:[#allocation33_spill] sm:$0xff] %v15773_v41  ;;  %v817_v21 = vld [vmem:[%s15559_s16 + $0x3d0] sm:$0xff] }
 0x1e5   : > { %2452 = vmatprep.mubr.bf16.mxu0 %v15733_v28  ;;  %2761 = vmatpush1.bf16.msra.mxu1 %v13459_v29  ;;  %v13488_v29 = vld [vmem:[#allocation5 + $0x1ec] ss:$16 sps:$4 sm:$0xff]  }
 0x1e6   : > { %2762 = vmatprep.subr.bf16.mxu1 %v13470_v43  ;;  %v803_v43 = vld [vmem:[%s15559_s16 + $0x360] sm:$0xff]  ;;  %2568 = vmatpush1.bf16.msra.mxu0 %v13474_v23  ;;  %v828_v23 = vld [vmem:[%s15559_s16 + $0x428] sm:$0xff] }
 0x1e7   : > { %2569 = vmatprep.subr.bf16.mxu0 %v13482_v42  ;;  %v15787_v5 = vpack.c.bf16 %v809_v44, %v803_v43  ;;  %v836_v42 = vld [vmem:[%s15559_s16 + $0x468] sm:$0xff]  ;;  %v15807_v43 = vpack.c.bf16 %v821_v20, %v815_v14  ;;  %v15809_v44 = vpack.c.bf16 %v823_v22, %v817_v21  ;;  %v839_v21 = vld [vmem:[%s15559_s16 + $0x480] sm:$0xff]  ;;  %v845_v22 = vld [vmem:[%s15559_s16 + $0x4b0] sm:$0xff] }
 0x1e9   : > { %2763 = vmatpush1.bf16.msra.mxu1 %v13468_v56  ;;  %v816_v56 = vld [vmem:[%s15559_s16 + $0x3c8] sm:$0xff]  ;;  %19931 = vst [vmem:[#allocation36_spill] sm:$0xff] %v15809_v44 }
 0x1ea   : > { %2764 = vmatprep.subr.bf16.mxu1 %v13479_v60  ;;  %v818_v60 = vld [vmem:[%s15559_s16 + $0x3d8] sm:$0xff]  ;;  %2570 = vmatpush1.bf16.msra.mxu0 %v13480_v45  ;;  %v15791_v11 = vpack.c.bf16 %v822_v57, %v816_v56  ;;  %v835_v56 = vld [vmem:[%s15559_s16 + $0x460] sm:$0xff]  ;;  %v840_v57 = vld [vmem:[%s15559_s16 + $0x488] sm:$0xff] }
 0x1eb   : > { %2260 = vmatmul.mubr.bf16.gmra.mrb[28].mxu1 %v15747_v58  ;;  %2571 = vmatprep.subr.bf16.mxu0 %v13485_v55  ;;  %v15793_v12 = vpack.c.bf16 %v824_v3, %v818_v60  ;;  %v829_v55 = vld [vmem:[%s15559_s16 + $0x430] sm:$0xff]  ;;  %v846_v60 = vld [vmem:[%s15559_s16 + $0x4b8] sm:$0xff] }
 0x1ec   : > { %2453 = vmatmul.mubr.bf16.gmra.mrb[28].mxu0 %v15749_v59  ;;  %2269 = vmatprep.mubr.bf16.mxu1 %v15751_v1  ;;  %v842_v3 = vld [vmem:[%s15559_s16 + $0x498] sm:$0xff]  ;;  %v15829_v14 = vpack.c.bf16 %v835_v56, %v829_v55  ;;  %v15847_v55 = vpack.c.bf16 %v845_v22, %v839_v21  ;;  %v864_v21 = vld [vmem:[%s15559_s16 + $0x548] sm:$0xff] }
 0x1ed   : > { %2462 = vmatprep.mubr.bf16.mxu0 %v15753_v2  ;;  %2765 = vmatpush1.bf16.msra.mxu1 %v13477_v4  ;;  %v13483_v4 = vld [vmem:[#allocation5 + $0x5c0] ss:$16 sps:$4 sm:$0xff]   ;;  %19930 = vst [vmem:[#allocation35_spill] sm:$0xff] %v15793_v12  ;;  %v870_v22 = vld [vmem:[%s15559_s16 + $0x578] sm:$0xff] }
 0x1ee   : > { %2766 = vmatprep.subr.bf16.mxu1 %v13488_v29  ;;  %2572 = vmatpush1.bf16.msra.mxu0 %v13483_v4  ;;  %v830_v29 = vld [vmem:[%s15559_s16 + $0x438] sm:$0xff]  ;;  %v848_v4 = vld [vmem:[%s15559_s16 + $0x4c8] sm:$0xff]  ;;  %19933 = vst [vmem:[#allocation38_spill] sm:$0xff] %v15829_v14 }
 0x1ef   : > { %2573 = vmatprep.subr.bf16.mxu0 %v13491_v13  ;;  %v15827_v13 = vpack.c.bf16 %v833_v48, %v827_v47  ;;  %v15833_v20 = vpack.c.bf16 %v848_v4, %v842_v3  ;;  %v854_v47 = vld [vmem:[%s15559_s16 + $0x4f8] sm:$0xff]  ;;  %v860_v48 = vld [vmem:[%s15559_s16 + $0x528] sm:$0xff]  ;;  %v851_v3 = vld [vmem:[%s15559_s16 + $0x4e0] sm:$0xff] }
 0x1f0   : > { %v857_v4 = vld [vmem:[%s15559_s16 + $0x510] sm:$0xff] }
 0x1f1   : > { %2767 = vmatpush1.bf16.msra.mxu1 %v13486_v24  ;;  %v834_v24 = vld [vmem:[%s15559_s16 + $0x458] sm:$0xff]  ;;  %19934 = vst [vmem:[#allocation39_spill] sm:$0xff] %v15833_v20 }
 0x1f2   : > { %2929 = vmatprep.subr.bf16.mxu1 %v13494_v46  ;;  %2574 = vmatpush1.bf16.msra.mxu0 %v13489_v17  ;;  %v15811_v45 = vpack.c.bf16 %v834_v24, %v828_v23  ;;  %v15813_v46 = vpack.c.bf16 %v836_v42, %v830_v29  ;;  %v15831_v17 = vpack.c.bf16 %v846_v60, %v840_v57  ;;  %v841_v23 = vld [vmem:[%s15559_s16 + $0x490] sm:$0xff]  ;;  %v847_v24 = vld [vmem:[%s15559_s16 + $0x4c0] sm:$0xff]  ;;  %v852_v29 = vld [vmem:[%s15559_s16 + $0x4e8] sm:$0xff] }
 0x1f3   : > { %2270 = vmatmul.mubr.bf16.gmra.mrb[32].mxu1 %v15767_v30  ;;  %v858_v42 = vld [vmem:[%s15559_s16 + $0x518] sm:$0xff]  ;;  %v15849_v56 = vpack.c.bf16 %v847_v24, %v841_v23  ;;  %v15853_v60 = vpack.c.bf16 %v860_v48, %v854_v47  ;;  %v872_v24 = vld [vmem:[%s15559_s16 + $0x588] sm:$0xff]  ;;  %v15871_v47 = vpack.c.bf16 %v870_v22, %v864_v21 }
 0x1f4   : > { %2463 = vmatmul.mubr.bf16.gmra.mrb[32].mxu0 %v15769_v39  ;;  %2279 = vmatprep.mubr.bf16.mxu1 %v15771_v40  ;;  %19932 = vst [vmem:[#allocation37_spill] sm:$0xff] %v15813_v46  ;;  %v15851_v57 = vpack.c.bf16 %v858_v42, %v852_v29  ;;  %v866_v23 = vld [vmem:[%s15559_s16 + $0x558] sm:$0xff]  ;;  %v15867_v29 = vpack.c.bf16 %v857_v4, %v851_v3  ;;  %v876_v3 = vld [vmem:[%s15559_s16 + $0x5a8] sm:$0xff] }
 0x1f5   : > { %2472 = vmatprep.mubr.bf16.mxu0 %v15773_v41  ;;  %19935 = vst [vmem:[#allocation40_spill] sm:$0xff] %v15849_v56  ;;  %19936 = vst [vmem:[#allocation41_spill] sm:$0xff] %v15853_v60  ;;  %v15873_v48 = vpack.c.bf16 %v872_v24, %v866_v23  ;;  %v884_v4 = vld [vmem:[%s15559_s16 + $0x5e8] sm:$0xff]  ;;  %v883_v41 = vld [vmem:[%s15559_s16 + $0x5e0] sm:$0xff] }
 0x1f7   : > { %19938 = vst [vmem:[#allocation43_spill] sm:$0xff] %v15873_v48 }
 0x1fb   : > { %2280 = vmatmul.mubr.bf16.gmra.mrb[36].mxu1 %v15787_v5 }
 0x1fc   : > { %2473 = vmatmul.mubr.bf16.gmra.mrb[36].mxu0 %v15789_v6  ;;  %2289 = vmatprep.mubr.bf16.mxu1 %v15791_v11  ;;  %v877_v6 = vld [vmem:[%s15559_s16 + $0x5b0] sm:$0xff] }
 0x1fd   : > { %2482 = vmatprep.mubr.bf16.mxu0 %v15793_v12  ;;  %v871_v12 = vld [vmem:[%s15559_s16 + $0x580] sm:$0xff] }
 0x203   : > { %2290 = vmatmul.mubr.bf16.gmra.mrb[40].mxu1 %v15807_v43 }
 0x204   : > { %2483 = vmatmul.mubr.bf16.gmra.mrb[40].mxu0 %v15809_v44  ;;  %2299 = vmatprep.mubr.bf16.mxu1 %v15811_v45  ;;  %v865_v44 = vld [vmem:[%s15559_s16 + $0x550] sm:$0xff] }
 0x205   : > { %2492 = vmatprep.mubr.bf16.mxu0 %v15813_v46  ;;  %v869_v46 = vld [vmem:[%s15559_s16 + $0x570] sm:$0xff]  ;;  %v15889_v22 = vpack.c.bf16 %v871_v12, %v865_v44  ;;  %v15907_v44 = vpack.c.bf16 %v883_v41, %v877_v6  ;;  %v13497_v41 = vld [vmem:[#allocation5 + $0x22c] ss:$16 sps:$4 sm:$0xff]  }
 0x207   : > { %19939 = vst [vmem:[#allocation44_spill] sm:$0xff] %v15889_v22  ;;  %19941 = vst [vmem:[#allocation46_spill] sm:$0xff] %v15907_v44 }
 0x20b   : > { %2300 = vmatmul.mubr.bf16.gmra.mrb[44].mxu1 %v15827_v13 }
 0x20c   : > { %2493 = vmatmul.mubr.bf16.gmra.mrb[44].mxu0 %v15829_v14  ;;  %2309 = vmatprep.mubr.bf16.mxu1 %v15831_v17  ;;  %v859_v14 = vld [vmem:[%s15559_s16 + $0x520] sm:$0xff] }
 0x20d   : > { %2502 = vmatprep.mubr.bf16.mxu0 %v15833_v20  ;;  %v853_v20 = vld [vmem:[%s15559_s16 + $0x4f0] sm:$0xff] }
 0x20e   : > { %v15869_v42 = vpack.c.bf16 %v859_v14, %v853_v20  ;;  %v882_v14 = vld [vmem:[%s15559_s16 + $0x5d8] sm:$0xff] }
 0x20f   : > { %v878_v20 = vld [vmem:[%s15559_s16 + $0x5b8] sm:$0xff]  ;;  %v15891_v23 = vpack.c.bf16 %v882_v14, %v876_v3  ;;  %v699_v14 = vld [vmem:[%s15559_s16 + $0x20] sm:$0xff] }
 0x210   : > { %19937 = vst [vmem:[#allocation42_spill] sm:$0xff] %v15869_v42  ;;  %v15893_v24 = vpack.c.bf16 %v884_v4, %v878_v20  ;;  %v705_v20 = vld [vmem:[%s15559_s16 + $0x50] sm:$0xff]  ;;  %v712_v4 = vld [vmem:[%s15559_s16 + $0x88] sm:$0xff] }
 0x212   : > { %19940 = vst [vmem:[#allocation45_spill] sm:$0xff] %v15893_v24 }
 0x213   : > { %2310 = vmatmul.mubr.bf16.gmra.mrb[48].mxu1 %v15847_v55 }
 0x214   : > { %2503 = vmatmul.mubr.bf16.gmra.mrb[48].mxu0 %v15849_v56  ;;  %2319 = vmatprep.mubr.bf16.mxu1 %v15851_v57  ;;  %v863_v56 = vld [vmem:[%s15559_s16 + $0x540] sm:$0xff] }
 0x215   : > { %2512 = vmatprep.mubr.bf16.mxu0 %v15853_v60  ;;  %v15887_v21 = vpack.c.bf16 %v869_v46, %v863_v56  ;;  %v881_v60 = vld [vmem:[%s15559_s16 + $0x5d0] sm:$0xff]  ;;  %v700_v46 = vld [vmem:[%s15559_s16 + $0x28] sm:$0xff]  ;;  %v706_v56 = vld [vmem:[%s15559_s16 + $0x58] sm:$0xff] }
 0x216   : > { %v15909_v3 = vpack.c.bf16 %v706_v56, %v700_v46  ;;  %v711_v46 = vld [vmem:[%s15559_s16 + $0x80] sm:$0xff]  ;;  %v717_v56 = vld [vmem:[%s15559_s16 + $0xb0] sm:$0xff] }
 0x218   : > { %19942 = vst [vmem:[#allocation47_spill] sm:$0xff] %v15909_v3 }
 0x21b   : > { %2320 = vmatmul.mubr.bf16.gmra.mrb[52].mxu1 %v15867_v29 }
 0x21c   : > { %2513 = vmatmul.mubr.bf16.gmra.mrb[52].mxu0 %v15869_v42  ;;  %2329 = vmatprep.mubr.bf16.mxu1 %v15871_v47  ;;  %v875_v42 = vld [vmem:[%s15559_s16 + $0x5a0] sm:$0xff] }
 0x21d   : > { %2522 = vmatprep.mubr.bf16.mxu0 %v15873_v48  ;;  %v15905_v12 = vpack.c.bf16 %v881_v60, %v875_v42  ;;  %v13492_v60 = vld [vmem:[#allocation5 + $0x208] ss:$16 sps:$4 sm:$0xff]   ;;  %v15919_v42 = vpack.c.bf16 %v705_v20, %v699_v14  ;;  %v13503_v20 = vld [vmem:[#allocation5 + $0x26c] ss:$16 sps:$4 sm:$0xff]  }
 0x21e   : > { %v730_v48 = vld [vmem:[%s15559_s16 + $0x118] sm:$0xff] }
 0x223   : > { %2330 = vmatmul.mubr.bf16.gmra.mrb[56].mxu1 %v15887_v21 }
 0x224   : > { %2523 = vmatmul.mubr.bf16.gmra.mrb[56].mxu0 %v15889_v22  ;;  %2339 = vmatprep.mubr.bf16.mxu1 %v15891_v23  ;;  %v718_v22 = vld [vmem:[%s15559_s16 + $0xb8] sm:$0xff] }
 0x225   : > { %2532 = vmatprep.mubr.bf16.mxu0 %v15893_v24  ;;  %v15921_v6 = vpack.c.bf16 %v718_v22, %v712_v4  ;;  %v13495_v24 = vld [vmem:[#allocation5 + $0x228] ss:$16 sps:$4 sm:$0xff]   ;;  %v729_v4 = vld [vmem:[%s15559_s16 + $0x110] sm:$0xff] }
 0x226   : > { %v13498_v22 = vld [vmem:[#allocation5 + $0x248] ss:$16 sps:$4 sm:$0xff]  }
 0x227   : > { %19943 = vst [vmem:[#allocation48_spill] sm:$0xff] %v15921_v6 }
 0x22b   : > { %2340 = vmatmul.mubr.bf16.gmra.mrb[60].mxu1 %v15905_v12 }
 0x22c   : > { %2533 = vmatmul.mubr.bf16.gmra.mrb[60].mxu0 %v15907_v44  ;;  %2768 = vmatprep.mubr.bf16.mxu1 %v15593_v53  ;;  %v724_v44 = vld [vmem:[%s15559_s16 + $0xe8] sm:$0xff]  ;;  %v15931_v53 = vpack.c.bf16 %v717_v56, %v711_v46  ;;  %v741_v46 = vld [vmem:[%s15559_s16 + $0x170] sm:$0xff]  ;;  %v754_v56 = vld [vmem:[%s15559_s16 + $0x1d8] sm:$0xff] }
 0x22d   : > { %2575 = vmatprep.mubr.bf16.mxu0 %v15909_v3  ;;  %v13500_v3 = vld [vmem:[#allocation5 + $0x24c] ss:$16 sps:$4 sm:$0xff]   ;;  %v15933_v14 = vpack.c.bf16 %v730_v48, %v724_v44  ;;  %v13504_v44 = vld [vmem:[#allocation5 + $0x288] ss:$16 sps:$4 sm:$0xff]  }
 0x22e   : > { %v13506_v48 = vld [vmem:[#allocation5 + $0x28c] ss:$16 sps:$4 sm:$0xff]  }
 0x233   : > { %2769 = vmatmul.mubr.bf16.vlgmr.msra.gmra.mrb[64].mxu1 %v15607_v15  ;;  %v723_v15 = vld [vmem:[%s15559_s16 + $0xe0] sm:$0xff] }
 0x234   : > { %2576 = vmatmul.mubr.bf16.vlgmr.msra.gmra.mrb[0].mxu0 %v15919_v42  ;;  %2930 = vmatpush1.bf16.msra.mxu1 %v13492_v60  ;;  %v736_v60 = vld [vmem:[%s15559_s16 + $0x148] sm:$0xff] }
 0x235   : > { %2585 = vmatprep.mubr.bf16.mxu0 %v15921_v6  ;;  %2778 = vmatprep.mubr.bf16.mxu1 %v15611_v18  ;;  %v742_v6 = vld [vmem:[%s15559_s16 + $0x178] sm:$0xff] }
 0x236   : > { %2931 = vmatprep.subr.bf16.mxu1 %v13497_v41  ;;  %v13501_v18 = vld [vmem:[#allocation5 + $0x268] ss:$16 sps:$4 sm:$0xff]   ;;  %v13509_v41 = vld [vmem:[#allocation5 + $0x2ac] ss:$16 sps:$4 sm:$0xff]  }
 0x238   : > { %2932 = vmatpush1.bf16.msra.mxu1 %v13495_v24  ;;  %v15943_v24 = vpack.c.bf16 %v729_v4, %v723_v15  ;;  %v13510_v15 = vld [vmem:[#allocation5 + $0x2c8] ss:$16 sps:$4 sm:$0xff]  }
 0x239   : > { %2933 = vmatprep.subr.bf16.mxu1 %v13500_v3  ;;  %v15945_v3 = vpack.c.bf16 %v742_v6, %v736_v60  ;;  %v13512_v6 = vld [vmem:[#allocation5 + $0x2cc] ss:$16 sps:$4 sm:$0xff]  }
 0x23a   : > { %v13515_v60 = vld [vmem:[#allocation5 + $0x2ec] ss:$16 sps:$4 sm:$0xff]  }
 0x23b   : > { %2779 = vmatmul.mubr.bf16.gmra.mrb[68].mxu1 %v15627_v31  ;;  %v735_v31 = vld [vmem:[%s15559_s16 + $0x140] sm:$0xff] }
 0x23c   : > { %2586 = vmatmul.mubr.bf16.gmra.mrb[4].mxu0 %v15931_v53  ;;  %2788 = vmatprep.mubr.bf16.mxu1 %v15631_v33  ;;  %v748_v33 = vld [vmem:[%s15559_s16 + $0x1a8] sm:$0xff] }
 0x23d   : > { %2595 = vmatprep.mubr.bf16.mxu0 %v15933_v14  ;;  %2934 = vmatpush1.bf16.msra.mxu1 %v13498_v22  ;;  %v13507_v22 = vld [vmem:[#allocation5 + $0x2a8] ss:$16 sps:$4 sm:$0xff]   ;;  %v15957_v4 = vpack.c.bf16 %v754_v56, %v748_v33  ;;  %v13521_v56 = vld [vmem:[#allocation5 + $0x32c] ss:$16 sps:$4 sm:$0xff]  }
 0x23e   : > { %2935 = vmatprep.subr.bf16.mxu1 %v13503_v20  ;;  %v15955_v20 = vpack.c.bf16 %v741_v46, %v735_v31  ;;  %v13516_v46 = vld [vmem:[#allocation5 + $0x308] ss:$16 sps:$4 sm:$0xff]  }
 0x241   : > { %2936 = vmatpush1.bf16.msra.mxu1 %v13501_v18  ;;  %v753_v18 = vld [vmem:[%s15559_s16 + $0x1d0] sm:$0xff] }
 0x242   : > { %2937 = vmatprep.subr.bf16.mxu1 %v13506_v48  ;;  %v766_v48 = vld [vmem:[%s15559_s16 + $0x238] sm:$0xff] }
 0x243   : > { %2789 = vmatmul.mubr.bf16.gmra.mrb[72].mxu1 %v15647_v49  ;;  %v747_v49 = vld [vmem:[%s15559_s16 + $0x1a0] sm:$0xff] }
 0x244   : > { %2596 = vmatmul.mubr.bf16.gmra.mrb[8].mxu0 %v15943_v24  ;;  %2798 = vmatprep.mubr.bf16.mxu1 %v15651_v51  ;;  %v760_v51 = vld [vmem:[%s15559_s16 + $0x208] sm:$0xff]  ;;  %v15967_v31 = vpack.c.bf16 %v753_v18, %v747_v49 }
 0x245   : > { %2605 = vmatprep.mubr.bf16.mxu0 %v15945_v3  ;;  %2938 = vmatpush1.bf16.msra.mxu1 %v13504_v44  ;;  %v13513_v44 = vld [vmem:[#allocation5 + $0x2e8] ss:$16 sps:$4 sm:$0xff]   ;;  %v15969_v33 = vpack.c.bf16 %v766_v48, %v760_v51  ;;  %v13527_v48 = vld [vmem:[#allocation5 + $0x36c] ss:$16 sps:$4 sm:$0xff]  }
 0x246   : > { %2939 = vmatprep.subr.bf16.mxu1 %v13509_v41  ;;  %v13518_v41 = vld [vmem:[#allocation5 + $0x30c] ss:$16 sps:$4 sm:$0xff]   ;;  %19944 = vst [vmem:[#allocation49_spill] sm:$0xff] %v15967_v31  ;;  %v13522_v18 = vld [vmem:[#allocation5 + $0x348] ss:$16 sps:$4 sm:$0xff]  }
 0x247   : > { %19945 = vst [vmem:[#allocation50_spill] sm:$0xff] %v15969_v33 }
 0x249   : > { %2940 = vmatpush1.bf16.msra.mxu1 %v13507_v22  ;;  %v765_v22 = vld [vmem:[%s15559_s16 + $0x230] sm:$0xff] }
 0x24a   : > { %2941 = vmatprep.subr.bf16.mxu1 %v13512_v6  ;;  %v778_v6 = vld [vmem:[%s15559_s16 + $0x298] sm:$0xff] }
 0x24b   : > { %2799 = vmatmul.mubr.bf16.gmra.mrb[76].mxu1 %v15667_v7  ;;  %v759_v7 = vld [vmem:[%s15559_s16 + $0x200] sm:$0xff] }
 0x24c   : > { %2606 = vmatmul.mubr.bf16.gmra.mrb[12].mxu0 %v15955_v20  ;;  %2808 = vmatprep.mubr.bf16.mxu1 %v15671_v9  ;;  %v772_v9 = vld [vmem:[%s15559_s16 + $0x268] sm:$0xff]  ;;  %v15979_v49 = vpack.c.bf16 %v765_v22, %v759_v7 }
 0x24d   : > { %2615 = vmatprep.mubr.bf16.mxu0 %v15957_v4  ;;  %2942 = vmatpush1.bf16.msra.mxu1 %v13510_v15  ;;  %v13519_v15 = vld [vmem:[#allocation5 + $0x328] ss:$16 sps:$4 sm:$0xff]   ;;  %v15981_v51 = vpack.c.bf16 %v778_v6, %v772_v9  ;;  %v13533_v6 = vld [vmem:[#allocation5 + $0x3ac] ss:$16 sps:$4 sm:$0xff]  }
 0x24e   : > { %2943 = vmatprep.subr.bf16.mxu1 %v13515_v60  ;;  %v13524_v60 = vld [vmem:[#allocation5 + $0x34c] ss:$16 sps:$4 sm:$0xff]   ;;  %19946 = vst [vmem:[#allocation51_spill] sm:$0xff] %v15979_v49  ;;  %v13528_v22 = vld [vmem:[#allocation5 + $0x388] ss:$16 sps:$4 sm:$0xff]  }
 0x24f   : > { %19947 = vst [vmem:[#allocation52_spill] sm:$0xff] %v15981_v51 }
 0x251   : > { %2944 = vmatpush1.bf16.msra.mxu1 %v13513_v44  ;;  %v777_v44 = vld [vmem:[%s15559_s16 + $0x290] sm:$0xff] }
 0x252   : > { %2945 = vmatprep.subr.bf16.mxu1 %v13518_v41  ;;  %v790_v41 = vld [vmem:[%s15559_s16 + $0x2f8] sm:$0xff] }
 0x253   : > { %2809 = vmatmul.mubr.bf16.gmra.mrb[80].mxu1 %v15687_v35  ;;  %v771_v35 = vld [vmem:[%s15559_s16 + $0x260] sm:$0xff] }
 0x254   : > { %2616 = vmatmul.mubr.bf16.gmra.mrb[16].mxu0 %v15967_v31  ;;  %2818 = vmatprep.mubr.bf16.mxu1 %v15691_v37  ;;  %v784_v37 = vld [vmem:[%s15559_s16 + $0x2c8] sm:$0xff]  ;;  %v15991_v7 = vpack.c.bf16 %v777_v44, %v771_v35 }
 0x255   : > { %2625 = vmatprep.mubr.bf16.mxu0 %v15969_v33  ;;  %2946 = vmatpush1.bf16.msra.mxu1 %v13516_v46  ;;  %v13525_v46 = vld [vmem:[#allocation5 + $0x368] ss:$16 sps:$4 sm:$0xff]   ;;  %v15993_v9 = vpack.c.bf16 %v790_v41, %v784_v37  ;;  %v13539_v41 = vld [vmem:[#allocation5 + $0x3ec] ss:$16 sps:$4 sm:$0xff]  }
 0x256   : > { %2947 = vmatprep.subr.bf16.mxu1 %v13521_v56  ;;  %v13530_v56 = vld [vmem:[#allocation5 + $0x38c] ss:$16 sps:$4 sm:$0xff]   ;;  %19948 = vst [vmem:[#allocation53_spill] sm:$0xff] %v15991_v7  ;;  %v13534_v44 = vld [vmem:[#allocation5 + $0x3c8] ss:$16 sps:$4 sm:$0xff]  }
 0x257   : > { %19949 = vst [vmem:[#allocation54_spill] sm:$0xff] %v15993_v9 }
 0x259   : > { %2948 = vmatpush1.bf16.msra.mxu1 %v13519_v15  ;;  %v789_v15 = vld [vmem:[%s15559_s16 + $0x2f0] sm:$0xff] }
 0x25a   : > { %2949 = vmatprep.subr.bf16.mxu1 %v13524_v60  ;;  %v802_v60 = vld [vmem:[%s15559_s16 + $0x358] sm:$0xff] }
 0x25b   : > { %2819 = vmatmul.mubr.bf16.gmra.mrb[84].mxu1 %v15707_v61  ;;  %v783_v61 = vld [vmem:[%s15559_s16 + $0x2c0] sm:$0xff] }
 0x25c   : > { %2626 = vmatmul.mubr.bf16.gmra.mrb[20].mxu0 %v15979_v49  ;;  %2828 = vmatprep.mubr.bf16.mxu1 %v15711_v63  ;;  %v796_v63 = vld [vmem:[%s15559_s16 + $0x328] sm:$0xff]  ;;  %v16003_v35 = vpack.c.bf16 %v789_v15, %v783_v61 }
 0x25d   : > { %2635 = vmatprep.mubr.bf16.mxu0 %v15981_v51  ;;  %2950 = vmatpush1.bf16.msra.mxu1 %v13522_v18  ;;  %v13531_v18 = vld [vmem:[#allocation5 + $0x3a8] ss:$16 sps:$4 sm:$0xff]   ;;  %v16005_v37 = vpack.c.bf16 %v802_v60, %v796_v63  ;;  %v13568_v63 = vld [vmem:[%s19954_s27] sm:$0xff]  }
 0x25e   : > { %2951 = vmatprep.subr.bf16.mxu1 %v13527_v48  ;;  %v13536_v48 = vld [vmem:[#allocation5 + $0x3cc] ss:$16 sps:$4 sm:$0xff]   ;;  %19950 = vst [vmem:[#allocation55_spill] sm:$0xff] %v16003_v35  ;;  %v807_v60 = vld [vmem:[%s15559_s16 + $0x380] sm:$0xff] }
 0x25f   : > { %19951 = vst [vmem:[#allocation56_spill] sm:$0xff] %v16005_v37 }
 0x261   : > { %2952 = vmatpush1.bf16.msra.mxu1 %v13525_v46  ;;  %v801_v46 = vld [vmem:[%s15559_s16 + $0x350] sm:$0xff] }
 0x262   : > { %2953 = vmatprep.subr.bf16.mxu1 %v13530_v56  ;;  %v814_v56 = vld [vmem:[%s15559_s16 + $0x3b8] sm:$0xff] }
 0x263   : > { %2829 = vmatmul.mubr.bf16.gmra.mrb[88].mxu1 %v15727_v25  ;;  %v795_v25 = vld [vmem:[%s15559_s16 + $0x320] sm:$0xff] }
 0x264   : > { %2636 = vmatmul.mubr.bf16.gmra.mrb[24].mxu0 %v15991_v7  ;;  %2838 = vmatprep.mubr.bf16.mxu1 %v15731_v27  ;;  %v808_v27 = vld [vmem:[%s15559_s16 + $0x388] sm:$0xff]  ;;  %v16015_v61 = vpack.c.bf16 %v801_v46, %v795_v25  ;;  %v13571_v46 = vld [vmem:[%s19954_s27 + $0x50] sm:$0xff]  }
 0x265   : > { %2645 = vmatprep.mubr.bf16.mxu0 %v15993_v9  ;;  %2954 = vmatpush1.bf16.msra.mxu1 %v13528_v22  ;;  %v13537_v22 = vld [vmem:[#allocation5 + $0x3e8] ss:$16 sps:$4 sm:$0xff]   ;;  %v16017_v15 = vpack.c.bf16 %v814_v56, %v808_v27  ;;  %v819_v27 = vld [vmem:[%s15559_s16 + $0x3e0] sm:$0xff]  ;;  %v825_v56 = vld [vmem:[%s15559_s16 + $0x410] sm:$0xff] }
 0x266   : > { %2955 = vmatprep.subr.bf16.mxu1 %v13533_v6  ;;  %v13542_v6 = vld [vmem:[#allocation5 + $0x40c] ss:$16 sps:$4 sm:$0xff]   ;;  %19952 = vst [vmem:[#allocation57_spill] sm:$0xff] %v16015_v61 }
 0x267   : > { %19953 = vst [vmem:[#allocation58_spill] sm:$0xff] %v16017_v15 }
 0x269   : > { %2956 = vmatpush1.bf16.msra.mxu1 %v13531_v18  ;;  %v813_v18 = vld [vmem:[%s15559_s16 + $0x3b0] sm:$0xff] }
 0x26a   : > { %2957 = vmatprep.subr.bf16.mxu1 %v13536_v48  ;;  %v826_v48 = vld [vmem:[%s15559_s16 + $0x418] sm:$0xff]  ;;  %v16039_v25 = vpack.c.bf16 %v813_v18, %v807_v60  ;;  %v16063_v60 = vpack.c.bf16 %v825_v56, %v819_v27  ;;  %v13578_v18 = vld [vmem:[%s19954_s27 + $0x60] sm:$0xff]  }
 0x26b   : > { %2839 = vmatmul.mubr.bf16.gmra.mrb[92].mxu1 %v15747_v58  ;;  %v13564_v58 = vld [vmem:[%s19954_s27 + $0x40] sm:$0xff]  }
 0x26c   : > { %2646 = vmatmul.mubr.bf16.gmra.mrb[28].mxu0 %v16003_v35  ;;  %2848 = vmatprep.mubr.bf16.mxu1 %v15751_v1  ;;  %v820_v1 = vld [vmem:[%s15559_s16 + $0x3e8] sm:$0xff]  ;;  %19955 = vst [vmem:[#allocation59_spill] sm:$0xff] %v16039_v25  ;;  %19957 = vst [vmem:[#allocation61_spill] sm:$0xff] %v16063_v60 }
 0x26d   : > { %2655 = vmatprep.mubr.bf16.mxu0 %v16005_v37  ;;  %2958 = vmatpush1.bf16.msra.mxu1 %v13534_v44  ;;  %v13569_v44 = vld [vmem:[%s19954_s27 + $0x48] sm:$0xff]  }
 0x26e   : > { %2959 = vmatprep.subr.bf16.mxu1 %v13539_v41  ;;  %11995 = vmatprep.subr.bf16.mxu0 %v13564_v58  ;;  %v13570_v41 = vld [vmem:[%s19954_s27 + $0x8] sm:$0xff]   ;;  %v13576_v58 = vld [vmem:[%s19954_s27 + $0x58] sm:$0xff]  }
 0x26f   : > { %11996 = vmatpush3.bf16.msra.mxu0 %v13568_v63  ;;  %v13577_v63 = vld [vmem:[%s19954_s27 + $0x18] sm:$0xff]  }
 0x270   : > { %11997 = vmatprep.subr.bf16.mxu0 %v13569_v44  ;;  %v844_v44 = vld [vmem:[%s15559_s16 + $0x4a8] sm:$0xff] }
 0x271   : > { %2960 = vmatpush1.bf16.msra.mxu1 %v13537_v22  ;;  %v832_v22 = vld [vmem:[%s15559_s16 + $0x448] sm:$0xff] }
 0x272   : > { %3122 = vmatprep.subr.bf16.mxu1 %v13542_v6  ;;  %v838_v6 = vld [vmem:[%s15559_s16 + $0x478] sm:$0xff] }
 0x273   : > { %2849 = vmatmul.mubr.bf16.gmra.mrb[96].mxu1 %v15767_v30  ;;  %v16041_v30 = vpack.c.bf16 %v826_v48, %v820_v1  ;;  %11998 = vmatpush3.bf16.msra.mxu0 %v13570_v41  ;;  %v831_v1 = vld [vmem:[%s15559_s16 + $0x440] sm:$0xff]  ;;  %v837_v48 = vld [vmem:[%s15559_s16 + $0x470] sm:$0xff]  ;;  %v850_v41 = vld [vmem:[%s15559_s16 + $0x4d8] sm:$0xff] }
 0x274   : > { %2656 = vmatmul.mubr.bf16.gmra.mrb[32].mxu0 %v16015_v61  ;;  %2858 = vmatprep.mubr.bf16.mxu1 %v15771_v40  ;;  %v13575_v40 = vld [vmem:[%s19954_s27 + $0x10] sm:$0xff]   ;;  %v16091_v56 = vpack.c.bf16 %v837_v48, %v831_v1  ;;  %v13590_v1 = vld [vmem:[%s19954_s27 + $0x78] sm:$0xff]   ;;  %v856_v48 = vld [vmem:[%s15559_s16 + $0x508] sm:$0xff] }
 0x275   : > { %2665 = vmatprep.mubr.bf16.mxu0 %v16017_v15  ;;  %19956 = vst [vmem:[#allocation60_spill] sm:$0xff] %v16041_v30  ;;  %11999 = vmatprep.subr.bf16.mxu0 %v13571_v46  ;;  %v13583_v46 = vld [vmem:[%s19954_s27 + $0x68] sm:$0xff]  }
 0x276   : > { %19959 = vst [vmem:[#allocation63_spill] sm:$0xff] %v16091_v56  ;;  %v13546_v61 = vld [vmem:[#allocation5 + $0x448] ss:$16 sps:$4 sm:$0xff]   ;;  %v13551_v35 = vld [vmem:[#allocation5 + $0x46c] ss:$16 sps:$4 sm:$0xff]  }
 0x277   : > { %12000 = vmatpush3.bf16.msra.mxu0 %v13575_v40  ;;  %v13584_v40 = vld [vmem:[%s19954_s27 + $0x28] sm:$0xff]  }
 0x278   : > { %12001 = vmatprep.subr.bf16.mxu0 %v13576_v58 }
 0x27b   : > { %2859 = vmatmul.mubr.bf16.gmra.mrb[100].mxu1 %v15787_v5  ;;  %v16065_v5 = vpack.c.bf16 %v838_v6, %v832_v22  ;;  %12002 = vmatpush3.bf16.msra.mxu0 %v13577_v63  ;;  %v16095_v22 = vpack.c.bf16 %v850_v41, %v844_v44  ;;  %v13585_v6 = vld [vmem:[%s19954_s27 + $0x70] sm:$0xff]   ;;  %v862_v44 = vld [vmem:[%s15559_s16 + $0x538] sm:$0xff] }
 0x27c   : > { %2666 = vmatmul.mubr.bf16.gmra.mrb[36].mxu0 %v16039_v25  ;;  %2868 = vmatprep.mubr.bf16.mxu1 %v15791_v11  ;;  %v13582_v11 = vld [vmem:[%s19954_s27 + $0x20] sm:$0xff]   ;;  %v13589_v63 = vld [vmem:[%s19954_s27 + $0x30] sm:$0xff]  }
 0x27d   : > { %2675 = vmatprep.mubr.bf16.mxu0 %v16041_v30  ;;  %19958 = vst [vmem:[#allocation62_spill] sm:$0xff] %v16065_v5  ;;  %12003 = vmatprep.subr.bf16.mxu0 %v13578_v18  ;;  %19960 = vst [vmem:[#allocation64_spill] sm:$0xff] %v16095_v22  ;;  %v843_v18 = vld [vmem:[%s15559_s16 + $0x4a0] sm:$0xff] }
 0x27f   : > { %12004 = vmatpush3.bf16.msra.mxu0 %v13582_v11  ;;  %v849_v11 = vld [vmem:[%s15559_s16 + $0x4d0] sm:$0xff] }
 0x280   : > { %12005 = vmatprep.subr.bf16.mxu0 %v13583_v46  ;;  %v16123_v46 = vpack.c.bf16 %v849_v11, %v843_v18  ;;  %v861_v18 = vld [vmem:[%s15559_s16 + $0x530] sm:$0xff]  ;;  %v868_v11 = vld [vmem:[%s15559_s16 + $0x568] sm:$0xff] }
 0x282   : > { %19961 = vst [vmem:[#allocation65_spill] sm:$0xff] %v16123_v46 }
 0x283   : > { %2869 = vmatmul.mubr.bf16.gmra.mrb[104].mxu1 %v15807_v43  ;;  %12006 = vmatpush3.bf16.msra.mxu0 %v13584_v40 }
 0x284   : > { %2676 = vmatmul.mubr.bf16.gmra.mrb[40].mxu0 %v16063_v60  ;;  %2878 = vmatprep.mubr.bf16.mxu1 %v15811_v45 }
 0x285   : > { %2685 = vmatprep.mubr.bf16.mxu0 %v16065_v5  ;;  %12007 = vmatprep.subr.bf16.mxu0 %v13585_v6  ;;  %v16127_v6 = vpack.c.bf16 %v862_v44, %v856_v48 }
 0x286   : > { %v16087_v27 = vpop.f32.mrb[0].mxu1 }
 0x287   : > { %v16089_v43 = vpop.f32.mrb[1].mxu1  ;;  %12008 = vmatpush3.bf16.msra.mxu0 %v13589_v63  ;;  %19962 = vst [vmem:[#allocation66_spill] sm:$0xff] %v16127_v6  ;;  %v855_v63 = vld [vmem:[%s15559_s16 + $0x500] sm:$0xff] }
 0x288   : > { %v16093_v45 = vpop.f32.mrb[2].mxu1  ;;  %12009 = vmatprep.subr.bf16.mxu0 %v13590_v1  ;;  %v874_v1 = vld [vmem:[%s15559_s16 + $0x598] sm:$0xff] }
 0x289   : > { %v16100_v58 = vpop.f32.mrb[3].mxu1 }
 0x28b   : > { %2879 = vmatmul.mubr.bf16.gmra.mrb[108].mxu1 %v15827_v13  ;;  %v13591_v13 = vld [vmem:[%s19954_s27 + $0x38] sm:$0xff]  }
 0x28c   : > { %2686 = vmatmul.mubr.bf16.gmra.mrb[44].mxu0 %v16091_v56  ;;  %2888 = vmatprep.mubr.bf16.mxu1 %v15831_v17  ;;  %v873_v56 = vld [vmem:[%s15559_s16 + $0x590] sm:$0xff] }
 0x28d   : > { %2695 = vmatprep.mubr.bf16.mxu0 %v16095_v22  ;;  %12010 = vmatpush3.bf16.msra.mxu0 %v13591_v13  ;;  %v16143_v13 = vpack.c.bf16 %v861_v18, %v855_v63  ;;  %v880_v63 = vld [vmem:[%s15559_s16 + $0x5c8] sm:$0xff]  ;;  %v886_v18 = vld [vmem:[%s15559_s16 + $0x5f8] sm:$0xff] }
 0x28e   : > { %v16119_v41 = vpop.f32.mrb[4].mxu1 }
 0x28f   : > { %v16121_v17 = vpop.f32.mrb[5].mxu1  ;;  %19963 = vst [vmem:[#allocation67_spill] sm:$0xff] %v16143_v13 }
 0x290   : > { %v16125_v40 = vpop.f32.mrb[6].mxu1 }
 0x291   : > { %v16129_v22 = vpop.f32.mrb[7].mxu1 }
 0x293   : > { %2889 = vmatmul.mubr.bf16.gmra.mrb[112].mxu1 %v15847_v55  ;;  %v16147_v55 = vpack.c.bf16 %v874_v1, %v868_v11 }
 0x294   : > { %2696 = vmatmul.mubr.bf16.gmra.mrb[48].mxu0 %v16123_v46  ;;  %2898 = vmatprep.mubr.bf16.mxu1 %v15851_v57  ;;  %v867_v57 = vld [vmem:[%s15559_s16 + $0x560] sm:$0xff] }
 0x295   : > { %2705 = vmatprep.mubr.bf16.mxu0 %v16127_v6  ;;  %19964 = vst [vmem:[#allocation68_spill] sm:$0xff] %v16147_v55  ;;  %v16163_v1 = vpack.c.bf16 %v873_v56, %v867_v57 }
 0x296   : > { %v16139_v48 = vpop.f32.mrb[8].mxu1 }
 0x297   : > { %v16141_v44 = vpop.f32.mrb[9].mxu1  ;;  %19965 = vst [vmem:[#allocation69_spill] sm:$0xff] %v16163_v1 }
 0x298   : > { %v16145_v46 = vpop.f32.mrb[10].mxu1 }
 0x299   : > { %v16149_v6 = vpop.f32.mrb[11].mxu1 }
 0x29b   : > { %2899 = vmatmul.mubr.bf16.gmra.mrb[116].mxu1 %v15867_v29 }
 0x29c   : > { %2706 = vmatmul.mubr.bf16.gmra.mrb[52].mxu0 %v16143_v13  ;;  %2908 = vmatprep.mubr.bf16.mxu1 %v15871_v47  ;;  %v16167_v13 = vpack.c.bf16 %v886_v18, %v880_v63  ;;  %v879_v47 = vld [vmem:[%s15559_s16 + $0x5c0] sm:$0xff] }
 0x29d   : > { %2715 = vmatprep.mubr.bf16.mxu0 %v16147_v55  ;;  %v885_v55 = vld [vmem:[%s15559_s16 + $0x5f0] sm:$0xff]  ;;  %s11376_s16 = sshll.u32 %s20287_s26, 3  ;;  %s15130_s26 = smov 126  }
 0x29e   : > { %v16159_v5 = vpop.f32.mrb[12].mxu1  ;;  %19966 = vst [vmem:[#allocation70_spill] sm:$0xff] %v16167_v13  ;;  %v16181_v57 = vpack.c.bf16 %v885_v55, %v879_v47  ;;  %v13545_v55 = vld [vmem:[#allocation5 + $0x42c] ss:$16 sps:$4 sm:$0xff]   ;;  %v13543_v47 = vld [vmem:[#allocation5 + $0x428] ss:$16 sps:$4 sm:$0xff]   ;;  %s16582_s2 = scalar_lea.vmem %s20067_s3, %s11376_s16  ;;  %s16989_s30 = scalar_lea.vmem %s20070_s4, %s11376_s16 }
 0x29f   : > { %v16161_v11 = vpop.f32.mrb[13].mxu1  ;;  %s12990_s16 = smul.u32 768, %s15555_s0  ;;  %s11108_s4 = scalar_lea.sflag [#allocation4], %s15555_s0 }
 0x2a0   : > { %v16165_v60 = vpop.f32.mrb[14].mxu1  ;;  %19967 = vst [vmem:[#allocation71_spill] sm:$0xff] %v16181_v57 }
 0x2a1   : > { %v16169_v29 = vpop.f32.mrb[15].mxu1  ;;  %s19096_s25 = scalar_lea.vmem [#allocation22], %s12990_s16 }
 0x2a2   : > { %s11127_s3 = sshll.u32 %s19096_s25, 4  ;;  %s19713_s3 = int_to_ptr.vmem [resolvable:$true] %s11127_s3 }
 0x2a3   : > { %2909 = vmatmul.mubr.bf16.gmra.mrb[120].mxu1 %v15887_v21  ;;  %s15017_s17 = scalar_lea.vmem %s19713_s3, 12288 }
 0x2a4   : > { %2716 = vmatmul.mubr.bf16.gmra.mrb[56].mxu0 %v16163_v1  ;;  %2918 = vmatprep.mubr.bf16.mxu1 %v15891_v23  ;;  %v13540_v1 = vld [vmem:[#allocation5 + $0x408] ss:$16 sps:$4 sm:$0xff]   ;;  %p15018_p8 = scmp.ne.s32.totalorder %s19713_s3, %s15017_s17 }
 0x2a5   : > { %2725 = vmatprep.mubr.bf16.mxu0 %v16167_v13 }
 0x2a6   : > { %v16177_v30 = vpop.f32.mrb[16].mxu1  ;;  %p15019_p10 = pnand %p15018_p8, %p20279_p6 }
 0x2a7   : > { %v16179_v56 = vpop.f32.mrb[17].mxu1 }
 0x2a8   : > { %v16183_v63 = vpop.f32.mrb[18].mxu1  ;;  %p15020_p11 = pneg %p15019_p10 }
 0x2a9   : > { %v16185_v18 = vpop.f32.mrb[19].mxu1 }
 0x2ab   : > { %2919 = vmatmul.mubr.bf16.gmra.mrb[124].mxu1 %v15905_v12  ;;  %v13548_v12 = vld [vmem:[#allocation5 + $0x44c] ss:$16 sps:$4 sm:$0xff]  }
 0x2ac   : > { %2726 = vmatmul.mubr.bf16.gmra.mrb[60].mxu0 %v16181_v57  ;;  %2961 = vmatprep.mubr.bf16.mxu1 %v15595_v54 }
 0x2ae   : > { %v16190_v21 = vpop.f32.mrb[20].mxu1 }
 0x2af   : > { %v16192_v23 = vpop.f32.mrb[21].mxu1 }
 0x2b0   : > { %v16194_v13 = vpop.f32.mrb[22].mxu1 }
 0x2b1   : > { %v16196_v25 = vpop.f32.mrb[23].mxu1 }
 0x2b3   : > { %2962 = vmatmul.mubr.bf16.vlgmr.msra.gmra.mrb[64].mxu1 %v15609_v16  ;;  %v13549_v16 = vld [vmem:[#allocation5 + $0x468] ss:$16 sps:$4 sm:$0xff]  }
 0x2b4   : > { %3123 = vmatpush1.bf16.msra.mxu1 %v13540_v1  ;;  %2971 = vmatprep.mubr.bf16.mxu1 %v15613_v19  ;;  %v13554_v19 = vld [vmem:[#allocation5 + $0x48c] ss:$16 sps:$4 sm:$0xff]  }
 0x2b5   : > { %3124 = vmatprep.subr.bf16.mxu1 %v13545_v55 }
 0x2b6   : > { %v16200_v57 = vpop.f32.mrb[24].mxu1 }
 0x2b7   : > { %v16202_v54 = vpop.f32.mrb[25].mxu1 }
 0x2b8   : > { %v16204_v15 = vpop.f32.mrb[26].mxu1  ;;  %3125 = vmatpush1.bf16.msra.mxu1 %v13543_v47  ;;  %v13552_v47 = vld [vmem:[#allocation5 + $0x488] ss:$16 sps:$4 sm:$0xff]  }
 0x2b9   : > { %v16206_v37 = vpop.f32.mrb[27].mxu1  ;;  %3126 = vmatprep.subr.bf16.mxu1 %v13548_v12  ;;  %v13557_v12 = vld [vmem:[#allocation5 + $0x4ac] ss:$16 sps:$4 sm:$0xff]  }
 0x2bb   : > { %2972 = vmatmul.mubr.bf16.gmra.mrb[68].mxu1 %v15629_v32  ;;  %v13555_v32 = vld [vmem:[#allocation5 + $0x4a8] ss:$16 sps:$4 sm:$0xff]  }
 0x2bc   : > { %2981 = vmatprep.mubr.bf16.mxu1 %v15633_v34  ;;  %3127 = vmatpush1.bf16.msra.mxu1 %v13546_v61  ;;  %v13560_v34 = vld [vmem:[#allocation5 + $0x4cc] ss:$16 sps:$4 sm:$0xff]  }
 0x2bd   : > { %3128 = vmatprep.subr.bf16.mxu1 %v13551_v35 }
 0x2be   : > { %v16210_v1 = vpop.f32.mrb[28].mxu1 }
 0x2bf   : > { %v16212_v55 = vpop.f32.mrb[29].mxu1 }
 0x2c0   : > { %v16214_v9 = vpop.f32.mrb[30].mxu1  ;;  %3129 = vmatpush1.bf16.msra.mxu1 %v13549_v16  ;;  %v13558_v16 = vld [vmem:[#allocation5 + $0x4c8] ss:$16 sps:$4 sm:$0xff]  }
 0x2c1   : > { %v16216_v7 = vpop.f32.mrb[31].mxu1  ;;  %3130 = vmatprep.subr.bf16.mxu1 %v13554_v19  ;;  %v13563_v19 = vld [vmem:[#allocation5 + $0x4ec] ss:$16 sps:$4 sm:$0xff]  }
 0x2c3   : > { %2982 = vmatmul.mubr.bf16.gmra.mrb[72].mxu1 %v15649_v50  ;;  %v13561_v50 = vld [vmem:[#allocation5 + $0x4e8] ss:$16 sps:$4 sm:$0xff]  }
 0x2c4   : > { %2991 = vmatprep.mubr.bf16.mxu1 %v15653_v52  ;;  %3131 = vmatpush1.bf16.msra.mxu1 %v13552_v47  ;;  %v13567_v52 = vld [vmem:[#allocation5 + $0x50c] ss:$16 sps:$4 sm:$0xff]  }
 0x2c5   : > { %3132 = vmatprep.subr.bf16.mxu1 %v13557_v12 }
 0x2c6   : > { %v16220_v35 = vpop.f32.mrb[32].mxu1 }
 0x2c7   : > { %v16222_v61 = vpop.f32.mrb[33].mxu1 }
 0x2c8   : > { %v16224_v51 = vpop.f32.mrb[34].mxu1  ;;  %3133 = vmatpush1.bf16.msra.mxu1 %v13555_v32  ;;  %v13565_v32 = vld [vmem:[#allocation5 + $0x508] ss:$16 sps:$4 sm:$0xff]  }
 0x2c9   : > { %v16226_v49 = vpop.f32.mrb[35].mxu1  ;;  %3134 = vmatprep.subr.bf16.mxu1 %v13560_v34  ;;  %v13574_v34 = vld [vmem:[#allocation5 + $0x52c] ss:$16 sps:$4 sm:$0xff]  }
 0x2cb   : > { %2992 = vmatmul.mubr.bf16.gmra.mrb[76].mxu1 %v15669_v8  ;;  %v13572_v8 = vld [vmem:[#allocation5 + $0x528] ss:$16 sps:$4 sm:$0xff]  }
 0x2cc   : > { %3001 = vmatprep.mubr.bf16.mxu1 %v15673_v10  ;;  %3135 = vmatpush1.bf16.msra.mxu1 %v13558_v16  ;;  %v13581_v10 = vld [vmem:[#allocation5 + $0x54c] ss:$16 sps:$4 sm:$0xff]  }
 0x2cd   : > { %3136 = vmatprep.subr.bf16.mxu1 %v13563_v19 }
 0x2ce   : > { %v16230_v47 = vpop.f32.mrb[36].mxu1 }
 0x2cf   : > { %v16232_v12 = vpop.f32.mrb[37].mxu1 }
 0x2d0   : > { %19968 = vst [vmem:[#allocation72_spill] sm:$0xff] %v16232_v12  ;;  %v16234_v33 = vpop.f32.mrb[38].mxu1  ;;  %3137 = vmatpush1.bf16.msra.mxu1 %v13561_v50  ;;  %v13579_v50 = vld [vmem:[#allocation5 + $0x548] ss:$16 sps:$4 sm:$0xff]  }
 0x2d1   : > { %19969 = vst [vmem:[#allocation73_spill] sm:$0xff] %v16234_v33  ;;  %v16236_v31 = vpop.f32.mrb[39].mxu1  ;;  %3138 = vmatprep.subr.bf16.mxu1 %v13567_v52  ;;  %v13588_v52 = vld [vmem:[#allocation5 + $0x56c] ss:$16 sps:$4 sm:$0xff]  }
 0x2d2   : > { %19970 = vst [vmem:[#allocation74_spill] sm:$0xff] %v16236_v31 }
 0x2d3   : > { %3002 = vmatmul.mubr.bf16.gmra.mrb[80].mxu1 %v15689_v36  ;;  %v13586_v36 = vld [vmem:[#allocation5 + $0x568] ss:$16 sps:$4 sm:$0xff]  }
 0x2d4   : > { %3011 = vmatprep.mubr.bf16.mxu1 %v15693_v38  ;;  %3139 = vmatpush1.bf16.msra.mxu1 %v13565_v32  ;;  %v13594_v38 = vld [vmem:[#allocation5 + $0x58c] ss:$16 sps:$4 sm:$0xff]  }
 0x2d5   : > { %3140 = vmatprep.subr.bf16.mxu1 %v13574_v34 }
 0x2d6   : > { %v16240_v16 = vpop.f32.mrb[40].mxu1 }
 0x2d7   : > { %19971 = vst [vmem:[#allocation75_spill] sm:$0xff] %v16240_v16  ;;  %v16242_v19 = vpop.f32.mrb[41].mxu1 }
 0x2d8   : > { %19972 = vst [vmem:[#allocation76_spill] sm:$0xff] %v16242_v19  ;;  %v16244_v12 = vpop.f32.mrb[42].mxu1  ;;  %3141 = vmatpush1.bf16.msra.mxu1 %v13572_v8  ;;  %v13592_v8 = vld [vmem:[#allocation5 + $0x588] ss:$16 sps:$4 sm:$0xff]  }
 0x2d9   : > { %19973 = vst [vmem:[#allocation77_spill] sm:$0xff] %v16244_v12  ;;  %v16246_v33 = vpop.f32.mrb[43].mxu1  ;;  %3142 = vmatprep.subr.bf16.mxu1 %v13581_v10  ;;  %v13597_v10 = vld [vmem:[#allocation5 + $0x5ac] ss:$16 sps:$4 sm:$0xff]  }
 0x2da   : > { %19974 = vst [vmem:[#allocation78_spill] sm:$0xff] %v16246_v33 }
 0x2db   : > { %3012 = vmatmul.mubr.bf16.gmra.mrb[84].mxu1 %v15709_v62  ;;  %v13595_v62 = vld [vmem:[#allocation5 + $0x5a8] ss:$16 sps:$4 sm:$0xff]  }
 0x2dc   : > { %3021 = vmatprep.mubr.bf16.mxu1 %v15713_v0  ;;  %3143 = vmatpush1.bf16.msra.mxu1 %v13579_v50  ;;  %v13600_v0 = vld [vmem:[#allocation5 + $0x5cc] ss:$16 sps:$4 sm:$0xff]  }
 0x2dd   : > { %3144 = vmatprep.subr.bf16.mxu1 %v13588_v52 }
 0x2de   : > { %v16250_v32 = vpop.f32.mrb[44].mxu1 }
 0x2df   : > { %19975 = vst [vmem:[#allocation79_spill] sm:$0xff] %v16250_v32  ;;  %v16252_v34 = vpop.f32.mrb[45].mxu1 }
 0x2e0   : > { %19976 = vst [vmem:[#allocation80_spill] sm:$0xff] %v16252_v34  ;;  %v16254_v19 = vpop.f32.mrb[46].mxu1  ;;  %3145 = vmatpush1.bf16.msra.mxu1 %v13586_v36  ;;  %v13598_v36 = vld [vmem:[#allocation5 + $0x5c8] ss:$16 sps:$4 sm:$0xff]  }
 0x2e1   : > { %19977 = vst [vmem:[#allocation81_spill] sm:$0xff] %v16254_v19  ;;  %v16256_v12 = vpop.f32.mrb[47].mxu1  ;;  %3146 = vmatprep.subr.bf16.mxu1 %v13594_v38  ;;  %v13603_v38 = vld [vmem:[#allocation5 + $0x5ec] ss:$16 sps:$4 sm:$0xff]  }
 0x2e2   : > { %19978 = vst [vmem:[#allocation82_spill] sm:$0xff] %v16256_v12  ;;  %v20003_v12 = vld [vmem:[#allocation38_spill] sm:$0xff] }
 0x2e3   : > { %3022 = vmatmul.mubr.bf16.gmra.mrb[88].mxu1 %v15729_v26  ;;  %v13601_v26 = vld [vmem:[#allocation5 + $0x5e8] ss:$16 sps:$4 sm:$0xff]  }
 0x2e4   : > { %3031 = vmatprep.mubr.bf16.mxu1 %v15733_v28  ;;  %3147 = vmatpush1.bf16.msra.mxu1 %v13592_v8 }
 0x2e5   : > { %3148 = vmatprep.subr.bf16.mxu1 %v13597_v10 }
 0x2e6   : > { %v16260_v50 = vpop.f32.mrb[48].mxu1 }
 0x2e7   : > { %19979 = vst [vmem:[#allocation83_spill] sm:$0xff] %v16260_v50  ;;  %v16262_v52 = vpop.f32.mrb[49].mxu1 }
 0x2e8   : > { %19980 = vst [vmem:[#allocation84_spill] sm:$0xff] %v16262_v52  ;;  %v16264_v34 = vpop.f32.mrb[50].mxu1  ;;  %3149 = vmatpush1.bf16.msra.mxu1 %v13595_v62 }
 0x2e9   : > { %19981 = vst [vmem:[#allocation85_spill] sm:$0xff] %v16264_v34  ;;  %v16266_v19 = vpop.f32.mrb[51].mxu1  ;;  %3150 = vmatprep.subr.bf16.mxu1 %v13600_v0  ;;  %v19987_v0 = vld [vmem:[#allocation33_spill] sm:$0xff] }
 0x2ea   : > { %19982 = vst [vmem:[#allocation86_spill] sm:$0xff] %v16266_v19  ;;  %v1177_v19 = vlaneseq }
 0x2eb   : > { %3032 = vmatmul.mubr.bf16.gmra.mrb[92].mxu1 %v15749_v59 }
 0x2ec   : > { %3041 = vmatprep.mubr.bf16.mxu1 %v15753_v2  ;;  %3151 = vmatpush1.bf16.msra.mxu1 %v13598_v36 }
 0x2ed   : > { %3152 = vmatprep.subr.bf16.mxu1 %v13603_v38  ;;  %v16286_v38 = vshrl.u32 %v1177_v19, 7 }
 0x2ee   : > { %v16270_v28 = vpop.f32.mrb[52].mxu1 }
 0x2ef   : > { %19983 = vst [vmem:[#allocation87_spill] sm:$0xff] %v16270_v28  ;;  %v16272_v8 = vpop.f32.mrb[53].mxu1  ;;  %19991 = vst [vmem:[#allocation93_spill] sm:$0xff] %v16286_v38 }
 0x2f0   : > { %19984 = vst [vmem:[#allocation88_spill] sm:$0xff] %v16272_v8  ;;  %v16274_v10 = vpop.f32.mrb[54].mxu1  ;;  %3153 = vmatpush1.bf16.msra.mxu1 %v13601_v26  ;;  %v19993_v8 = vld [vmem:[#allocation34_spill] sm:$0xff]  ;;  %v19994_v26 = vld [vmem:[#allocation35_spill] sm:$0xff] }
 0x2f1   : > { %19985 = vst [vmem:[#allocation89_spill] sm:$0xff] %v16274_v10  ;;  %v16276_v62 = vpop.f32.mrb[55].mxu1  ;;  %v20002_v10 = vld [vmem:[#allocation37_spill] sm:$0xff] }
 0x2f2   : > { %19986 = vst [vmem:[#allocation90_spill] sm:$0xff] %v16276_v62  ;;  %v16293_v62 = vsub.s32 0, %v16286_v38 }
 0x2f3   : > { %3042 = vmatmul.mubr.bf16.gmra.mrb[96].mxu1 %v15769_v39  ;;  %v1175_v39 = vld [vmem:[#allocation7] sm:$0xf] }
 0x2f4   : > { %3051 = vmatprep.mubr.bf16.mxu1 %v19987_v0  ;;  %19995 = vst [vmem:[#allocation34_spill] sm:$0xff] %v16293_v62  ;;  %v16296_v0 = vsub.s32 1, %v16286_v38  ;;  %v16305_v19 = vrot.slane %v1175_v39, %v16293_v62 }
 0x2f6   : > { %v16280_v59 = vpop.f32.mrb[56].mxu1  ;;  %19996 = vst [vmem:[#allocation35_spill] sm:$0xff] %v16296_v0  ;;  %v2192_v38 = vadd.f32 %v16087_v27, %v16305_v19  ;;  %v2196_v62 = vadd.f32 %v16093_v45, %v16305_v19 }
 0x2f7   : > { %19988 = vst [vmem:[#allocation33_spill] sm:$0xff] %v16280_v59  ;;  %v16282_v2 = vpop.f32.mrb[57].mxu1 }
 0x2f8   : > { %19989 = vst [vmem:[#allocation91_spill] sm:$0xff] %v16282_v2  ;;  %v16284_v36 = vpop.f32.mrb[58].mxu1 }
 0x2f9   : > { %19990 = vst [vmem:[#allocation92_spill] sm:$0xff] %v16284_v36  ;;  %v16288_v28 = vpop.f32.mrb[59].mxu1 }
 0x2fa   : > { %19992 = vst [vmem:[#allocation94_spill] sm:$0xff] %v16288_v28 }
 0x2fb   : > { %3052 = vmatmul.mubr.bf16.gmra.mrb[100].mxu1 %v19993_v8  ;;  %v16310_v8 = vrot.slane %v1175_v39, %v16296_v0 }
 0x2fc   : > { %3061 = vmatprep.mubr.bf16.mxu1 %v19994_v26  ;;  %v20001_v26 = vld [vmem:[#allocation36_spill] sm:$0xff] }
 0x2fd   : > { %v2198_v39 = vadd.f32 %v16100_v58, %v16310_v8  ;;  %v13604_v58 = vld [vmem:[%s19954_s27 + $0xc0] sm:$0xff]   ;;  %v2208_v31 = vadd.f32 %v16129_v22, %v16310_v8 }
 0x2fe   : > { %v16298_v59 = vpop.f32.mrb[60].mxu1  ;;  %12107 = vmatprep.subr.bf16.mxu1 %v13604_v58 }
 0x2ff   : > { %19997 = vst [vmem:[#allocation95_spill] sm:$0xff] %v16298_v59  ;;  %v16300_v2 = vpop.f32.mrb[61].mxu1 }
 0x300   : > { %19998 = vst [vmem:[#allocation96_spill] sm:$0xff] %v16300_v2  ;;  %v16302_v36 = vpop.f32.mrb[62].mxu1  ;;  %v2194_v2 = vadd.f32 %v16089_v43, %v16310_v8 }
 0x301   : > { %19999 = vst [vmem:[#allocation97_spill] sm:$0xff] %v16302_v36  ;;  %v16307_v28 = vpop.f32.mrb[63].mxu1 }
 0x302   : > { %20000 = vst [vmem:[#allocation98_spill] sm:$0xff] %v16307_v28 }
 0x303   : > { %3062 = vmatmul.mubr.bf16.gmra.mrb[104].mxu1 %v20001_v26 }
 0x304   : > { %3071 = vmatprep.mubr.bf16.mxu1 %v20002_v10 }
 0x307   : > { %v2577_v59 = vpop.f32.mrb[0].mxu0 }
 0x308   : > { %v12220_v36 = vadd.f32 %v2577_v59, %v2192_v38  ;;  %v2579_v34 = vpop.f32.mrb[1].mxu0  ;;  %v20004_v59 = vld [vmem:[#allocation39_spill] sm:$0xff] }
 0x309   : > { %v12222_v0 = vadd.f32 %v2579_v34, %v2194_v2  ;;  %v2581_v28 = vpop.f32.mrb[2].mxu0  ;;  %v2202_v34 = vadd.f32 %v16119_v41, %v16305_v19  ;;  %v2204_v2 = vadd.f32 %v16121_v17, %v16310_v8 }
 0x30a   : > { %v3443_v26 = vmul.f32 0.2, %v12220_v36  ;;  %v12224_v52 = vadd.f32 %v2581_v28, %v2196_v62  ;;  %v2583_v10 = vpop.f32.mrb[3].mxu0  ;;  %vm3315_vm0 = vcmp.gt.f32.partialorder %v12220_v36, 0.0 }
 0x30b   : > { %v3444_v50 = vmul.f32 0.2, %v12222_v0  ;;  %v12226_v27 = vadd.f32 %v2583_v10, %v2198_v39  ;;  %vm3316_vm1 = vcmp.gt.f32.partialorder %v12222_v0, 0.0  ;;  %3072 = vmatmul.mubr.bf16.gmra.mrb[108].mxu1 %v20003_v12 }
 0x30c   : > { %vm3319_vm2 = vcmp.gt.f32.partialorder %v12224_v52, 0.0  ;;  %v3447_v43 = vmul.f32 0.2, %v12224_v52  ;;  %3081 = vmatprep.mubr.bf16.mxu1 %v20004_v59  ;;  %v3571_v28 = vsel %vm3315_vm0, %v12220_v36, %v3443_v26  ;;  %v2206_v59 = vadd.f32 %v16125_v40, %v16305_v19  ;;  %v20005_v40 = vld [vmem:[#allocation40_spill] sm:$0xff] }
 0x30d   : > { %vm3320_vm3 = vcmp.gt.f32.partialorder %v12226_v27, 0.0  ;;  %v3448_v45 = vmul.f32 0.2, %v12226_v27  ;;  %v3572_v10 = vsel %vm3316_vm1, %v12222_v0, %v3444_v50 }
 0x30e   : > { %v3575_v62 = vsel %vm3319_vm2, %v12224_v52, %v3447_v43 }
 0x30f   : > { %v3699_v38 = vpack.c.bf16 %v3575_v62, %v3571_v28  ;;  %v2587_v39 = vpop.f32.mrb[4].mxu0  ;;  %v3576_v12 = vsel %vm3320_vm3, %v12226_v27, %v3448_v45  ;;  %v20006_v45 = vld [vmem:[#allocation41_spill] sm:$0xff] }
 0x310   : > { %v12228_v32 = vadd.f32 %v2587_v39, %v2202_v34  ;;  %v2589_v33 = vpop.f32.mrb[5].mxu0  ;;  %v3700_v16 = vpack.c.bf16 %v3576_v12, %v3572_v10  ;;  %v2218_v12 = vadd.f32 %v16149_v6, %v16310_v8  ;;  %v2222_v6 = vadd.f32 %v16159_v5, %v16305_v19 }
 0x311   : > { %v12230_v41 = vadd.f32 %v2589_v33, %v2204_v2  ;;  %v2591_v36 = vpop.f32.mrb[6].mxu0  ;;  %v2212_v33 = vadd.f32 %v16139_v48, %v16305_v19  ;;  %v2216_v2 = vadd.f32 %v16145_v46, %v16305_v19  ;;  %v20007_v46 = vld [vmem:[#allocation42_spill] sm:$0xff] }
 0x312   : > { %v3451_v52 = vmul.f32 0.2, %v12228_v32  ;;  %v12232_v26 = vadd.f32 %v2591_v36, %v2206_v59  ;;  %v2593_v43 = vpop.f32.mrb[7].mxu0  ;;  %4058 = vmatprep.mubr.bf16.mxu0 %v3700_v16  ;;  %vm3323_vm4 = vcmp.gt.f32.partialorder %v12228_v32, 0.0  ;;  %v2214_v16 = vadd.f32 %v16141_v44, %v16310_v8 }
 0x313   : > { %v3452_v17 = vmul.f32 0.2, %v12230_v41  ;;  %v12234_v50 = vadd.f32 %v2593_v43, %v2208_v31  ;;  %4059 = vmatmul.mubr.bf16.vlgmr.msra.gmra.mrb[64].mxu0 %v3699_v38  ;;  %vm3324_vm5 = vcmp.gt.f32.partialorder %v12230_v41, 0.0  ;;  %3082 = vmatmul.mubr.bf16.gmra.mrb[112].mxu1 %v20005_v40  ;;  %v2224_v40 = vadd.f32 %v16161_v11, %v16310_v8 }
 0x314   : > { %vm3327_vm6 = vcmp.gt.f32.partialorder %v12232_v26, 0.0  ;;  %v3455_v0 = vmul.f32 0.2, %v12232_v26  ;;  %3091 = vmatprep.mubr.bf16.mxu1 %v20006_v45  ;;  %v3579_v22 = vsel %vm3323_vm4, %v12228_v32, %v3451_v52 }
 0x315   : > { %vm3328_vm7 = vcmp.gt.f32.partialorder %v12234_v50, 0.0  ;;  %v3456_v27 = vmul.f32 0.2, %v12234_v50  ;;  %v3580_v31 = vsel %vm3324_vm5, %v12230_v41, %v3452_v17  ;;  %v20008_v17 = vld [vmem:[#allocation43_spill] sm:$0xff] }
 0x316   : > { %v3583_v58 = vsel %vm3327_vm6, %v12232_v26, %v3455_v0 }
 0x317   : > { %v2597_v34 = vpop.f32.mrb[8].mxu0  ;;  %v3584_v28 = vsel %vm3328_vm7, %v12234_v50, %v3456_v27  ;;  %v3703_v62 = vpack.c.bf16 %v3583_v58, %v3579_v22  ;;  %v2226_v58 = vadd.f32 %v16165_v60, %v16305_v19  ;;  %v20009_v60 = vld [vmem:[#allocation44_spill] sm:$0xff] }
 0x318   : > { %v12236_v38 = vadd.f32 %v2597_v34, %v2212_v33  ;;  %v2599_v39 = vpop.f32.mrb[9].mxu0  ;;  %v3704_v10 = vpack.c.bf16 %v3584_v28, %v3580_v31  ;;  %v2228_v28 = vadd.f32 %v16169_v29, %v16310_v8  ;;  %v2232_v29 = vadd.f32 %v16177_v30, %v16305_v19 }
 0x319   : > { %v12238_v59 = vadd.f32 %v2599_v39, %v2214_v16  ;;  %v2601_v48 = vpop.f32.mrb[10].mxu0 }
 0x31a   : > { %v3459_v32 = vmul.f32 0.2, %v12236_v38  ;;  %v12240_v36 = vadd.f32 %v2601_v48, %v2216_v2  ;;  %v2603_v52 = vpop.f32.mrb[11].mxu0  ;;  %4066 = vmatprep.mubr.bf16.mxu0 %v3704_v10  ;;  %vm3331_vm8 = vcmp.gt.f32.partialorder %v12236_v38, 0.0  ;;  %v20010_v48 = vld [vmem:[#allocation45_spill] sm:$0xff] }
 0x31b   : > { %v3460_v44 = vmul.f32 0.2, %v12238_v59  ;;  %v12242_v41 = vadd.f32 %v2603_v52, %v2218_v12  ;;  %4067 = vmatmul.mubr.bf16.gmra.mrb[68].mxu0 %v3703_v62  ;;  %vm3332_vm9 = vcmp.gt.f32.partialorder %v12238_v59, 0.0  ;;  %3092 = vmatmul.mubr.bf16.gmra.mrb[116].mxu1 %v20007_v46  ;;  %v2234_v52 = vadd.f32 %v16179_v56, %v16310_v8 }
 0x31c   : > { %vm3335_vm10 = vcmp.gt.f32.partialorder %v12240_v36, 0.0  ;;  %v3463_v26 = vmul.f32 0.2, %v12240_v36  ;;  %3101 = vmatprep.mubr.bf16.mxu1 %v20008_v17  ;;  %v3587_v50 = vsel %vm3331_vm8, %v12236_v38, %v3459_v32 }
 0x31d   : > { %vm3336_vm11 = vcmp.gt.f32.partialorder %v12242_v41, 0.0  ;;  %v3464_v43 = vmul.f32 0.2, %v12242_v41  ;;  %v3588_v45 = vsel %vm3332_vm9, %v12238_v59, %v3460_v44 }
 0x31e   : > { %v3591_v0 = vsel %vm3335_vm10, %v12240_v36, %v3463_v26 }
 0x31f   : > { %v2607_v27 = vpop.f32.mrb[12].mxu0  ;;  %v3592_v33 = vsel %vm3336_vm11, %v12242_v41, %v3464_v43  ;;  %v3707_v22 = vpack.c.bf16 %v3591_v0, %v3587_v50  ;;  %v2236_v43 = vadd.f32 %v16183_v63, %v16305_v19  ;;  %v2238_v0 = vadd.f32 %v16185_v18, %v16310_v8  ;;  %v20011_v63 = vld [vmem:[#allocation46_spill] sm:$0xff] }
 0x320   : > { %v12244_v16 = vadd.f32 %v2607_v27, %v2222_v6  ;;  %v2609_v34 = vpop.f32.mrb[13].mxu0  ;;  %v3708_v31 = vpack.c.bf16 %v3592_v33, %v3588_v45  ;;  %v2242_v18 = vadd.f32 %v16190_v21, %v16305_v19 }
 0x321   : > { %v12246_v62 = vadd.f32 %v2609_v34, %v2224_v40  ;;  %v2611_v5 = vpop.f32.mrb[14].mxu0  ;;  %v20012_v34 = vld [vmem:[#allocation47_spill] sm:$0xff] }
 0x322   : > { %v3467_v2 = vmul.f32 0.2, %v12244_v16  ;;  %v12248_v38 = vadd.f32 %v2611_v5, %v2226_v58  ;;  %v2613_v39 = vpop.f32.mrb[15].mxu0  ;;  %4074 = vmatprep.mubr.bf16.mxu0 %v3708_v31  ;;  %vm3339_vm12 = vcmp.gt.f32.partialorder %v12244_v16, 0.0 }
 0x323   : > { %v3468_v11 = vmul.f32 0.2, %v12246_v62  ;;  %v12250_v10 = vadd.f32 %v2613_v39, %v2228_v28  ;;  %4075 = vmatmul.mubr.bf16.gmra.mrb[72].mxu0 %v3707_v22  ;;  %vm3340_vm13 = vcmp.gt.f32.partialorder %v12246_v62, 0.0  ;;  %3102 = vmatmul.mubr.bf16.gmra.mrb[120].mxu1 %v20009_v60 }
 0x324   : > { %vm3343_vm14 = vcmp.gt.f32.partialorder %v12248_v38, 0.0  ;;  %v3471_v12 = vmul.f32 0.2, %v12248_v38  ;;  %3111 = vmatprep.mubr.bf16.mxu1 %v20010_v48  ;;  %v3595_v32 = vsel %vm3339_vm12, %v12244_v16, %v3467_v2 }
 0x325   : > { %vm3344_vm15 = vcmp.gt.f32.partialorder %v12250_v10, 0.0  ;;  %v3472_v59 = vmul.f32 0.2, %v12250_v10  ;;  %v3596_v41 = vsel %vm3340_vm13, %v12246_v62, %v3468_v11  ;;  %v2244_v62 = vadd.f32 %v16192_v23, %v16310_v8 }
 0x326   : > { %v3599_v36 = vsel %vm3343_vm14, %v12248_v38, %v3471_v12  ;;  %v2246_v11 = vadd.f32 %v16194_v13, %v16305_v19  ;;  %v13606_v13 = vld [vmem:[%s19954_s27 + $0xc8] sm:$0xff]  }
 0x327   : > { %v2617_v44 = vpop.f32.mrb[16].mxu0  ;;  %v3600_v26 = vsel %vm3344_vm15, %v12250_v10, %v3472_v59  ;;  %v3711_v46 = vpack.c.bf16 %v3599_v36, %v3595_v32  ;;  %v2248_v59 = vadd.f32 %v16196_v25, %v16310_v8 }
 0x328   : > { %v12252_v17 = vadd.f32 %v2617_v44, %v2232_v29  ;;  %v2619_v6 = vpop.f32.mrb[17].mxu0  ;;  %v3712_v50 = vpack.c.bf16 %v3600_v26, %v3596_v41  ;;  %v13605_v29 = vld [vmem:[%s19954_s27 + $0x80] sm:$0xff]   ;;  %v20013_v26 = vld [vmem:[#allocation48_spill] sm:$0xff] }
 0x329   : > { %v12254_v40 = vadd.f32 %v2619_v6, %v2234_v52  ;;  %v2621_v30 = vpop.f32.mrb[18].mxu0 }
 0x32a   : > { %v3475_v27 = vmul.f32 0.2, %v12252_v17  ;;  %v12256_v45 = vadd.f32 %v2621_v30, %v2236_v43  ;;  %v2623_v33 = vpop.f32.mrb[19].mxu0  ;;  %4082 = vmatprep.mubr.bf16.mxu0 %v3712_v50  ;;  %vm3347_vm0 = vcmp.gt.f32.partialorder %v12252_v17, 0.0  ;;  %v2252_v43 = vadd.f32 %v16200_v57, %v16305_v19  ;;  %v13608_v50 = vld [vmem:[%s19954_s27 + $0xd0] sm:$0xff]  }
 0x32b   : > { %v3476_v56 = vmul.f32 0.2, %v12254_v40  ;;  %v12258_v22 = vadd.f32 %v2623_v33, %v2238_v0  ;;  %4083 = vmatmul.mubr.bf16.gmra.mrb[76].mxu0 %v3711_v46  ;;  %vm3348_vm1 = vcmp.gt.f32.partialorder %v12254_v40, 0.0  ;;  %3112 = vmatmul.mubr.bf16.gmra.mrb[124].mxu1 %v20011_v63  ;;  %v13607_v46 = vld [vmem:[%s19954_s27 + $0x88] sm:$0xff]  }
 0x32c   : > { %vm3351_vm2 = vcmp.gt.f32.partialorder %v12256_v45, 0.0  ;;  %v3479_v58 = vmul.f32 0.2, %v12256_v45  ;;  %3154 = vmatprep.mubr.bf16.mxu1 %v20012_v34  ;;  %v3603_v31 = vsel %vm3347_vm0, %v12252_v17, %v3475_v27 }
 0x32d   : > { %vm3352_vm3 = vcmp.gt.f32.partialorder %v12258_v22, 0.0  ;;  %v3480_v16 = vmul.f32 0.2, %v12258_v22  ;;  %v3604_v2 = vsel %vm3348_vm1, %v12254_v40, %v3476_v56 }
 0x32e   : > { %v3607_v28 = vsel %vm3351_vm2, %v12256_v45, %v3479_v58  ;;  %v2256_v45 = vadd.f32 %v16204_v15, %v16305_v19  ;;  %v13610_v15 = vld [vmem:[%s19954_s27 + $0xd8] sm:$0xff]  }
 0x32f   : > { %v2627_v5 = vpop.f32.mrb[20].mxu0  ;;  %v3608_v38 = vsel %vm3352_vm3, %v12258_v22, %v3480_v16  ;;  %v3715_v39 = vpack.c.bf16 %v3607_v28, %v3603_v31  ;;  %v2258_v22 = vadd.f32 %v16206_v37, %v16310_v8 }
 0x330   : > { %v12260_v10 = vadd.f32 %v2627_v5, %v2242_v18  ;;  %v2629_v12 = vpop.f32.mrb[21].mxu0  ;;  %v3716_v60 = vpack.c.bf16 %v3608_v38, %v3604_v2  ;;  %v13611_v5 = vld [vmem:[%s19954_s27 + $0x98] sm:$0xff]   ;;  %v2262_v2 = vadd.f32 %v16210_v1, %v16305_v19 }
 0x331   : > { %v12262_v48 = vadd.f32 %v2629_v12, %v2244_v62  ;;  %v2631_v21 = vpop.f32.mrb[22].mxu0 }
 0x332   : > { %v3483_v23 = vmul.f32 0.2, %v12260_v10  ;;  %v12264_v32 = vadd.f32 %v2631_v21, %v2246_v11  ;;  %v2633_v36 = vpop.f32.mrb[23].mxu0  ;;  %4090 = vmatprep.mubr.bf16.mxu0 %v3716_v60  ;;  %vm3355_vm4 = vcmp.gt.f32.partialorder %v12260_v10, 0.0  ;;  %v13612_v11 = vld [vmem:[%s19954_s27 + $0xe0] sm:$0xff]  }
 0x333   : > { %v3484_v52 = vmul.f32 0.2, %v12262_v48  ;;  %v12266_v44 = vadd.f32 %v2633_v36, %v2248_v59  ;;  %4091 = vmatmul.mubr.bf16.gmra.mrb[80].mxu0 %v3715_v39  ;;  %vm3356_vm5 = vcmp.gt.f32.partialorder %v12262_v48, 0.0  ;;  %3155 = vmatmul.mubr.bf16.vlgmr.msra.gmra.mrb[64].mxu1 %v15919_v42  ;;  %v2254_v42 = vadd.f32 %v16202_v54, %v16310_v8  ;;  %v13609_v54 = vld [vmem:[%s19954_s27 + $0x90] sm:$0xff]  }
 0x334   : > { %vm3359_vm6 = vcmp.gt.f32.partialorder %v12264_v32, 0.0  ;;  %v3487_v25 = vmul.f32 0.2, %v12264_v32  ;;  %3164 = vmatprep.mubr.bf16.mxu1 %v20013_v26  ;;  %12108 = vmatpush3.bf16.msra.mxu1 %v13605_v29  ;;  %v3611_v17 = vsel %vm3355_vm4, %v12260_v10, %v3483_v23  ;;  %v2266_v59 = vadd.f32 %v16214_v9, %v16305_v19  ;;  %v13614_v9 = vld [vmem:[%s19954_s27 + $0xe8] sm:$0xff]  }
 0x335   : > { %vm3360_vm7 = vcmp.gt.f32.partialorder %v12266_v44, 0.0  ;;  %v3488_v41 = vmul.f32 0.2, %v12266_v44  ;;  %12109 = vmatprep.subr.bf16.mxu1 %v13606_v13  ;;  %v3612_v40 = vsel %vm3356_vm5, %v12262_v48, %v3484_v52  ;;  %v2268_v29 = vadd.f32 %v16216_v7, %v16310_v8  ;;  %v13615_v26 = vld [vmem:[%s19954_s27 + $0xa8] sm:$0xff]  }
 0x336   : > { %v3615_v6 = vsel %vm3359_vm6, %v12264_v32, %v3487_v25 }
 0x337   : > { %v2637_v0 = vpop.f32.mrb[24].mxu0  ;;  %v3616_v30 = vsel %vm3360_vm7, %v12266_v44, %v3488_v41  ;;  %v3719_v27 = vpack.c.bf16 %v3615_v6, %v3611_v17  ;;  %v2274_v6 = vadd.f32 %v16222_v61, %v16310_v8 }
 0x338   : > { %v12268_v33 = vadd.f32 %v2637_v0, %v2252_v43  ;;  %v2639_v57 = vpop.f32.mrb[25].mxu0  ;;  %v3720_v56 = vpack.c.bf16 %v3616_v30, %v3612_v40  ;;  %12110 = vmatpush3.bf16.msra.mxu1 %v13607_v46  ;;  %v2272_v46 = vadd.f32 %v16220_v35, %v16305_v19 }
 0x339   : > { %v12270_v58 = vadd.f32 %v2639_v57, %v2254_v42  ;;  %v2641_v63 = vpop.f32.mrb[26].mxu0  ;;  %12111 = vmatprep.subr.bf16.mxu1 %v13608_v50 }
 0x33a   : > { %v3491_v16 = vmul.f32 0.2, %v12268_v33  ;;  %v12272_v34 = vadd.f32 %v2641_v63, %v2256_v45  ;;  %v2643_v18 = vpop.f32.mrb[27].mxu0  ;;  %4098 = vmatprep.mubr.bf16.mxu0 %v3720_v56  ;;  %vm3363_vm8 = vcmp.gt.f32.partialorder %v12268_v33, 0.0  ;;  %v2278_v45 = vadd.f32 %v16226_v49, %v16310_v8 }
 0x33b   : > { %v3492_v31 = vmul.f32 0.2, %v12270_v58  ;;  %v12274_v28 = vadd.f32 %v2643_v18, %v2258_v22  ;;  %4099 = vmatmul.mubr.bf16.gmra.mrb[84].mxu0 %v3719_v27  ;;  %vm3364_vm9 = vcmp.gt.f32.partialorder %v12270_v58, 0.0  ;;  %3165 = vmatmul.mubr.bf16.gmra.mrb[68].mxu1 %v15931_v53  ;;  %v2264_v53 = vadd.f32 %v16212_v55, %v16310_v8  ;;  %v13613_v55 = vld [vmem:[%s19954_s27 + $0xa0] sm:$0xff]  }
 0x33c   : > { %vm3367_vm10 = vcmp.gt.f32.partialorder %v12272_v34, 0.0  ;;  %v3495_v37 = vmul.f32 0.2, %v12272_v34  ;;  %3174 = vmatprep.mubr.bf16.mxu1 %v15933_v14  ;;  %12112 = vmatpush3.bf16.msra.mxu1 %v13609_v54  ;;  %v3619_v38 = vsel %vm3363_vm8, %v12268_v33, %v3491_v16  ;;  %v2282_v49 = vadd.f32 %v16230_v47, %v16305_v19 }
 0x33d   : > { %vm3368_vm11 = vcmp.gt.f32.partialorder %v12274_v28, 0.0  ;;  %v3496_v62 = vmul.f32 0.2, %v12274_v28  ;;  %12113 = vmatprep.subr.bf16.mxu1 %v13610_v15  ;;  %v3620_v14 = vsel %vm3364_vm9, %v12270_v58, %v3492_v31 }
 0x33e   : > { %v3623_v39 = vsel %vm3367_vm10, %v12272_v34, %v3495_v37  ;;  %v20014_v34 = vld [vmem:[#allocation72_spill] sm:$0xff] }
 0x33f   : > { %v2647_v10 = vpop.f32.mrb[28].mxu0  ;;  %v3624_v12 = vsel %vm3368_vm11, %v12274_v28, %v3496_v62  ;;  %v3723_v60 = vpack.c.bf16 %v3623_v39, %v3619_v38  ;;  %v2284_v18 = vadd.f32 %v20014_v34, %v16310_v8  ;;  %v20015_v62 = vld [vmem:[#allocation73_spill] sm:$0xff] }
 0x340   : > { %v12276_v48 = vadd.f32 %v2647_v10, %v2262_v2  ;;  %v2649_v1 = vpop.f32.mrb[29].mxu0  ;;  %v3724_v21 = vpack.c.bf16 %v3624_v12, %v3620_v14  ;;  %12114 = vmatpush3.bf16.msra.mxu1 %v13611_v5  ;;  %v2286_v5 = vadd.f32 %v20015_v62, %v16305_v19  ;;  %v20027_v34 = vld [vmem:[#allocation81_spill] sm:$0xff] }
 0x341   : > { %v12278_v23 = vadd.f32 %v2649_v1, %v2264_v53  ;;  %v2651_v32 = vpop.f32.mrb[30].mxu0  ;;  %12115 = vmatprep.subr.bf16.mxu1 %v13612_v11 }
 0x342   : > { %v3499_v36 = vmul.f32 0.2, %v12276_v48  ;;  %v12280_v13 = vadd.f32 %v2651_v32, %v2266_v59  ;;  %v2653_v52 = vpop.f32.mrb[31].mxu0  ;;  %4106 = vmatprep.mubr.bf16.mxu0 %v3724_v21  ;;  %vm3371_vm12 = vcmp.gt.f32.partialorder %v12276_v48, 0.0  ;;  %v20018_v21 = vld [vmem:[#allocation50_spill] sm:$0xff] }
 0x343   : > { %v3500_v44 = vmul.f32 0.2, %v12278_v23  ;;  %v12282_v25 = vadd.f32 %v2653_v52, %v2268_v29  ;;  %4107 = vmatmul.mubr.bf16.gmra.mrb[88].mxu0 %v3723_v60  ;;  %vm3372_vm13 = vcmp.gt.f32.partialorder %v12278_v23, 0.0  ;;  %3175 = vmatmul.mubr.bf16.gmra.mrb[72].mxu1 %v15943_v24  ;;  %v20019_v29 = vld [vmem:[#allocation75_spill] sm:$0xff] }
 0x344   : > { %vm3375_vm14 = vcmp.gt.f32.partialorder %v12280_v13, 0.0  ;;  %v3503_v7 = vmul.f32 0.2, %v12280_v13  ;;  %3184 = vmatprep.mubr.bf16.mxu1 %v15945_v3  ;;  %12116 = vmatpush3.bf16.msra.mxu1 %v13613_v55  ;;  %v3627_v43 = vsel %vm3371_vm12, %v12276_v48, %v3499_v36  ;;  %v2276_v3 = vadd.f32 %v16224_v51, %v16305_v19  ;;  %v20017_v48 = vld [vmem:[#allocation49_spill] sm:$0xff]  ;;  %v20020_v36 = vld [vmem:[#allocation76_spill] sm:$0xff] }
 0x345   : > { %vm3376_vm15 = vcmp.gt.f32.partialorder %v12282_v25, 0.0  ;;  %v3504_v41 = vmul.f32 0.2, %v12282_v25  ;;  %12117 = vmatprep.subr.bf16.mxu1 %v13614_v9  ;;  %v3628_v24 = vsel %vm3372_vm13, %v12278_v23, %v3500_v44  ;;  %v2292_v23 = vadd.f32 %v20019_v29, %v16305_v19 }
 0x346   : > { %v3631_v17 = vsel %vm3375_vm14, %v12280_v13, %v3503_v7  ;;  %v2294_v13 = vadd.f32 %v20020_v36, %v16310_v8  ;;  %v20021_v7 = vld [vmem:[#allocation77_spill] sm:$0xff] }
 0x347   : > { %v2657_v50 = vpop.f32.mrb[32].mxu0  ;;  %v3632_v42 = vsel %vm3376_vm15, %v12282_v25, %v3504_v41  ;;  %v3727_v0 = vpack.c.bf16 %v3631_v17, %v3627_v43  ;;  %v2296_v41 = vadd.f32 %v20021_v7, %v16305_v19  ;;  %v20022_v17 = vld [vmem:[#allocation78_spill] sm:$0xff]  ;;  %v20033_v36 = vld [vmem:[#allocation85_spill] sm:$0xff] }
 0x348   : > { %v12284_v40 = vadd.f32 %v2657_v50, %v2272_v46  ;;  %v2659_v30 = vpop.f32.mrb[33].mxu0  ;;  %v3728_v27 = vpack.c.bf16 %v3632_v42, %v3628_v24  ;;  %12118 = vmatpush3.bf16.msra.mxu1 %v13615_v26 }
 0x349   : > { %v12286_v35 = vadd.f32 %v2659_v30, %v2274_v6  ;;  %v2661_v33 = vpop.f32.mrb[34].mxu0  ;;  %v2298_v6 = vadd.f32 %v20022_v17, %v16310_v8 }
 0x34a   : > { %v3507_v57 = vmul.f32 0.2, %v12284_v40  ;;  %v12288_v56 = vadd.f32 %v2661_v33, %v2276_v3  ;;  %v2663_v22 = vpop.f32.mrb[35].mxu0  ;;  %4114 = vmatprep.mubr.bf16.mxu0 %v3728_v27  ;;  %vm3379_vm0 = vcmp.gt.f32.partialorder %v12284_v40, 0.0  ;;  %v20024_v33 = vld [vmem:[#allocation52_spill] sm:$0xff] }
 0x34b   : > { %v3508_v61 = vmul.f32 0.2, %v12286_v35  ;;  %v12290_v58 = vadd.f32 %v2663_v22, %v2278_v45  ;;  %4115 = vmatmul.mubr.bf16.gmra.mrb[92].mxu0 %v3727_v0  ;;  %vm3380_vm1 = vcmp.gt.f32.partialorder %v12286_v35, 0.0  ;;  %3185 = vmatmul.mubr.bf16.gmra.mrb[76].mxu1 %v15955_v20  ;;  %v20023_v45 = vld [vmem:[#allocation51_spill] sm:$0xff] }
 0x34c   : > { %vm3383_vm2 = vcmp.gt.f32.partialorder %v12288_v56, 0.0  ;;  %v3511_v51 = vmul.f32 0.2, %v12288_v56  ;;  %3194 = vmatprep.mubr.bf16.mxu1 %v15957_v4  ;;  %v3635_v54 = vsel %vm3379_vm0, %v12284_v40, %v3507_v57  ;;  %v20016_v4 = vld [vmem:[#allocation74_spill] sm:$0xff]  ;;  %v20025_v57 = vld [vmem:[#allocation79_spill] sm:$0xff] }
 0x34d   : > { %vm3384_vm3 = vcmp.gt.f32.partialorder %v12290_v58, 0.0  ;;  %v3512_v63 = vmul.f32 0.2, %v12290_v58  ;;  %v3636_v31 = vsel %vm3380_vm1, %v12286_v35, %v3508_v61  ;;  %v2288_v39 = vadd.f32 %v20016_v4, %v16310_v8 }
 0x34e   : > { %v3639_v16 = vsel %vm3383_vm2, %v12288_v56, %v3511_v51  ;;  %v2302_v56 = vadd.f32 %v20025_v57, %v16305_v19 }
 0x34f   : > { %v2667_v15 = vpop.f32.mrb[36].mxu0  ;;  %v3640_v28 = vsel %vm3384_vm3, %v12290_v58, %v3512_v63  ;;  %v3731_v37 = vpack.c.bf16 %v3639_v16, %v3635_v54  ;;  %v20026_v58 = vld [vmem:[#allocation80_spill] sm:$0xff] }
 0x350   : > { %v12292_v20 = vadd.f32 %v2667_v15, %v2282_v49  ;;  %v2669_v2 = vpop.f32.mrb[37].mxu0  ;;  %v3732_v38 = vpack.c.bf16 %v3640_v28, %v3636_v31  ;;  %v2304_v51 = vadd.f32 %v20026_v58, %v16310_v8  ;;  %v20039_v58 = vld [vmem:[#allocation89_spill] sm:$0xff] }
 0x351   : > { %v12294_v11 = vadd.f32 %v2669_v2, %v2284_v18  ;;  %v2671_v47 = vpop.f32.mrb[38].mxu0  ;;  %v2306_v18 = vadd.f32 %v20027_v34, %v16305_v19 }
 0x352   : > { %v3515_v53 = vmul.f32 0.2, %v12292_v20  ;;  %v12296_v10 = vadd.f32 %v2671_v47, %v2286_v5  ;;  %v2673_v14 = vpop.f32.mrb[39].mxu0  ;;  %4122 = vmatprep.mubr.bf16.mxu0 %v3732_v38  ;;  %vm3387_vm4 = vcmp.gt.f32.partialorder %v12292_v20, 0.0 }
 0x353   : > { %v3516_v12 = vmul.f32 0.2, %v12294_v11  ;;  %v12298_v60 = vadd.f32 %v2673_v14, %v2288_v39  ;;  %4123 = vmatmul.mubr.bf16.gmra.mrb[96].mxu0 %v3731_v37  ;;  %vm3388_vm5 = vcmp.gt.f32.partialorder %v12294_v11, 0.0  ;;  %3195 = vmatmul.mubr.bf16.gmra.mrb[80].mxu1 %v20017_v48  ;;  %v20028_v37 = vld [vmem:[#allocation82_spill] sm:$0xff] }
 0x354   : > { %vm3391_vm6 = vcmp.gt.f32.partialorder %v12296_v10, 0.0  ;;  %v3519_v59 = vmul.f32 0.2, %v12296_v10  ;;  %3204 = vmatprep.mubr.bf16.mxu1 %v20018_v21  ;;  %v3643_v32 = vsel %vm3387_vm4, %v12292_v20, %v3515_v53  ;;  %v2308_v62 = vadd.f32 %v20028_v37, %v16310_v8  ;;  %v20029_v53 = vld [vmem:[#allocation53_spill] sm:$0xff]  ;;  %v20030_v14 = vld [vmem:[#allocation54_spill] sm:$0xff] }
 0x355   : > { %vm3392_vm7 = vcmp.gt.f32.partialorder %v12298_v60, 0.0  ;;  %v3520_v1 = vmul.f32 0.2, %v12298_v60  ;;  %v3644_v9 = vsel %vm3388_vm5, %v12294_v11, %v3516_v12  ;;  %v20031_v12 = vld [vmem:[#allocation83_spill] sm:$0xff] }
 0x356   : > { %v3647_v55 = vsel %vm3391_vm6, %v12296_v10, %v3519_v59 }
 0x357   : > { %v2677_v52 = vpop.f32.mrb[40].mxu0  ;;  %v3648_v44 = vsel %vm3392_vm7, %v12298_v60, %v3520_v1  ;;  %v3735_v25 = vpack.c.bf16 %v3647_v55, %v3643_v32  ;;  %v2312_v60 = vadd.f32 %v20031_v12, %v16305_v19  ;;  %v20032_v1 = vld [vmem:[#allocation84_spill] sm:$0xff]  ;;  %v20044_v12 = vld [vmem:[#allocation91_spill] sm:$0xff] }
 0x358   : > { %v12300_v26 = vadd.f32 %v2677_v52, %v2292_v23  ;;  %v2679_v46 = vpop.f32.mrb[41].mxu0  ;;  %v3736_v43 = vpack.c.bf16 %v3648_v44, %v3644_v9  ;;  %v2314_v21 = vadd.f32 %v20032_v1, %v16310_v8 }
 0x359   : > { %v12302_v50 = vadd.f32 %v2679_v46, %v2294_v13  ;;  %v2681_v24 = vpop.f32.mrb[42].mxu0  ;;  %v2316_v13 = vadd.f32 %v20033_v36, %v16305_v19 }
 0x35a   : > { %v3523_v42 = vmul.f32 0.2, %v12300_v26  ;;  %v12304_v0 = vadd.f32 %v2681_v24, %v2296_v41  ;;  %v2683_v3 = vpop.f32.mrb[43].mxu0  ;;  %4130 = vmatprep.mubr.bf16.mxu0 %v3736_v43  ;;  %vm3395_vm8 = vcmp.gt.f32.partialorder %v12300_v26, 0.0 }
 0x35b   : > { %v3524_v40 = vmul.f32 0.2, %v12302_v50  ;;  %v12306_v30 = vadd.f32 %v2683_v3, %v2298_v6  ;;  %4131 = vmatmul.mubr.bf16.gmra.mrb[100].mxu0 %v3735_v25  ;;  %vm3396_vm9 = vcmp.gt.f32.partialorder %v12302_v50, 0.0  ;;  %3205 = vmatmul.mubr.bf16.gmra.mrb[84].mxu1 %v20023_v45  ;;  %v20034_v25 = vld [vmem:[#allocation86_spill] sm:$0xff]  ;;  %v20036_v3 = vld [vmem:[#allocation56_spill] sm:$0xff] }
 0x35c   : > { %vm3399_vm10 = vcmp.gt.f32.partialorder %v12304_v0, 0.0  ;;  %v3527_v27 = vmul.f32 0.2, %v12304_v0  ;;  %3214 = vmatprep.mubr.bf16.mxu1 %v20024_v33  ;;  %v3651_v22 = vsel %vm3395_vm8, %v12300_v26, %v3523_v42  ;;  %v2318_v7 = vadd.f32 %v20034_v25, %v16310_v8  ;;  %v20035_v42 = vld [vmem:[#allocation55_spill] sm:$0xff] }
 0x35d   : > { %vm3400_vm11 = vcmp.gt.f32.partialorder %v12306_v30, 0.0  ;;  %v3528_v35 = vmul.f32 0.2, %v12306_v30  ;;  %v3652_v49 = vsel %vm3396_vm9, %v12302_v50, %v3524_v40  ;;  %v20037_v40 = vld [vmem:[#allocation87_spill] sm:$0xff] }
 0x35e   : > { %v3655_v61 = vsel %vm3399_vm10, %v12304_v0, %v3527_v27 }
 0x35f   : > { %v2687_v63 = vpop.f32.mrb[44].mxu0  ;;  %v3656_v54 = vsel %vm3400_vm11, %v12306_v30, %v3528_v35  ;;  %v3739_v16 = vpack.c.bf16 %v3655_v61, %v3651_v22  ;;  %v2322_v30 = vadd.f32 %v20037_v40, %v16305_v19  ;;  %v20038_v35 = vld [vmem:[#allocation88_spill] sm:$0xff] }
 0x360   : > { %v12308_v15 = vadd.f32 %v2687_v63, %v2302_v56  ;;  %v2689_v31 = vpop.f32.mrb[45].mxu0  ;;  %v3740_v28 = vpack.c.bf16 %v3656_v54, %v3652_v49  ;;  %v2324_v33 = vadd.f32 %v20038_v35, %v16310_v8  ;;  %v20050_v40 = vld [vmem:[#allocation96_spill] sm:$0xff] }
 0x361   : > { %v12310_v5 = vadd.f32 %v2689_v31, %v2304_v51  ;;  %v2691_v20 = vpop.f32.mrb[46].mxu0  ;;  %v2326_v51 = vadd.f32 %v20039_v58, %v16305_v19 }
 0x362   : > { %v3531_v2 = vmul.f32 0.2, %v12308_v15  ;;  %v12312_v38 = vadd.f32 %v2691_v20, %v2306_v18  ;;  %v2693_v4 = vpop.f32.mrb[47].mxu0  ;;  %4138 = vmatprep.mubr.bf16.mxu0 %v3740_v28  ;;  %vm3403_vm12 = vcmp.gt.f32.partialorder %v12308_v15, 0.0 }
 0x363   : > { %v3532_v39 = vmul.f32 0.2, %v12310_v5  ;;  %v12314_v11 = vadd.f32 %v2693_v4, %v2308_v62  ;;  %4139 = vmatmul.mubr.bf16.gmra.mrb[104].mxu0 %v3739_v16  ;;  %vm3404_vm13 = vcmp.gt.f32.partialorder %v12310_v5, 0.0  ;;  %3215 = vmatmul.mubr.bf16.gmra.mrb[88].mxu1 %v20029_v53  ;;  %v20040_v16 = vld [vmem:[#allocation90_spill] sm:$0xff]  ;;  %v13617_v4 = vld [vmem:[%s19954_s27 + $0xb0] sm:$0xff]  }
 0x364   : > { %vm3407_vm14 = vcmp.gt.f32.partialorder %v12312_v38, 0.0  ;;  %v3535_v47 = vmul.f32 0.2, %v12312_v38  ;;  %3224 = vmatprep.mubr.bf16.mxu1 %v20030_v14  ;;  %v3659_v59 = vsel %vm3403_vm12, %v12308_v15, %v3531_v2  ;;  %v2328_v34 = vadd.f32 %v20040_v16, %v16310_v8  ;;  %v20041_v2 = vld [vmem:[#allocation57_spill] sm:$0xff] }
 0x365   : > { %vm3408_vm15 = vcmp.gt.f32.partialorder %v12314_v11, 0.0  ;;  %v3536_v10 = vmul.f32 0.2, %v12314_v11  ;;  %v3660_v23 = vsel %vm3404_vm13, %v12310_v5, %v3532_v39 }
 0x366   : > { %v3663_v48 = vsel %vm3407_vm14, %v12312_v38, %v3535_v47  ;;  %v13616_v38 = vld [vmem:[%s19954_s27 + $0xf0] sm:$0xff]   ;;  %v20043_v47 = vld [vmem:[#allocation33_spill] sm:$0xff] }
 0x367   : > { %v2697_v29 = vpop.f32.mrb[48].mxu0  ;;  %v3664_v32 = vsel %vm3408_vm15, %v12314_v11, %v3536_v10  ;;  %v3743_v55 = vpack.c.bf16 %v3663_v48, %v3659_v59  ;;  %v20042_v11 = vld [vmem:[#allocation58_spill] sm:$0xff]  ;;  %v2332_v53 = vadd.f32 %v20043_v47, %v16305_v19  ;;  %12119 = vmatprep.subr.bf16.mxu1 %v13616_v38  ;;  %v20055_v47 = vld [vmem:[#allocation63_spill] sm:$0xff] }
 0x368   : > { %v12316_v52 = vadd.f32 %v2697_v29, %v2312_v60  ;;  %v2699_v9 = vpop.f32.mrb[49].mxu0  ;;  %v3744_v44 = vpack.c.bf16 %v3664_v32, %v3660_v23  ;;  %v2334_v60 = vadd.f32 %v20044_v12, %v16310_v8  ;;  %12120 = vmatpush3.bf16.msra.mxu1 %v13617_v4  ;;  %v20045_v29 = vld [vmem:[#allocation92_spill] sm:$0xff]  ;;  %v20059_v12 = vld [vmem:[#allocation67_spill] sm:$0xff] }
 0x369   : > { %v12318_v41 = vadd.f32 %v2699_v9, %v2314_v21  ;;  %v2701_v26 = vpop.f32.mrb[50].mxu0  ;;  %v2336_v23 = vadd.f32 %v20045_v29, %v16305_v19 }
 0x36a   : > { %v3539_v46 = vmul.f32 0.2, %v12316_v52  ;;  %v12320_v43 = vadd.f32 %v2701_v26, %v2316_v13  ;;  %v2703_v17 = vpop.f32.mrb[51].mxu0  ;;  %4146 = vmatprep.mubr.bf16.mxu0 %v3744_v44  ;;  %vm3411_vm0 = vcmp.gt.f32.partialorder %v12316_v52, 0.0  ;;  %v20046_v13 = vld [vmem:[#allocation94_spill] sm:$0xff] }
 0x36b   : > { %v3540_v6 = vmul.f32 0.2, %v12318_v41  ;;  %v12322_v50 = vadd.f32 %v2703_v17, %v2318_v7  ;;  %4147 = vmatmul.mubr.bf16.gmra.mrb[108].mxu0 %v3743_v55  ;;  %vm3412_vm1 = vcmp.gt.f32.partialorder %v12318_v41, 0.0  ;;  %3225 = vmatmul.mubr.bf16.gmra.mrb[92].mxu1 %v20035_v42  ;;  %v20047_v17 = vld [vmem:[#allocation59_spill] sm:$0xff] }
 0x36c   : > { %vm3415_vm2 = vcmp.gt.f32.partialorder %v12320_v43, 0.0  ;;  %v3543_v24 = vmul.f32 0.2, %v12320_v43  ;;  %3234 = vmatprep.mubr.bf16.mxu1 %v20036_v3  ;;  %v3667_v27 = vsel %vm3411_vm0, %v12316_v52, %v3539_v46  ;;  %v2338_v52 = vadd.f32 %v20046_v13, %v16310_v8 }
 0x36d   : > { %vm3416_vm3 = vcmp.gt.f32.partialorder %v12322_v50, 0.0  ;;  %v3544_v0 = vmul.f32 0.2, %v12322_v50  ;;  %v3668_v56 = vsel %vm3412_vm1, %v12318_v41, %v3540_v6 }
 0x36e   : > { %v3671_v45 = vsel %vm3415_vm2, %v12320_v43, %v3543_v24  ;;  %v20049_v24 = vld [vmem:[#allocation95_spill] sm:$0xff] }
 0x36f   : > { %v2707_v57 = vpop.f32.mrb[52].mxu0  ;;  %v3672_v22 = vsel %vm3416_vm3, %v12322_v50, %v3544_v0  ;;  %v3747_v61 = vpack.c.bf16 %v3671_v45, %v3667_v27  ;;  %v20048_v50 = vld [vmem:[#allocation60_spill] sm:$0xff]  ;;  %v2342_v42 = vadd.f32 %v20049_v24, %v16305_v19 }
 0x370   : > { %v12324_v63 = vadd.f32 %v2707_v57, %v2322_v30  ;;  %v2709_v49 = vpop.f32.mrb[53].mxu0  ;;  %v3748_v54 = vpack.c.bf16 %v3672_v22, %v3668_v56  ;;  %v2344_v30 = vadd.f32 %v20050_v40, %v16310_v8  ;;  %v20051_v57 = vld [vmem:[#allocation97_spill] sm:$0xff] }
 0x371   : > { %v12326_v18 = vadd.f32 %v2709_v49, %v2324_v33  ;;  %v2711_v15 = vpop.f32.mrb[54].mxu0  ;;  %v2346_v56 = vadd.f32 %v20051_v57, %v16305_v19  ;;  %v20053_v19 = vld [vmem:[#allocation61_spill] sm:$0xff] }
 0x372   : > { %v3547_v31 = vmul.f32 0.2, %v12324_v63  ;;  %v12328_v28 = vadd.f32 %v2711_v15, %v2326_v51  ;;  %v2713_v37 = vpop.f32.mrb[55].mxu0  ;;  %4154 = vmatprep.mubr.bf16.mxu0 %v3748_v54  ;;  %vm3419_vm4 = vcmp.gt.f32.partialorder %v12324_v63, 0.0  ;;  %v20052_v51 = vld [vmem:[#allocation98_spill] sm:$0xff] }
 0x373   : > { %v3548_v62 = vmul.f32 0.2, %v12326_v18  ;;  %v12330_v5 = vadd.f32 %v2713_v37, %v2328_v34  ;;  %4155 = vmatmul.mubr.bf16.gmra.mrb[112].mxu0 %v3747_v61  ;;  %vm3420_vm5 = vcmp.gt.f32.partialorder %v12326_v18, 0.0  ;;  %3235 = vmatmul.mubr.bf16.gmra.mrb[96].mxu1 %v20041_v2  ;;  %v13618_v37 = vld [vmem:[%s19954_s27 + $0xf8] sm:$0xff]  }
 0x374   : > { %vm3423_vm6 = vcmp.gt.f32.partialorder %v12328_v28, 0.0  ;;  %v3551_v20 = vmul.f32 0.2, %v12328_v28  ;;  %3244 = vmatprep.mubr.bf16.mxu1 %v20042_v11  ;;  %v3675_v10 = vsel %vm3419_vm4, %v12324_v63, %v3547_v31  ;;  %v2348_v63 = vadd.f32 %v20052_v51, %v16310_v8  ;;  %v13619_v8 = vld [vmem:[%s19954_s27 + $0xb8] sm:$0xff]   ;;  %12121 = vmatprep.subr.bf16.mxu1 %v13618_v37 }
 0x375   : > { %vm3424_vm7 = vcmp.gt.f32.partialorder %v12330_v5, 0.0  ;;  %v3552_v39 = vmul.f32 0.2, %v12330_v5  ;;  %v3676_v48 = vsel %vm3420_vm5, %v12326_v18, %v3548_v62  ;;  %12122 = vmatpush3.bf16.msra.mxu1 %v13619_v8 }
 0x376   : > { %v3679_v14 = vsel %vm3423_vm6, %v12328_v28, %v3551_v20 }
 0x377   : > { %v2717_v59 = vpop.f32.mrb[56].mxu0  ;;  %v3680_v1 = vsel %vm3424_vm7, %v12330_v5, %v3552_v39  ;;  %v3751_v21 = vpack.c.bf16 %v3679_v14, %v3675_v10  ;;  %v20054_v5 = vld [vmem:[#allocation62_spill] sm:$0xff]  ;;  %v20057_v10 = vld [vmem:[#allocation65_spill] sm:$0xff] }
 0x378   : > { %v12332_v32 = vadd.f32 %v2717_v59, %v2332_v53  ;;  %v2719_v55 = vpop.f32.mrb[57].mxu0  ;;  %v3752_v36 = vpack.c.bf16 %v3680_v1, %v3676_v48  ;;  %v20056_v53 = vld [vmem:[#allocation64_spill] sm:$0xff]  ;;  %v20058_v14 = vld [vmem:[#allocation66_spill] sm:$0xff]  ;;  %v20061_v59 = vld [vmem:[#allocation69_spill] sm:$0xff] }
 0x379   : > { %v12334_v9 = vadd.f32 %v2719_v55, %v2334_v60  ;;  %v2721_v44 = vpop.f32.mrb[58].mxu0  ;;  %v20060_v60 = vld [vmem:[#allocation68_spill] sm:$0xff]  ;;  %v20062_v48 = vld [vmem:[#allocation70_spill] sm:$0xff]  ;;  %v20063_v1 = vld [vmem:[#allocation71_spill] sm:$0xff] }
 0x37a   : > { %v3555_v25 = vmul.f32 0.2, %v12332_v32  ;;  %v12336_v7 = vadd.f32 %v2721_v44, %v2336_v23  ;;  %v2723_v41 = vpop.f32.mrb[59].mxu0  ;;  %4162 = vmatprep.mubr.bf16.mxu0 %v3752_v36  ;;  %vm3427_vm8 = vcmp.gt.f32.partialorder %v12332_v32, 0.0 }
 0x37b   : > { %v3556_v26 = vmul.f32 0.2, %v12334_v9  ;;  %v12338_v46 = vadd.f32 %v2723_v41, %v2338_v52  ;;  %4163 = vmatmul.mubr.bf16.gmra.mrb[116].mxu0 %v3751_v21  ;;  %vm3428_vm9 = vcmp.gt.f32.partialorder %v12334_v9, 0.0  ;;  %3245 = vmatmul.mubr.bf16.gmra.mrb[100].mxu1 %v20047_v17 }
 0x37c   : > { %vm3431_vm10 = vcmp.gt.f32.partialorder %v12336_v7, 0.0  ;;  %v3559_v43 = vmul.f32 0.2, %v12336_v7  ;;  %3254 = vmatprep.mubr.bf16.mxu1 %v20048_v50  ;;  %v3683_v0 = vsel %vm3427_vm8, %v12332_v32, %v3555_v25 }
 0x37d   : > { %vm3432_vm11 = vcmp.gt.f32.partialorder %v12338_v46, 0.0  ;;  %v3560_v6 = vmul.f32 0.2, %v12338_v46  ;;  %v3684_v45 = vsel %vm3428_vm9, %v12334_v9, %v3556_v26 }
 0x37e   : > { %v3687_v3 = vsel %vm3431_vm10, %v12336_v7, %v3559_v43 }
 0x37f   : > { %v2727_v27 = vpop.f32.mrb[60].mxu0  ;;  %v3688_v35 = vsel %vm3432_vm11, %v12338_v46, %v3560_v6  ;;  %v3755_v33 = vpack.c.bf16 %v3687_v3, %v3683_v0  ;;  %v20064_v3 = vld [vmem:[#allocation93_spill] sm:$0xff] }
 0x380   : > { %v12340_v22 = vadd.f32 %v2727_v27, %v2342_v42  ;;  %v2729_v61 = vpop.f32.mrb[61].mxu0  ;;  %v3756_v58 = vpack.c.bf16 %v3688_v35, %v3684_v45  ;;  %v16548_v40 = vsub.s32 2, %v20064_v3  ;;  %v16551_v27 = vsub.s32 3, %v20064_v3  ;;  %v14676_v35 = vld [vmem:[#allocation7] sm:$0xf] }
 0x381   : > { %v12342_v49 = vadd.f32 %v2729_v61, %v2344_v30  ;;  %v2731_v54 = vpop.f32.mrb[62].mxu0 }
 0x382   : > { %v3563_v16 = vmul.f32 0.2, %v12340_v22  ;;  %v12344_v34 = vadd.f32 %v2731_v54, %v2346_v56  ;;  %v2733_v18 = vpop.f32.mrb[63].mxu0  ;;  %4170 = vmatprep.mubr.bf16.mxu0 %v3756_v58  ;;  %vm3435_vm12 = vcmp.gt.f32.partialorder %v12340_v22, 0.0  ;;  %20065 = vst [vmem:[#allocation36_spill] sm:$0xff] %v16548_v40  ;;  %20066 = vst [vmem:[#allocation37_spill] sm:$0xff] %v16551_v27  ;;  %v16559_v57 = vrot.slane %v14676_v35, %v16551_v27 }
 0x383   : > { %v3564_v15 = vmul.f32 0.2, %v12342_v49  ;;  %v12346_v31 = vadd.f32 %v2733_v18, %v2348_v63  ;;  %4171 = vmatmul.mubr.bf16.gmra.mrb[120].mxu0 %v3755_v33  ;;  %vm3436_vm13 = vcmp.gt.f32.partialorder %v12342_v49, 0.0  ;;  %3255 = vmatmul.mubr.bf16.gmra.mrb[104].mxu1 %v20053_v19  ;;  %v16556_v33 = vrot.slane %v14676_v35, %v16548_v40 }
 0x384   : > { %vm3439_vm14 = vcmp.gt.f32.partialorder %v12344_v34, 0.0  ;;  %v3567_v28 = vmul.f32 0.2, %v12344_v34  ;;  %3264 = vmatprep.mubr.bf16.mxu1 %v20054_v5  ;;  %v3691_v20 = vsel %vm3435_vm12, %v12340_v22, %v3563_v16 }
 0x385   : > { %vm3440_vm15 = vcmp.gt.f32.partialorder %v12346_v31, 0.0  ;;  %v3568_v62 = vmul.f32 0.2, %v12346_v31  ;;  %v3692_v38 = vsel %vm3436_vm13, %v12342_v49, %v3564_v15 }
 0x386   : > { %v3695_v2 = vsel %vm3439_vm14, %v12344_v34, %v3567_v28 }
 0x387   : > { %v3696_v4 = vsel %vm3440_vm15, %v12346_v31, %v3568_v62  ;;  %v3759_v39 = vpack.c.bf16 %v3695_v2, %v3691_v20 }
 0x388   : > { %v3760_v11 = vpack.c.bf16 %v3696_v4, %v3692_v38 }
 0x38a   : > { %4178 = vmatprep.mubr.bf16.mxu0 %v3760_v11 }
 0x38b   : > { %4179 = vmatmul.mubr.bf16.gmra.mrb[124].mxu0 %v3759_v39  ;;  %3265 = vmatmul.mubr.bf16.gmra.mrb[108].mxu1 %v20055_v47 }
 0x38c   : > { %3274 = vmatprep.mubr.bf16.mxu1 %v20056_v53 }
 0x393   : > { %3275 = vmatmul.mubr.bf16.gmra.mrb[112].mxu1 %v20057_v10 }
 0x394   : > { %3284 = vmatprep.mubr.bf16.mxu1 %v20058_v14 }
 0x39b   : > { %3285 = vmatmul.mubr.bf16.gmra.mrb[116].mxu1 %v20059_v12 }
 0x39c   : > { %3294 = vmatprep.mubr.bf16.mxu1 %v20060_v60 }
 0x3a3   : > { %3295 = vmatmul.mubr.bf16.gmra.mrb[120].mxu1 %v20061_v59 }
 0x3a4   : > { %3304 = vmatprep.mubr.bf16.mxu1 %v20062_v48 }
 0x3ab   : > { %3305 = vmatmul.mubr.bf16.gmra.mrb[124].mxu1 %v20063_v1 }
 0x3e6   : > { %v12011_v21 = vpop.f32.mrb[64].mxu0 }
 0x3e7   : > { %v12012_v29 = vpop.f32.mrb[65].mxu0 }
 0x3e8   : > { %v16533_v23 = vadd.f32 %v12012_v29, %v12011_v21  ;;  %v12014_v32 = vpop.f32.mrb[66].mxu0 }
 0x3e9   : > { %v12015_v55 = vpop.f32.mrb[67].mxu0 }
 0x3ea   : > { %v16535_v36 = vadd.f32 %v12015_v55, %v12014_v32  ;;  %v4877_v55 = vld [vmem:[%s16582_s2 + $0x8] sm:$0xff] }
 0x3eb   : > { %4942 = vrot.lane.b32.xlu0 %v4877_v55, %s15127_s5 }
 0x3ee   : > { %v12017_v13 = vpop.f32.mrb[68].mxu0 }
 0x3ef   : > { %v12018_v52 = vpop.f32.mrb[69].mxu0 }
 0x3f0   : > { %v16537_v9 = vadd.f32 %v12018_v52, %v12017_v13  ;;  %v12020_v44 = vpop.f32.mrb[70].mxu0  ;;  %v4876_v13 = vld [vmem:[%s16582_s2] sm:$0xff] }
 0x3f1   : > { %v12021_v25 = vpop.f32.mrb[71].mxu0  ;;  %4940 = vrot.lane.b32.xlu1 %v4876_v13, %s15127_s5 }
 0x3f2   : > { %v16539_v7 = vadd.f32 %v12021_v25, %v12020_v44 }
 0x3f6   : > { %v12023_v41 = vpop.f32.mrb[72].mxu0 }
 0x3f7   : > { %v12024_v26 = vpop.f32.mrb[73].mxu0 }
 0x3f8   : > { %v16541_v46 = vadd.f32 %v12024_v26, %v12023_v41  ;;  %v12026_v43 = vpop.f32.mrb[74].mxu0  ;;  %v4878_v26 = vld [vmem:[%s16582_s2 + $0x10] sm:$0xff] }
 0x3f9   : > { %v12027_v17 = vpop.f32.mrb[75].mxu0  ;;  %4944 = vrot.lane.b32.xlu0 %v4878_v26, %s15127_s5 }
 0x3fa   : > { %v16543_v6 = vadd.f32 %v12027_v17, %v12026_v43  ;;  %v4879_v17 = vld [vmem:[%s16582_s2 + $0x18] sm:$0xff] }
 0x3fb   : > { %4946 = vrot.lane.b32.xlu1 %v4879_v17, %s15127_s5 }
 0x3fe   : > { %v12029_v50 = vpop.f32.mrb[76].mxu0 }
 0x3ff   : > { %v12030_v24 = vpop.f32.mrb[77].mxu0 }
 0x400   : > { %v16545_v42 = vadd.f32 %v12030_v24, %v12029_v50  ;;  %v12032_v0 = vpop.f32.mrb[78].mxu0 }
 0x401   : > { %v12033_v30 = vpop.f32.mrb[79].mxu0 }
 0x402   : > { %v16553_v45 = vadd.f32 %v12033_v30, %v12032_v0 }
 0x406   : > { %v12035_v56 = vpop.f32.mrb[80].mxu0  ;;  %v3156_v22 = vpop.f32.mrb[64].mxu1 }
 0x407   : > { %v12036_v61 = vpop.f32.mrb[81].mxu0  ;;  %v12347_v58 = vadd.f32 %v3156_v22, %v16556_v33  ;;  %v3158_v63 = vpop.f32.mrb[65].mxu1 }
 0x408   : > { %v16562_v51 = vadd.f32 %v12036_v61, %v12035_v56  ;;  %v12038_v49 = vpop.f32.mrb[82].mxu0  ;;  %v12348_v54 = vadd.f32 %v3158_v63, %v16559_v57  ;;  %v3160_v16 = vpop.f32.mrb[66].mxu1 }
 0x409   : > { %v12039_v34 = vpop.f32.mrb[83].mxu0  ;;  %v3445_v18 = vmul.f32 0.2, %v12347_v58  ;;  %v12349_v15 = vadd.f32 %v3160_v16, %v16556_v33  ;;  %v3162_v31 = vpop.f32.mrb[67].mxu1  ;;  %vm3317_vm0 = vcmp.gt.f32.partialorder %v12347_v58, 0.0 }
 0x40a   : > { %v3446_v28 = vmul.f32 0.2, %v12348_v54  ;;  %v16566_v19 = vadd.f32 %v12039_v34, %v12038_v49  ;;  %v12350_v37 = vadd.f32 %v3162_v31, %v16559_v57  ;;  %vm3318_vm1 = vcmp.gt.f32.partialorder %v12348_v54, 0.0  ;;  %v4881_v34 = vld [vmem:[%s16582_s2 + $0x28] sm:$0xff] }
 0x40b   : > { %vm3321_vm2 = vcmp.gt.f32.partialorder %v12349_v15, 0.0  ;;  %v3449_v8 = vmul.f32 0.2, %v12349_v15  ;;  %v3573_v5 = vsel %vm3317_vm0, %v12347_v58, %v3445_v18  ;;  %4950 = vrot.lane.b32.xlu0 %v4881_v34, %s15127_s5 }
 0x40c   : > { %vm3322_vm3 = vcmp.gt.f32.partialorder %v12350_v37, 0.0  ;;  %v3450_v62 = vmul.f32 0.2, %v12350_v37  ;;  %v3574_v11 = vsel %vm3318_vm1, %v12348_v54, %v3446_v28  ;;  %v4880_v28 = vld [vmem:[%s16582_s2 + $0x20] sm:$0xff] }
 0x40d   : > { %v3577_v20 = vsel %vm3321_vm2, %v12349_v15, %v3449_v8  ;;  %4948 = vrot.lane.b32.xlu1 %v4880_v28, %s15127_s5 }
 0x40e   : > { %v12041_v2 = vpop.f32.mrb[84].mxu0  ;;  %v3701_v38 = vpack.c.bf16 %v3577_v20, %v3573_v5  ;;  %v3166_v4 = vpop.f32.mrb[68].mxu1  ;;  %v3578_v47 = vsel %vm3322_vm3, %v12350_v37, %v3450_v62 }
 0x40f   : > { %v12042_v39 = vpop.f32.mrb[85].mxu0  ;;  %v12351_v53 = vadd.f32 %v3166_v4, %v16556_v33  ;;  %v3168_v14 = vpop.f32.mrb[69].mxu1  ;;  %v3702_v60 = vpack.c.bf16 %v3578_v47, %v3574_v11  ;;  %v4882_v4 = vld [vmem:[%s16582_s2 + $0x30] sm:$0xff]  ;;  %v4883_v11 = vld [vmem:[%s16582_s2 + $0x38] sm:$0xff] }
 0x410   : > { %v16573_v10 = vadd.f32 %v12042_v39, %v12041_v2  ;;  %v12044_v12 = vpop.f32.mrb[86].mxu0  ;;  %v12352_v59 = vadd.f32 %v3168_v14, %v16559_v57  ;;  %v3170_v48 = vpop.f32.mrb[70].mxu1  ;;  %4952 = vrot.lane.b32.xlu0 %v4882_v4, %s15127_s5 }
 0x411   : > { %v12045_v1 = vpop.f32.mrb[87].mxu0  ;;  %v3453_v21 = vmul.f32 0.2, %v12351_v53  ;;  %v12353_v29 = vadd.f32 %v3170_v48, %v16556_v33  ;;  %v3172_v32 = vpop.f32.mrb[71].mxu1  ;;  %4219 = vmatprep.mubr.bf16.mxu1 %v3702_v60  ;;  %vm3325_vm4 = vcmp.gt.f32.partialorder %v12351_v53, 0.0  ;;  %4954 = vrot.lane.b32.xlu1 %v4883_v11, %s15127_s5 }
 0x412   : > { %v3454_v52 = vmul.f32 0.2, %v12352_v59  ;;  %v16587_v44 = vadd.f32 %v12045_v1, %v12044_v12  ;;  %v12354_v25 = vadd.f32 %v3172_v32, %v16559_v57  ;;  %4220 = vmatmul.mubr.bf16.vlgmr.msra.gmra.mrb[128].mxu1 %v3701_v38  ;;  %vm3326_vm5 = vcmp.gt.f32.partialorder %v12352_v59, 0.0 }
 0x413   : > { %vm3329_vm6 = vcmp.gt.f32.partialorder %v12353_v29, 0.0  ;;  %v3457_v41 = vmul.f32 0.2, %v12353_v29  ;;  %v3581_v24 = vsel %vm3325_vm4, %v12351_v53, %v3453_v21 }
 0x414   : > { %vm3330_vm7 = vcmp.gt.f32.partialorder %v12354_v25, 0.0  ;;  %v3458_v43 = vmul.f32 0.2, %v12354_v25  ;;  %v3582_v56 = vsel %vm3326_vm5, %v12352_v59, %v3454_v52  ;;  %v4885_v52 = vld [vmem:[%s16582_s2 + $0x48] sm:$0xff] }
 0x415   : > { %v3585_v0 = vsel %vm3329_vm6, %v12353_v29, %v3457_v41  ;;  %4958 = vrot.lane.b32.xlu0 %v4885_v52, %s15127_s5 }
 0x416   : > { %v12047_v50 = vpop.f32.mrb[88].mxu0  ;;  %v3176_v30 = vpop.f32.mrb[72].mxu1  ;;  %v3586_v22 = vsel %vm3330_vm7, %v12354_v25, %v3458_v43  ;;  %v3705_v61 = vpack.c.bf16 %v3585_v0, %v3581_v24  ;;  %v4884_v43 = vld [vmem:[%s16582_s2 + $0x40] sm:$0xff] }
 0x417   : > { %v12048_v35 = vpop.f32.mrb[89].mxu0  ;;  %v12355_v58 = vadd.f32 %v3176_v30, %v16556_v33  ;;  %v3178_v49 = vpop.f32.mrb[73].mxu1  ;;  %v3706_v16 = vpack.c.bf16 %v3586_v22, %v3582_v56  ;;  %4956 = vrot.lane.b32.xlu1 %v4884_v43, %s15127_s5  ;;  %v4886_v22 = vld [vmem:[%s16582_s2 + $0x50] sm:$0xff] }
 0x418   : > { %v16597_v63 = vadd.f32 %v12048_v35, %v12047_v50  ;;  %v12050_v54 = vpop.f32.mrb[90].mxu0  ;;  %v12356_v18 = vadd.f32 %v3178_v49, %v16559_v57  ;;  %v3180_v15 = vpop.f32.mrb[74].mxu1 }
 0x419   : > { %v12051_v31 = vpop.f32.mrb[91].mxu0  ;;  %v3461_v37 = vmul.f32 0.2, %v12355_v58  ;;  %v12357_v8 = vadd.f32 %v3180_v15, %v16556_v33  ;;  %v3182_v62 = vpop.f32.mrb[75].mxu1  ;;  %4227 = vmatprep.mubr.bf16.mxu1 %v3706_v16  ;;  %vm3333_vm8 = vcmp.gt.f32.partialorder %v12355_v58, 0.0  ;;  %4960 = vrot.lane.b32.xlu0 %v4886_v22, %s15127_s5 }
 0x41a   : > { %v3462_v5 = vmul.f32 0.2, %v12356_v18  ;;  %v16604_v20 = vadd.f32 %v12051_v31, %v12050_v54  ;;  %v12358_v2 = vadd.f32 %v3182_v62, %v16559_v57  ;;  %4228 = vmatmul.mubr.bf16.gmra.mrb[132].mxu1 %v3705_v61  ;;  %vm3334_vm9 = vcmp.gt.f32.partialorder %v12356_v18, 0.0 }
 0x41b   : > { %vm3337_vm10 = vcmp.gt.f32.partialorder %v12357_v8, 0.0  ;;  %v3465_v38 = vmul.f32 0.2, %v12357_v8  ;;  %v3589_v53 = vsel %vm3333_vm8, %v12355_v58, %v3461_v37  ;;  %v4887_v58 = vld [vmem:[%s16582_s2 + $0x58] sm:$0xff] }
 0x41c   : > { %vm3338_vm11 = vcmp.gt.f32.partialorder %v12358_v2, 0.0  ;;  %v3466_v39 = vmul.f32 0.2, %v12358_v2  ;;  %v3590_v59 = vsel %vm3334_vm9, %v12356_v18, %v3462_v5  ;;  %4962 = vrot.lane.b32.xlu1 %v4887_v58, %s15127_s5 }
 0x41d   : > { %v3593_v14 = vsel %vm3337_vm10, %v12357_v8, %v3465_v38  ;;  %v4889_v38 = vld [vmem:[%s16582_s2 + $0x68] sm:$0xff] }
 0x41e   : > { %v12053_v47 = vpop.f32.mrb[92].mxu0  ;;  %v3186_v12 = vpop.f32.mrb[76].mxu1  ;;  %v3594_v48 = vsel %vm3338_vm11, %v12358_v2, %v3466_v39  ;;  %v3709_v1 = vpack.c.bf16 %v3593_v14, %v3589_v53  ;;  %4966 = vrot.lane.b32.xlu0 %v4889_v38, %s15127_s5  ;;  %v4895_v38 = vld [vmem:[%s16582_s2 + $0x98] sm:$0xff] }
 0x41f   : > { %v12054_v60 = vpop.f32.mrb[93].mxu0  ;;  %v12359_v21 = vadd.f32 %v3186_v12, %v16556_v33  ;;  %v3188_v32 = vpop.f32.mrb[77].mxu1  ;;  %v3710_v13 = vpack.c.bf16 %v3594_v48, %v3590_v59 }
 0x420   : > { %v16613_v29 = vadd.f32 %v12054_v60, %v12053_v47  ;;  %v12056_v55 = vpop.f32.mrb[94].mxu0  ;;  %v12360_v25 = vadd.f32 %v3188_v32, %v16559_v57  ;;  %v3190_v41 = vpop.f32.mrb[78].mxu1  ;;  %v4888_v47 = vld [vmem:[%s16582_s2 + $0x60] sm:$0xff] }
 0x421   : > { %v12057_v26 = vpop.f32.mrb[95].mxu0  ;;  %v3469_v17 = vmul.f32 0.2, %v12359_v21  ;;  %v12361_v50 = vadd.f32 %v3190_v41, %v16556_v33  ;;  %v3192_v24 = vpop.f32.mrb[79].mxu1  ;;  %4235 = vmatprep.mubr.bf16.mxu1 %v3710_v13  ;;  %vm3341_vm12 = vcmp.gt.f32.partialorder %v12359_v21, 0.0  ;;  %4964 = vrot.lane.b32.xlu1 %v4888_v47, %s15127_s5 }
 0x422   : > { %v3470_v0 = vmul.f32 0.2, %v12360_v25  ;;  %v16620_v30 = vadd.f32 %v12057_v26, %v12056_v55  ;;  %v12362_v35 = vadd.f32 %v3192_v24, %v16559_v57  ;;  %4236 = vmatmul.mubr.bf16.gmra.mrb[136].mxu1 %v3709_v1  ;;  %vm3342_vm13 = vcmp.gt.f32.partialorder %v12360_v25, 0.0  ;;  %v4891_v55 = vld [vmem:[%s16582_s2 + $0x78] sm:$0xff] }
 0x423   : > { %vm3345_vm14 = vcmp.gt.f32.partialorder %v12361_v50, 0.0  ;;  %v3473_v56 = vmul.f32 0.2, %v12361_v50  ;;  %v3597_v54 = vsel %vm3341_vm12, %v12359_v21, %v3469_v17  ;;  %v4890_v21 = vld [vmem:[%s16582_s2 + $0x70] sm:$0xff] }
 0x424   : > { %vm3346_vm15 = vcmp.gt.f32.partialorder %v12362_v35, 0.0  ;;  %v3474_v61 = vmul.f32 0.2, %v12362_v35  ;;  %v3598_v15 = vsel %vm3342_vm13, %v12360_v25, %v3470_v0  ;;  %4968 = vrot.lane.b32.xlu0 %v4890_v21, %s15127_s5 }
 0x425   : > { %v3601_v16 = vsel %vm3345_vm14, %v12361_v50, %v3473_v56  ;;  %4970 = vrot.lane.b32.xlu1 %v4891_v55, %s15127_s5 }
 0x426   : > { %v12059_v49 = vpop.f32.mrb[96].mxu0  ;;  %v3196_v34 = vpop.f32.mrb[80].mxu1  ;;  %v3602_v31 = vsel %vm3346_vm15, %v12362_v35, %v3474_v61  ;;  %v3713_v28 = vpack.c.bf16 %v3601_v16, %v3597_v54  ;;  %v4893_v61 = vld [vmem:[%s16582_s2 + $0x88] sm:$0xff]  ;;  %v4892_v16 = vld [vmem:[%s16582_s2 + $0x80] sm:$0xff] }
 0x427   : > { %v12060_v18 = vpop.f32.mrb[97].mxu0  ;;  %v12363_v37 = vadd.f32 %v3196_v34, %v16556_v33  ;;  %v3198_v62 = vpop.f32.mrb[81].mxu1  ;;  %v3714_v2 = vpack.c.bf16 %v3602_v31, %v3598_v15 }
 0x428   : > { %v16629_v8 = vadd.f32 %v12060_v18, %v12059_v49  ;;  %v12062_v5 = vpop.f32.mrb[98].mxu0  ;;  %v12364_v4 = vadd.f32 %v3198_v62, %v16559_v57  ;;  %v3200_v39 = vpop.f32.mrb[82].mxu1  ;;  %4974 = vrot.lane.b32.xlu0 %v4893_v61, %s15127_s5  ;;  %v4898_v61 = vld [vmem:[%s16582_s2 + $0xb0] sm:$0xff] }
 0x429   : > { %v12063_v11 = vpop.f32.mrb[99].mxu0  ;;  %v3477_v53 = vmul.f32 0.2, %v12363_v37  ;;  %v12365_v14 = vadd.f32 %v3200_v39, %v16556_v33  ;;  %v3202_v12 = vpop.f32.mrb[83].mxu1  ;;  %4243 = vmatprep.mubr.bf16.mxu1 %v3714_v2  ;;  %vm3349_vm0 = vcmp.gt.f32.partialorder %v12363_v37, 0.0  ;;  %4972 = vrot.lane.b32.xlu1 %v4892_v16, %s15127_s5 }
 0x42a   : > { %v3478_v60 = vmul.f32 0.2, %v12364_v4  ;;  %v16636_v59 = vadd.f32 %v12063_v11, %v12062_v5  ;;  %v12366_v48 = vadd.f32 %v3202_v12, %v16559_v57  ;;  %4244 = vmatmul.mubr.bf16.gmra.mrb[140].mxu1 %v3713_v28  ;;  %vm3350_vm1 = vcmp.gt.f32.partialorder %v12364_v4, 0.0  ;;  %v4894_v5 = vld [vmem:[%s16582_s2 + $0x90] sm:$0xff] }
 0x42b   : > { %vm3353_vm2 = vcmp.gt.f32.partialorder %v12365_v14, 0.0  ;;  %v3481_v1 = vmul.f32 0.2, %v12365_v14  ;;  %v3605_v52 = vsel %vm3349_vm0, %v12363_v37, %v3477_v53 }
 0x42c   : > { %vm3354_vm3 = vcmp.gt.f32.partialorder %v12366_v48, 0.0  ;;  %v3482_v32 = vmul.f32 0.2, %v12366_v48  ;;  %v3606_v43 = vsel %vm3350_vm1, %v12364_v4, %v3478_v60  ;;  %4976 = vrot.lane.b32.xlu0 %v4894_v5, %s15127_s5 }
 0x42d   : > { %v3609_v25 = vsel %vm3353_vm2, %v12365_v14, %v3481_v1  ;;  %4978 = vrot.lane.b32.xlu1 %v4895_v38, %s15127_s5 }
 0x42e   : > { %v12065_v13 = vpop.f32.mrb[100].mxu0  ;;  %v3206_v41 = vpop.f32.mrb[84].mxu1  ;;  %v3610_v17 = vsel %vm3354_vm3, %v12366_v48, %v3482_v32  ;;  %v3717_v50 = vpack.c.bf16 %v3609_v25, %v3605_v52 }
 0x42f   : > { %v12066_v26 = vpop.f32.mrb[101].mxu0  ;;  %v12367_v24 = vadd.f32 %v3206_v41, %v16556_v33  ;;  %v3208_v35 = vpop.f32.mrb[85].mxu1  ;;  %v3718_v22 = vpack.c.bf16 %v3610_v17, %v3606_v43 }
 0x430   : > { %v16645_v0 = vadd.f32 %v12066_v26, %v12065_v13  ;;  %v12068_v56 = vpop.f32.mrb[102].mxu0  ;;  %v12368_v58 = vadd.f32 %v3208_v35, %v16559_v57  ;;  %v3210_v49 = vpop.f32.mrb[86].mxu1  ;;  %v4897_v13 = vld [vmem:[%s16582_s2 + $0xa8] sm:$0xff]  ;;  %v4896_v26 = vld [vmem:[%s16582_s2 + $0xa0] sm:$0xff] }
 0x431   : > { %v12069_v54 = vpop.f32.mrb[103].mxu0  ;;  %v3485_v34 = vmul.f32 0.2, %v12367_v24  ;;  %v12369_v18 = vadd.f32 %v3210_v49, %v16556_v33  ;;  %v3212_v15 = vpop.f32.mrb[87].mxu1  ;;  %4251 = vmatprep.mubr.bf16.mxu1 %v3718_v22  ;;  %vm3357_vm4 = vcmp.gt.f32.partialorder %v12367_v24, 0.0  ;;  %4982 = vrot.lane.b32.xlu0 %v4897_v13, %s15127_s5  ;;  %v4899_v49 = vld [vmem:[%s16582_s2 + $0xb8] sm:$0xff] }
 0x432   : > { %v3486_v31 = vmul.f32 0.2, %v12368_v58  ;;  %v16652_v28 = vadd.f32 %v12069_v54, %v12068_v56  ;;  %v12370_v37 = vadd.f32 %v3212_v15, %v16559_v57  ;;  %4252 = vmatmul.mubr.bf16.gmra.mrb[144].mxu1 %v3717_v50  ;;  %vm3358_vm5 = vcmp.gt.f32.partialorder %v12368_v58, 0.0  ;;  %4980 = vrot.lane.b32.xlu1 %v4896_v26, %s15127_s5  ;;  %v4903_v26 = vld [vmem:[%s16582_s2 + $0xd8] sm:$0xff] }
 0x433   : > { %vm3361_vm6 = vcmp.gt.f32.partialorder %v12369_v18, 0.0  ;;  %v3489_v62 = vmul.f32 0.2, %v12369_v18  ;;  %v3613_v39 = vsel %vm3357_vm4, %v12367_v24, %v3485_v34 }
 0x434   : > { %vm3362_vm7 = vcmp.gt.f32.partialorder %v12370_v37, 0.0  ;;  %v3490_v2 = vmul.f32 0.2, %v12370_v37  ;;  %v3614_v14 = vsel %vm3358_vm5, %v12368_v58, %v3486_v31 }
 0x435   : > { %v3617_v11 = vsel %vm3361_vm6, %v12369_v18, %v3489_v62  ;;  %4984 = vrot.lane.b32.xlu0 %v4898_v61, %s15127_s5 }
 0x436   : > { %v12071_v4 = vpop.f32.mrb[104].mxu0  ;;  %v3216_v47 = vpop.f32.mrb[88].mxu1  ;;  %v3618_v12 = vsel %vm3362_vm7, %v12370_v37, %v3490_v2  ;;  %v3721_v60 = vpack.c.bf16 %v3617_v11, %v3613_v39  ;;  %4986 = vrot.lane.b32.xlu1 %v4899_v49, %s15127_s5  ;;  %v4901_v11 = vld [vmem:[%s16582_s2 + $0xc8] sm:$0xff] }
 0x437   : > { %v12072_v53 = vpop.f32.mrb[105].mxu0  ;;  %v12371_v48 = vadd.f32 %v3216_v47, %v16556_v33  ;;  %v3218_v21 = vpop.f32.mrb[89].mxu1  ;;  %v3722_v55 = vpack.c.bf16 %v3618_v12, %v3614_v14  ;;  %v4900_v12 = vld [vmem:[%s16582_s2 + $0xc0] sm:$0xff] }
 0x438   : > { %v16661_v1 = vadd.f32 %v12072_v53, %v12071_v4  ;;  %v12074_v32 = vpop.f32.mrb[106].mxu0  ;;  %v12372_v52 = vadd.f32 %v3218_v21, %v16559_v57  ;;  %v3220_v25 = vpop.f32.mrb[90].mxu1 }
 0x439   : > { %v12075_v41 = vpop.f32.mrb[107].mxu0  ;;  %v3493_v43 = vmul.f32 0.2, %v12371_v48  ;;  %v12373_v17 = vadd.f32 %v3220_v25, %v16556_v33  ;;  %v3222_v50 = vpop.f32.mrb[91].mxu1  ;;  %4259 = vmatprep.mubr.bf16.mxu1 %v3722_v55  ;;  %vm3365_vm8 = vcmp.gt.f32.partialorder %v12371_v48, 0.0  ;;  %4990 = vrot.lane.b32.xlu0 %v4901_v11, %s15127_s5  ;;  %v4902_v25 = vld [vmem:[%s16582_s2 + $0xd0] sm:$0xff] }
 0x43a   : > { %v3494_v24 = vmul.f32 0.2, %v12372_v52  ;;  %v16668_v35 = vadd.f32 %v12075_v41, %v12074_v32  ;;  %v12374_v56 = vadd.f32 %v3222_v50, %v16559_v57  ;;  %4260 = vmatmul.mubr.bf16.gmra.mrb[148].mxu1 %v3721_v60  ;;  %vm3366_vm9 = vcmp.gt.f32.partialorder %v12372_v52, 0.0  ;;  %4988 = vrot.lane.b32.xlu1 %v4900_v12, %s15127_s5 }
 0x43b   : > { %vm3369_vm10 = vcmp.gt.f32.partialorder %v12373_v17, 0.0  ;;  %v3497_v22 = vmul.f32 0.2, %v12373_v17  ;;  %v3621_v16 = vsel %vm3365_vm8, %v12371_v48, %v3493_v43 }
 0x43c   : > { %vm3370_vm11 = vcmp.gt.f32.partialorder %v12374_v56, 0.0  ;;  %v3498_v58 = vmul.f32 0.2, %v12374_v56  ;;  %v3622_v31 = vsel %vm3366_vm9, %v12372_v52, %v3494_v24 }
 0x43d   : > { %v3625_v34 = vsel %vm3369_vm10, %v12373_v17, %v3497_v22  ;;  %4992 = vrot.lane.b32.xlu0 %v4902_v25, %s15127_s5 }
 0x43e   : > { %v12077_v54 = vpop.f32.mrb[108].mxu0  ;;  %v3226_v18 = vpop.f32.mrb[92].mxu1  ;;  %v3626_v37 = vsel %vm3370_vm11, %v12374_v56, %v3498_v58  ;;  %v3725_v62 = vpack.c.bf16 %v3625_v34, %v3621_v16  ;;  %4994 = vrot.lane.b32.xlu1 %v4903_v26, %s15127_s5 }
 0x43f   : > { %v12078_v15 = vpop.f32.mrb[109].mxu0  ;;  %v12375_v5 = vadd.f32 %v3226_v18, %v16556_v33  ;;  %v3228_v38 = vpop.f32.mrb[93].mxu1  ;;  %v3726_v39 = vpack.c.bf16 %v3626_v37, %v3622_v31 }
 0x440   : > { %v16677_v2 = vadd.f32 %v12078_v15, %v12077_v54  ;;  %v12080_v4 = vpop.f32.mrb[110].mxu0  ;;  %v12376_v47 = vadd.f32 %v3228_v38, %v16559_v57  ;;  %v3230_v53 = vpop.f32.mrb[94].mxu1 }
 0x441   : > { %v12081_v14 = vpop.f32.mrb[111].mxu0  ;;  %v3501_v60 = vmul.f32 0.2, %v12375_v5  ;;  %v12377_v48 = vadd.f32 %v3230_v53, %v16556_v33  ;;  %v3232_v21 = vpop.f32.mrb[95].mxu1  ;;  %4267 = vmatprep.mubr.bf16.mxu1 %v3726_v39  ;;  %vm3373_vm12 = vcmp.gt.f32.partialorder %v12375_v5, 0.0 }
 0x442   : > { %v3502_v32 = vmul.f32 0.2, %v12376_v47  ;;  %v16684_v55 = vadd.f32 %v12081_v14, %v12080_v4  ;;  %v12378_v13 = vadd.f32 %v3232_v21, %v16559_v57  ;;  %4268 = vmatmul.mubr.bf16.gmra.mrb[152].mxu1 %v3725_v62  ;;  %vm3374_vm13 = vcmp.gt.f32.partialorder %v12376_v47, 0.0 }
 0x443   : > { %vm3377_vm14 = vcmp.gt.f32.partialorder %v12377_v48, 0.0  ;;  %v3505_v52 = vmul.f32 0.2, %v12377_v48  ;;  %v3629_v17 = vsel %vm3373_vm12, %v12375_v5, %v3501_v60 }
 0x444   : > { %vm3378_vm15 = vcmp.gt.f32.partialorder %v12378_v13, 0.0  ;;  %v3506_v41 = vmul.f32 0.2, %v12378_v13  ;;  %v3630_v22 = vsel %vm3374_vm13, %v12376_v47, %v3502_v32 }
 0x445   : > { %v3633_v50 = vsel %vm3377_vm14, %v12377_v48, %v3505_v52 }
 0x446   : > { %v12083_v43 = vpop.f32.mrb[112].mxu0  ;;  %v3236_v24 = vpop.f32.mrb[96].mxu1  ;;  %v3634_v61 = vsel %vm3378_vm15, %v12378_v13, %v3506_v41  ;;  %v3729_v58 = vpack.c.bf16 %v3633_v50, %v3629_v17 }
 0x447   : > { %v12084_v56 = vpop.f32.mrb[113].mxu0  ;;  %v12379_v49 = vadd.f32 %v3236_v24, %v16556_v33  ;;  %v3238_v16 = vpop.f32.mrb[97].mxu1  ;;  %v3730_v18 = vpack.c.bf16 %v3634_v61, %v3630_v22 }
 0x448   : > { %v16693_v54 = vadd.f32 %v12084_v56, %v12083_v43  ;;  %v12086_v34 = vpop.f32.mrb[114].mxu0  ;;  %v12380_v15 = vadd.f32 %v3238_v16, %v16559_v57  ;;  %v3240_v31 = vpop.f32.mrb[98].mxu1 }
 0x449   : > { %v12087_v37 = vpop.f32.mrb[115].mxu0  ;;  %v3509_v62 = vmul.f32 0.2, %v12379_v49  ;;  %v12381_v5 = vadd.f32 %v3240_v31, %v16556_v33  ;;  %v3242_v38 = vpop.f32.mrb[99].mxu1  ;;  %4275 = vmatprep.mubr.bf16.mxu1 %v3730_v18  ;;  %vm3381_vm0 = vcmp.gt.f32.partialorder %v12379_v49, 0.0 }
 0x44a   : > { %v3510_v4 = vmul.f32 0.2, %v12380_v15  ;;  %v16698_v39 = vadd.f32 %v12087_v37, %v12086_v34  ;;  %v12382_v11 = vadd.f32 %v3242_v38, %v16559_v57  ;;  %4276 = vmatmul.mubr.bf16.gmra.mrb[156].mxu1 %v3729_v58  ;;  %vm3382_vm1 = vcmp.gt.f32.partialorder %v12380_v15, 0.0 }
 0x44b   : > { %vm3385_vm2 = vcmp.gt.f32.partialorder %v12381_v5, 0.0  ;;  %v3513_v47 = vmul.f32 0.2, %v12381_v5  ;;  %v3637_v12 = vsel %vm3381_vm0, %v12379_v49, %v3509_v62 }
 0x44c   : > { %vm3386_vm3 = vcmp.gt.f32.partialorder %v12382_v11, 0.0  ;;  %v3514_v53 = vmul.f32 0.2, %v12382_v11  ;;  %v3638_v32 = vsel %vm3382_vm1, %v12380_v15, %v3510_v4 }
 0x44d   : > { %v3641_v60 = vsel %vm3385_vm2, %v12381_v5, %v3513_v47 }
 0x44e   : > { %v12089_v14 = vpop.f32.mrb[116].mxu0  ;;  %v3246_v48 = vpop.f32.mrb[100].mxu1  ;;  %v3642_v13 = vsel %vm3386_vm3, %v12382_v11, %v3514_v53  ;;  %v3733_v52 = vpack.c.bf16 %v3641_v60, %v3637_v12 }
 0x44f   : > { %v12090_v21 = vpop.f32.mrb[117].mxu0  ;;  %v12383_v25 = vadd.f32 %v3246_v48, %v16556_v33  ;;  %v3248_v26 = vpop.f32.mrb[101].mxu1  ;;  %v3734_v17 = vpack.c.bf16 %v3642_v13, %v3638_v32 }
 0x450   : > { %v16702_v41 = vadd.f32 %v12090_v21, %v12089_v14  ;;  %v12092_v43 = vpop.f32.mrb[118].mxu0  ;;  %v12384_v50 = vadd.f32 %v3248_v26, %v16559_v57  ;;  %v3250_v24 = vpop.f32.mrb[102].mxu1 }
 0x451   : > { %v12093_v56 = vpop.f32.mrb[119].mxu0  ;;  %v3517_v22 = vmul.f32 0.2, %v12383_v25  ;;  %v12385_v61 = vadd.f32 %v3250_v24, %v16556_v33  ;;  %v3252_v58 = vpop.f32.mrb[103].mxu1  ;;  %4283 = vmatprep.mubr.bf16.mxu1 %v3734_v17  ;;  %vm3389_vm4 = vcmp.gt.f32.partialorder %v12383_v25, 0.0 }
 0x452   : > { %v3518_v49 = vmul.f32 0.2, %v12384_v50  ;;  %v16706_v16 = vadd.f32 %v12093_v56, %v12092_v43  ;;  %v12386_v34 = vadd.f32 %v3252_v58, %v16559_v57  ;;  %4284 = vmatmul.mubr.bf16.gmra.mrb[160].mxu1 %v3733_v52  ;;  %vm3390_vm5 = vcmp.gt.f32.partialorder %v12384_v50, 0.0 }
 0x453   : > { %vm3393_vm6 = vcmp.gt.f32.partialorder %v12385_v61, 0.0  ;;  %v3521_v18 = vmul.f32 0.2, %v12385_v61  ;;  %v3645_v37 = vsel %vm3389_vm4, %v12383_v25, %v3517_v22 }
 0x454   : > { %vm3394_vm7 = vcmp.gt.f32.partialorder %v12386_v34, 0.0  ;;  %v3522_v15 = vmul.f32 0.2, %v12386_v34  ;;  %v3646_v4 = vsel %vm3390_vm5, %v12384_v50, %v3518_v49 }
 0x455   : > { %v3649_v62 = vsel %vm3393_vm6, %v12385_v61, %v3521_v18 }
 0x456   : > { %v12095_v31 = vpop.f32.mrb[120].mxu0  ;;  %v3256_v5 = vpop.f32.mrb[104].mxu1  ;;  %v3650_v11 = vsel %vm3394_vm7, %v12386_v34, %v3522_v15  ;;  %v3737_v47 = vpack.c.bf16 %v3649_v62, %v3645_v37 }
 0x457   : > { %v12096_v38 = vpop.f32.mrb[121].mxu0  ;;  %v12387_v53 = vadd.f32 %v3256_v5, %v16556_v33  ;;  %v3258_v12 = vpop.f32.mrb[105].mxu1  ;;  %v3738_v48 = vpack.c.bf16 %v3650_v11, %v3646_v4 }
 0x458   : > { %v16710_v14 = vadd.f32 %v12096_v38, %v12095_v31  ;;  %v12098_v60 = vpop.f32.mrb[122].mxu0  ;;  %v12388_v21 = vadd.f32 %v3258_v12, %v16559_v57  ;;  %v3260_v32 = vpop.f32.mrb[106].mxu1 }
 0x459   : > { %v12099_v13 = vpop.f32.mrb[123].mxu0  ;;  %v3525_v52 = vmul.f32 0.2, %v12387_v53  ;;  %v12389_v25 = vadd.f32 %v3260_v32, %v16556_v33  ;;  %v3262_v26 = vpop.f32.mrb[107].mxu1  ;;  %4291 = vmatprep.mubr.bf16.mxu1 %v3738_v48  ;;  %vm3397_vm8 = vcmp.gt.f32.partialorder %v12387_v53, 0.0 }
 0x45a   : > { %v3526_v43 = vmul.f32 0.2, %v12388_v21  ;;  %v16714_v17 = vadd.f32 %v12099_v13, %v12098_v60  ;;  %v12390_v50 = vadd.f32 %v3262_v26, %v16559_v57  ;;  %4292 = vmatmul.mubr.bf16.gmra.mrb[164].mxu1 %v3737_v47  ;;  %vm3398_vm9 = vcmp.gt.f32.partialorder %v12388_v21, 0.0 }
 0x45b   : > { %vm3401_vm10 = vcmp.gt.f32.partialorder %v12389_v25, 0.0  ;;  %v3529_v24 = vmul.f32 0.2, %v12389_v25  ;;  %v3653_v61 = vsel %vm3397_vm8, %v12387_v53, %v3525_v52 }
 0x45c   : > { %vm3402_vm11 = vcmp.gt.f32.partialorder %v12390_v50, 0.0  ;;  %v3530_v56 = vmul.f32 0.2, %v12390_v50  ;;  %v3654_v18 = vsel %vm3398_vm9, %v12388_v21, %v3526_v43 }
 0x45d   : > { %v3657_v58 = vsel %vm3401_vm10, %v12389_v25, %v3529_v24  ;;  %v4904_v24 = vld [vmem:[%s16582_s2 + $0xe0] sm:$0xff] }
 0x45e   : > { %v12101_v22 = vpop.f32.mrb[124].mxu0  ;;  %v3266_v49 = vpop.f32.mrb[108].mxu1  ;;  %v3658_v15 = vsel %vm3402_vm11, %v12390_v50, %v3530_v56  ;;  %v3741_v31 = vpack.c.bf16 %v3657_v58, %v3653_v61  ;;  %v4905_v50 = vld [vmem:[%s16582_s2 + $0xe8] sm:$0xff]  ;;  %4996 = vrot.lane.b32.xlu1 %v4904_v24, %s15127_s5 }
 0x45f   : > { %v12102_v34 = vpop.f32.mrb[125].mxu0  ;;  %v12391_v37 = vadd.f32 %v3266_v49, %v16556_v33  ;;  %v3268_v5 = vpop.f32.mrb[109].mxu1  ;;  %v3742_v4 = vpack.c.bf16 %v3658_v15, %v3654_v18  ;;  %4998 = vrot.lane.b32.xlu0 %v4905_v50, %s15127_s5 }
 0x460   : > { %v16718_v62 = vadd.f32 %v12102_v34, %v12101_v22  ;;  %v12104_v38 = vpop.f32.mrb[126].mxu0  ;;  %v12392_v11 = vadd.f32 %v3268_v5, %v16559_v57  ;;  %v3270_v47 = vpop.f32.mrb[110].mxu1 }
 0x461   : > { %v12105_v12 = vpop.f32.mrb[127].mxu0  ;;  %v3533_v60 = vmul.f32 0.2, %v12391_v37  ;;  %v12393_v53 = vadd.f32 %v3270_v47, %v16556_v33  ;;  %v3272_v48 = vpop.f32.mrb[111].mxu1  ;;  %4299 = vmatprep.mubr.bf16.mxu1 %v3742_v4  ;;  %vm3405_vm12 = vcmp.gt.f32.partialorder %v12391_v37, 0.0  ;;  %v4907_v47 = vld [vmem:[%s16582_s2 + $0xf8] sm:$0xff] }
 0x462   : > { %v3534_v21 = vmul.f32 0.2, %v12392_v11  ;;  %v16722_v32 = vadd.f32 %v12105_v12, %v12104_v38  ;;  %v12394_v13 = vadd.f32 %v3272_v48, %v16559_v57  ;;  %4300 = vmatmul.mubr.bf16.gmra.mrb[168].mxu1 %v3741_v31  ;;  %vm3406_vm13 = vcmp.gt.f32.partialorder %v12392_v11, 0.0  ;;  %v4906_v12 = vld [vmem:[%s16582_s2 + $0xf0] sm:$0xff] }
 0x463   : > { %vm3409_vm14 = vcmp.gt.f32.partialorder %v12393_v53, 0.0  ;;  %v3537_v52 = vmul.f32 0.2, %v12393_v53  ;;  %v3661_v26 = vsel %vm3405_vm12, %v12391_v37, %v3533_v60  ;;  %5002 = vrot.lane.b32.xlu0 %v4907_v47, %s15127_s5  ;;  %5000 = vrot.lane.b32.xlu1 %v4906_v12, %s15127_s5  ;;  %v19833_v48 = vmov 1  }
 0x464   : > { %vm3410_vm15 = vcmp.gt.f32.partialorder %v12394_v13, 0.0  ;;  %v3538_v25 = vmul.f32 0.2, %v12394_v13  ;;  %v3662_v22 = vsel %vm3406_vm13, %v12392_v11, %v3534_v21  ;;  %13162 = vset.pattern.permute.xlu1 %v19833_v48 }
 0x465   : > { %v3665_v43 = vsel %vm3409_vm14, %v12393_v53, %v3537_v52  ;;  %v19831_v52 = vmov 0  }
 0x466   : > { %v3276_v56 = vpop.f32.mrb[112].mxu1  ;;  %v3666_v61 = vsel %vm3410_vm15, %v12394_v13, %v3538_v25  ;;  %v3745_v58 = vpack.c.bf16 %v3665_v43, %v3661_v26  ;;  %13161 = vset.pattern.permute.xlu0 %v19831_v52 }
 0x467   : > { %v12395_v49 = vadd.f32 %v3276_v56, %v16556_v33  ;;  %v3278_v34 = vpop.f32.mrb[113].mxu1  ;;  %v3746_v18 = vpack.c.bf16 %v3666_v61, %v3662_v22 }
 0x468   : > { %v12396_v15 = vadd.f32 %v3278_v34, %v16559_v57  ;;  %v3280_v31 = vpop.f32.mrb[114].mxu1 }
 0x469   : > { %v3541_v37 = vmul.f32 0.2, %v12395_v49  ;;  %v12397_v5 = vadd.f32 %v3280_v31, %v16556_v33  ;;  %v3282_v38 = vpop.f32.mrb[115].mxu1  ;;  %4307 = vmatprep.mubr.bf16.mxu1 %v3746_v18  ;;  %vm3413_vm0 = vcmp.gt.f32.partialorder %v12395_v49, 0.0 }
 0x46a   : > { %v3542_v4 = vmul.f32 0.2, %v12396_v15  ;;  %v12398_v11 = vadd.f32 %v3282_v38, %v16559_v57  ;;  %4308 = vmatmul.mubr.bf16.gmra.mrb[172].mxu1 %v3745_v58  ;;  %vm3414_vm1 = vcmp.gt.f32.partialorder %v12396_v15, 0.0 }
 0x46b   : > { %vm3417_vm2 = vcmp.gt.f32.partialorder %v12397_v5, 0.0  ;;  %v3545_v60 = vmul.f32 0.2, %v12397_v5  ;;  %v3669_v21 = vsel %vm3413_vm0, %v12395_v49, %v3541_v37 }
 0x46c   : > { %vm3418_vm3 = vcmp.gt.f32.partialorder %v12398_v11, 0.0  ;;  %v3546_v53 = vmul.f32 0.2, %v12398_v11  ;;  %v3670_v26 = vsel %vm3414_vm1, %v12396_v15, %v3542_v4 }
 0x46d   : > { %v3673_v13 = vsel %vm3417_vm2, %v12397_v5, %v3545_v60 }
 0x46e   : > { %v3286_v25 = vpop.f32.mrb[116].mxu1  ;;  %v3674_v43 = vsel %vm3418_vm3, %v12398_v11, %v3546_v53  ;;  %v3749_v50 = vpack.c.bf16 %v3673_v13, %v3669_v21 }
 0x46f   : > { %v12399_v24 = vadd.f32 %v3286_v25, %v16556_v33  ;;  %v3288_v56 = vpop.f32.mrb[117].mxu1  ;;  %v3750_v22 = vpack.c.bf16 %v3674_v43, %v3670_v26 }
 0x470   : > { %v12400_v61 = vadd.f32 %v3288_v56, %v16559_v57  ;;  %v3290_v58 = vpop.f32.mrb[118].mxu1 }
 0x471   : > { %v3549_v34 = vmul.f32 0.2, %v12399_v24  ;;  %v12401_v18 = vadd.f32 %v3290_v58, %v16556_v33  ;;  %v3292_v31 = vpop.f32.mrb[119].mxu1  ;;  %4315 = vmatprep.mubr.bf16.mxu1 %v3750_v22  ;;  %vm3421_vm4 = vcmp.gt.f32.partialorder %v12399_v24, 0.0 }
 0x472   : > { %v3550_v49 = vmul.f32 0.2, %v12400_v61  ;;  %v12402_v37 = vadd.f32 %v3292_v31, %v16559_v57  ;;  %4316 = vmatmul.mubr.bf16.gmra.mrb[176].mxu1 %v3749_v50  ;;  %vm3422_vm5 = vcmp.gt.f32.partialorder %v12400_v61, 0.0 }
 0x473   : > { %vm3425_vm6 = vcmp.gt.f32.partialorder %v12401_v18, 0.0  ;;  %v3553_v15 = vmul.f32 0.2, %v12401_v18  ;;  %v3677_v38 = vsel %vm3421_vm4, %v12399_v24, %v3549_v34 }
 0x474   : > { %vm3426_vm7 = vcmp.gt.f32.partialorder %v12402_v37, 0.0  ;;  %v3554_v5 = vmul.f32 0.2, %v12402_v37  ;;  %v3678_v47 = vsel %vm3422_vm5, %v12400_v61, %v3550_v49 }
 0x475   : > { %v3681_v4 = vsel %vm3425_vm6, %v12401_v18, %v3553_v15 }
 0x476   : > { %v3296_v11 = vpop.f32.mrb[120].mxu1  ;;  %v3682_v12 = vsel %vm3426_vm7, %v12402_v37, %v3554_v5  ;;  %v3753_v60 = vpack.c.bf16 %v3681_v4, %v3677_v38 }
 0x477   : > { %v12403_v53 = vadd.f32 %v3296_v11, %v16556_v33  ;;  %v3298_v21 = vpop.f32.mrb[121].mxu1  ;;  %v3754_v13 = vpack.c.bf16 %v3682_v12, %v3678_v47 }
 0x478   : > { %v12404_v25 = vadd.f32 %v3298_v21, %v16559_v57  ;;  %v3300_v26 = vpop.f32.mrb[122].mxu1 }
 0x479   : > { %v3557_v43 = vmul.f32 0.2, %v12403_v53  ;;  %v12405_v50 = vadd.f32 %v3300_v26, %v16556_v33  ;;  %v3302_v56 = vpop.f32.mrb[123].mxu1  ;;  %4323 = vmatprep.mubr.bf16.mxu1 %v3754_v13  ;;  %vm3429_vm8 = vcmp.gt.f32.partialorder %v12403_v53, 0.0 }
 0x47a   : > { %v3558_v22 = vmul.f32 0.2, %v12404_v25  ;;  %v12406_v24 = vadd.f32 %v3302_v56, %v16559_v57  ;;  %4324 = vmatmul.mubr.bf16.gmra.mrb[180].mxu1 %v3753_v60  ;;  %vm3430_vm9 = vcmp.gt.f32.partialorder %v12404_v25, 0.0 }
 0x47b   : > { %vm3433_vm10 = vcmp.gt.f32.partialorder %v12405_v50, 0.0  ;;  %v3561_v61 = vmul.f32 0.2, %v12405_v50  ;;  %v3685_v34 = vsel %vm3429_vm8, %v12403_v53, %v3557_v43 }
 0x47c   : > { %vm3434_vm11 = vcmp.gt.f32.partialorder %v12406_v24, 0.0  ;;  %v3562_v58 = vmul.f32 0.2, %v12406_v24  ;;  %v3686_v49 = vsel %vm3430_vm9, %v12404_v25, %v3558_v22 }
 0x47d   : > { %v3689_v18 = vsel %vm3433_vm10, %v12405_v50, %v3561_v61 }
 0x47e   : > { %v3306_v31 = vpop.f32.mrb[124].mxu1  ;;  %v3690_v37 = vsel %vm3434_vm11, %v12406_v24, %v3562_v58  ;;  %v3757_v15 = vpack.c.bf16 %v3689_v18, %v3685_v34 }
 0x47f   : > { %v12407_v5 = vadd.f32 %v3306_v31, %v16556_v33  ;;  %v3308_v38 = vpop.f32.mrb[125].mxu1  ;;  %v3758_v4 = vpack.c.bf16 %v3690_v37, %v3686_v49 }
 0x480   : > { %v12408_v11 = vadd.f32 %v3308_v38, %v16559_v57  ;;  %v3310_v47 = vpop.f32.mrb[126].mxu1 }
 0x481   : > { %v3565_v12 = vmul.f32 0.2, %v12407_v5  ;;  %v12409_v60 = vadd.f32 %v3310_v47, %v16556_v33  ;;  %v3312_v21 = vpop.f32.mrb[127].mxu1  ;;  %4331 = vmatprep.mubr.bf16.mxu1 %v3758_v4  ;;  %vm3437_vm12 = vcmp.gt.f32.partialorder %v12407_v5, 0.0  ;;  %v16751_v33 = vld [vmem:[#allocation8] ss:$0 sm:$0xff] }
 0x482   : > { %v3566_v13 = vmul.f32 0.2, %v12408_v11  ;;  %v12410_v53 = vadd.f32 %v3312_v21, %v16559_v57  ;;  %4332 = vmatmul.mubr.bf16.gmra.mrb[184].mxu1 %v3757_v15  ;;  %vm3438_vm13 = vcmp.gt.f32.partialorder %v12408_v11, 0.0  ;;  %v4061_v57 = vadd.f32 %v16533_v23, %v16751_v33 }
 0x483   : > { %vm3441_vm14 = vcmp.gt.f32.partialorder %v12409_v60, 0.0  ;;  %v3569_v25 = vmul.f32 0.2, %v12409_v60  ;;  %v3693_v43 = vsel %vm3437_vm12, %v12407_v5, %v3565_v12  ;;  %v4064_v37 = vadd.f32 %v16535_v36, %v16751_v33 }
 0x484   : > { %vm3442_vm15 = vcmp.gt.f32.partialorder %v12410_v53, 0.0  ;;  %v3570_v26 = vmul.f32 0.2, %v12410_v53  ;;  %v3694_v56 = vsel %vm3438_vm13, %v12408_v11, %v3566_v13  ;;  %v4069_v23 = vadd.f32 %v16537_v9, %v16751_v33 }
 0x485   : > { %v3697_v50 = vsel %vm3441_vm14, %v12409_v60, %v3569_v25  ;;  %v4072_v36 = vadd.f32 %v16539_v7, %v16751_v33  ;;  %v4077_v9 = vadd.f32 %v16541_v46, %v16751_v33 }
 0x486   : > { %v3698_v22 = vsel %vm3442_vm15, %v12410_v53, %v3570_v26  ;;  %v3761_v24 = vpack.c.bf16 %v3697_v50, %v3693_v43 }
 0x487   : > { %v3762_v61 = vpack.c.bf16 %v3698_v22, %v3694_v56 }
 0x489   : > { %4339 = vmatprep.mubr.bf16.mxu1 %v3762_v61 }
 0x48a   : > { %4340 = vmatmul.mubr.bf16.gmra.mrb[188].mxu1 %v3761_v24 }
 0x4e5   : > { %v12123_v58 = vpop.f32.mrb[128].mxu1 }
 0x4e6   : > { %v12124_v34 = vpop.f32.mrb[129].mxu1 }
 0x4e7   : > { %v12125_v18 = vadd.f32 %v12124_v34, %v12123_v58  ;;  %v12126_v31 = vpop.f32.mrb[130].mxu1 }
 0x4e8   : > { %v12127_v49 = vpop.f32.mrb[131].mxu1 }
 0x4e9   : > { %v4222_v15 = vadd.f32 %v12125_v18, %v4061_v57  ;;  %v12128_v5 = vadd.f32 %v12127_v49, %v12126_v31  ;;  %v4080_v31 = vadd.f32 %v16543_v6, %v16751_v33 }
 0x4eb   : > { %v4225_v38 = vadd.f32 %v12128_v5, %v4064_v37  ;;  %vm4348_vm0 = vcmp.gt.f32.partialorder %v4222_v15, 0.0  ;;  %v4380_v4 = vmul.f32 0.2, %v4222_v15 }
 0x4ed   : > { %v12129_v11 = vpop.f32.mrb[132].mxu1  ;;  %v4412_v47 = vsel %vm4348_vm0, %v4222_v15, %v4380_v4  ;;  %v4381_v12 = vmul.f32 0.2, %v4225_v38  ;;  %vm4349_vm1 = vcmp.gt.f32.partialorder %v4225_v38, 0.0 }
 0x4ee   : > { %v12130_v60 = vpop.f32.mrb[133].mxu1  ;;  %4642 = vperm.xlu1 %13162, %v4412_v47   ;;  %4447 = vperm.xlu0 %13161, %v4412_v47  }
 0x4ef   : > { %v12131_v21 = vadd.f32 %v12130_v60, %v12129_v11  ;;  %v12132_v13 = vpop.f32.mrb[134].mxu1  ;;  %v4413_v43 = vsel %vm4349_vm1, %v4225_v38, %v4381_v12  ;;  %v4085_v11 = vadd.f32 %v16545_v42, %v16751_v33 }
 0x4f0   : > { %v12133_v53 = vpop.f32.mrb[135].mxu1 }
 0x4f1   : > { %v4230_v25 = vadd.f32 %v12131_v21, %v4069_v23  ;;  %v12134_v26 = vadd.f32 %v12133_v53, %v12132_v13  ;;  %v4088_v23 = vadd.f32 %v16553_v45, %v16751_v33 }
 0x4f2   : > { %4646 = vperm.xlu1 %13162, %v4413_v43   ;;  %4452 = vperm.xlu0 %13161, %v4413_v43  }
 0x4f3   : > { %v4233_v50 = vadd.f32 %v12134_v26, %v4072_v36  ;;  %vm4350_vm2 = vcmp.gt.f32.partialorder %v4230_v25, 0.0  ;;  %v4382_v56 = vmul.f32 0.2, %v4230_v25 }
 0x4f5   : > { %v12135_v22 = vpop.f32.mrb[136].mxu1  ;;  %v4414_v24 = vsel %vm4350_vm2, %v4230_v25, %v4382_v56  ;;  %vm4351_vm3 = vcmp.gt.f32.partialorder %v4233_v50, 0.0  ;;  %v4383_v61 = vmul.f32 0.2, %v4233_v50 }
 0x4f6   : > { %v12136_v58 = vpop.f32.mrb[137].mxu1  ;;  %4457 = vperm.xlu0 %13161, %v4414_v24   ;;  %13164 = vset.pattern.permute.xlu1 %v19831_v52 }
 0x4f7   : > { %v12137_v7 = vadd.f32 %v12136_v58, %v12135_v22  ;;  %v12138_v34 = vpop.f32.mrb[138].mxu1  ;;  %v4415_v57 = vsel %vm4351_vm3, %v4233_v50, %v4383_v61  ;;  %v4093_v50 = vadd.f32 %v16562_v51, %v16751_v33  ;;  %v16780_v51 = vpop.permute.xlu0 %4942 }
 0x4f8   : > { %v12139_v18 = vpop.f32.mrb[139].mxu1  ;;  %4462 = vperm.xlu1 %13164, %v4415_v57  }
 0x4f9   : > { %v4238_v49 = vadd.f32 %v12137_v7, %v4077_v9  ;;  %v12140_v37 = vadd.f32 %v12139_v18, %v12138_v34  ;;  %v4101_v18 = vadd.f32 %v16573_v10, %v16751_v33 }
 0x4fa   : > { %13163 = vset.pattern.permute.xlu0 %v19833_v48 }
 0x4fb   : > { %v4241_v15 = vadd.f32 %v12140_v37, %v4080_v31  ;;  %4650 = vperm.xlu0 %13163, %v4414_v24   ;;  %v4384_v38 = vmul.f32 0.2, %v4238_v49  ;;  %vm4352_vm5 = vcmp.gt.f32.partialorder %v4238_v49, 0.0  ;;  %v4096_v24 = vadd.f32 %v16566_v19, %v16751_v33 }
 0x4fc   : > { %13165 = vset.pattern.permute.xlu1 %v19833_v48 }
 0x4fd   : > { %v12141_v5 = vpop.f32.mrb[140].mxu1  ;;  %4654 = vperm.xlu1 %13165, %v4415_v57   ;;  %vm4353_vm4 = vcmp.gt.f32.partialorder %v4241_v15, 0.0  ;;  %v4385_v46 = vmul.f32 0.2, %v4241_v15  ;;  %v4416_v53 = vsel %vm4352_vm5, %v4238_v49, %v4384_v38  ;;  %v4104_v38 = vadd.f32 %v16587_v44, %v16751_v33 }
 0x4fe   : > { %v12142_v4 = vpop.f32.mrb[141].mxu1  ;;  %v4109_v44 = vadd.f32 %v16597_v63, %v16751_v33 }
 0x4ff   : > { %v12143_v47 = vadd.f32 %v12142_v4, %v12141_v5  ;;  %v12144_v6 = vpop.f32.mrb[142].mxu1  ;;  %13168 = vset.pattern.permute.xlu0 %v19831_v52  ;;  %v4417_v12 = vsel %vm4353_vm4, %v4241_v15, %v4385_v46  ;;  %v16786_v5 = vpop.permute.xlu1 %4940 }
 0x500   : > { %v12145_v60 = vpop.f32.mrb[143].mxu1  ;;  %4472 = vperm.xlu0 %13168, %v4417_v12  }
 0x501   : > { %v4246_v21 = vadd.f32 %v12143_v47, %v4085_v11  ;;  %v12146_v13 = vadd.f32 %v12145_v60, %v12144_v6  ;;  %13166 = vset.pattern.permute.xlu1 %v19831_v52  ;;  %v16790_v6 = vpop.permute.xlu0 %4944 }
 0x502   : > { %4467 = vperm.xlu1 %13166, %v4416_v53  }
 0x503   : > { %v4249_v36 = vadd.f32 %v12146_v13, %v4088_v23  ;;  %vm4354_vm6 = vcmp.gt.f32.partialorder %v4246_v21, 0.0  ;;  %v4386_v25 = vmul.f32 0.2, %v4246_v21 }
 0x505   : > { %v12147_v42 = vpop.f32.mrb[144].mxu1  ;;  %v4418_v26 = vsel %vm4354_vm6, %v4246_v21, %v4386_v25  ;;  %v4387_v7 = vmul.f32 0.2, %v4249_v36  ;;  %vm4355_vm7 = vcmp.gt.f32.partialorder %v4249_v36, 0.0  ;;  %v16793_v21 = vpop.permute.xlu1 %4946 }
 0x506   : > { %v12148_v43 = vpop.f32.mrb[145].mxu1  ;;  %13167 = vset.pattern.permute.xlu1 %v19833_v48  ;;  %4477 = vperm.xlu0 %13168, %v4418_v26  }
 0x507   : > { %v12149_v56 = vadd.f32 %v12148_v43, %v12147_v42  ;;  %v12150_v45 = vpop.f32.mrb[146].mxu1  ;;  %4658 = vperm.xlu1 %13167, %v4416_v53   ;;  %v4419_v37 = vsel %vm4355_vm7, %v4249_v36, %v4387_v7  ;;  %v4112_v42 = vadd.f32 %v16604_v20, %v16751_v33  ;;  %v4117_v20 = vadd.f32 %v16613_v29, %v16751_v33 }
 0x508   : > { %v12151_v22 = vpop.f32.mrb[147].mxu1 }
 0x509   : > { %v4254_v61 = vadd.f32 %v12149_v56, %v4093_v50  ;;  %v12152_v58 = vadd.f32 %v12151_v22, %v12150_v45  ;;  %v16802_v56 = vpop.permute.xlu0 %4950  ;;  %v16805_v63 = vpop.permute.xlu1 %4948 }
 0x50a   : > { %13169 = vset.pattern.permute.xlu0 %v19833_v48 }
 0x50b   : > { %v4257_v9 = vadd.f32 %v12152_v58, %v4096_v24  ;;  %4662 = vperm.xlu1 %13167, %v4417_v12   ;;  %4666 = vperm.xlu0 %13169, %v4418_v26   ;;  %v4388_v23 = vmul.f32 0.2, %v4254_v61  ;;  %vm4356_vm10 = vcmp.gt.f32.partialorder %v4254_v61, 0.0 }
 0x50d   : > { %v12153_v34 = vpop.f32.mrb[148].mxu1  ;;  %vm4357_vm8 = vcmp.gt.f32.partialorder %v4257_v9, 0.0  ;;  %v4389_v57 = vmul.f32 0.2, %v4257_v9  ;;  %v4420_v50 = vsel %vm4356_vm10, %v4254_v61, %v4388_v23 }
 0x50e   : > { %v12154_v31 = vpop.f32.mrb[149].mxu1 }
 0x50f   : > { %v12155_v49 = vadd.f32 %v12154_v31, %v12153_v34  ;;  %v12156_v19 = vpop.f32.mrb[150].mxu1  ;;  %13170 = vset.pattern.permute.xlu1 %v19831_v52  ;;  %13174 = vset.pattern.permute.xlu0 %v19831_v52  ;;  %v4421_v15 = vsel %vm4357_vm8, %v4257_v9, %v4389_v57  ;;  %v16813_v34 = vpop.permute.xlu0 %4952 }
 0x510   : > { %v12157_v46 = vpop.f32.mrb[151].mxu1  ;;  %4482 = vperm.xlu1 %13170, %v4419_v37   ;;  %4492 = vperm.xlu0 %13174, %v4421_v15  }
 0x511   : > { %v4262_v4 = vadd.f32 %v12155_v49, %v4101_v18  ;;  %v12158_v11 = vadd.f32 %v12157_v46, %v12156_v19  ;;  %v4120_v18 = vadd.f32 %v16620_v30, %v16751_v33  ;;  %v16818_v19 = vpop.permute.xlu1 %4954  ;;  %v4125_v30 = vadd.f32 %v16629_v8, %v16751_v33 }
 0x513   : > { %v4265_v10 = vadd.f32 %v12158_v11, %v4104_v38  ;;  %vm4358_vm9 = vcmp.gt.f32.partialorder %v4262_v4, 0.0  ;;  %v4390_v47 = vmul.f32 0.2, %v4262_v4  ;;  %v16822_v11 = vpop.permute.xlu0 %4958 }
 0x514   : > { %13171 = vset.pattern.permute.xlu1 %v19833_v48 }
 0x515   : > { %v12159_v12 = vpop.f32.mrb[152].mxu1  ;;  %4670 = vperm.xlu1 %13171, %v4419_v37   ;;  %v4422_v60 = vsel %vm4358_vm9, %v4262_v4, %v4390_v47  ;;  %v4391_v46 = vmul.f32 0.2, %v4265_v10  ;;  %vm4359_vm13 = vcmp.gt.f32.partialorder %v4265_v10, 0.0 }
 0x516   : > { %v12160_v13 = vpop.f32.mrb[153].mxu1  ;;  %4497 = vperm.xlu0 %13174, %v4422_v60  }
 0x517   : > { %v12161_v53 = vadd.f32 %v12160_v13, %v12159_v12  ;;  %v12162_v36 = vpop.f32.mrb[154].mxu1  ;;  %v4423_v23 = vsel %vm4359_vm13, %v4265_v10, %v4391_v46  ;;  %v16827_v13 = vpop.permute.xlu1 %4956 }
 0x518   : > { %v12163_v25 = vpop.f32.mrb[155].mxu1  ;;  %v16834_v8 = vpop.permute.xlu0 %4960 }
 0x519   : > { %v16799_v26 = vadd.f32 %v12161_v53, %v4109_v44  ;;  %v12164_v43 = vadd.f32 %v12163_v25, %v12162_v36  ;;  %13172 = vset.pattern.permute.xlu1 %v19831_v52  ;;  %v4128_v44 = vadd.f32 %v16636_v59, %v16751_v33 }
 0x51a   : > { %4487 = vperm.xlu1 %13172, %v4420_v50   ;;  %13175 = vset.pattern.permute.xlu0 %v19833_v48 }
 0x51b   : > { %v4273_v45 = vadd.f32 %v12164_v43, %v4112_v42  ;;  %4682 = vperm.xlu0 %13175, %v4422_v60   ;;  %v4392_v43 = vmul.f32 0.2, %v16799_v26  ;;  %vm4360_vm15 = vcmp.gt.f32.partialorder %v16799_v26, 0.0 }
 0x51d   : > { %v12165_v22 = vpop.f32.mrb[156].mxu1  ;;  %vm4361_vm11 = vcmp.gt.f32.partialorder %v4273_v45, 0.0  ;;  %v4393_v24 = vmul.f32 0.2, %v4273_v45 }
 0x51e   : > { %v12166_v58 = vpop.f32.mrb[157].mxu1  ;;  %13173 = vset.pattern.permute.xlu1 %v19833_v48 }
 0x51f   : > { %v12167_v9 = vadd.f32 %v12166_v58, %v12165_v22  ;;  %v12168_v61 = vpop.f32.mrb[158].mxu1  ;;  %4674 = vperm.xlu1 %13173, %v4420_v50   ;;  %13180 = vset.pattern.permute.xlu0 %v19831_v52  ;;  %v16811_v7 = vsel %vm4361_vm11, %v4273_v45, %v4393_v24  ;;  %v16838_v50 = vpop.permute.xlu1 %4962  ;;  %v4133_v45 = vadd.f32 %v16645_v0, %v16751_v33 }
 0x520   : > { %v12169_v57 = vpop.f32.mrb[159].mxu1  ;;  %4512 = vperm.xlu0 %13180, %v16811_v7  }
 0x521   : > { %v4278_v31 = vadd.f32 %v12167_v9, %v4117_v20  ;;  %v12170_v49 = vadd.f32 %v12169_v57, %v12168_v61  ;;  %v4136_v9 = vadd.f32 %v16652_v28, %v16751_v33  ;;  %v4141_v28 = vadd.f32 %v16661_v1, %v16751_v33 }
 0x523   : > { %v16820_v29 = vadd.f32 %v12170_v49, %v4120_v18  ;;  %4678 = vperm.xlu1 %13173, %v4421_v15   ;;  %vm4362_vm12 = vcmp.gt.f32.partialorder %v4278_v31, 0.0  ;;  %v4394_v37 = vmul.f32 0.2, %v4278_v31  ;;  %v4424_v18 = vsel %vm4360_vm15, %v16799_v26, %v4392_v43 }
 0x525   : > { %v12171_v38 = vpop.f32.mrb[160].mxu1  ;;  %v4426_v4 = vsel %vm4362_vm12, %v4278_v31, %v4394_v37  ;;  %v16851_v31 = vpop.permute.xlu0 %4966  ;;  %v4395_v1 = vmul.f32 0.2, %v16820_v29  ;;  %vm4363_vm1 = vcmp.gt.f32.partialorder %v16820_v29, 0.0  ;;  %vm11074_vm12 = vcmask 31744  }
 0x526   : > { %v12172_v47 = vpop.f32.mrb[161].mxu1  ;;  %4517 = vperm.xlu0 %13180, %v4426_v4   ;;  %v16855_v37 = vpop.permute.xlu1 %4964 }
 0x527   : > { %v12173_v12 = vadd.f32 %v12172_v47, %v12171_v38  ;;  %v12174_v60 = vpop.f32.mrb[162].mxu1  ;;  %13176 = vset.pattern.permute.xlu1 %v19831_v52 }
 0x528   : > { %v12175_v15 = vpop.f32.mrb[163].mxu1  ;;  %4502 = vperm.xlu1 %13176, %v4423_v23  }
 0x529   : > { %v16831_v53 = vadd.f32 %v12173_v12, %v4125_v30  ;;  %v12176_v36 = vadd.f32 %v12175_v15, %v12174_v60  ;;  %v16860_v30 = vpop.permute.xlu0 %4968  ;;  %v4144_v60 = vadd.f32 %v16668_v35, %v16751_v33  ;;  %v4149_v35 = vadd.f32 %v16677_v2, %v16751_v33 }
 0x52a   : > { %13181 = vset.pattern.permute.xlu0 %v19833_v48  ;;  %v4152_v2 = vadd.f32 %v16684_v55, %v16751_v33  ;;  %v4157_v55 = vadd.f32 %v16693_v54, %v16751_v33 }
 0x52b   : > { %v4289_v25 = vadd.f32 %v12176_v36, %v4128_v44  ;;  %4698 = vperm.xlu0 %13181, %v4426_v4   ;;  %v16866_v44 = vpop.permute.xlu1 %4970  ;;  %vm4364_vm4 = vcmp.gt.f32.partialorder %v16831_v53, 0.0 }
 0x52c   : > { %13177 = vset.pattern.permute.xlu1 %v19833_v48 }
 0x52d   : > { %v12177_v42 = vpop.f32.mrb[164].mxu1  ;;  %4686 = vperm.xlu1 %13177, %v4423_v23   ;;  %vm4365_vm14 = vcmp.gt.f32.partialorder %v4289_v25, 0.0  ;;  %v4397_v10 = vmul.f32 0.2, %v4289_v25 }
 0x52e   : > { %v12178_v59 = vpop.f32.mrb[165].mxu1 }
 0x52f   : > { %v12179_v22 = vadd.f32 %v12178_v59, %v12177_v42  ;;  %v12180_v24 = vpop.f32.mrb[166].mxu1  ;;  %13186 = vset.pattern.permute.xlu0 %v19831_v52  ;;  %v16844_v58 = vsel %vm4365_vm14, %v4289_v25, %v4397_v10  ;;  %v16872_v10 = vpop.permute.xlu0 %4974 }
 0x530   : > { %v12181_v20 = vpop.f32.mrb[167].mxu1  ;;  %4532 = vperm.xlu0 %13186, %v16844_v58  }
 0x531   : > { %v4294_v61 = vadd.f32 %v12179_v22, %v4133_v45  ;;  %v12182_v57 = vadd.f32 %v12181_v20, %v12180_v24  ;;  %13178 = vset.pattern.permute.xlu1 %v19831_v52  ;;  %v16881_v24 = vpop.permute.xlu1 %4972 }
 0x532   : > { %4507 = vperm.xlu1 %13178, %v4424_v18  }
 0x533   : > { %v16853_v0 = vadd.f32 %v12182_v57, %v4136_v9  ;;  %vm4366_vm0 = vcmp.gt.f32.partialorder %v4294_v61, 0.0  ;;  %v4398_v49 = vmul.f32 0.2, %v4294_v61 }
 0x535   : > { %v12183_v46 = vpop.f32.mrb[168].mxu1  ;;  %v4430_v38 = vsel %vm4366_vm0, %v4294_v61, %v4398_v49  ;;  %v16888_v49 = vpop.permute.xlu0 %4976  ;;  %vm4367_vm7 = vcmp.gt.f32.partialorder %v16853_v0, 0.0 }
 0x536   : > { %v12184_v4 = vpop.f32.mrb[169].mxu1  ;;  %13179 = vset.pattern.permute.xlu1 %v19833_v48  ;;  %4537 = vperm.xlu0 %13186, %v4430_v38  }
 0x537   : > { %v12185_v47 = vadd.f32 %v12184_v4, %v12183_v46  ;;  %v12186_v26 = vpop.f32.mrb[170].mxu1  ;;  %4690 = vperm.xlu1 %13179, %v4424_v18   ;;  %v16891_v46 = vpop.permute.xlu1 %4978  ;;  %v4396_v4 = vmul.f32 0.2, %v16831_v53 }
 0x538   : > { %v12187_v12 = vpop.f32.mrb[171].mxu1 }
 0x539   : > { %v16864_v23 = vadd.f32 %v12185_v47, %v4141_v28  ;;  %v12188_v15 = vadd.f32 %v12187_v12, %v12186_v26 }
 0x53a   : > { %13187 = vset.pattern.permute.xlu0 %v19833_v48 }
 0x53b   : > { %v4305_v36 = vadd.f32 %v12188_v15, %v4144_v60  ;;  %4694 = vperm.xlu1 %13179, %v16811_v7   ;;  %4714 = vperm.xlu0 %13187, %v4430_v38   ;;  %v4427_v7 = vsel %vm4363_vm1, %v16820_v29, %v4395_v1  ;;  %v4160_v60 = vadd.f32 %v16698_v39, %v16751_v33  ;;  %v16906_v54 = vpop.permute.xlu1 %4980  ;;  %vm4368_vm9 = vcmp.gt.f32.partialorder %v16864_v23, 0.0 }
 0x53c   : > { %v4428_v1 = vsel %vm4364_vm4, %v16831_v53, %v4396_v4  ;;  %v4399_v4 = vmul.f32 0.2, %v16853_v0 }
 0x53d   : > { %v12189_v25 = vpop.f32.mrb[172].mxu1  ;;  %vm4369_vm2 = vcmp.gt.f32.partialorder %v4305_v36, 0.0  ;;  %v4401_v42 = vmul.f32 0.2, %v4305_v36 }
 0x53e   : > { %v12190_v43 = vpop.f32.mrb[173].mxu1 }
 0x53f   : > { %v12191_v59 = vadd.f32 %v12190_v43, %v12189_v25  ;;  %v12192_v45 = vpop.f32.mrb[174].mxu1  ;;  %13182 = vset.pattern.permute.xlu1 %v19831_v52  ;;  %13192 = vset.pattern.permute.xlu0 %v19831_v52  ;;  %v16879_v22 = vsel %vm4369_vm2, %v4305_v36, %v4401_v42  ;;  %v16903_v25 = vpop.permute.xlu0 %4982 }
 0x540   : > { %v12193_v20 = vpop.f32.mrb[175].mxu1  ;;  %4522 = vperm.xlu1 %13182, %v4427_v7   ;;  %4552 = vperm.xlu0 %13192, %v16879_v22  }
 0x541   : > { %v4310_v9 = vadd.f32 %v12191_v59, %v4149_v35  ;;  %v12194_v61 = vadd.f32 %v12193_v20, %v12192_v45  ;;  %v4165_v59 = vadd.f32 %v16702_v41, %v16751_v33 }
 0x543   : > { %v16886_v57 = vadd.f32 %v12194_v61, %v4152_v2  ;;  %vm4370_vm3 = vcmp.gt.f32.partialorder %v4310_v9, 0.0  ;;  %v4402_v18 = vmul.f32 0.2, %v4310_v9  ;;  %v16914_v20 = vpop.permute.xlu0 %4984  ;;  %v16919_v61 = vpop.permute.xlu1 %4986 }
 0x544   : > { %13183 = vset.pattern.permute.xlu1 %v19833_v48 }
 0x545   : > { %v12195_v29 = vpop.f32.mrb[176].mxu1  ;;  %4702 = vperm.xlu1 %13183, %v4427_v7   ;;  %v4434_v38 = vsel %vm4370_vm3, %v4310_v9, %v4402_v18  ;;  %v4168_v9 = vadd.f32 %v16706_v16, %v16751_v33  ;;  %v4173_v16 = vadd.f32 %v16710_v14, %v16751_v33  ;;  %vm4371_vm11 = vcmp.gt.f32.partialorder %v16886_v57, 0.0 }
 0x546   : > { %v12196_v28 = vpop.f32.mrb[177].mxu1  ;;  %4557 = vperm.xlu0 %13192, %v4434_v38  }
 0x547   : > { %v12197_v47 = vadd.f32 %v12196_v28, %v12195_v29  ;;  %v12198_v26 = vpop.f32.mrb[178].mxu1 }
 0x548   : > { %v12199_v12 = vpop.f32.mrb[179].mxu1 }
 0x549   : > { %v16899_v15 = vadd.f32 %v12197_v47, %v4157_v55  ;;  %v12200_v36 = vadd.f32 %v12199_v12, %v12198_v26  ;;  %13184 = vset.pattern.permute.xlu1 %v19831_v52  ;;  %v16926_v47 = vpop.permute.xlu0 %4990  ;;  %v16930_v12 = vpop.permute.xlu1 %4988 }
 0x54a   : > { %4527 = vperm.xlu1 %13184, %v4428_v1   ;;  %13193 = vset.pattern.permute.xlu0 %v19833_v48 }
 0x54b   : > { %v4321_v42 = vadd.f32 %v12200_v36, %v4160_v60  ;;  %4730 = vperm.xlu0 %13193, %v4434_v38   ;;  %vm4372_vm13 = vcmp.gt.f32.partialorder %v16899_v15, 0.0 }
 0x54d   : > { %v12201_v35 = vpop.f32.mrb[180].mxu1  ;;  %vm4373_vm5 = vcmp.gt.f32.partialorder %v4321_v42, 0.0  ;;  %v4405_v43 = vmul.f32 0.2, %v4321_v42  ;;  %v16939_v14 = vpop.permute.xlu0 %4992 }
 0x54e   : > { %v12202_v39 = vpop.f32.mrb[181].mxu1  ;;  %13185 = vset.pattern.permute.xlu1 %v19833_v48 }
 0x54f   : > { %v12203_v45 = vadd.f32 %v12202_v39, %v12201_v35  ;;  %v12204_v53 = vpop.f32.mrb[182].mxu1  ;;  %4706 = vperm.xlu1 %13185, %v4428_v1   ;;  %13198 = vset.pattern.permute.xlu0 %v19831_v52  ;;  %v16912_v7 = vsel %vm4373_vm5, %v4321_v42, %v4405_v43  ;;  %v4176_v42 = vadd.f32 %v16714_v17, %v16751_v33 }
 0x550   : > { %v12205_v2 = vpop.f32.mrb[183].mxu1  ;;  %4572 = vperm.xlu0 %13198, %v16912_v7  }
 0x551   : > { %v4326_v18 = vadd.f32 %v12203_v45, %v4165_v59  ;;  %v12206_v29 = vadd.f32 %v12205_v2, %v12204_v53  ;;  %v16942_v59 = vpop.permute.xlu1 %4994  ;;  %v4400_v53 = vmul.f32 0.2, %v16864_v23  ;;  %v4181_v2 = vadd.f32 %v16718_v62, %v16751_v33 }
 0x553   : > { %v16921_v41 = vadd.f32 %v12206_v29, %v4168_v9  ;;  %4710 = vperm.xlu1 %13185, %v16844_v58   ;;  %vm4374_vm6 = vcmp.gt.f32.partialorder %v4326_v18, 0.0  ;;  %v4406_v38 = vmul.f32 0.2, %v4326_v18  ;;  %v4431_v58 = vsel %vm4367_vm7, %v16853_v0, %v4399_v4 }
 0x554   : > { %v4184_v4 = vadd.f32 %v16722_v32, %v16751_v33  ;;  %v4444_v33 = vld [vmem:[#allocation10] sm:$0x3] }
 0x555   : > { %v12207_v28 = vpop.f32.mrb[184].mxu1  ;;  %v4438_v55 = vsel %vm4374_vm6, %v4326_v18, %v4406_v38  ;;  %v16958_v62 = vpop.permute.xlu1 %4996  ;;  %vm4375_vm14 = vcmp.gt.f32.partialorder %v16921_v41, 0.0 }
 0x556   : > { %v12208_v26 = vpop.f32.mrb[185].mxu1  ;;  %4577 = vperm.xlu0 %13198, %v4438_v55  }
 0x557   : > { %v12209_v60 = vadd.f32 %v12208_v26, %v12207_v28  ;;  %v12210_v36 = vpop.f32.mrb[186].mxu1  ;;  %13188 = vset.pattern.permute.xlu1 %v19831_v52  ;;  %v4432_v26 = vsel %vm4368_vm9, %v16864_v23, %v4400_v53  ;;  %v20068_v23 = vld [vmem:[#allocation35_spill] sm:$0xff] }
 0x558   : > { %v12211_v1 = vpop.f32.mrb[187].mxu1  ;;  %4542 = vperm.xlu1 %13188, %v4431_v58  }
 0x559   : > { %v16936_v35 = vadd.f32 %v12209_v60, %v4173_v16  ;;  %v12212_v43 = vadd.f32 %v12211_v1, %v12210_v36  ;;  %v16956_v16 = vpop.permute.xlu0 %4998  ;;  %v16965_v1 = vpop.permute.xlu1 %5000 }
 0x55a   : > { %13199 = vset.pattern.permute.xlu0 %v19833_v48 }
 0x55b   : > { %v4337_v39 = vadd.f32 %v12212_v43, %v4176_v42  ;;  %4746 = vperm.xlu0 %13199, %v4438_v55   ;;  %v16969_v42 = vrot.slane %v4444_v33, %v20068_v23  ;;  %v20069_v43 = vld [vmem:[#allocation34_spill] sm:$0xff]  ;;  %vm4376_vm15 = vcmp.gt.f32.partialorder %v16936_v35, 0.0 }
 0x55c   : > { %13189 = vset.pattern.permute.xlu1 %v19833_v48 }
 0x55d   : > { %v12213_v45 = vpop.f32.mrb[188].mxu1  ;;  %4718 = vperm.xlu1 %13189, %v4431_v58   ;;  %vm4377_vm8 = vcmp.gt.f32.partialorder %v4337_v39, 0.0  ;;  %v4409_v0 = vmul.f32 0.2, %v4337_v39  ;;  %v16963_v32 = vpop.permute.xlu0 %5002 }
 0x55e   : > { %v12214_v17 = vpop.f32.mrb[189].mxu1 }
 0x55f   : > { %v12215_v9 = vadd.f32 %v12214_v17, %v12213_v45  ;;  %v12216_v18 = vpop.f32.mrb[190].mxu1  ;;  %13204 = vset.pattern.permute.xlu0 %v19831_v52  ;;  %v16949_v29 = vsel %vm4377_vm8, %v4337_v39, %v4409_v0  ;;  %v16972_v39 = vrot.slane %v4444_v33, %v20069_v43  ;;  %v4403_v45 = vmul.f32 0.2, %v16886_v57 }
 0x560   : > { %v12217_v38 = vpop.f32.mrb[191].mxu1  ;;  %4592 = vperm.xlu0 %13204, %v16949_v29  }
 0x561   : > { %v4342_v28 = vadd.f32 %v12215_v9, %v4181_v2  ;;  %v12218_v55 = vadd.f32 %v12217_v38, %v12216_v18  ;;  %13190 = vset.pattern.permute.xlu1 %v19831_v52  ;;  %v16979_v9 = vld [vmem:[#allocation11] ss:$0 sm:$0xff]  ;;  %v4435_v18 = vsel %vm4371_vm11, %v16886_v57, %v4403_v45 }
 0x562   : > { %4547 = vperm.xlu1 %13190, %v4432_v26  }
 0x563   : > { %v16960_v60 = vadd.f32 %v12218_v55, %v4184_v4  ;;  %vm4378_vm10 = vcmp.gt.f32.partialorder %v4342_v28, 0.0  ;;  %v4410_v36 = vmul.f32 0.2, %v4342_v28 }
 0x565   : > { %v4442_v58 = vsel %vm4378_vm10, %v4342_v28, %v4410_v36  ;;  %vm4379_vm0 = vcmp.gt.f32.partialorder %v16960_v60, 0.0 }
 0x566   : > { %13191 = vset.pattern.permute.xlu1 %v19833_v48  ;;  %4597 = vperm.xlu0 %13204, %v4442_v58  }
 0x567   : > { %4722 = vperm.xlu1 %13191, %v4432_v26  }
 0x56a   : > { %13205 = vset.pattern.permute.xlu0 %v19833_v48 }
 0x56b   : > { %4726 = vperm.xlu1 %13191, %v16879_v22   ;;  %4762 = vperm.xlu0 %13205, %v4442_v58   ;;  %v4404_v58 = vmul.f32 0.2, %v16899_v15 }
 0x56d   : > { %v4643_v0 = vpop.permute.xlu1 %4642  ;;  %v4448_v53 = vpop.permute.xlu0 %4447 }
 0x56e   : > { %v4773_v17 = vmul.f32 %v16969_v42, %v4643_v0  ;;  %v4609_v2 = vmul.f32 %v16972_v39, %v4448_v53  ;;  %v4436_v53 = vsel %vm4372_vm13, %v16899_v15, %v4404_v58 }
 0x56f   : > { %13194 = vset.pattern.permute.xlu1 %v19831_v52  ;;  %13210 = vset.pattern.permute.xlu0 %v19831_v52 }
 0x570   : > { %v4805_v22 = vadd.f32 %v4773_v17, %v4609_v2  ;;  %4562 = vperm.xlu1 %13194, %v4435_v18  }
 0x571   : > { %v4647_v38 = vpop.permute.xlu1 %4646  ;;  %v4453_v4 = vpop.permute.xlu0 %4452 }
 0x572   : > { %v16992_v28 = vadd.f32 %v16979_v9, %v4805_v22  ;;  %v4774_v57 = vmul.f32 %v16969_v42, %v4647_v38  ;;  %v4610_v55 = vmul.f32 %v16972_v39, %v4453_v4 }
 0x574   : > { %11075 = vst.msk [vmem:[%s16989_s30] sm:$0xff] %vm11074_vm12, %v16992_v28  ;;  %v4806_v26 = vadd.f32 %v4774_v57, %v4610_v55  ;;  %13195 = vset.pattern.permute.xlu1 %v19833_v48 }
 0x575   : > { %4734 = vperm.xlu1 %13195, %v4435_v18   ;;  %v4458_v36 = vpop.permute.xlu0 %4457 }
 0x576   : > { %v17002_v33 = vadd.f32 %v16979_v9, %v4806_v26  ;;  %v4611_v2 = vmul.f32 %v16972_v39, %v4458_v36 }
 0x577   : > { %v4463_v45 = vpop.permute.xlu1 %4462 }
 0x578   : > { %11076 = vst.msk [vmem:[%s16989_s30 + $0x8] sm:$0xff] %vm11074_vm12, %v17002_v33  ;;  %v5037_v0 = vmul.f32 %v16780_v51, %v17002_v33  ;;  %v4612_v38 = vmul.f32 %v16972_v39, %v4463_v45  ;;  %v4407_v45 = vmul.f32 0.2, %v16921_v41 }
 0x579   : > { %13196 = vset.pattern.permute.xlu1 %v19831_v52 }
 0x57a   : > { %4567 = vperm.xlu1 %13196, %v4436_v53   ;;  %5102 = vrot.lane.b32.xlu0 %v5037_v0, %s15130_s26  ;;  %v4651_v17 = vpop.permute.xlu0 %4650 }
 0x57b   : > { %v4775_v18 = vmul.f32 %v16969_v42, %v4651_v17 }
 0x57c   : > { %v4655_v22 = vpop.permute.xlu1 %4654 }
 0x57d   : > { %v4807_v4 = vadd.f32 %v4775_v18, %v4611_v2  ;;  %v4776_v51 = vmul.f32 %v16969_v42, %v4655_v22 }
 0x57e   : > { %13197 = vset.pattern.permute.xlu1 %v19833_v48 }
 0x57f   : > { %v17019_v15 = vadd.f32 %v16979_v9, %v4807_v4  ;;  %v4808_v57 = vadd.f32 %v4776_v51, %v4612_v38  ;;  %4738 = vperm.xlu1 %13197, %v4436_v53   ;;  %v4473_v26 = vpop.permute.xlu0 %4472 }
 0x581   : > { %11077 = vst.msk [vmem:[%s16989_s30 + $0x10] sm:$0xff] %vm11074_vm12, %v17019_v15  ;;  %v17025_v55 = vadd.f32 %v16979_v9, %v4808_v57  ;;  %v4468_v36 = vpop.permute.xlu1 %4467  ;;  %v5038_v58 = vmul.f32 %v16790_v6, %v17019_v15  ;;  %v4439_v6 = vsel %vm4375_vm14, %v16921_v41, %v4407_v45  ;;  %v4408_v41 = vmul.f32 0.2, %v16936_v35 }
 0x582   : > { %v4613_v17 = vmul.f32 %v16972_v39, %v4468_v36 }
 0x583   : > { %11078 = vst.msk [vmem:[%s16989_s30 + $0x18] sm:$0xff] %vm11074_vm12, %v17025_v55  ;;  %4742 = vperm.xlu1 %13197, %v16912_v7   ;;  %5104 = vrot.lane.b32.xlu0 %v5038_v58, %s15130_s26  ;;  %v4614_v7 = vmul.f32 %v16972_v39, %v4473_v26 }
 0x585   : > { %v4478_v0 = vpop.permute.xlu0 %4477 }
 0x586   : > { %v4659_v53 = vpop.permute.xlu1 %4658  ;;  %v4615_v4 = vmul.f32 %v16972_v39, %v4478_v0 }
 0x587   : > { %v4777_v2 = vmul.f32 %v16969_v42, %v4659_v53  ;;  %13200 = vset.pattern.permute.xlu1 %v19831_v52 }
 0x588   : > { %4582 = vperm.xlu1 %13200, %v4439_v6  }
 0x589   : > { %v4809_v18 = vadd.f32 %v4777_v2, %v4613_v17  ;;  %v4440_v2 = vsel %vm4376_vm15, %v16936_v35, %v4408_v41  ;;  %v4411_v41 = vmul.f32 0.2, %v16960_v60 }
 0x58a   : > { %v4663_v22 = vpop.permute.xlu1 %4662  ;;  %v4667_v38 = vpop.permute.xlu0 %4666 }
 0x58b   : > { %v17043_v51 = vadd.f32 %v16979_v9, %v4809_v18  ;;  %v4778_v57 = vmul.f32 %v16969_v42, %v4663_v22  ;;  %v4779_v36 = vmul.f32 %v16969_v42, %v4667_v38 }
 0x58c   : > { %13201 = vset.pattern.permute.xlu1 %v19833_v48 }
 0x58d   : > { %11079 = vst.msk [vmem:[%s16989_s30 + $0x20] sm:$0xff] %vm11074_vm12, %v17043_v51  ;;  %v4810_v26 = vadd.f32 %v4778_v57, %v4614_v7  ;;  %v4811_v58 = vadd.f32 %v4779_v36, %v4615_v4  ;;  %4750 = vperm.xlu1 %13201, %v4439_v6  }
 0x58f   : > { %v17054_v45 = vadd.f32 %v16979_v9, %v4810_v26  ;;  %v17057_v0 = vadd.f32 %v16979_v9, %v4811_v58  ;;  %v4483_v53 = vpop.permute.xlu1 %4482  ;;  %v4493_v17 = vpop.permute.xlu0 %4492 }
 0x590   : > { %v4616_v7 = vmul.f32 %v16972_v39, %v4483_v53 }
 0x591   : > { %11080 = vst.msk [vmem:[%s16989_s30 + $0x28] sm:$0xff] %vm11074_vm12, %v17054_v45  ;;  %11081 = vst.msk [vmem:[%s16989_s30 + $0x30] sm:$0xff] %vm11074_vm12, %v17057_v0  ;;  %13202 = vset.pattern.permute.xlu1 %v19831_v52  ;;  %v5041_v6 = vmul.f32 %v16802_v56, %v17054_v45  ;;  %v5042_v4 = vmul.f32 %v16813_v34, %v17057_v0 }
 0x592   : > { %4587 = vperm.xlu1 %13202, %v4440_v2  }
 0x593   : > { %5110 = vrot.lane.b32.xlu0 %v5041_v6, %s15130_s26 }
 0x594   : > { %v4671_v18 = vpop.permute.xlu1 %4670 }
 0x595   : > { %v4780_v22 = vmul.f32 %v16969_v42, %v4671_v18  ;;  %v4498_v38 = vpop.permute.xlu0 %4497 }
 0x596   : > { %13203 = vset.pattern.permute.xlu1 %v19833_v48  ;;  %v4619_v26 = vmul.f32 %v16972_v39, %v4498_v38 }
 0x597   : > { %v4812_v57 = vadd.f32 %v4780_v22, %v4616_v7  ;;  %4754 = vperm.xlu1 %13203, %v4440_v2   ;;  %5112 = vrot.lane.b32.xlu0 %v5042_v4, %s15130_s26  ;;  %v4443_v7 = vsel %vm4379_vm0, %v16960_v60, %v4411_v41  ;;  %v4618_v4 = vmul.f32 %v16972_v39, %v4493_v17 }
 0x598   : > { %v5036_v17 = vmul.f32 %v16786_v5, %v16992_v28  ;;  %v5039_v5 = vmul.f32 %v16793_v21, %v17025_v55  ;;  %v5040_v21 = vmul.f32 %v16805_v63, %v17043_v51 }
 0x599   : > { %v17077_v56 = vadd.f32 %v16979_v9, %v4812_v57  ;;  %v4488_v35 = vpop.permute.xlu1 %4487 }
 0x59a   : > { %v4683_v36 = vpop.permute.xlu0 %4682  ;;  %v4617_v2 = vmul.f32 %v16972_v39, %v4488_v35 }
 0x59b   : > { %11082 = vst.msk [vmem:[%s16989_s30 + $0x38] sm:$0xff] %vm11074_vm12, %v17077_v56  ;;  %v4783_v34 = vmul.f32 %v16969_v42, %v4683_v36  ;;  %4758 = vperm.xlu1 %13203, %v16949_v29  }
 0x59d   : > { %v4815_v58 = vadd.f32 %v4783_v34, %v4619_v26 }
 0x59e   : > { %v4675_v53 = vpop.permute.xlu1 %4674 }
 0x59f   : > { %v17089_v6 = vadd.f32 %v16979_v9, %v4815_v58  ;;  %v4781_v18 = vmul.f32 %v16969_v42, %v4675_v53  ;;  %13206 = vset.pattern.permute.xlu1 %v19831_v52  ;;  %v4513_v22 = vpop.permute.xlu0 %4512 }
 0x5a0   : > { %4602 = vperm.xlu1 %13206, %v4443_v7  }
 0x5a1   : > { %11085 = vst.msk [vmem:[%s16989_s30 + $0x50] sm:$0xff] %vm11074_vm12, %v17089_v6  ;;  %v4813_v29 = vadd.f32 %v4781_v18, %v4617_v2 }
 0x5a2   : > { %v4679_v38 = vpop.permute.xlu1 %4678 }
 0x5a3   : > { %v17099_v57 = vadd.f32 %v16979_v9, %v4813_v29  ;;  %v4782_v35 = vmul.f32 %v16969_v42, %v4679_v38  ;;  %v5046_v38 = vmul.f32 %v16834_v8, %v17089_v6  ;;  %v5043_v8 = vmul.f32 %v16818_v19, %v17077_v56 }
 0x5a4   : > { %13207 = vset.pattern.permute.xlu1 %v19833_v48 }
 0x5a5   : > { %11083 = vst.msk [vmem:[%s16989_s30 + $0x40] sm:$0xff] %vm11074_vm12, %v17099_v57  ;;  %v4814_v60 = vadd.f32 %v4782_v35, %v4618_v4  ;;  %4766 = vperm.xlu1 %13207, %v4443_v7   ;;  %v4518_v36 = vpop.permute.xlu0 %4517 }
 0x5a6   : > { %v4623_v53 = vmul.f32 %v16972_v39, %v4518_v36 }
 0x5a7   : > { %v17107_v41 = vadd.f32 %v16979_v9, %v4814_v60  ;;  %v4503_v26 = vpop.permute.xlu1 %4502 }
 0x5a8   : > { %v4620_v7 = vmul.f32 %v16972_v39, %v4503_v26 }
 0x5a9   : > { %11084 = vst.msk [vmem:[%s16989_s30 + $0x48] sm:$0xff] %vm11074_vm12, %v17107_v41  ;;  %5100 = vrot.lane.b32.xlu1 %v5036_v17, %s15130_s26  ;;  %v5045_v34 = vmul.f32 %v16822_v11, %v17107_v41 }
 0x5aa   : > { %v4699_v58 = vpop.permute.xlu0 %4698  ;;  %13208 = vset.pattern.permute.xlu1 %v19831_v52 }
 0x5ab   : > { %v4787_v2 = vmul.f32 %v16969_v42, %v4699_v58  ;;  %5118 = vrot.lane.b32.xlu0 %v5045_v34, %s15130_s26 }
 0x5ac   : > { %v4687_v18 = vpop.permute.xlu1 %4686 }
 0x5ad   : > { %v4819_v29 = vadd.f32 %v4787_v2, %v4623_v53  ;;  %v4784_v11 = vmul.f32 %v16969_v42, %v4687_v18  ;;  %5106 = vrot.lane.b32.xlu1 %v5039_v5, %s15130_s26  ;;  %v5044_v53 = vmul.f32 %v16827_v13, %v17099_v57  ;;  %v4622_v5 = vmul.f32 %v16972_v39, %v4513_v22 }
 0x5af   : > { %v17129_v4 = vadd.f32 %v16979_v9, %v4819_v29  ;;  %v4816_v35 = vadd.f32 %v4784_v11, %v4620_v7  ;;  %5120 = vrot.lane.b32.xlu0 %v5046_v38, %s15130_s26  ;;  %v4533_v36 = vpop.permute.xlu0 %4532 }
 0x5b1   : > { %11089 = vst.msk [vmem:[%s16989_s30 + $0x70] sm:$0xff] %vm11074_vm12, %v17129_v4  ;;  %v17138_v60 = vadd.f32 %v16979_v9, %v4816_v35  ;;  %v4508_v26 = vpop.permute.xlu1 %4507  ;;  %5108 = vrot.lane.b32.xlu1 %v5040_v21, %s15130_s26 }
 0x5b2   : > { %v4621_v34 = vmul.f32 %v16972_v39, %v4508_v26 }
 0x5b3   : > { %11086 = vst.msk [vmem:[%s16989_s30 + $0x58] sm:$0xff] %vm11074_vm12, %v17138_v60  ;;  %v5047_v7 = vmul.f32 %v16838_v50, %v17138_v60 }
 0x5b5   : > { %5114 = vrot.lane.b32.xlu1 %v5043_v8, %s15130_s26  ;;  %v4538_v63 = vpop.permute.xlu0 %4537 }
 0x5b6   : > { %v4691_v17 = vpop.permute.xlu1 %4690  ;;  %v4627_v29 = vmul.f32 %v16972_v39, %v4538_v63 }
 0x5b7   : > { %v4785_v58 = vmul.f32 %v16969_v42, %v4691_v17 }
 0x5b9   : > { %v4817_v2 = vadd.f32 %v4785_v58, %v4621_v34  ;;  %5116 = vrot.lane.b32.xlu1 %v5044_v53, %s15130_s26  ;;  %v5050_v34 = vmul.f32 %v16860_v30, %v17129_v4 }
 0x5ba   : > { %v4695_v18 = vpop.permute.xlu1 %4694  ;;  %v4715_v19 = vpop.permute.xlu0 %4714 }
 0x5bb   : > { %v17157_v11 = vadd.f32 %v16979_v9, %v4817_v2  ;;  %v4786_v38 = vmul.f32 %v16969_v42, %v4695_v18  ;;  %v4791_v13 = vmul.f32 %v16969_v42, %v4715_v19 }
 0x5bd   : > { %11087 = vst.msk [vmem:[%s16989_s30 + $0x60] sm:$0xff] %vm11074_vm12, %v17157_v11  ;;  %v4818_v22 = vadd.f32 %v4786_v38, %v4622_v5  ;;  %v4823_v35 = vadd.f32 %v4791_v13, %v4627_v29  ;;  %5122 = vrot.lane.b32.xlu1 %v5047_v7, %s15130_s26  ;;  %v5048_v8 = vmul.f32 %v16855_v37, %v17157_v11 }
 0x5bf   : > { %v17166_v21 = vadd.f32 %v16979_v9, %v4818_v22  ;;  %v17169_v50 = vadd.f32 %v16979_v9, %v4823_v35  ;;  %v4523_v26 = vpop.permute.xlu1 %4522  ;;  %v17179_v63 = vpop.permute.xlu0 %4552 }
 0x5c0   : > { %v4624_v58 = vmul.f32 %v16972_v39, %v4523_v26 }
 0x5c1   : > { %11088 = vst.msk [vmem:[%s16989_s30 + $0x68] sm:$0xff] %vm11074_vm12, %v17166_v21  ;;  %11093 = vst.msk [vmem:[%s16989_s30 + $0x90] sm:$0xff] %vm11074_vm12, %v17169_v50  ;;  %5124 = vrot.lane.b32.xlu1 %v5048_v8, %s15130_s26  ;;  %v5049_v17 = vmul.f32 %v16851_v31, %v17166_v21 }
 0x5c3   : > { %5126 = vrot.lane.b32.xlu0 %v5049_v17, %s15130_s26 }
 0x5c4   : > { %v4703_v37 = vpop.permute.xlu1 %4702 }
 0x5c5   : > { %v4788_v53 = vmul.f32 %v16969_v42, %v4703_v37  ;;  %5128 = vrot.lane.b32.xlu1 %v5050_v34, %s15130_s26  ;;  %v4558_v2 = vpop.permute.xlu0 %4557 }
 0x5c6   : > { %v4631_v30 = vmul.f32 %v16972_v39, %v4558_v2 }
 0x5c7   : > { %v4820_v5 = vadd.f32 %v4788_v53, %v4624_v58 }
 0x5c9   : > { %v17191_v18 = vadd.f32 %v16979_v9, %v4820_v5  ;;  %v4528_v19 = vpop.permute.xlu1 %4527 }
 0x5ca   : > { %v4731_v31 = vpop.permute.xlu0 %4730  ;;  %v4625_v22 = vmul.f32 %v16972_v39, %v4528_v19 }
 0x5cb   : > { %11090 = vst.msk [vmem:[%s16989_s30 + $0x78] sm:$0xff] %vm11074_vm12, %v17191_v18  ;;  %v4795_v7 = vmul.f32 %v16969_v42, %v4731_v31  ;;  %v5051_v29 = vmul.f32 %v16866_v44, %v17191_v18  ;;  %v4626_v44 = vmul.f32 %v16972_v39, %v4533_v36 }
 0x5cd   : > { %v4827_v38 = vadd.f32 %v4795_v7, %v4631_v30  ;;  %5130 = vrot.lane.b32.xlu0 %v5051_v29, %s15130_s26 }
 0x5ce   : > { %v4707_v13 = vpop.permute.xlu1 %4706 }
 0x5cf   : > { %v17203_v35 = vadd.f32 %v16979_v9, %v4827_v38  ;;  %v4789_v26 = vmul.f32 %v16969_v42, %v4707_v13  ;;  %v17209_v17 = vpop.permute.xlu0 %4572 }
 0x5d1   : > { %11097 = vst.msk [vmem:[%s16989_s30 + $0xb0] sm:$0xff] %vm11074_vm12, %v17203_v35  ;;  %v4821_v8 = vadd.f32 %v4789_v26, %v4625_v22  ;;  %v5054_v26 = vmul.f32 %v16888_v49, %v17169_v50 }
 0x5d2   : > { %v4711_v34 = vpop.permute.xlu1 %4710 }
 0x5d3   : > { %v17213_v37 = vadd.f32 %v16979_v9, %v4821_v8  ;;  %v4790_v58 = vmul.f32 %v16969_v42, %v4711_v34 }
 0x5d5   : > { %11091 = vst.msk [vmem:[%s16989_s30 + $0x80] sm:$0xff] %vm11074_vm12, %v17213_v37  ;;  %v4822_v53 = vadd.f32 %v4790_v58, %v4626_v44  ;;  %v4578_v2 = vpop.permute.xlu0 %4577  ;;  %v5052_v5 = vmul.f32 %v16881_v24, %v17213_v37 }
 0x5d6   : > { %v4635_v7 = vmul.f32 %v16972_v39, %v4578_v2 }
 0x5d7   : > { %v17222_v19 = vadd.f32 %v16979_v9, %v4822_v53  ;;  %v4543_v31 = vpop.permute.xlu1 %4542  ;;  %5132 = vrot.lane.b32.xlu0 %v5052_v5, %s15130_s26 }
 0x5d8   : > { %v4628_v38 = vmul.f32 %v16972_v39, %v4543_v31 }
 0x5d9   : > { %11092 = vst.msk [vmem:[%s16989_s30 + $0x88] sm:$0xff] %vm11074_vm12, %v17222_v19  ;;  %v5053_v36 = vmul.f32 %v16872_v10, %v17222_v19 }
 0x5da   : > { %v4747_v30 = vpop.permute.xlu0 %4746 }
 0x5db   : > { %v4799_v29 = vmul.f32 %v16969_v42, %v4747_v30  ;;  %5134 = vrot.lane.b32.xlu1 %v5053_v36, %s15130_s26  ;;  %v4630_v30 = vmul.f32 %v16972_v39, %v17179_v63 }
 0x5dc   : > { %v4719_v24 = vpop.permute.xlu1 %4718 }
 0x5dd   : > { %v4831_v13 = vadd.f32 %v4799_v29, %v4635_v7  ;;  %v4792_v22 = vmul.f32 %v16969_v42, %v4719_v24 }
 0x5df   : > { %v17238_v8 = vadd.f32 %v16979_v9, %v4831_v13  ;;  %v4824_v10 = vadd.f32 %v4792_v22, %v4628_v38  ;;  %5136 = vrot.lane.b32.xlu1 %v5054_v26, %s15130_s26  ;;  %v17247_v44 = vpop.permute.xlu0 %4592 }
 0x5e1   : > { %11101 = vst.msk [vmem:[%s16989_s30 + $0xd0] sm:$0xff] %vm11074_vm12, %v17238_v8  ;;  %v17245_v34 = vadd.f32 %v16979_v9, %v4824_v10  ;;  %v4548_v58 = vpop.permute.xlu1 %4547 }
 0x5e2   : > { %v4629_v5 = vmul.f32 %v16972_v39, %v4548_v58 }
 0x5e3   : > { %11094 = vst.msk [vmem:[%s16989_s30 + $0x98] sm:$0xff] %vm11074_vm12, %v17245_v34  ;;  %v5055_v49 = vmul.f32 %v16891_v46, %v17245_v34 }
 0x5e5   : > { %5138 = vrot.lane.b32.xlu0 %v5055_v49, %s15130_s26  ;;  %v4598_v53 = vpop.permute.xlu0 %4597 }
 0x5e6   : > { %v4723_v2 = vpop.permute.xlu1 %4722  ;;  %v4639_v24 = vmul.f32 %v16972_v39, %v4598_v53 }
 0x5e7   : > { %v4793_v31 = vmul.f32 %v16969_v42, %v4723_v2 }
 0x5e9   : > { %v4825_v36 = vadd.f32 %v4793_v31, %v4629_v5  ;;  %v5058_v31 = vmul.f32 %v16914_v20, %v17203_v35 }
 0x5ea   : > { %v4727_v7 = vpop.permute.xlu1 %4726  ;;  %v4763_v29 = vpop.permute.xlu0 %4762 }
 0x5eb   : > { %v17261_v46 = vadd.f32 %v16979_v9, %v4825_v36  ;;  %v4794_v38 = vmul.f32 %v16969_v42, %v4727_v7  ;;  %v4803_v13 = vmul.f32 %v16969_v42, %v4763_v29 }
 0x5ed   : > { %11095 = vst.msk [vmem:[%s16989_s30 + $0xa0] sm:$0xff] %vm11074_vm12, %v17261_v46  ;;  %v4826_v22 = vadd.f32 %v4794_v38, %v4630_v30  ;;  %v4835_v26 = vadd.f32 %v4803_v13, %v4639_v24  ;;  %v5056_v63 = vmul.f32 %v16906_v54, %v17261_v46 }
 0x5ef   : > { %v17271_v10 = vadd.f32 %v16979_v9, %v4826_v22  ;;  %v17274_v58 = vadd.f32 %v16979_v9, %v4835_v26  ;;  %v4563_v49 = vpop.permute.xlu1 %4562  ;;  %5140 = vrot.lane.b32.xlu0 %v5056_v63, %s15130_s26  ;;  %v4634_v22 = vmul.f32 %v16972_v39, %v17209_v17 }
 0x5f0   : > { %v4632_v2 = vmul.f32 %v16972_v39, %v4563_v49 }
 0x5f1   : > { %11096 = vst.msk [vmem:[%s16989_s30 + $0xa8] sm:$0xff] %vm11074_vm12, %v17271_v10  ;;  %11105 = vst.msk [vmem:[%s16989_s30 + $0xf0] sm:$0xff] %vm11074_vm12, %v17274_v58  ;;  %v5057_v53 = vmul.f32 %v16903_v25, %v17271_v10 }
 0x5f3   : > { %5142 = vrot.lane.b32.xlu1 %v5057_v53, %s15130_s26 }
 0x5f4   : > { %v4735_v54 = vpop.permute.xlu1 %4734 }
 0x5f5   : > { %v4796_v5 = vmul.f32 %v16969_v42, %v4735_v54 }
 0x5f7   : > { %v4828_v36 = vadd.f32 %v4796_v5, %v4632_v2  ;;  %5144 = vrot.lane.b32.xlu1 %v5058_v31, %s15130_s26 }
 0x5f9   : > { %v17292_v30 = vadd.f32 %v16979_v9, %v4828_v36  ;;  %v4568_v7 = vpop.permute.xlu1 %4567 }
 0x5fa   : > { %v4633_v20 = vmul.f32 %v16972_v39, %v4568_v7 }
 0x5fb   : > { %11098 = vst.msk [vmem:[%s16989_s30 + $0xb8] sm:$0xff] %vm11074_vm12, %v17292_v30  ;;  %v5059_v25 = vmul.f32 %v16919_v61, %v17292_v30 }
 0x5fd   : > { %5146 = vrot.lane.b32.xlu0 %v5059_v25, %s15130_s26 }
 0x5fe   : > { %v4739_v29 = vpop.permute.xlu1 %4738 }
 0x5ff   : > { %v4797_v24 = vmul.f32 %v16969_v42, %v4739_v29 }
 0x601   : > { %v4829_v38 = vadd.f32 %v4797_v24, %v4633_v20 }
 0x602   : > { %v4743_v13 = vpop.permute.xlu1 %4742 }
 0x603   : > { %v17305_v26 = vadd.f32 %v16979_v9, %v4829_v38  ;;  %v4798_v63 = vmul.f32 %v16969_v42, %v4743_v13  ;;  %v4638_v13 = vmul.f32 %v16972_v39, %v17247_v44 }
 0x605   : > { %11099 = vst.msk [vmem:[%s16989_s30 + $0xc0] sm:$0xff] %vm11074_vm12, %v17305_v26  ;;  %v4830_v61 = vadd.f32 %v4798_v63, %v4634_v22  ;;  %v5060_v49 = vmul.f32 %v16930_v12, %v17305_v26  ;;  %v5062_v12 = vmul.f32 %v16939_v14, %v17238_v8 }
 0x607   : > { %v17314_v53 = vadd.f32 %v16979_v9, %v4830_v61  ;;  %v4583_v54 = vpop.permute.xlu1 %4582  ;;  %5148 = vrot.lane.b32.xlu0 %v5060_v49, %s15130_s26  ;;  %v5103_v49 = vpop.permute.xlu0 %5102 }
 0x608   : > { %v4636_v5 = vmul.f32 %v16972_v39, %v4583_v54  ;;  %v5197_v44 = vadd.f32 %v5103_v49, %v17002_v33 }
 0x609   : > { %11100 = vst.msk [vmem:[%s16989_s30 + $0xc8] sm:$0xff] %vm11074_vm12, %v17314_v53  ;;  %v5061_v17 = vmul.f32 %v16926_v47, %v17314_v53 }
 0x60b   : > { %5150 = vrot.lane.b32.xlu1 %v5061_v17, %s15130_s26 }
 0x60c   : > { %v4751_v2 = vpop.permute.xlu1 %4750 }
 0x60d   : > { %v4800_v31 = vmul.f32 %v16969_v42, %v4751_v2 }
 0x60f   : > { %v4832_v36 = vadd.f32 %v4800_v31, %v4636_v5  ;;  %5152 = vrot.lane.b32.xlu1 %v5062_v12, %s15130_s26 }
 0x611   : > { %v17329_v7 = vadd.f32 %v16979_v9, %v4832_v36  ;;  %v4588_v25 = vpop.permute.xlu1 %4587 }
 0x612   : > { %v4637_v14 = vmul.f32 %v16972_v39, %v4588_v25 }
 0x613   : > { %11102 = vst.msk [vmem:[%s16989_s30 + $0xd8] sm:$0xff] %vm11074_vm12, %v17329_v7  ;;  %v5063_v47 = vmul.f32 %v16942_v59, %v17329_v7 }
 0x615   : > { %5154 = vrot.lane.b32.xlu0 %v5063_v47, %s15130_s26  ;;  %v5105_v47 = vpop.permute.xlu0 %5104 }
 0x616   : > { %v4755_v29 = vpop.permute.xlu1 %4754 }
 0x617   : > { %v4801_v20 = vmul.f32 %v16969_v42, %v4755_v29 }
 0x619   : > { %v4833_v24 = vadd.f32 %v4801_v20, %v4637_v14 }
 0x61a   : > { %v4759_v38 = vpop.permute.xlu1 %4758 }
 0x61b   : > { %v17342_v22 = vadd.f32 %v16979_v9, %v4833_v24  ;;  %v4802_v63 = vmul.f32 %v16969_v42, %v4759_v38 }
 0x61d   : > { %11103 = vst.msk [vmem:[%s16989_s30 + $0xe0] sm:$0xff] %vm11074_vm12, %v17342_v22  ;;  %v4834_v59 = vadd.f32 %v4802_v63, %v4638_v13  ;;  %v5064_v61 = vmul.f32 %v16958_v62, %v17342_v22 }
 0x61f   : > { %v17351_v54 = vadd.f32 %v16979_v9, %v4834_v59  ;;  %v4603_v17 = vpop.permute.xlu1 %4602  ;;  %5156 = vrot.lane.b32.xlu0 %v5064_v61, %s15130_s26 }
 0x620   : > { %v4640_v5 = vmul.f32 %v16972_v39, %v4603_v17  ;;  %v5198_v39 = vadd.f32 %v5105_v47, %v17019_v15 }
 0x621   : > { %11104 = vst.msk [vmem:[%s16989_s30 + $0xe8] sm:$0xff] %vm11074_vm12, %v17351_v54  ;;  %v5065_v2 = vmul.f32 %v16956_v16, %v17351_v54 }
 0x623   : > { %5158 = vrot.lane.b32.xlu1 %v5065_v2, %s15130_s26  ;;  %5236 = vperm.xlu0 %13210, %v5197_v44  }
 0x624   : > { %v4767_v62 = vpop.permute.xlu1 %4766 }
 0x625   : > { %v4804_v31 = vmul.f32 %v16969_v42, %v4767_v62 }
 0x627   : > { %v4836_v12 = vadd.f32 %v4804_v31, %v4640_v5 }
 0x628   : > { %v5101_v36 = vpop.permute.xlu1 %5100 }
 0x629   : > { %v17364_v25 = vadd.f32 %v16979_v9, %v4836_v12  ;;  %v5196_v33 = vadd.f32 %v5101_v36, %v16992_v28  ;;  %v5111_v9 = vpop.permute.xlu0 %5110  ;;  %v5066_v28 = vmul.f32 %v16965_v1, %v17274_v58 }
 0x62b   : > { %11106 = vst.msk [vmem:[%s16989_s30 + $0xf8] sm:$0xff] %vm11074_vm12, %v17364_v25  ;;  %5231 = vperm.xlu1 %13208, %v5196_v33   ;;  %v5067_v16 = vmul.f32 %v16963_v32, %v17364_v25  ;;  %v5201_v32 = vadd.f32 %v5111_v9, %v17054_v45  ;;  %s15131_s30 = smov [#allocation22]  }
 0x62c   : > { %v5107_v42 = vpop.permute.xlu1 %5106 }
 0x62d   : > { %5162 = vrot.lane.b32.xlu0 %v5067_v16, %s15130_s26  ;;  %v5113_v15 = vpop.permute.xlu0 %5112  ;;  %v5199_v14 = vadd.f32 %v5107_v42, %v17025_v55 }
 0x62e   : > { %v5202_v20 = vadd.f32 %v5113_v15, %v17057_v0 }
 0x62f   : > { %13209 = vset.pattern.permute.xlu1 %v19833_v48 }
 0x630   : > { %5426 = vperm.xlu1 %13209, %v5196_v33   ;;  %v5109_v29 = vpop.permute.xlu1 %5108 }
 0x631   : > { %5241 = vperm.xlu0 %13210, %v5198_v39   ;;  %v5119_v1 = vpop.permute.xlu0 %5118  ;;  %v5200_v45 = vadd.f32 %v5109_v29, %v17043_v51 }
 0x632   : > { %v5205_v55 = vadd.f32 %v5119_v1, %v17107_v41 }
 0x634   : > { %5430 = vperm.xlu1 %13209, %v5197_v44   ;;  %v5115_v24 = vpop.permute.xlu1 %5114 }
 0x635   : > { %13211 = vset.pattern.permute.xlu0 %v19833_v48  ;;  %v5121_v13 = vpop.permute.xlu0 %5120  ;;  %v5203_v59 = vadd.f32 %v5115_v24, %v17077_v56 }
 0x636   : > { %5434 = vperm.xlu0 %13211, %v5198_v39   ;;  %v5206_v63 = vadd.f32 %v5121_v13, %v17089_v6 }
 0x638   : > { %5160 = vrot.lane.b32.xlu1 %v5066_v28, %s15130_s26  ;;  %v5117_v38 = vpop.permute.xlu1 %5116  ;;  %s15021_s26 = sshll.u32 %s15131_s30, 4  ;;  %s15022_s26 = int_to_ptr.vmem [resolvable:$false] %s15021_s26 }
 0x639   : > { %13212 = vset.pattern.permute.xlu1 %v19831_v52  ;;  %v5127_v61 = vpop.permute.xlu0 %5126  ;;  %v5204_v17 = vadd.f32 %v5117_v38, %v17099_v57  ;;  %s15023_s16 = scalar_lea.vmem %s15022_s26, 24576  ;;  %p15024_p0 = scmp.lt.s32.totalorder %s19713_s3, %s15022_s26 }
 0x63a   : > { %13216 = vset.pattern.permute.xlu0 %v19831_v52  ;;  %v5209_v41 = vadd.f32 %v5127_v61, %v17166_v21  ;;  %p15025_p5 = scmp.lt.s32.totalorder %s15023_s16, %s15017_s17 }
 0x63b   : > { %5256 = vperm.xlu0 %13216, %v5201_v32  }
 0x63c   : > { %5246 = vperm.xlu1 %13212, %v5199_v14   ;;  %v5123_v0 = vpop.permute.xlu1 %5122  ;;  %p15026_p9 = por %p15025_p5, %p15024_p0 }
 0x63d   : > { %v5207_v62 = vadd.f32 %v5123_v0, %v17138_v60  ;;  %v13620_v0 = vld [vmem:[#allocation19] ss:$24 sps:$4 sm:$0xff]  }
 0x63e   : > { %p15027_p7 = pnand %p15026_p9, %p15020_p11 }
 0x63f   : > { %5261 = vperm.xlu0 %13216, %v5202_v20   ;;  %v5131_v21 = vpop.permute.xlu0 %5130 }
 0x640   : > { %13213 = vset.pattern.permute.xlu1 %v19833_v48  ;;  %v5125_v51 = vpop.permute.xlu1 %5124 }
 0x641   : > { %5438 = vperm.xlu1 %13213, %v5199_v14  }
 0x643   : > { %13217 = vset.pattern.permute.xlu0 %v19833_v48 }
 0x644   : > { %5450 = vperm.xlu0 %13217, %v5202_v20   ;;  %v5129_v49 = vpop.permute.xlu1 %5128 }
 0x645   : > { %13214 = vset.pattern.permute.xlu1 %v19831_v52  ;;  %v5210_v6 = vadd.f32 %v5129_v49, %v17129_v4 }
 0x646   : > { %5251 = vperm.xlu1 %13214, %v5200_v45  }
 0x648   : > { %13222 = vset.pattern.permute.xlu0 %v19831_v52 }
 0x649   : > { %5276 = vperm.xlu0 %13222, %v5205_v55   ;;  %v5133_v4 = vpop.permute.xlu0 %5132 }
 0x64a   : > { %13215 = vset.pattern.permute.xlu1 %v19833_v48 }
 0x64b   : > { %5442 = vperm.xlu1 %13215, %v5200_v45  }
 0x64d   : > { %5281 = vperm.xlu0 %13222, %v5206_v63   ;;  %v5135_v56 = vpop.permute.xlu1 %5134 }
 0x64e   : > { %v5213_v44 = vadd.f32 %v5135_v56, %v17222_v19  ;;  %v13631_v56 = vld [vmem:[#allocation19 + $0x3c] ss:$24 sps:$4 sm:$0xff]  }
 0x64f   : > { %5446 = vperm.xlu1 %13215, %v5201_v32   ;;  %v5228_v32 = vld [vmem:[#allocation13] sm:$0x3] }
 0x650   : > { %v17460_v24 = vrot.slane %v5228_v32, %v20068_v23 }
 0x651   : > { %13223 = vset.pattern.permute.xlu0 %v19833_v48  ;;  %v5137_v2 = vpop.permute.xlu1 %5136 }
 0x652   : > { %5466 = vperm.xlu0 %13223, %v5206_v63   ;;  %v5214_v57 = vadd.f32 %v5137_v2, %v17169_v50  ;;  %v5208_v50 = vadd.f32 %v5125_v51, %v17157_v11  ;;  %v5211_v11 = vadd.f32 %v5131_v21, %v17191_v18  ;;  %v13623_v63 = vld [vmem:[#allocation19 + $0x8] ss:$24 sps:$4 sm:$0xff]  }
 0x653   : > { %13218 = vset.pattern.permute.xlu1 %v19831_v52  ;;  %v13626_v21 = vld [vmem:[#allocation19 + $0x30] ss:$24 sps:$4 sm:$0xff]  }
 0x654   : > { %5266 = vperm.xlu1 %13218, %v5203_v59  }
 0x656   : > { %13228 = vset.pattern.permute.xlu0 %v19831_v52 }
 0x657   : > { %5296 = vperm.xlu0 %13228, %v5209_v41   ;;  %v5139_v5 = vpop.permute.xlu0 %5138 }
 0x658   : > { %13219 = vset.pattern.permute.xlu1 %v19833_v48  ;;  %v5215_v9 = vadd.f32 %v5139_v5, %v17245_v34  ;;  %v13637_v5 = vld [vmem:[#allocation19 + $0x6c] ss:$24 sps:$4 sm:$0xff]  }
 0x659   : > { %5454 = vperm.xlu1 %13219, %v5203_v59   ;;  %v17467_v59 = vld [vmem:[#allocation14] ss:$0 sm:$0xff] }
 0x65b   : > { %5301 = vperm.xlu0 %13228, %v5210_v6  }
 0x65d   : > { %13220 = vset.pattern.permute.xlu1 %v19831_v52 }
 0x65e   : > { %5271 = vperm.xlu1 %13220, %v5204_v17  }
 0x65f   : > { %13229 = vset.pattern.permute.xlu0 %v19833_v48 }
 0x660   : > { %5482 = vperm.xlu0 %13229, %v5210_v6  }
 0x661   : > { %v5141_v31 = vpop.permute.xlu0 %5140 }
 0x662   : > { %13221 = vset.pattern.permute.xlu1 %v19833_v48  ;;  %v5216_v19 = vadd.f32 %v5141_v31, %v17261_v46 }
 0x663   : > { %5458 = vperm.xlu1 %13221, %v5204_v17   ;;  %v13628_v17 = vld [vmem:[#allocation19 + $0x34] ss:$24 sps:$4 sm:$0xff]  }
 0x664   : > { %13234 = vset.pattern.permute.xlu0 %v19831_v52 }
 0x665   : > { %5316 = vperm.xlu0 %13234, %v5213_v44   ;;  %v5143_v12 = vpop.permute.xlu1 %5142 }
 0x667   : > { %5462 = vperm.xlu1 %13221, %v5205_v55   ;;  %v13625_v55 = vld [vmem:[#allocation19 + $0xc] ss:$24 sps:$4 sm:$0xff]  }
 0x668   : > { %8670 = vmatprep.subr.bf16.mxu1 %v13625_v55 }
 0x669   : > { %5321 = vperm.xlu0 %13234, %v5214_v57   ;;  %v5145_v60 = vpop.permute.xlu1 %5144  ;;  %8671 = vmatpush1.bf16.msra.mxu1 %v13623_v63  ;;  %v13658_v63 = vld [vmem:[#allocation19 + $0x124] ss:$24 sps:$4 sm:$0xff]  }
 0x66a   : > { %v5218_v36 = vadd.f32 %v5145_v60, %v17203_v35  ;;  %v5212_v35 = vadd.f32 %v5133_v4, %v17213_v37  ;;  %8672 = vmatprep.subr.bf16.mxu1 %v13631_v56  ;;  %v13643_v60 = vld [vmem:[#allocation19 + $0x9c] ss:$24 sps:$4 sm:$0xff]  }
 0x66b   : > { %13224 = vset.pattern.permute.xlu1 %v19831_v52 }
 0x66c   : > { %5286 = vperm.xlu1 %13224, %v5207_v62  }
 0x66d   : > { %13235 = vset.pattern.permute.xlu0 %v19833_v48 }
 0x66e   : > { %5498 = vperm.xlu0 %13235, %v5214_v57  }
 0x66f   : > { %v5147_v46 = vpop.permute.xlu0 %5146 }
 0x670   : > { %13225 = vset.pattern.permute.xlu1 %v19833_v48  ;;  %v5219_v15 = vadd.f32 %v5147_v46, %v17292_v30  ;;  %v13622_v30 = vld [vmem:[#allocation19 + $0x4] ss:$24 sps:$4 sm:$0xff]  }
 0x671   : > { %5470 = vperm.xlu1 %13225, %v5207_v62   ;;  %8284 = vmatprep.subr.bf16.mxu0 %v13622_v30  ;;  %v13634_v62 = vld [vmem:[#allocation19 + $0x64] ss:$24 sps:$4 sm:$0xff]  }
 0x672   : > { %13238 = vset.pattern.permute.xlu0 %v19831_v52  ;;  %8285 = vmatpush1.bf16.msra.mxu0 %v13620_v0 }
 0x673   : > { %5331 = vperm.xlu0 %13238, %v5216_v19   ;;  %8286 = vmatprep.subr.bf16.mxu0 %v13628_v17 }
 0x675   : > { %13226 = vset.pattern.permute.xlu1 %v19831_v52 }
 0x676   : > { %5291 = vperm.xlu1 %13226, %v5208_v50   ;;  %8287 = vmatpush1.bf16.msra.mxu0 %v13626_v21 }
 0x677   : > { %13239 = vset.pattern.permute.xlu0 %v19833_v48  ;;  %8288 = vmatprep.subr.bf16.mxu0 %v13634_v62  ;;  %v13670_v62 = vld [vmem:[#allocation19 + $0x184] ss:$24 sps:$4 sm:$0xff]  }
 0x678   : > { %5506 = vperm.xlu0 %13239, %v5216_v19  }
 0x679   : > { %v5149_v33 = vpop.permute.xlu0 %5148 }
 0x67a   : > { %13227 = vset.pattern.permute.xlu1 %v19833_v48  ;;  %v5220_v16 = vadd.f32 %v5149_v33, %v17305_v26  ;;  %v13641_v33 = vld [vmem:[#allocation19 + $0x98] ss:$24 sps:$4 sm:$0xff]  }
 0x67b   : > { %5474 = vperm.xlu1 %13227, %v5208_v50   ;;  %v13640_v50 = vld [vmem:[#allocation19 + $0x94] ss:$24 sps:$4 sm:$0xff]  }
 0x67c   : > { %13242 = vset.pattern.permute.xlu0 %v19831_v52 }
 0x67d   : > { %5341 = vperm.xlu0 %13242, %v5218_v36   ;;  %v17422_v47 = vpop.permute.xlu1 %5150 }
 0x67f   : > { %5478 = vperm.xlu1 %13227, %v5209_v41   ;;  %v5221_v41 = vadd.f32 %v17422_v47, %v17314_v53  ;;  %v13632_v53 = vld [vmem:[#allocation19 + $0x60] ss:$24 sps:$4 sm:$0xff]  }
 0x680   : > { %8289 = vmatpush1.bf16.msra.mxu0 %v13632_v53 }
 0x681   : > { %13243 = vset.pattern.permute.xlu0 %v19833_v48  ;;  %v5153_v18 = vpop.permute.xlu1 %5152  ;;  %8290 = vmatprep.subr.bf16.mxu0 %v13640_v50 }
 0x682   : > { %5514 = vperm.xlu0 %13243, %v5218_v36   ;;  %v5222_v39 = vadd.f32 %v5153_v18, %v17238_v8  ;;  %v5217_v8 = vadd.f32 %v5143_v12, %v17271_v10  ;;  %v17455_v10 = vrot.slane %v5228_v32, %v20069_v43  ;;  %v13646_v18 = vld [vmem:[#allocation19 + $0xc4] ss:$24 sps:$4 sm:$0xff]  }
 0x683   : > { %13230 = vset.pattern.permute.xlu1 %v19831_v52  ;;  %v13655_v32 = vld [vmem:[#allocation19 + $0xfc] ss:$24 sps:$4 sm:$0xff]  }
 0x684   : > { %5306 = vperm.xlu1 %13230, %v5211_v11  }
 0x686   : > { %13246 = vset.pattern.permute.xlu0 %v19831_v52 }
 0x687   : > { %5351 = vperm.xlu0 %13246, %v5220_v16   ;;  %v17431_v26 = vpop.permute.xlu0 %5154 }
 0x688   : > { %13231 = vset.pattern.permute.xlu1 %v19833_v48 }
 0x689   : > { %5486 = vperm.xlu1 %13231, %v5211_v11   ;;  %v13638_v11 = vld [vmem:[#allocation19 + $0x90] ss:$24 sps:$4 sm:$0xff]  }
 0x68a   : > { %8291 = vmatpush1.bf16.msra.mxu0 %v13638_v11 }
 0x68b   : > { %13247 = vset.pattern.permute.xlu0 %v19833_v48  ;;  %8292 = vmatprep.subr.bf16.mxu0 %v13646_v18  ;;  %v13679_v18 = vld [vmem:[#allocation19 + $0x1bc] ss:$24 sps:$4 sm:$0xff]  }
 0x68c   : > { %5522 = vperm.xlu0 %13247, %v5220_v16   ;;  %v5223_v16 = vadd.f32 %v17431_v26, %v17329_v7  ;;  %v13647_v7 = vld [vmem:[#allocation19 + $0xc8] ss:$24 sps:$4 sm:$0xff]  }
 0x68d   : > { %13232 = vset.pattern.permute.xlu1 %v19831_v52 }
 0x68e   : > { %5311 = vperm.xlu1 %13232, %v5212_v35  }
 0x690   : > { %13250 = vset.pattern.permute.xlu0 %v19831_v52 }
 0x691   : > { %5361 = vperm.xlu0 %13250, %v5222_v39   ;;  %v5157_v42 = vpop.permute.xlu0 %5156 }
 0x692   : > { %13233 = vset.pattern.permute.xlu1 %v19833_v48  ;;  %v5224_v37 = vadd.f32 %v5157_v42, %v17342_v22 }
 0x693   : > { %5490 = vperm.xlu1 %13233, %v5212_v35  }
 0x695   : > { %13251 = vset.pattern.permute.xlu0 %v19833_v48  ;;  %v17443_v28 = vpop.permute.xlu1 %5158 }
 0x696   : > { %5530 = vperm.xlu0 %13251, %v5222_v39   ;;  %v13649_v39 = vld [vmem:[#allocation19 + $0xcc] ss:$24 sps:$4 sm:$0xff]   ;;  %v5225_v55 = vadd.f32 %v17443_v28, %v17351_v54 }
 0x697   : > { %5494 = vperm.xlu1 %13233, %v5213_v44   ;;  %v13629_v44 = vld [vmem:[#allocation19 + $0x38] ss:$24 sps:$4 sm:$0xff]   ;;  %v13664_v28 = vld [vmem:[#allocation19 + $0x154] ss:$24 sps:$4 sm:$0xff]  }
 0x698   : > { %8673 = vmatpush1.bf16.msra.mxu1 %v13629_v44  ;;  %v13667_v44 = vld [vmem:[#allocation19 + $0x15c] ss:$24 sps:$4 sm:$0xff]  }
 0x699   : > { %8674 = vmatprep.subr.bf16.mxu1 %v13637_v5 }
 0x69a   : > { %13254 = vset.pattern.permute.xlu0 %v19831_v52 }
 0x69b   : > { %13236 = vset.pattern.permute.xlu1 %v19831_v52  ;;  %5371 = vperm.xlu0 %13254, %v5224_v37  }
 0x69c   : > { %5326 = vperm.xlu1 %13236, %v5215_v9  }
 0x69f   : > { %13255 = vset.pattern.permute.xlu0 %v19833_v48 }
 0x6a0   : > { %13237 = vset.pattern.permute.xlu1 %v19833_v48  ;;  %5538 = vperm.xlu0 %13255, %v5224_v37  }
 0x6a1   : > { %5502 = vperm.xlu1 %13237, %v5215_v9   ;;  %v13644_v9 = vld [vmem:[#allocation19 + $0xc0] ss:$24 sps:$4 sm:$0xff]  }
 0x6a2   : > { %v5237_v22 = vpop.permute.xlu0 %5236  ;;  %8293 = vmatpush1.bf16.msra.mxu0 %v13644_v9 }
 0x6a3   : > { %v5394_v45 = vmul.f32 %v17455_v10, %v5237_v22  ;;  %v13652_v22 = vld [vmem:[#allocation19 + $0xf4] ss:$24 sps:$4 sm:$0xff]  }
 0x6a4   : > { %8294 = vmatprep.subr.bf16.mxu0 %v13652_v22 }
 0x6a5   : > { %13240 = vset.pattern.permute.xlu1 %v19831_v52 }
 0x6a6   : > { %5336 = vperm.xlu1 %13240, %v5217_v8   ;;  %v17448_v29 = vpop.permute.xlu0 %5162 }
 0x6a7   : > { %v5227_v50 = vadd.f32 %v17448_v29, %v17364_v25  ;;  %v13674_v29 = vld [vmem:[#allocation19 + $0x1b0] ss:$24 sps:$4 sm:$0xff]  }
 0x6aa   : > { %v17445_v34 = vpop.permute.xlu1 %5231  ;;  %13241 = vset.pattern.permute.xlu1 %v19833_v48 }
 0x6ab   : > { %5510 = vperm.xlu1 %13241, %v5217_v8  }
 0x6af   : > { %v17451_v14 = vpop.permute.xlu1 %5426  ;;  %13244 = vset.pattern.permute.xlu1 %v19831_v52 }
 0x6b0   : > { %5346 = vperm.xlu1 %13244, %v5219_v15   ;;  %v17457_v20 = vpop.permute.xlu0 %5241  ;;  %v5557_v30 = vmul.f32 %v17460_v24, %v17451_v14  ;;  %v13659_v14 = vld [vmem:[#allocation19 + $0x128] ss:$24 sps:$4 sm:$0xff]  }
 0x6b3   : > { %v5431_v1 = vpop.permute.xlu1 %5430 }
 0x6b4   : > { %v5558_v38 = vmul.f32 %v17460_v24, %v5431_v1  ;;  %13245 = vset.pattern.permute.xlu1 %v19833_v48  ;;  %v13650_v1 = vld [vmem:[#allocation19 + $0xf0] ss:$24 sps:$4 sm:$0xff]  }
 0x6b5   : > { %5518 = vperm.xlu1 %13245, %v5219_v15   ;;  %v17465_v13 = vpop.permute.xlu0 %5434  ;;  %8295 = vmatpush1.bf16.msra.mxu0 %v13650_v1 }
 0x6b6   : > { %v5590_v51 = vadd.f32 %v5558_v38, %v5394_v45  ;;  %v13653_v38 = vld [vmem:[#allocation19 + $0xf8] ss:$24 sps:$4 sm:$0xff]   ;;  %8296 = vmatprep.subr.bf16.mxu0 %v13658_v63  ;;  %v5559_v22 = vmul.f32 %v17460_v24, %v17465_v13  ;;  %v5395_v63 = vmul.f32 %v17455_v10, %v17457_v20  ;;  %v13688_v13 = vld [vmem:[#allocation19 + $0x214] ss:$24 sps:$4 sm:$0xff]  }
 0x6b7   : > { %v5161_v61 = vpop.permute.xlu1 %5160  ;;  %v13689_v20 = vld [vmem:[#allocation19 + $0x218] ss:$24 sps:$4 sm:$0xff]  }
 0x6b8   : > { %v5629_v49 = vadd.f32 %v17467_v59, %v5590_v51  ;;  %v5226_v6 = vadd.f32 %v5161_v61, %v17274_v58  ;;  %v13635_v58 = vld [vmem:[#allocation19 + $0x68] ss:$24 sps:$4 sm:$0xff]   ;;  %v13661_v51 = vld [vmem:[#allocation19 + $0x12c] ss:$24 sps:$4 sm:$0xff]   ;;  %v5393_v61 = vmul.f32 %v17455_v10, %v17445_v34 }
 0x6b9   : > { %13248 = vset.pattern.permute.xlu1 %v19831_v52  ;;  %8675 = vmatpush1.bf16.msra.mxu1 %v13635_v58  ;;  %v13662_v34 = vld [vmem:[#allocation19 + $0x150] ss:$24 sps:$4 sm:$0xff]   ;;  %v13673_v58 = vld [vmem:[#allocation19 + $0x18c] ss:$24 sps:$4 sm:$0xff]  }
 0x6ba   : > { %5356 = vperm.xlu1 %13248, %v5221_v41   ;;  %5546 = vperm.xlu0 %13255, %v5226_v6   ;;  %v17474_v2 = vpop.permute.xlu0 %5256  ;;  %v5693_v4 = vmul.f32 0.2, %v5629_v49  ;;  %vm5661_vm1 = vcmp.gt.f32.partialorder %v5629_v49, 0.0 }
 0x6bb   : > { %v5247_v57 = vpop.permute.xlu1 %5246  ;;  %8676 = vmatprep.subr.bf16.mxu1 %v13643_v60  ;;  %v5398_v17 = vmul.f32 %v17455_v10, %v17474_v2 }
 0x6bc   : > { %v17480_v19 = vsel %vm5661_vm1, %v5629_v49, %v5693_v4  ;;  %v5396_v36 = vmul.f32 %v17455_v10, %v5247_v57  ;;  %v13665_v4 = vld [vmem:[#allocation19 + $0x158] ss:$24 sps:$4 sm:$0xff]  }
 0x6bd   : > { %8677 = vmatpush1.bf16.msra.mxu1 %v13641_v33 }
 0x6be   : > { %13249 = vset.pattern.permute.xlu1 %v19833_v48  ;;  %13260 = vset.pattern.permute.xlu0 %v19831_v52  ;;  %v17478_v31 = vpop.permute.xlu0 %5261 }
 0x6bf   : > { %5526 = vperm.xlu1 %13249, %v5221_v41   ;;  %5764 = vperm.xlu0 %13260, %v17480_v19   ;;  %v13656_v41 = vld [vmem:[#allocation19 + $0x120] ss:$24 sps:$4 sm:$0xff]  }
 0x6c0   : > { %v5439_v12 = vpop.permute.xlu1 %5438  ;;  %8678 = vmatprep.subr.bf16.mxu1 %v13649_v39  ;;  %8297 = vmatpush1.bf16.msra.mxu0 %v13656_v41  ;;  %v13691_v41 = vld [vmem:[#allocation19 + $0x21c] ss:$24 sps:$4 sm:$0xff]  }
 0x6c1   : > { %v5560_v46 = vmul.f32 %v17460_v24, %v5439_v12  ;;  %8679 = vmatpush1.bf16.msra.mxu1 %v13647_v7  ;;  %8298 = vmatprep.subr.bf16.mxu0 %v13664_v28  ;;  %v13668_v12 = vld [vmem:[#allocation19 + $0x180] ss:$24 sps:$4 sm:$0xff]   ;;  %v13694_v28 = vld [vmem:[#allocation19 + $0x244] ss:$24 sps:$4 sm:$0xff]  }
 0x6c2   : > { %8680 = vmatprep.subr.bf16.mxu1 %v13655_v32 }
 0x6c3   : > { %v5592_v47 = vadd.f32 %v5560_v46, %v5396_v36  ;;  %13252 = vset.pattern.permute.xlu1 %v19831_v52  ;;  %5381 = vperm.xlu0 %13260, %v5226_v6   ;;  %v17488_v35 = vpop.permute.xlu0 %5450  ;;  %v5589_v6 = vadd.f32 %v5557_v30, %v5393_v61  ;;  %v13671_v36 = vld [vmem:[#allocation19 + $0x188] ss:$24 sps:$4 sm:$0xff]   ;;  %v13685_v30 = vld [vmem:[#allocation19 + $0x1ec] ss:$24 sps:$4 sm:$0xff]  }
 0x6c4   : > { %5366 = vperm.xlu1 %13252, %v5223_v16   ;;  %8299 = vmatpush1.bf16.msra.mxu0 %v13662_v34 }
 0x6c5   : > { %v5631_v42 = vadd.f32 %v17467_v59, %v5592_v47  ;;  %v17491_v37 = vpop.permute.xlu1 %5251  ;;  %8681 = vmatpush1.bf16.msra.mxu1 %v13653_v38  ;;  %v5628_v57 = vadd.f32 %v17467_v59, %v5589_v6  ;;  %8300 = vmatprep.subr.bf16.mxu0 %v13670_v62  ;;  %v13680_v38 = vld [vmem:[#allocation19 + $0x1e0] ss:$24 sps:$4 sm:$0xff]   ;;  %v13686_v6 = vld [vmem:[#allocation19 + $0x210] ss:$24 sps:$4 sm:$0xff]  }
 0x6c6   : > { %8682 = vmatprep.subr.bf16.mxu1 %v13661_v51 }
 0x6c7   : > { %vm5663_vm2 = vcmp.gt.f32.partialorder %v5631_v42, 0.0  ;;  %v5695_v26 = vmul.f32 0.2, %v5631_v42  ;;  %v5692_v11 = vmul.f32 0.2, %v5628_v57  ;;  %vm5660_vm4 = vcmp.gt.f32.partialorder %v5628_v57, 0.0 }
 0x6c8   : > { %13253 = vset.pattern.permute.xlu1 %v19833_v48  ;;  %v17494_v8 = vpop.permute.xlu0 %5276  ;;  %8301 = vmatpush1.bf16.msra.mxu0 %v13668_v12 }
 0x6c9   : > { %5534 = vperm.xlu1 %13253, %v5223_v16   ;;  %v17496_v15 = vsel %vm5663_vm2, %v5631_v42, %v5695_v26  ;;  %8683 = vmatpush1.bf16.msra.mxu1 %v13659_v14  ;;  %v13676_v16 = vld [vmem:[#allocation19 + $0x1b4] ss:$24 sps:$4 sm:$0xff]   ;;  %v13677_v42 = vld [vmem:[#allocation19 + $0x1b8] ss:$24 sps:$4 sm:$0xff]   ;;  %v5724_v7 = vsel %vm5660_vm4, %v5628_v57, %v5692_v11  ;;  %v13682_v26 = vld [vmem:[#allocation19 + $0x1e4] ss:$24 sps:$4 sm:$0xff]  }
 0x6ca   : > { %v17498_v45 = vpop.permute.xlu1 %5442  ;;  %5774 = vperm.xlu0 %13260, %v17496_v15   ;;  %8684 = vmatprep.subr.bf16.mxu1 %v13667_v44  ;;  %v13692_v44 = vld [vmem:[#allocation19 + $0x240] ss:$24 sps:$4 sm:$0xff]  }
 0x6cb   : > { %8302 = vmatprep.subr.bf16.mxu0 %v13676_v16  ;;  %v13695_v57 = vld [vmem:[#allocation19 + $0x248] ss:$24 sps:$4 sm:$0xff]   ;;  %v13701_v11 = vld [vmem:[#allocation19 + $0x278] ss:$24 sps:$4 sm:$0xff]  }
 0x6cc   : > { %v17505_v0 = vpop.permute.xlu0 %5281  ;;  %8303 = vmatpush1.bf16.msra.mxu0 %v13674_v29  ;;  %v5397_v29 = vmul.f32 %v17455_v10, %v17491_v37  ;;  %v13712_v37 = vld [vmem:[#allocation19 + $0x2d4] ss:$24 sps:$4 sm:$0xff]  }
 0x6cd   : > { %13256 = vset.pattern.permute.xlu1 %v19831_v52  ;;  %8685 = vmatpush1.bf16.msra.mxu1 %v13665_v4 }
 0x6ce   : > { %v5447_v49 = vpop.permute.xlu1 %5446  ;;  %5376 = vperm.xlu1 %13256, %v5225_v55   ;;  %8686 = vmatprep.subr.bf16.mxu1 %v13673_v58  ;;  %v13700_v58 = vld [vmem:[#allocation19 + $0x274] ss:$24 sps:$4 sm:$0xff]  }
 0x6cf   : > { %v5562_v54 = vmul.f32 %v17460_v24, %v5447_v49  ;;  %8304 = vmatprep.subr.bf16.mxu0 %v13682_v26  ;;  %v5591_v49 = vadd.f32 %v5559_v22, %v5395_v63 }
 0x6d0   : > { %8305 = vmatpush1.bf16.msra.mxu0 %v13680_v38 }
 0x6d1   : > { %v5594_v56 = vadd.f32 %v5562_v54, %v5398_v17  ;;  %v17513_v21 = vpop.permute.xlu0 %5466  ;;  %8687 = vmatpush1.bf16.msra.mxu1 %v13671_v36  ;;  %8306 = vmatprep.subr.bf16.mxu0 %v13688_v13  ;;  %v5630_v34 = vadd.f32 %v17467_v59, %v5591_v49  ;;  %v13698_v36 = vld [vmem:[#allocation19 + $0x270] ss:$24 sps:$4 sm:$0xff]  }
 0x6d2   : > { %13257 = vset.pattern.permute.xlu1 %v19833_v48  ;;  %8688 = vmatprep.subr.bf16.mxu1 %v13679_v18 }
 0x6d3   : > { %v5633_v53 = vadd.f32 %v17467_v59, %v5594_v56  ;;  %v5267_v2 = vpop.permute.xlu1 %5266  ;;  %5542 = vperm.xlu1 %13257, %v5225_v55   ;;  %v13683_v55 = vld [vmem:[#allocation19 + $0x1e8] ss:$24 sps:$4 sm:$0xff]   ;;  %v13697_v56 = vld [vmem:[#allocation19 + $0x24c] ss:$24 sps:$4 sm:$0xff]   ;;  %vm5662_vm6 = vcmp.gt.f32.partialorder %v5630_v34, 0.0 }
 0x6d4   : > { %v5400_v47 = vmul.f32 %v17455_v10, %v5267_v2  ;;  %8307 = vmatpush1.bf16.msra.mxu0 %v13686_v6 }
 0x6d5   : > { %vm5665_vm3 = vcmp.gt.f32.partialorder %v5633_v53, 0.0  ;;  %v5697_v5 = vmul.f32 0.2, %v5633_v53  ;;  %8689 = vmatpush1.bf16.msra.mxu1 %v13677_v42  ;;  %8308 = vmatprep.subr.bf16.mxu0 %v13694_v28 }
 0x6d6   : > { %v17520_v60 = vpop.permute.xlu0 %5296  ;;  %8690 = vmatprep.subr.bf16.mxu1 %v13685_v30  ;;  %v13710_v30 = vld [vmem:[#allocation19 + $0x2d0] ss:$24 sps:$4 sm:$0xff]  }
 0x6d7   : > { %13258 = vset.pattern.permute.xlu1 %v19831_v52  ;;  %v17523_v46 = vsel %vm5665_vm3, %v5633_v53, %v5697_v5  ;;  %v5402_v53 = vmul.f32 %v17455_v10, %v17494_v8  ;;  %v13703_v5 = vld [vmem:[#allocation19 + $0x27c] ss:$24 sps:$4 sm:$0xff]   ;;  %v5561_v8 = vmul.f32 %v17460_v24, %v17498_v45  ;;  %v13707_v45 = vld [vmem:[#allocation19 + $0x2a8] ss:$24 sps:$4 sm:$0xff]  }
 0x6d8   : > { %v5455_v33 = vpop.permute.xlu1 %5454  ;;  %5386 = vperm.xlu1 %13258, %v5227_v50   ;;  %5784 = vperm.xlu0 %13260, %v17523_v46  }
 0x6d9   : > { %v5564_v25 = vmul.f32 %v17460_v24, %v5455_v33  ;;  %8691 = vmatpush1.bf16.msra.mxu1 %v13683_v55  ;;  %8309 = vmatpush1.bf16.msra.mxu0 %v13692_v44  ;;  %v13715_v55 = vld [vmem:[#allocation19 + $0x2dc] ss:$24 sps:$4 sm:$0xff]  }
 0x6da   : > { %v17528_v39 = vpop.permute.xlu0 %5301  ;;  %8692 = vmatprep.subr.bf16.mxu1 %v13691_v41  ;;  %8310 = vmatprep.subr.bf16.mxu0 %v13700_v58 }
 0x6db   : > { %v5596_v9 = vadd.f32 %v5564_v25, %v5400_v47  ;;  %v13706_v47 = vld [vmem:[#allocation19 + $0x2a4] ss:$24 sps:$4 sm:$0xff]  }
 0x6dc   : > { %5759 = vperm.xlu1 %13258, %v5724_v7   ;;  %v13709_v25 = vld [vmem:[#allocation19 + $0x2ac] ss:$24 sps:$4 sm:$0xff]  }
 0x6dd   : > { %v5635_v32 = vadd.f32 %v17467_v59, %v5596_v9  ;;  %v17533_v1 = vpop.permute.xlu1 %5271  ;;  %8693 = vmatpush1.bf16.msra.mxu1 %v13689_v20  ;;  %8311 = vmatpush1.bf16.msra.mxu0 %v13698_v36  ;;  %v13704_v9 = vld [vmem:[#allocation19 + $0x2a0] ss:$24 sps:$4 sm:$0xff]  }
 0x6de   : > { %8694 = vmatprep.subr.bf16.mxu1 %v13697_v56  ;;  %8312 = vmatprep.subr.bf16.mxu0 %v13706_v47 }
 0x6df   : > { %v17537_v51 = vpop.permute.xlu0 %5482  ;;  %vm5667_vm5 = vcmp.gt.f32.partialorder %v5635_v32, 0.0  ;;  %v5699_v61 = vmul.f32 0.2, %v5635_v32 }
 0x6e0   : > { %13259 = vset.pattern.permute.xlu1 %v19833_v48 }
 0x6e1   : > { %6083 = vperm.xlu1 %13259, %v5724_v7   ;;  %v17540_v14 = vsel %vm5667_vm5, %v5635_v32, %v5699_v61  ;;  %8695 = vmatpush1.bf16.msra.mxu1 %v13695_v57  ;;  %v5593_v7 = vadd.f32 %v5561_v8, %v5397_v29  ;;  %v13713_v61 = vld [vmem:[#allocation19 + $0x2d8] ss:$24 sps:$4 sm:$0xff]   ;;  %v5399_v57 = vmul.f32 %v17455_v10, %v17478_v31 }
 0x6e2   : > { %v17542_v17 = vpop.permute.xlu1 %5458  ;;  %5794 = vperm.xlu0 %13260, %v17540_v14   ;;  %8696 = vmatprep.subr.bf16.mxu1 %v13703_v5 }
 0x6e3   : > { %8313 = vmatpush1.bf16.msra.mxu0 %v13704_v9  ;;  %v5632_v13 = vadd.f32 %v17467_v59, %v5593_v7 }
 0x6e4   : > { %v17545_v54 = vpop.permute.xlu0 %5316  ;;  %8314 = vmatprep.subr.bf16.mxu0 %v13712_v37 }
 0x6e5   : > { %5550 = vperm.xlu1 %13259, %v5227_v50   ;;  %v5694_v50 = vmul.f32 0.2, %v5630_v34  ;;  %8697 = vmatpush1.bf16.msra.mxu1 %v13701_v11  ;;  %v5696_v56 = vmul.f32 0.2, %v5632_v13  ;;  %vm5664_vm9 = vcmp.gt.f32.partialorder %v5632_v13, 0.0 }
 0x6e6   : > { %v5463_v4 = vpop.permute.xlu1 %5462  ;;  %8698 = vmatprep.subr.bf16.mxu1 %v13709_v25  ;;  %v5565_v25 = vmul.f32 %v17460_v24, %v17542_v17 }
 0x6e7   : > { %v5566_v2 = vmul.f32 %v17460_v24, %v5463_v4  ;;  %v5726_v18 = vsel %vm5662_vm6, %v5630_v34, %v5694_v50  ;;  %8315 = vmatpush1.bf16.msra.mxu0 %v13710_v30  ;;  %v5563_v34 = vmul.f32 %v17460_v24, %v17488_v35  ;;  %v5407_v35 = vmul.f32 %v17455_v10, %v17528_v39 }
 0x6e8   : > { %v17551_v62 = vpop.permute.xlu0 %5321 }
 0x6e9   : > { %v5598_v12 = vadd.f32 %v5566_v2, %v5402_v53  ;;  %6087 = vperm.xlu1 %13259, %v17480_v19   ;;  %8699 = vmatpush1.bf16.msra.mxu1 %v13707_v45  ;;  %v5728_v53 = vsel %vm5664_vm9, %v5632_v13, %v5696_v56  ;;  %v5595_v58 = vadd.f32 %v5563_v34, %v5399_v57 }
 0x6ea   : > { %8700 = vmatprep.subr.bf16.mxu1 %v13715_v55  ;;  %v5567_v55 = vmul.f32 %v17460_v24, %v17513_v21 }
 0x6eb   : > { %v5637_v33 = vadd.f32 %v17467_v59, %v5598_v12  ;;  %v5287_v16 = vpop.permute.xlu1 %5286  ;;  %v5406_v12 = vmul.f32 %v17455_v10, %v17520_v60 }
 0x6ec   : > { %v5404_v32 = vmul.f32 %v17455_v10, %v5287_v16 }
 0x6ed   : > { %13261 = vset.pattern.permute.xlu1 %v19831_v52  ;;  %v17560_v19 = vpop.permute.xlu0 %5498  ;;  %vm5669_vm7 = vcmp.gt.f32.partialorder %v5637_v33, 0.0  ;;  %v5701_v42 = vmul.f32 0.2, %v5637_v33  ;;  %8701 = vmatpush1.bf16.msra.mxu1 %v13713_v61  ;;  %v5411_v61 = vmul.f32 %v17455_v10, %v17551_v62 }
 0x6ee   : > { %5769 = vperm.xlu1 %13261, %v5726_v18  }
 0x6ef   : > { %v17562_v26 = vsel %vm5669_vm7, %v5637_v33, %v5701_v42 }
 0x6f0   : > { %v5471_v22 = vpop.permute.xlu1 %5470  ;;  %5804 = vperm.xlu0 %13260, %v17562_v26  }
 0x6f1   : > { %v5568_v38 = vmul.f32 %v17460_v24, %v5471_v22 }
 0x6f2   : > { %13262 = vset.pattern.permute.xlu1 %v19833_v48  ;;  %v17568_v63 = vpop.permute.xlu0 %5331 }
 0x6f3   : > { %v5600_v41 = vadd.f32 %v5568_v38, %v5404_v32  ;;  %6091 = vperm.xlu1 %13262, %v5726_v18   ;;  %v5575_v38 = vmul.f32 %v17460_v24, %v17560_v19  ;;  %v5410_v19 = vmul.f32 %v17455_v10, %v17545_v54 }
 0x6f5   : > { %v5639_v49 = vadd.f32 %v17467_v59, %v5600_v41  ;;  %v17572_v6 = vpop.permute.xlu1 %5291  ;;  %v5403_v41 = vmul.f32 %v17455_v10, %v17505_v0 }
 0x6f7   : > { %6095 = vperm.xlu1 %13262, %v17496_v15   ;;  %v17575_v20 = vpop.permute.xlu0 %5506  ;;  %vm5671_vm8 = vcmp.gt.f32.partialorder %v5639_v49, 0.0  ;;  %v5703_v28 = vmul.f32 0.2, %v5639_v49  ;;  %v5571_v15 = vmul.f32 %v17460_v24, %v17537_v51  ;;  %v5634_v51 = vadd.f32 %v17467_v59, %v5595_v58 }
 0x6f8   : > { %v5599_v56 = vadd.f32 %v5567_v55, %v5403_v41 }
 0x6f9   : > { %v17579_v44 = vsel %vm5671_vm8, %v5639_v49, %v5703_v28  ;;  %v5603_v50 = vadd.f32 %v5571_v15, %v5407_v35  ;;  %v5698_v16 = vmul.f32 0.2, %v5634_v51  ;;  %vm5666_vm11 = vcmp.gt.f32.partialorder %v5634_v51, 0.0 }
 0x6fa   : > { %v17581_v4 = vpop.permute.xlu1 %5474  ;;  %5814 = vperm.xlu0 %13260, %v17579_v44   ;;  %v5638_v0 = vadd.f32 %v17467_v59, %v5599_v56 }
 0x6fb   : > { %13263 = vset.pattern.permute.xlu1 %v19831_v52  ;;  %v5642_v8 = vadd.f32 %v17467_v59, %v5603_v50  ;;  %v5730_v9 = vsel %vm5666_vm11, %v5634_v51, %v5698_v16 }
 0x6fc   : > { %5779 = vperm.xlu1 %13263, %v5728_v53   ;;  %v17589_v2 = vpop.permute.xlu0 %5341  ;;  %v5702_v51 = vmul.f32 0.2, %v5638_v0  ;;  %vm5670_vm0 = vcmp.gt.f32.partialorder %v5638_v0, 0.0 }
 0x6fd   : > { %v5706_v18 = vmul.f32 0.2, %v5642_v8  ;;  %vm5674_vm12 = vcmp.gt.f32.partialorder %v5642_v8, 0.0 }
 0x6fe   : > { %v5479_v5 = vpop.permute.xlu1 %5478 }
 0x6ff   : > { %v5570_v31 = vmul.f32 %v17460_v24, %v5479_v5  ;;  %v5738_v22 = vsel %vm5674_vm12, %v5642_v8, %v5706_v18  ;;  %v5569_v8 = vmul.f32 %v17460_v24, %v17581_v4 }
 0x700   : > { %13264 = vset.pattern.permute.xlu1 %v19833_v48 }
 0x701   : > { %v5602_v36 = vadd.f32 %v5570_v31, %v5406_v12  ;;  %6099 = vperm.xlu1 %13264, %v5728_v53   ;;  %v17598_v11 = vpop.permute.xlu0 %5514 }
 0x703   : > { %v5641_v33 = vadd.f32 %v17467_v59, %v5602_v36  ;;  %v17602_v39 = vpop.permute.xlu1 %5306 }
 0x704   : > { %v5408_v41 = vmul.f32 %v17455_v10, %v17602_v39 }
 0x705   : > { %6103 = vperm.xlu1 %13264, %v17523_v46   ;;  %vm5673_vm10 = vcmp.gt.f32.partialorder %v5641_v33, 0.0  ;;  %v5705_v60 = vmul.f32 0.2, %v5641_v33  ;;  %v5401_v46 = vmul.f32 %v17455_v10, %v17533_v1 }
 0x706   : > { %v17605_v47 = vpop.permute.xlu0 %5351 }
 0x707   : > { %v17609_v29 = vsel %vm5673_vm10, %v5641_v33, %v5705_v60  ;;  %v5597_v45 = vadd.f32 %v5565_v25, %v5401_v46  ;;  %v5405_v60 = vmul.f32 %v17455_v10, %v17572_v6  ;;  %v5734_v25 = vsel %vm5670_vm0, %v5638_v0, %v5702_v51 }
 0x708   : > { %v17611_v42 = vpop.permute.xlu1 %5486  ;;  %5824 = vperm.xlu0 %13260, %v17609_v29   ;;  %v5415_v46 = vmul.f32 %v17455_v10, %v17589_v2 }
 0x709   : > { %13265 = vset.pattern.permute.xlu1 %v19831_v52  ;;  %v5636_v37 = vadd.f32 %v17467_v59, %v5597_v45  ;;  %v5601_v18 = vadd.f32 %v5569_v8, %v5405_v60  ;;  %v5572_v55 = vmul.f32 %v17460_v24, %v17611_v42 }
 0x70a   : > { %5789 = vperm.xlu1 %13265, %v5730_v9  }
 0x70b   : > { %v17617_v7 = vpop.permute.xlu0 %5522  ;;  %v5700_v30 = vmul.f32 0.2, %v5636_v37  ;;  %vm5668_vm13 = vcmp.gt.f32.partialorder %v5636_v37, 0.0  ;;  %v5640_v6 = vadd.f32 %v17467_v59, %v5601_v18 }
 0x70c   : > { %5829 = vperm.xlu0 %13260, %v5738_v22  }
 0x70d   : > { %v17619_v17 = vpop.permute.xlu1 %5311  ;;  %v5732_v21 = vsel %vm5668_vm13, %v5636_v37, %v5700_v30  ;;  %v5704_v30 = vmul.f32 0.2, %v5640_v6  ;;  %vm5672_vm1 = vcmp.gt.f32.partialorder %v5640_v6, 0.0 }
 0x70e   : > { %13266 = vset.pattern.permute.xlu1 %v19833_v48 }
 0x70f   : > { %6107 = vperm.xlu1 %13266, %v5730_v9  }
 0x710   : > { %13273 = vset.pattern.permute.xlu0 %v19833_v48  ;;  %v17624_v32 = vpop.permute.xlu0 %5361 }
 0x711   : > { %6139 = vperm.xlu0 %13273, %v5738_v22  }
 0x712   : > { %v17626_v1 = vpop.permute.xlu1 %5490 }
 0x713   : > { %6111 = vperm.xlu1 %13266, %v17540_v14   ;;  %v5607_v14 = vadd.f32 %v5575_v38, %v5411_v61  ;;  %v5573_v56 = vmul.f32 %v17460_v24, %v17626_v1 }
 0x715   : > { %v17635_v13 = vpop.permute.xlu0 %5530  ;;  %13278 = vset.pattern.permute.xlu0 %v19831_v52  ;;  %v5646_v57 = vadd.f32 %v17467_v59, %v5607_v14 }
 0x716   : > { %v5495_v49 = vpop.permute.xlu1 %5494 }
 0x717   : > { %v5574_v28 = vmul.f32 %v17460_v24, %v5495_v49  ;;  %13267 = vset.pattern.permute.xlu1 %v19831_v52  ;;  %v5710_v5 = vmul.f32 0.2, %v5646_v57  ;;  %vm5678_vm15 = vcmp.gt.f32.partialorder %v5646_v57, 0.0  ;;  %v5736_v49 = vsel %vm5672_vm1, %v5640_v6, %v5704_v30  ;;  %v17719_v6 = vld [vmem:[#allocation16] sm:$0xff] }
 0x718   : > { %5799 = vperm.xlu1 %13267, %v5732_v21  }
 0x719   : > { %v5606_v62 = vadd.f32 %v5574_v28, %v5410_v19  ;;  %v5742_v33 = vsel %vm5678_vm15, %v5646_v57, %v5710_v5  ;;  %v5419_v57 = vmul.f32 %v17455_v10, %v17624_v32  ;;  %v13718_v5 = vld [vmem:[#allocation19 + $0x304] ss:$24 sps:$4 sm:$0xff]  }
 0x71a   : > { %v5372_v34 = vpop.permute.xlu0 %5371  ;;  %8477 = vmatprep.subr.bf16.mxu0 %v13718_v5 }
 0x71b   : > { %v5645_v15 = vadd.f32 %v17467_v59, %v5606_v62  ;;  %v17646_v53 = vpop.permute.xlu1 %5326  ;;  %v5421_v12 = vmul.f32 %v17455_v10, %v5372_v34  ;;  %v5583_v62 = vmul.f32 %v17460_v24, %v17635_v13  ;;  %v5409_v34 = vmul.f32 %v17455_v10, %v17619_v17 }
 0x71c   : > { %13268 = vset.pattern.permute.xlu1 %v19833_v48 }
 0x71d   : > { %6115 = vperm.xlu1 %13268, %v5732_v21   ;;  %vm5677_vm14 = vcmp.gt.f32.partialorder %v5645_v15, 0.0  ;;  %v5709_v54 = vmul.f32 0.2, %v5645_v15 }
 0x71f   : > { %v5539_v58 = vpop.permute.xlu0 %5538  ;;  %v17650_v35 = vsel %vm5677_vm14, %v5645_v15, %v5709_v54  ;;  %v5605_v54 = vadd.f32 %v5573_v56, %v5409_v34 }
 0x720   : > { %v5585_v50 = vmul.f32 %v17460_v24, %v5539_v58  ;;  %v17654_v31 = vpop.permute.xlu1 %5502  ;;  %5844 = vperm.xlu0 %13278, %v17650_v35   ;;  %v5615_v58 = vadd.f32 %v5583_v62, %v5419_v57 }
 0x721   : > { %6119 = vperm.xlu1 %13268, %v17562_v26   ;;  %v5579_v26 = vmul.f32 %v17460_v24, %v17598_v11 }
 0x722   : > { %v17658_v36 = vadd.f32 %v5585_v50, %v5421_v12  ;;  %v5654_v32 = vadd.f32 %v17467_v59, %v5615_v58  ;;  %v6213_v58 = vrot.slane %v17719_v6, %v20068_v23 }
 0x723   : > { %v5611_v9 = vadd.f32 %v5579_v26, %v5415_v46  ;;  %v5576_v46 = vmul.f32 %v17460_v24, %v17654_v31 }
 0x724   : > { %5849 = vperm.xlu0 %13278, %v5742_v33   ;;  %v5718_v18 = vmul.f32 0.2, %v5654_v32  ;;  %vm5686_vm7 = vcmp.gt.f32.partialorder %v5654_v32, 0.0 }
 0x725   : > { %v5337_v16 = vpop.permute.xlu1 %5336  ;;  %13269 = vset.pattern.permute.xlu1 %v19831_v52  ;;  %v5650_v11 = vadd.f32 %v17467_v59, %v5611_v9  ;;  %v19830_v9 = vsub.s32 4, %v20064_v3 }
 0x726   : > { %5809 = vperm.xlu1 %13269, %v5734_v25   ;;  %v5414_v45 = vmul.f32 %v17455_v10, %v5337_v16 }
 0x727   : > { %v5714_v14 = vmul.f32 0.2, %v5650_v11  ;;  %vm5682_vm3 = vcmp.gt.f32.partialorder %v5650_v11, 0.0 }
 0x728   : > { %13279 = vset.pattern.permute.xlu0 %v19833_v48 }
 0x729   : > { %6155 = vperm.xlu0 %13279, %v5742_v33   ;;  %v5746_v21 = vsel %vm5682_vm3, %v5650_v11, %v5714_v14 }
 0x72a   : > { %v5511_v4 = vpop.permute.xlu1 %5510  ;;  %13270 = vset.pattern.permute.xlu1 %v19833_v48 }
 0x72b   : > { %v5578_v22 = vmul.f32 %v17460_v24, %v5511_v4  ;;  %6123 = vperm.xlu1 %13270, %v5734_v25   ;;  %v5412_v4 = vmul.f32 %v17455_v10, %v17646_v53  ;;  %v5581_v53 = vmul.f32 %v17460_v24, %v17617_v7  ;;  %v5417_v7 = vmul.f32 %v17455_v10, %v17605_v47 }
 0x72d   : > { %v5610_v37 = vadd.f32 %v5578_v22, %v5414_v45  ;;  %13284 = vset.pattern.permute.xlu0 %v19831_v52  ;;  %v5750_v22 = vsel %vm5686_vm7, %v5654_v32, %v5718_v18  ;;  %v5608_v31 = vadd.f32 %v5576_v46, %v5412_v4  ;;  %v5656_v32 = vadd.f32 %v17467_v59, %v17658_v36 }
 0x72e   : > { %v17787_v4 = vrot.slane %v6213_v58, %v20068_v23 }
 0x72f   : > { %v5649_v38 = vadd.f32 %v17467_v59, %v5610_v37  ;;  %v17677_v2 = vpop.permute.xlu1 %5346  ;;  %6127 = vperm.xlu1 %13270, %v17579_v44   ;;  %v5604_v44 = vadd.f32 %v5572_v55, %v5408_v41  ;;  %v5932_v37 = vsub.s32 6, %v20064_v3  ;;  %v5925_v41 = vrot.slane %v17719_v6, %v16548_v40 }
 0x730   : > { %vm5688_vm14 = vcmp.gt.f32.partialorder %v5656_v32, 0.0 }
 0x731   : > { %vm5681_vm2 = vcmp.gt.f32.partialorder %v5649_v38, 0.0  ;;  %v5713_v61 = vmul.f32 0.2, %v5649_v38  ;;  %v5643_v42 = vadd.f32 %v17467_v59, %v5604_v44  ;;  %v5933_v44 = vrot.slane %v17719_v6, %v5932_v37 }
 0x733   : > { %13271 = vset.pattern.permute.xlu1 %v19831_v52  ;;  %v17685_v19 = vsel %vm5681_vm2, %v5649_v38, %v5713_v61  ;;  %v5707_v15 = vmul.f32 0.2, %v5643_v42  ;;  %vm5675_vm4 = vcmp.gt.f32.partialorder %v5643_v42, 0.0  ;;  %v5577_v38 = vmul.f32 %v17460_v24, %v17575_v20 }
 0x734   : > { %v17687_v28 = vpop.permute.xlu1 %5518  ;;  %5819 = vperm.xlu1 %13271, %v5736_v49   ;;  %5864 = vperm.xlu0 %13284, %v17685_v19   ;;  %v5921_v61 = vrot.slane %v17719_v6, %v20069_v43  ;;  %v5929_v20 = vrot.slane %v17719_v6, %v19830_v9 }
 0x735   : > { %v5739_v17 = vsel %vm5675_vm4, %v5643_v42, %v5707_v15  ;;  %v5580_v55 = vmul.f32 %v17460_v24, %v17687_v28  ;;  %v5416_v28 = vmul.f32 %v17455_v10, %v17677_v2  ;;  %v17753_v2 = vrot.slane %v5925_v41, %v20069_v43 }
 0x736   : > { %v17750_v47 = vrot.slane %v5921_v61, %v20069_v43 }
 0x737   : > { %v5612_v56 = vadd.f32 %v5580_v55, %v5416_v28 }
 0x738   : > { %13272 = vset.pattern.permute.xlu1 %v19833_v48  ;;  %5869 = vperm.xlu0 %13284, %v5746_v21  }
 0x739   : > { %v5357_v39 = vpop.permute.xlu1 %5356  ;;  %6131 = vperm.xlu1 %13272, %v5736_v49   ;;  %v5547_v12 = vpop.permute.xlu0 %5546  ;;  %v5413_v49 = vmul.f32 %v17455_v10, %v17568_v63  ;;  %v5647_v63 = vadd.f32 %v17467_v59, %v5608_v31  ;;  %v5720_v31 = vmul.f32 0.2, %v5656_v32 }
 0x73a   : > { %v5418_v1 = vmul.f32 %v17455_v10, %v5357_v39  ;;  %v5587_v42 = vmul.f32 %v17460_v24, %v5547_v12  ;;  %v5613_v39 = vadd.f32 %v5581_v53, %v5417_v7 }
 0x73b   : > { %vm5679_vm8 = vcmp.gt.f32.partialorder %v5647_v63, 0.0 }
 0x73c   : > { %13285 = vset.pattern.permute.xlu0 %v19833_v48 }
 0x73d   : > { %6135 = vperm.xlu1 %13272, %v17609_v29   ;;  %6171 = vperm.xlu0 %13285, %v5746_v21   ;;  %v5644_v29 = vadd.f32 %v17467_v59, %v5605_v54  ;;  %v5609_v21 = vadd.f32 %v5577_v38, %v5413_v49  ;;  %v17759_v54 = vrot.slane %v5929_v20, %v20069_v43 }
 0x73e   : > { %v5527_v0 = vpop.permute.xlu1 %5526  ;;  %v17709_v60 = vpop.permute.xlu0 %5764 }
 0x73f   : > { %v5582_v13 = vmul.f32 %v17460_v24, %v5527_v0  ;;  %v5708_v25 = vmul.f32 0.2, %v5644_v29  ;;  %vm5676_vm6 = vcmp.gt.f32.partialorder %v5644_v29, 0.0  ;;  %v5648_v5 = vadd.f32 %v17467_v59, %v5609_v21 }
 0x741   : > { %v5614_v50 = vadd.f32 %v5582_v13, %v5418_v1  ;;  %13274 = vset.pattern.permute.xlu1 %v19831_v52  ;;  %13290 = vset.pattern.permute.xlu0 %v19831_v52  ;;  %v5740_v45 = vsel %vm5676_vm6, %v5644_v29, %v5708_v25  ;;  %v19829_v1 = vsub.s32 5, %v20064_v3  ;;  %v6224_v13 = vsub.s32 7, %v20064_v3 }
 0x742   : > { %5834 = vperm.xlu1 %13274, %v5739_v17   ;;  %v5382_v11 = vpop.permute.xlu0 %5381  ;;  %v5652_v29 = vadd.f32 %v17467_v59, %v5613_v39  ;;  %vm5680_vm10 = vcmp.gt.f32.partialorder %v5648_v5, 0.0 }
 0x743   : > { %v5653_v51 = vadd.f32 %v17467_v59, %v5614_v50  ;;  %v5367_v8 = vpop.permute.xlu1 %5366  ;;  %v5423_v14 = vmul.f32 %v17455_v10, %v5382_v11  ;;  %v6221_v36 = vrot.slane %v17719_v6, %v19829_v1  ;;  %v6225_v46 = vrot.slane %v17719_v6, %v6224_v13 }
 0x744   : > { %v5420_v12 = vmul.f32 %v17455_v10, %v5367_v8  ;;  %v5712_v11 = vmul.f32 0.2, %v5648_v5  ;;  %vm5684_vm11 = vcmp.gt.f32.partialorder %v5652_v29, 0.0  ;;  %v5716_v38 = vmul.f32 0.2, %v5652_v29 }
 0x745   : > { %vm5685_vm5 = vcmp.gt.f32.partialorder %v5653_v51, 0.0  ;;  %v5717_v33 = vmul.f32 0.2, %v5653_v51  ;;  %v5619_v34 = vadd.f32 %v5587_v42, %v5423_v14  ;;  %v17798_v20 = vrot.slane %v6221_v36, %v20068_v23 }
 0x746   : > { %13275 = vset.pattern.permute.xlu1 %v19833_v48  ;;  %v17801_v14 = vrot.slane %v6225_v46, %v20068_v23  ;;  %v5744_v28 = vsel %vm5680_vm10, %v5648_v5, %v5712_v11  ;;  %v17815_v21 = vsel %vm5684_vm11, %v5652_v29, %v5716_v38  ;;  %v5958_v29 = vmul.f32 %v17750_v47, %v17709_v60 }
 0x747   : > { %6143 = vperm.xlu1 %13275, %v5739_v17   ;;  %v17712_v16 = vsel %vm5685_vm5, %v5653_v51, %v5717_v33  ;;  %v5711_v17 = vmul.f32 0.2, %v5647_v63  ;;  %v17773_v51 = vrot.slane %v5933_v44, %v20069_v43  ;;  %v5651_v33 = vadd.f32 %v17467_v59, %v5612_v56 }
 0x748   : > { %v5535_v26 = vpop.permute.xlu1 %5534  ;;  %5884 = vperm.xlu0 %13290, %v17712_v16   ;;  %v5658_v25 = vadd.f32 %v17467_v59, %v5619_v34 }
 0x749   : > { %v5584_v57 = vmul.f32 %v17460_v24, %v5535_v26  ;;  %v6217_v26 = vrot.slane %v17719_v6, %v16551_v27  ;;  %v5715_v61 = vmul.f32 0.2, %v5651_v33  ;;  %vm5683_vm13 = vcmp.gt.f32.partialorder %v5651_v33, 0.0  ;;  %v5775_v49 = vpop.permute.xlu0 %5774 }
 0x74a   : > { %v5722_v6 = vmul.f32 0.2, %v5658_v25  ;;  %vm5690_vm12 = vcmp.gt.f32.partialorder %v5658_v25, 0.0  ;;  %v5961_v36 = vmul.f32 %v17773_v51, %v17709_v60  ;;  %v17842_v46 = vmul.f32 %v17750_v47, %v5775_v49 }
 0x74b   : > { %13276 = vset.pattern.permute.xlu1 %v19831_v52  ;;  %v5616_v8 = vadd.f32 %v5584_v57, %v5420_v12  ;;  %v17795_v41 = vrot.slane %v6217_v26, %v20068_v23  ;;  %v17820_v39 = vsel %vm5683_vm13, %v5651_v33, %v5715_v61  ;;  %v5960_v33 = vmul.f32 %v17759_v54, %v17709_v60 }
 0x74c   : > { %5839 = vperm.xlu1 %13276, %v5740_v45   ;;  %5889 = vperm.xlu0 %13290, %v5750_v22   ;;  %v5754_v42 = vsel %vm5690_vm12, %v5658_v25, %v5722_v6  ;;  %v17852_v11 = vmul.f32 %v17773_v51, %v5775_v49 }
 0x74d   : > { %v5377_v30 = vpop.permute.xlu1 %5376 }
 0x74e   : > { %v5422_v15 = vmul.f32 %v17455_v10, %v5377_v30  ;;  %v5655_v30 = vadd.f32 %v17467_v59, %v5616_v8 }
 0x750   : > { %13277 = vset.pattern.permute.xlu1 %v19833_v48  ;;  %13291 = vset.pattern.permute.xlu0 %v19833_v48  ;;  %v5719_v56 = vmul.f32 0.2, %v5655_v30  ;;  %vm5687_vm15 = vcmp.gt.f32.partialorder %v5655_v30, 0.0 }
 0x751   : > { %6147 = vperm.xlu1 %13277, %v5740_v45   ;;  %6187 = vperm.xlu0 %13291, %v5750_v22   ;;  %v6502_v45 = vld [vmem:[#allocation17] sm:$0xf]  ;;  %v5743_v22 = vsel %vm5679_vm8, %v5647_v63, %v5711_v17 }
 0x752   : > { %v5543_v62 = vpop.permute.xlu1 %5542  ;;  %v17807_v7 = vrot.slane %v6502_v45, %v16548_v40  ;;  %v17812_v44 = vrot.slane %v6502_v45, %v20068_v23  ;;  %v17818_v63 = vrot.slane %v6502_v45, %v16551_v27 }
 0x753   : > { %v5586_v0 = vmul.f32 %v17460_v24, %v5543_v62  ;;  %v17822_v62 = vsel %vm5688_vm14, %v5656_v32, %v5720_v31  ;;  %v5959_v32 = vmul.f32 %v17753_v2, %v17709_v60  ;;  %v17856_v60 = vsel %vm5687_vm15, %v5655_v30, %v5719_v56 }
 0x754   : > { %20071 = vst [vmem:[#allocation38_spill] sm:$0xff] %v17807_v7 }
 0x755   : > { %v5618_v50 = vadd.f32 %v5586_v0, %v5422_v15  ;;  %6151 = vperm.xlu1 %13277, %v17650_v35   ;;  %13296 = vset.pattern.permute.xlu0 %v19831_v52 }
 0x757   : > { %v5657_v18 = vadd.f32 %v17467_v59, %v5618_v50  ;;  %v17778_v35 = vpop.permute.xlu1 %5386  ;;  %v17804_v59 = vrot.slane %v6502_v45, %v20069_v43  ;;  %v5785_v13 = vpop.permute.xlu0 %5784  ;;  %v17845_v45 = vmul.f32 %v17753_v2, %v5775_v49 }
 0x758   : > { %v17873_v30 = vmul.f32 %v17773_v51, %v5785_v13 }
 0x759   : > { %13280 = vset.pattern.permute.xlu1 %v19831_v52  ;;  %vm5689_vm9 = vcmp.gt.f32.partialorder %v5657_v18, 0.0  ;;  %v5721_v37 = vmul.f32 0.2, %v5657_v18 }
 0x75a   : > { %5854 = vperm.xlu1 %13280, %v5743_v22  }
 0x75b   : > { %v5760_v53 = vpop.permute.xlu1 %5759  ;;  %v17791_v55 = vsel %vm5689_vm9, %v5657_v18, %v5721_v37  ;;  %v17849_v37 = vmul.f32 %v17759_v54, %v5775_v49  ;;  %v17867_v49 = vmul.f32 %v17753_v2, %v5785_v13 }
 0x75c   : > { %5904 = vperm.xlu0 %13296, %v17791_v55   ;;  %v5954_v34 = vmul.f32 %v17750_v47, %v5760_v53  ;;  %v5955_v57 = vmul.f32 %v17753_v2, %v5760_v53  ;;  %v5956_v15 = vmul.f32 %v17759_v54, %v5760_v53  ;;  %v5957_v0 = vmul.f32 %v17773_v51, %v5760_v53 }
 0x75d   : > { %v5424_v53 = vmul.f32 %v17455_v10, %v17778_v35 }
 0x75e   : > { %13281 = vset.pattern.permute.xlu1 %v19833_v48 }
 0x75f   : > { %6159 = vperm.xlu1 %13281, %v5743_v22  }
 0x760   : > { %v6084_v58 = vpop.permute.xlu1 %6083  ;;  %5909 = vperm.xlu0 %13296, %v5754_v42  }
 0x761   : > { %v6246_v5 = vmul.f32 %v17787_v4, %v6084_v58  ;;  %v6247_v12 = vmul.f32 %v17795_v41, %v6084_v58  ;;  %v6248_v50 = vmul.f32 %v17798_v20, %v6084_v58  ;;  %v6249_v17 = vmul.f32 %v17801_v14, %v6084_v58  ;;  %v5795_v38 = vpop.permute.xlu0 %5794 }
 0x762   : > { %v17876_v10 = vmul.f32 %v17750_v47, %v5795_v38  ;;  %v17879_v35 = vmul.f32 %v17753_v2, %v5795_v38 }
 0x763   : > { %v6374_v25 = vadd.f32 %v6246_v5, %v5954_v34  ;;  %v6375_v8 = vadd.f32 %v6247_v12, %v5955_v57  ;;  %v6376_v18 = vadd.f32 %v6248_v50, %v5956_v15  ;;  %v6377_v26 = vadd.f32 %v6249_v17, %v5957_v0  ;;  %13282 = vset.pattern.permute.xlu1 %v19831_v52 }
 0x764   : > { %v5551_v22 = vpop.permute.xlu1 %5550  ;;  %5859 = vperm.xlu1 %13282, %v5744_v28   ;;  %13298 = vset.pattern.permute.xlu0 %v19833_v48  ;;  %v17864_v57 = vmul.f32 %v17750_v47, %v5785_v13 }
 0x765   : > { %v5588_v31 = vmul.f32 %v17460_v24, %v5551_v22  ;;  %6203 = vperm.xlu0 %13298, %v5754_v42   ;;  %v6524_v6 = vadd.f32 %v17804_v59, %v6374_v25  ;;  %v6526_v61 = vadd.f32 %v17807_v7, %v6376_v18  ;;  %v6525_v34 = vadd.f32 %v17812_v44, %v6375_v8 }
 0x766   : > { %v17870_v24 = vmul.f32 %v17759_v54, %v5785_v13  ;;  %v6527_v15 = vadd.f32 %v17818_v63, %v6377_v26  ;;  %v14677_v26 = vld [vmem:[#allocation14] ss:$0 sm:$0xff] }
 0x767   : > { %v5620_v42 = vadd.f32 %v5588_v31, %v5424_v53  ;;  %vm6652_vm0 = vcmp.gt.f32.partialorder %v6524_v6, 0.0  ;;  %vm6654_vm1 = vcmp.gt.f32.partialorder %v6526_v61, 0.0  ;;  %vm6653_vm2 = vcmp.gt.f32.partialorder %v6525_v34, 0.0 }
 0x768   : > { %v6088_v56 = vpop.permute.xlu1 %6087  ;;  %13283 = vset.pattern.permute.xlu1 %v19833_v48  ;;  %v6781_v12 = vmul.f32 0.2, %v6525_v34  ;;  %v6780_v18 = vmul.f32 0.2, %v6524_v6  ;;  %v6782_v22 = vmul.f32 0.2, %v6526_v61 }
 0x769   : > { %v6250_v0 = vmul.f32 %v17787_v4, %v6088_v56  ;;  %v6251_v58 = vmul.f32 %v17795_v41, %v6088_v56  ;;  %v6252_v5 = vmul.f32 %v17798_v20, %v6088_v56  ;;  %v6253_v13 = vmul.f32 %v17801_v14, %v6088_v56  ;;  %6163 = vperm.xlu1 %13283, %v5744_v28  }
 0x76a   : > { %v17887_v31 = vadd.f32 %v14677_v26, %v5620_v42  ;;  %v6783_v53 = vmul.f32 0.2, %v6527_v15  ;;  %vm6655_vm3 = vcmp.gt.f32.partialorder %v6527_v15, 0.0 }
 0x76b   : > { %v6378_v50 = vadd.f32 %v6250_v0, %v5958_v29  ;;  %v6379_v17 = vadd.f32 %v6251_v58, %v5959_v32  ;;  %v6380_v25 = vadd.f32 %v6252_v5, %v5960_v33  ;;  %v6381_v8 = vadd.f32 %v6253_v13, %v5961_v36 }
 0x76c   : > { %v17894_v29 = vmul.f32 %v17759_v54, %v5795_v38  ;;  %v17897_v32 = vmul.f32 %v17773_v51, %v5795_v38  ;;  %v6909_v33 = vsel %vm6653_vm2, %v6525_v34, %v6781_v12  ;;  %v6908_v58 = vsel %vm6652_vm0, %v6524_v6, %v6780_v18 }
 0x76d   : > { %v6528_v1 = vadd.f32 %v17804_v59, %v6378_v50  ;;  %v6530_v9 = vadd.f32 %v17807_v7, %v6380_v25  ;;  %v5770_v56 = vpop.permute.xlu1 %5769  ;;  %6167 = vperm.xlu1 %13283, %v17685_v19   ;;  %v6529_v28 = vadd.f32 %v17812_v44, %v6379_v17  ;;  %v6531_v36 = vadd.f32 %v17818_v63, %v6381_v8 }
 0x76e   : > { %v17903_v19 = vmul.f32 0.2, %v17887_v31  ;;  %v6911_v5 = vsel %vm6655_vm3, %v6527_v15, %v6783_v53  ;;  %v6910_v13 = vsel %vm6654_vm1, %v6526_v61, %v6782_v22  ;;  %v5963_v50 = vmul.f32 %v17753_v2, %v5770_v56 }
 0x76f   : > { %vm6656_vm4 = vcmp.gt.f32.partialorder %v6528_v1, 0.0  ;;  %vm6658_vm5 = vcmp.gt.f32.partialorder %v6530_v9, 0.0  ;;  %v6784_v42 = vmul.f32 0.2, %v6528_v1  ;;  %v6786_v0 = vmul.f32 0.2, %v6530_v9  ;;  %v5805_v25 = vpop.permute.xlu0 %5804 }
 0x770   : > { %v5964_v38 = vmul.f32 %v17759_v54, %v5770_v56  ;;  %vm6657_vm6 = vcmp.gt.f32.partialorder %v6529_v28, 0.0  ;;  %v6785_v34 = vmul.f32 0.2, %v6529_v28  ;;  %v5965_v12 = vmul.f32 %v17773_v51, %v5770_v56 }
 0x771   : > { %13286 = vset.pattern.permute.xlu1 %v19831_v52  ;;  %v6912_v6 = vsel %vm6656_vm4, %v6528_v1, %v6784_v42  ;;  %vm6659_vm7 = vcmp.gt.f32.partialorder %v6531_v36, 0.0  ;;  %v6914_v15 = vsel %vm6658_vm5, %v6530_v9, %v6786_v0  ;;  %v5962_v26 = vmul.f32 %v17750_v47, %v5770_v56  ;;  %v13716_v56 = vld [vmem:[#allocation19 + $0x300] ss:$24 sps:$4 sm:$0xff]  }
 0x772   : > { %v6092_v17 = vpop.permute.xlu1 %6091  ;;  %5874 = vperm.xlu1 %13286, %v17820_v39   ;;  %v6913_v53 = vsel %vm6657_vm6, %v6529_v28, %v6785_v34  ;;  %v6787_v52 = vmul.f32 0.2, %v6531_v36  ;;  %v17918_v48 = vpack.c.bf16 %v6914_v15, %v6910_v13  ;;  %v17922_v9 = vpack.c.bf16 %v6912_v6, %v6908_v58  ;;  %v13721_v34 = vld [vmem:[#allocation19 + $0x334] ss:$24 sps:$4 sm:$0xff]  }
 0x773   : > { %v6254_v61 = vmul.f32 %v17787_v4, %v6092_v17  ;;  %v6255_v8 = vmul.f32 %v17795_v41, %v6092_v17  ;;  %v6256_v18 = vmul.f32 %v17798_v20, %v6092_v17  ;;  %v6257_v22 = vmul.f32 %v17801_v14, %v6092_v17 }
 0x774   : > { %20072 = vst [vmem:[#allocation39_spill] sm:$0xff] %v17918_v48  ;;  %20073 = vst [vmem:[#allocation40_spill] sm:$0xff] %v17922_v9  ;;  %v17925_v0 = vmul.f32 %v17750_v47, %v5805_v25  ;;  %v17927_v23 = vpack.c.bf16 %v6913_v53, %v6909_v33  ;;  %v20075_v17 = vmov 1   ;;  %v6915_v28 = vsel %vm6659_vm7, %v6531_v36, %v6787_v52 }
 0x775   : > { %v6383_v3 = vadd.f32 %v6255_v8, %v5963_v50  ;;  %v17920_v1 = vadd.f32 %v6256_v18, %v5964_v38  ;;  %v6385_v42 = vadd.f32 %v6257_v22, %v5965_v12  ;;  %v6382_v27 = vadd.f32 %v6254_v61, %v5962_v26  ;;  %v13719_v8 = vld [vmem:[#allocation19 + $0x330] ss:$24 sps:$4 sm:$0xff]   ;;  %v13742_v18 = vld [vmem:[#allocation19 + $0x30c] ss:$24 sps:$4 sm:$0xff]  }
 0x776   : > { %20074 = vst [vmem:[#allocation41_spill] sm:$0xff] %v17927_v23  ;;  %v6096_v40 = vpop.permute.xlu1 %6095  ;;  %13287 = vset.pattern.permute.xlu1 %v20075_v17  ;;  %v17937_v33 = vmul.f32 %v17753_v2, %v5805_v25  ;;  %8316 = vmatprep.mubr.bf16.mxu0 %v17927_v23  ;;  %vm5691_vm8 = vcmp.gt.f32.partialorder %v17887_v31, 0.0  ;;  %v17943_v36 = vpack.c.bf16 %v6915_v28, %v6911_v5  ;;  %v20077_v22 = vmov 0  }
 0x777   : > { %v6258_v13 = vmul.f32 %v17787_v4, %v6096_v40  ;;  %v6259_v50 = vmul.f32 %v17795_v41, %v6096_v40  ;;  %v6260_v38 = vmul.f32 %v17798_v20, %v6096_v40  ;;  %v6261_v58 = vmul.f32 %v17801_v14, %v6096_v40  ;;  %6175 = vperm.xlu1 %13287, %v17820_v39  }
 0x778   : > { %8702 = vmatprep.mubr.bf16.mxu1 %v17927_v23  ;;  %v6533_v52 = vadd.f32 %v17812_v44, %v6383_v3  ;;  %20076 = vst [vmem:[#allocation42_spill] sm:$0xff] %v17943_v36  ;;  %8317 = vmatmul.mubr.bf16.vlgmr.msra.gmra.mrb[128].mxu0 %v17922_v9  ;;  %v17955_v15 = vmul.f32 %v17759_v54, %v5805_v25  ;;  %v13722_v23 = vld [vmem:[#allocation19 + $0x360] ss:$24 sps:$4 sm:$0xff]  }
 0x779   : > { %8703 = vmatmul.mubr.bf16.vlgmr.msra.gmra.mrb[192].mxu1 %v17922_v9  ;;  %v6386_v40 = vadd.f32 %v6258_v13, %v17842_v46  ;;  %v6387_v39 = vadd.f32 %v6259_v50, %v17845_v45  ;;  %v17950_v12 = vadd.f32 %v6260_v38, %v17849_v37  ;;  %v17952_v6 = vpop.permute.xlu0 %5814  ;;  %v17958_v3 = vmul.f32 %v17773_v51, %v5805_v25  ;;  %v13740_v46 = vld [vmem:[#allocation19 + $0x308] ss:$24 sps:$4 sm:$0xff]   ;;  %v13748_v50 = vld [vmem:[#allocation19 + $0x33c] ss:$24 sps:$4 sm:$0xff]  }
 0x77a   : > { %v6389_v5 = vadd.f32 %v6261_v58, %v17852_v11  ;;  %v6532_v61 = vadd.f32 %v17804_v59, %v6382_v27  ;;  %8478 = vmatpush1.bf16.msra.mxu0 %v13716_v56  ;;  %vm6661_vm9 = vcmp.gt.f32.partialorder %v6533_v52, 0.0  ;;  %v6789_v26 = vmul.f32 0.2, %v6533_v52  ;;  %v13724_v11 = vld [vmem:[#allocation19 + $0x364] ss:$24 sps:$4 sm:$0xff]   ;;  %8863 = vmatprep.subr.bf16.mxu1 %v13742_v18 }
 0x77b   : > { %v5780_v45 = vpop.permute.xlu1 %5779  ;;  %13288 = vset.pattern.permute.xlu1 %v20077_v22  ;;  %v6537_v37 = vadd.f32 %v17812_v44, %v6387_v39  ;;  %v17968_v25 = vsel %vm5691_vm8, %v17887_v31, %v17903_v19  ;;  %8479 = vmatprep.subr.bf16.mxu0 %v13721_v34  ;;  %v17972_v27 = vmul.f32 %v17750_v47, %v17952_v6 }
 0x77c   : > { %v17976_v53 = vmul.f32 %v17753_v2, %v17952_v6  ;;  %v5970_v56 = vmul.f32 %v17750_v47, %v5780_v45  ;;  %v5971_v28 = vmul.f32 %v17753_v2, %v5780_v45  ;;  %5879 = vperm.xlu1 %13288, %v17815_v21   ;;  %v5972_v13 = vmul.f32 %v17759_v54, %v5780_v45 }
 0x77d   : > { %20078 = vst [vmem:[#allocation43_spill] sm:$0xff] %v17972_v27  ;;  %vm6665_vm10 = vcmp.gt.f32.partialorder %v6537_v37, 0.0  ;;  %v6793_v31 = vmul.f32 0.2, %v6537_v37  ;;  %v6536_v19 = vadd.f32 %v17804_v59, %v6386_v40  ;;  %v6917_v38 = vsel %vm6661_vm9, %v6533_v52, %v6789_v26  ;;  %8864 = vmatpush1.bf16.msra.mxu1 %v13740_v46  ;;  %v13746_v46 = vld [vmem:[#allocation19 + $0x338] ss:$24 sps:$4 sm:$0xff]  }
 0x77e   : > { %20079 = vst [vmem:[#allocation44_spill] sm:$0xff] %v17976_v53  ;;  %v6788_v58 = vmul.f32 0.2, %v6532_v61  ;;  %8480 = vmatpush1.bf16.msra.mxu0 %v13719_v8  ;;  %v6535_v34 = vadd.f32 %v17818_v63, %v6385_v42  ;;  %v6539_v39 = vadd.f32 %v17818_v63, %v6389_v5  ;;  %vm6660_vm11 = vcmp.gt.f32.partialorder %v6532_v61, 0.0  ;;  %8865 = vmatprep.subr.bf16.mxu1 %v13748_v50  ;;  %v13727_v8 = vld [vmem:[#allocation19 + $0x394] ss:$24 sps:$4 sm:$0xff]  }
 0x77f   : > { %v6921_v43 = vsel %vm6665_vm10, %v6537_v37, %v6793_v31  ;;  %vm6664_vm12 = vcmp.gt.f32.partialorder %v6536_v19, 0.0  ;;  %v6792_v9 = vmul.f32 0.2, %v6536_v19  ;;  %8481 = vmatprep.subr.bf16.mxu0 %v13724_v11  ;;  %v5973_v40 = vmul.f32 %v17773_v51, %v5780_v45  ;;  %v13730_v27 = vld [vmem:[#allocation19 + $0x3c4] ss:$24 sps:$4 sm:$0xff]  }
 0x780   : > { %v6100_v18 = vpop.permute.xlu1 %6099  ;;  %13289 = vset.pattern.permute.xlu1 %v20075_v17  ;;  %v17988_v52 = vpack.c.bf16 %v6921_v43, %v6917_v38  ;;  %vm6663_vm13 = vcmp.gt.f32.partialorder %v6535_v34, 0.0  ;;  %vm6667_vm14 = vcmp.gt.f32.partialorder %v6539_v39, 0.0  ;;  %v6916_v43 = vsel %vm6660_vm11, %v6532_v61, %v6788_v58 }
 0x781   : > { %v6262_v42 = vmul.f32 %v17787_v4, %v6100_v18  ;;  %v6263_v5 = vmul.f32 %v17795_v41, %v6100_v18  ;;  %v6264_v37 = vmul.f32 %v17798_v20, %v6100_v18  ;;  %v6265_v26 = vmul.f32 %v17801_v14, %v6100_v18  ;;  %6179 = vperm.xlu1 %13289, %v17815_v21   ;;  %v13725_v18 = vld [vmem:[#allocation19 + $0x390] ss:$24 sps:$4 sm:$0xff]  }
 0x782   : > { %20080 = vst [vmem:[#allocation45_spill] sm:$0xff] %v17988_v52  ;;  %8326 = vmatprep.mubr.bf16.mxu0 %v17988_v52  ;;  %8712 = vmatprep.mubr.bf16.mxu1 %v17988_v52  ;;  %v6920_v45 = vsel %vm6664_vm12, %v6536_v19, %v6792_v9  ;;  %v6791_v11 = vmul.f32 0.2, %v6535_v34  ;;  %v6795_v31 = vmul.f32 0.2, %v6539_v39  ;;  %v18014_v58 = vmul.f32 %v17759_v54, %v17952_v6 }
 0x783   : > { %v6390_v50 = vadd.f32 %v6262_v42, %v5970_v56  ;;  %v6391_v38 = vadd.f32 %v6263_v5, %v5971_v28  ;;  %v17999_v48 = vadd.f32 %v6264_v37, %v5972_v13  ;;  %v18001_v36 = vadd.f32 %v6265_v26, %v5973_v40  ;;  %8482 = vmatpush1.bf16.msra.mxu0 %v13722_v23  ;;  %v13754_v23 = vld [vmem:[#allocation19 + $0x36c] ss:$24 sps:$4 sm:$0xff]   ;;  %v13728_v5 = vld [vmem:[#allocation19 + $0x3c0] ss:$24 sps:$4 sm:$0xff]  }
 0x784   : > { %v18003_v53 = vpack.c.bf16 %v6920_v45, %v6916_v43  ;;  %v6104_v21 = vpop.permute.xlu1 %6103  ;;  %8483 = vmatprep.subr.bf16.mxu0 %v13727_v8  ;;  %8866 = vmatpush1.bf16.msra.mxu1 %v13746_v46  ;;  %v6919_v61 = vsel %vm6663_vm13, %v6535_v34, %v6791_v11  ;;  %v6923_v9 = vsel %vm6667_vm14, %v6539_v39, %v6795_v31  ;;  %v13752_v37 = vld [vmem:[#allocation19 + $0x368] ss:$24 sps:$4 sm:$0xff]  }
 0x785   : > { %v6266_v19 = vmul.f32 %v17787_v4, %v6104_v21  ;;  %v6267_v56 = vmul.f32 %v17795_v41, %v6104_v21  ;;  %v6268_v28 = vmul.f32 %v17798_v20, %v6104_v21  ;;  %v6269_v13 = vmul.f32 %v17801_v14, %v6104_v21  ;;  %6183 = vperm.xlu1 %13289, %v17712_v16  }
 0x786   : > { %20081 = vst [vmem:[#allocation46_spill] sm:$0xff] %v18003_v53  ;;  %8327 = vmatmul.mubr.bf16.gmra.mrb[132].mxu0 %v18003_v53  ;;  %8713 = vmatmul.mubr.bf16.gmra.mrb[196].mxu1 %v18003_v53  ;;  %v6541_v34 = vadd.f32 %v17812_v44, %v6391_v38  ;;  %v18019_v39 = vpack.c.bf16 %v6923_v9, %v6919_v61 }
 0x787   : > { %v6394_v40 = vadd.f32 %v6266_v19, %v17864_v57  ;;  %v6395_v8 = vadd.f32 %v6267_v56, %v17867_v49  ;;  %v18024_v46 = vadd.f32 %v6268_v28, %v17870_v24  ;;  %v18027_v16 = vadd.f32 %v6269_v13, %v17873_v30  ;;  %v5825_v42 = vpop.permute.xlu0 %5824  ;;  %8484 = vmatpush1.bf16.msra.mxu0 %v13725_v18  ;;  %v13733_v57 = vld [vmem:[#allocation19 + $0x3f4] ss:$24 sps:$4 sm:$0xff]   ;;  %v13731_v28 = vld [vmem:[#allocation19 + $0x3f0] ss:$24 sps:$4 sm:$0xff]  }
 0x788   : > { %20082 = vst [vmem:[#allocation47_spill] sm:$0xff] %v18019_v39  ;;  %v18031_v26 = vmul.f32 %v17773_v51, %v17952_v6  ;;  %v6540_v43 = vadd.f32 %v17804_v59, %v6390_v50  ;;  %8485 = vmatprep.subr.bf16.mxu0 %v13730_v27  ;;  %v18036_v49 = vadd.f32 %v17807_v7, %v17920_v1  ;;  %vm6669_vm15 = vcmp.gt.f32.partialorder %v6541_v34, 0.0  ;;  %v13757_v27 = vld [vmem:[#allocation19 + $0x39c] ss:$24 sps:$4 sm:$0xff]  }
 0x789   : > { %20083 = vst [vmem:[#allocation48_spill] sm:$0xff] %v18024_v46  ;;  %v18040_v24 = vadd.f32 %v17807_v7, %v17950_v12  ;;  %v5790_v30 = vpop.permute.xlu1 %5789  ;;  %13292 = vset.pattern.permute.xlu1 %v20077_v22  ;;  %v6545_v45 = vadd.f32 %v17812_v44, %v6395_v8  ;;  %v6797_v6 = vmul.f32 0.2, %v6541_v34  ;;  %v6544_v11 = vadd.f32 %v17804_v59, %v6394_v40 }
 0x78a   : > { %8867 = vmatprep.subr.bf16.mxu1 %v13754_v23  ;;  %v18046_v31 = vmul.f32 %v17750_v47, %v5825_v42  ;;  %v18049_v1 = vmul.f32 %v17753_v2, %v5825_v42  ;;  %v18052_v12 = vmul.f32 %v17759_v54, %v5825_v42  ;;  %v18055_v50 = vmul.f32 %v17773_v51, %v5825_v42 }
 0x78b   : > { %5894 = vperm.xlu1 %13292, %v17856_v60   ;;  %v5978_v38 = vmul.f32 %v17750_v47, %v5790_v30  ;;  %v5979_v18 = vmul.f32 %v17753_v2, %v5790_v30  ;;  %v5830_v21 = vpop.permute.xlu0 %5829  ;;  %vm6673_vm0 = vcmp.gt.f32.partialorder %v6545_v45, 0.0  ;;  %v6801_v61 = vmul.f32 0.2, %v6545_v45  ;;  %8486 = vmatpush1.bf16.msra.mxu0 %v13728_v5 }
 0x78c   : > { %8868 = vmatpush1.bf16.msra.mxu1 %v13752_v37  ;;  %v5980_v9 = vmul.f32 %v17759_v54, %v5790_v30  ;;  %v5981_v19 = vmul.f32 %v17773_v51, %v5790_v30  ;;  %v6925_v56 = vsel %vm6669_vm15, %v6541_v34, %v6797_v6  ;;  %vm6668_vm1 = vcmp.gt.f32.partialorder %v6540_v43, 0.0  ;;  %8487 = vmatprep.subr.bf16.mxu0 %v13733_v57  ;;  %v13736_v34 = vld [vmem:[#allocation19 + $0x424] ss:$24 sps:$4 sm:$0xff]  }
 0x78d   : > { %v6929_v13 = vsel %vm6673_vm0, %v6545_v45, %v6801_v61  ;;  %vm6672_vm2 = vcmp.gt.f32.partialorder %v6544_v11, 0.0  ;;  %v6796_v23 = vmul.f32 0.2, %v6540_v43  ;;  %v6800_v40 = vmul.f32 0.2, %v6544_v11  ;;  %8869 = vmatprep.subr.bf16.mxu1 %v13757_v27 }
 0x78e   : > { %v6010_v8 = vmul.f32 %v17750_v47, %v5830_v21  ;;  %v6011_v42 = vmul.f32 %v17753_v2, %v5830_v21  ;;  %v6012_v5 = vmul.f32 %v17759_v54, %v5830_v21  ;;  %v6108_v37 = vpop.permute.xlu1 %6107  ;;  %v18067_v30 = vpack.c.bf16 %v6929_v13, %v6925_v56 }
 0x78f   : > { %13293 = vset.pattern.permute.xlu1 %v20075_v17  ;;  %v6270_v6 = vmul.f32 %v17787_v4, %v6108_v37  ;;  %v6271_v57 = vmul.f32 %v17795_v41, %v6108_v37  ;;  %v6272_v45 = vmul.f32 %v17798_v20, %v6108_v37  ;;  %v6273_v27 = vmul.f32 %v17801_v14, %v6108_v37 }
 0x790   : > { %20084 = vst [vmem:[#allocation72_spill] sm:$0xff] %v18067_v30  ;;  %6191 = vperm.xlu1 %13293, %v17856_v60   ;;  %v6013_v61 = vmul.f32 %v17773_v51, %v5830_v21  ;;  %8336 = vmatprep.mubr.bf16.mxu0 %v18067_v30  ;;  %v6140_v53 = vpop.permute.xlu0 %6139  ;;  %v6924_v56 = vsel %vm6668_vm1, %v6540_v43, %v6796_v23  ;;  %v18080_v52 = vmul.f32 0.2, %v18036_v49  ;;  %vm6662_vm3 = vcmp.gt.f32.partialorder %v18036_v49, 0.0 }
 0x791   : > { %8722 = vmatprep.mubr.bf16.mxu1 %v18067_v30  ;;  %v6928_v13 = vsel %vm6672_vm2, %v6544_v11, %v6800_v40  ;;  %v6398_v39 = vadd.f32 %v6270_v6, %v5978_v38  ;;  %v6399_v46 = vadd.f32 %v6271_v57, %v5979_v18  ;;  %v18082_v7 = vadd.f32 %v6272_v45, %v5980_v9  ;;  %v13734_v11 = vld [vmem:[#allocation19 + $0x420] ss:$24 sps:$4 sm:$0xff]  }
 0x792   : > { %v18084_v37 = vadd.f32 %v6273_v27, %v5981_v19  ;;  %8488 = vmatpush1.bf16.msra.mxu0 %v13731_v28  ;;  %v6302_v60 = vmul.f32 %v17787_v4, %v6140_v53  ;;  %v6303_v21 = vmul.f32 %v17795_v41, %v6140_v53  ;;  %v6304_v30 = vmul.f32 %v17798_v20, %v6140_v53  ;;  %v6112_v23 = vpop.permute.xlu1 %6111  ;;  %v13739_v19 = vld [vmem:[#allocation19 + $0x454] ss:$24 sps:$4 sm:$0xff]  }
 0x793   : > { %20085 = vst [vmem:[#allocation73_spill] sm:$0xff] %v18082_v7  ;;  %v6305_v43 = vmul.f32 %v17801_v14, %v6140_v53  ;;  %8489 = vmatprep.subr.bf16.mxu0 %v13736_v34  ;;  %v18090_v40 = vpack.c.bf16 %v6928_v13, %v6924_v56  ;;  %v6274_v38 = vmul.f32 %v17787_v4, %v6112_v23  ;;  %v13755_v56 = vld [vmem:[#allocation19 + $0x398] ss:$24 sps:$4 sm:$0xff]   ;;  %vm6666_vm4 = vcmp.gt.f32.partialorder %v18040_v24, 0.0  ;;  %v13763_v13 = vld [vmem:[#allocation19 + $0x3cc] ss:$24 sps:$4 sm:$0xff]  }
 0x794   : > { %v6275_v18 = vmul.f32 %v17795_v41, %v6112_v23  ;;  %v6276_v9 = vmul.f32 %v17798_v20, %v6112_v23  ;;  %13294 = vset.pattern.permute.xlu1 %v20077_v22  ;;  %v6430_v28 = vadd.f32 %v6302_v60, %v6010_v8  ;;  %v6431_v6 = vadd.f32 %v6303_v21, %v6011_v42 }
 0x795   : > { %20086 = vst [vmem:[#allocation74_spill] sm:$0xff] %v18090_v40  ;;  %v18097_v57 = vadd.f32 %v6304_v30, %v6012_v5  ;;  %v18099_v53 = vadd.f32 %v6305_v43, %v6013_v61  ;;  %5899 = vperm.xlu1 %13294, %v17822_v62   ;;  %8337 = vmatmul.mubr.bf16.gmra.mrb[136].mxu0 %v18090_v40  ;;  %v18109_v8 = vmul.f32 0.2, %v18040_v24  ;;  %v13737_v61 = vld [vmem:[#allocation19 + $0x450] ss:$24 sps:$4 sm:$0xff]  }
 0x796   : > { %8723 = vmatmul.mubr.bf16.gmra.mrb[200].mxu1 %v18090_v40  ;;  %v6277_v34 = vmul.f32 %v17801_v14, %v6112_v23  ;;  %v6402_v45 = vadd.f32 %v6274_v38, %v17876_v10  ;;  %v6403_v27 = vadd.f32 %v6275_v18, %v17879_v35  ;;  %v18112_v42 = vadd.f32 %v6276_v9, %v17894_v29 }
 0x797   : > { %20087 = vst [vmem:[#allocation49_spill] sm:$0xff] %v18097_v57  ;;  %20088 = vst [vmem:[#allocation50_spill] sm:$0xff] %v18099_v53  ;;  %v6549_v5 = vadd.f32 %v17812_v44, %v6399_v46  ;;  %v6548_v30 = vadd.f32 %v17804_v59, %v6398_v39  ;;  %8490 = vmatpush1.bf16.msra.mxu0 %v13734_v11  ;;  %v18118_v10 = vadd.f32 %v17818_v63, %v18001_v36  ;;  %v5800_v60 = vpop.permute.xlu1 %5799  ;;  %v13745_v46 = vld [vmem:[#allocation19 + $0x484] ss:$24 sps:$4 sm:$0xff]  }
 0x798   : > { %20089 = vst [vmem:[#allocation75_spill] sm:$0xff] %v18112_v42  ;;  %v18121_v35 = vadd.f32 %v6277_v34, %v17897_v32  ;;  %v6553_v21 = vadd.f32 %v17812_v44, %v6403_v27  ;;  %v6552_v29 = vadd.f32 %v17804_v59, %v6402_v45  ;;  %v6581_v43 = vadd.f32 %v17812_v44, %v6431_v6  ;;  %v13743_v45 = vld [vmem:[#allocation19 + $0x480] ss:$24 sps:$4 sm:$0xff]   ;;  %v13793_v42 = vld [vmem:[#allocation19 + $0x51c] ss:$24 sps:$4 sm:$0xff]  }
 0x799   : > { %8491 = vmatprep.subr.bf16.mxu0 %v13739_v19  ;;  %v5986_v39 = vmul.f32 %v17750_v47, %v5800_v60  ;;  %v5987_v23 = vmul.f32 %v17753_v2, %v5800_v60  ;;  %v5988_v11 = vmul.f32 %v17759_v54, %v5800_v60  ;;  %13295 = vset.pattern.permute.xlu1 %v20075_v17  ;;  %vm6677_vm5 = vcmp.gt.f32.partialorder %v6549_v5, 0.0 }
 0x79a   : > { %20090 = vst [vmem:[#allocation76_spill] sm:$0xff] %v18121_v35  ;;  %v18131_v32 = vadd.f32 %v17804_v59, %v6430_v28  ;;  %6195 = vperm.xlu1 %13295, %v17822_v62   ;;  %vm6681_vm6 = vcmp.gt.f32.partialorder %v6553_v21, 0.0  ;;  %v6805_v36 = vmul.f32 0.2, %v6549_v5  ;;  %v6809_v38 = vmul.f32 0.2, %v6553_v21  ;;  %8870 = vmatpush1.bf16.msra.mxu1 %v13755_v56 }
 0x79b   : > { %vm6676_vm7 = vcmp.gt.f32.partialorder %v6548_v30, 0.0  ;;  %vm6680_vm8 = vcmp.gt.f32.partialorder %v6552_v29, 0.0  ;;  %v6804_v18 = vmul.f32 0.2, %v6548_v30  ;;  %v6808_v9 = vmul.f32 0.2, %v6552_v29  ;;  %8492 = vmatpush1.bf16.msra.mxu0 %v13737_v61  ;;  %8871 = vmatprep.subr.bf16.mxu1 %v13763_v13 }
 0x79c   : > { %v6933_v19 = vsel %vm6677_vm5, %v6549_v5, %v6805_v36  ;;  %v6937_v6 = vsel %vm6681_vm6, %v6553_v21, %v6809_v38  ;;  %vm6709_vm9 = vcmp.gt.f32.partialorder %v6581_v43, 0.0  ;;  %v6837_v34 = vmul.f32 0.2, %v6581_v43  ;;  %8493 = vmatprep.subr.bf16.mxu0 %v13745_v46  ;;  %v6116_v62 = vpop.permute.xlu1 %6115 }
 0x79d   : > { %v5989_v28 = vmul.f32 %v17773_v51, %v5800_v60  ;;  %v18135_v27 = vpack.c.bf16 %v6937_v6, %v6933_v19  ;;  %v6932_v40 = vsel %vm6676_vm7, %v6548_v30, %v6804_v18  ;;  %v6936_v57 = vsel %vm6680_vm8, %v6552_v29, %v6808_v9  ;;  %v13760_v19 = vld [vmem:[#allocation19 + $0x4e4] ss:$24 sps:$4 sm:$0xff]  }
 0x79e   : > { %v6278_v56 = vmul.f32 %v17787_v4, %v6116_v62  ;;  %v6279_v53 = vmul.f32 %v17795_v41, %v6116_v62  ;;  %v6280_v61 = vmul.f32 %v17798_v20, %v6116_v62  ;;  %v6281_v5 = vmul.f32 %v17801_v14, %v6116_v62  ;;  %6199 = vperm.xlu1 %13295, %v17791_v55   ;;  %v13766_v6 = vld [vmem:[#allocation19 + $0x3fc] ss:$24 sps:$4 sm:$0xff]  }
 0x79f   : > { %20091 = vst [vmem:[#allocation77_spill] sm:$0xff] %v18135_v27  ;;  %8346 = vmatprep.mubr.bf16.mxu0 %v18135_v27  ;;  %8732 = vmatprep.mubr.bf16.mxu1 %v18135_v27  ;;  %v18144_v13 = vpack.c.bf16 %v6936_v57, %v6932_v40  ;;  %v18147_v60 = vsel %vm6709_vm9, %v6581_v43, %v6837_v34  ;;  %vm6708_vm10 = vcmp.gt.f32.partialorder %v18131_v32, 0.0  ;;  %v5845_v36 = vpop.permute.xlu0 %5844  ;;  %v13751_v40 = vld [vmem:[#allocation19 + $0x4b4] ss:$24 sps:$4 sm:$0xff]   ;;  %v13761_v57 = vld [vmem:[#allocation19 + $0x3c8] ss:$24 sps:$4 sm:$0xff]  }
 0x7a0   : > { %v18154_v30 = vsel %vm6662_vm3, %v18036_v49, %v18080_v52  ;;  %v6406_v21 = vadd.f32 %v6278_v56, %v5986_v39  ;;  %v6407_v29 = vadd.f32 %v6279_v53, %v5987_v23  ;;  %v18156_v55 = vadd.f32 %v6280_v61, %v5988_v11  ;;  %8494 = vmatpush1.bf16.msra.mxu0 %v13743_v45  ;;  %v6120_v49 = vpop.permute.xlu1 %6119  ;;  %v13749_v39 = vld [vmem:[#allocation19 + $0x4b0] ss:$24 sps:$4 sm:$0xff]  }
 0x7a1   : > { %20092 = vst [vmem:[#allocation78_spill] sm:$0xff] %v18144_v13  ;;  %v18158_v46 = vadd.f32 %v6281_v5, %v5989_v28  ;;  %8347 = vmatmul.mubr.bf16.gmra.mrb[140].mxu0 %v18144_v13  ;;  %8733 = vmatmul.mubr.bf16.gmra.mrb[204].mxu1 %v18144_v13  ;;  %v18163_v43 = vmul.f32 %v17750_v47, %v5845_v36  ;;  %v6836_v53 = vmul.f32 0.2, %v18131_v32  ;;  %v13764_v61 = vld [vmem:[#allocation19 + $0x3f8] ss:$24 sps:$4 sm:$0xff]   ;;  %vm6671_vm5 = vcmp.gt.f32.partialorder %v18118_v10, 0.0 }
 0x7a2   : > { %20093 = vst [vmem:[#allocation51_spill] sm:$0xff] %v18156_v55  ;;  %v18166_v52 = vmul.f32 %v17753_v2, %v5845_v36  ;;  %v6922_v23 = vsel %vm6666_vm4, %v18040_v24, %v18109_v8  ;;  %v18174_v11 = vmul.f32 %v17759_v54, %v5845_v36  ;;  %v6282_v38 = vmul.f32 %v17787_v4, %v6120_v49  ;;  %v13767_v13 = vld [vmem:[#allocation19 + $0x510] ss:$24 sps:$4 sm:$0xff]  }
 0x7a3   : > { %20094 = vst [vmem:[#allocation52_spill] sm:$0xff] %v18158_v46  ;;  %v6283_v18 = vmul.f32 %v17795_v41, %v6120_v49  ;;  %v6284_v9 = vmul.f32 %v17798_v20, %v6120_v49  ;;  %13297 = vset.pattern.permute.xlu1 %v20077_v22  ;;  %v18181_v34 = vmul.f32 %v17773_v51, %v5845_v36  ;;  %v5850_v22 = vpop.permute.xlu0 %5849 }
 0x7a4   : > { %v6285_v45 = vmul.f32 %v17801_v14, %v6120_v49  ;;  %5914 = vperm.xlu1 %13297, %v17968_v25   ;;  %v6557_v24 = vadd.f32 %v17812_v44, %v6407_v29  ;;  %v6556_v8 = vadd.f32 %v17804_v59, %v6406_v21  ;;  %v6410_v28 = vadd.f32 %v6282_v38, %v17925_v0  ;;  %v13769_v49 = vld [vmem:[#allocation19 + $0x514] ss:$24 sps:$4 sm:$0xff]  }
 0x7a5   : > { %v6411_v62 = vadd.f32 %v6283_v18, %v17937_v33  ;;  %v18190_v56 = vadd.f32 %v6284_v9, %v17955_v15  ;;  %8495 = vmatprep.subr.bf16.mxu0 %v13751_v40  ;;  %8872 = vmatpush1.bf16.msra.mxu1 %v13761_v57  ;;  %v6026_v36 = vmul.f32 %v17750_v47, %v5850_v22  ;;  %v13758_v33 = vld [vmem:[#allocation19 + $0x4e0] ss:$24 sps:$4 sm:$0xff]   ;;  %v13772_v15 = vld [vmem:[#allocation19 + $0x42c] ss:$24 sps:$4 sm:$0xff]   ;;  %v5810_v40 = vpop.permute.xlu1 %5809 }
 0x7a6   : > { %v18193_v5 = vadd.f32 %v6285_v45, %v17958_v3  ;;  %v6027_v29 = vmul.f32 %v17753_v2, %v5850_v22  ;;  %v18200_v0 = vsel %vm6708_vm10, %v18131_v32, %v6836_v53  ;;  %8496 = vmatpush1.bf16.msra.mxu0 %v13749_v39  ;;  %v6028_v21 = vmul.f32 %v17759_v54, %v5850_v22 }
 0x7a7   : > { %20095 = vst [vmem:[#allocation79_spill] sm:$0xff] %v18190_v56  ;;  %v6561_v57 = vadd.f32 %v17812_v44, %v6411_v62  ;;  %vm6685_vm11 = vcmp.gt.f32.partialorder %v6557_v24, 0.0  ;;  %v6813_v3 = vmul.f32 0.2, %v6557_v24  ;;  %8497 = vmatprep.subr.bf16.mxu0 %v13760_v19  ;;  %8873 = vmatprep.subr.bf16.mxu1 %v13766_v6  ;;  %v6029_v38 = vmul.f32 %v17773_v51, %v5850_v22  ;;  %v13770_v6 = vld [vmem:[#allocation19 + $0x428] ss:$24 sps:$4 sm:$0xff]  }
 0x7a8   : > { %20096 = vst [vmem:[#allocation80_spill] sm:$0xff] %v18193_v5  ;;  %v5994_v18 = vmul.f32 %v17750_v47, %v5810_v40  ;;  %v5995_v32 = vmul.f32 %v17753_v2, %v5810_v40  ;;  %v5996_v53 = vmul.f32 %v17759_v54, %v5810_v40  ;;  %13299 = vset.pattern.permute.xlu1 %v20075_v17  ;;  %v6156_v45 = vpop.permute.xlu0 %6155  ;;  %vm6684_vm13 = vcmp.gt.f32.partialorder %v6556_v8, 0.0 }
 0x7a9   : > { %v5997_v39 = vmul.f32 %v17773_v51, %v5810_v40  ;;  %6207 = vperm.xlu1 %13299, %v17968_v25   ;;  %vm6689_vm12 = vcmp.gt.f32.partialorder %v6561_v57, 0.0  ;;  %v6817_v9 = vmul.f32 0.2, %v6561_v57  ;;  %v6560_v19 = vadd.f32 %v17804_v59, %v6410_v28  ;;  %8874 = vmatpush1.bf16.msra.mxu1 %v13764_v61  ;;  %v13775_v61 = vld [vmem:[#allocation19 + $0x45c] ss:$24 sps:$4 sm:$0xff]  }
 0x7aa   : > { %v6941_v62 = vsel %vm6685_vm11, %v6557_v24, %v6813_v3  ;;  %v6812_v22 = vmul.f32 0.2, %v6556_v8  ;;  %8498 = vmatpush1.bf16.msra.mxu0 %v13758_v33  ;;  %8875 = vmatprep.subr.bf16.mxu1 %v13772_v15  ;;  %v18214_v17 = vpack.c.bf16 %v6922_v23, %v18154_v30  ;;  %v6318_v40 = vmul.f32 %v17787_v4, %v6156_v45  ;;  %v6124_v56 = vpop.permute.xlu1 %6123  ;;  %v13778_v3 = vld [vmem:[#allocation19 + $0x544] ss:$24 sps:$4 sm:$0xff]  }
 0x7ab   : > { %v6319_v25 = vmul.f32 %v17795_v41, %v6156_v45  ;;  %v6320_v27 = vmul.f32 %v17798_v20, %v6156_v45  ;;  %v6321_v28 = vmul.f32 %v17801_v14, %v6156_v45  ;;  %8499 = vmatprep.subr.bf16.mxu0 %v13769_v49  ;;  %v6945_v24 = vsel %vm6689_vm12, %v6561_v57, %v6817_v9  ;;  %v13773_v9 = vld [vmem:[#allocation19 + $0x458] ss:$24 sps:$4 sm:$0xff]  }
 0x7ac   : > { %20097 = vst [vmem:[#allocation81_spill] sm:$0xff] %v18214_v17  ;;  %vm6688_vm14 = vcmp.gt.f32.partialorder %v6560_v19, 0.0  ;;  %v6816_v33 = vmul.f32 0.2, %v6560_v19  ;;  %v6940_v15 = vsel %vm6684_vm13, %v6556_v8, %v6812_v22  ;;  %v6446_v30 = vadd.f32 %v6318_v40, %v6026_v36 }
 0x7ad   : > { %v6447_v23 = vadd.f32 %v6319_v25, %v6027_v29  ;;  %v18222_v17 = vadd.f32 %v6320_v27, %v6028_v21  ;;  %v18224_v55 = vadd.f32 %v6321_v28, %v6029_v38  ;;  %8876 = vmatpush1.bf16.msra.mxu1 %v13770_v6  ;;  %v6286_v5 = vmul.f32 %v17787_v4, %v6124_v56  ;;  %v13779_v25 = vld [vmem:[#allocation19 + $0x488] ss:$24 sps:$4 sm:$0xff]   ;;  %v20104_v28 = vld [vmem:[#allocation43_spill] sm:$0xff] }
 0x7ae   : > { %v6287_v49 = vmul.f32 %v17795_v41, %v6124_v56  ;;  %v6288_v45 = vmul.f32 %v17798_v20, %v6124_v56  ;;  %v6289_v57 = vmul.f32 %v17801_v14, %v6124_v56  ;;  %8500 = vmatpush1.bf16.msra.mxu0 %v13767_v13  ;;  %v18230_v46 = vpack.c.bf16 %v6945_v24, %v6941_v62  ;;  %v6128_v56 = vpop.permute.xlu1 %6127  ;;  %v13776_v13 = vld [vmem:[#allocation19 + $0x540] ss:$24 sps:$4 sm:$0xff]   ;;  %v13781_v62 = vld [vmem:[#allocation19 + $0x48c] ss:$24 sps:$4 sm:$0xff]  }
 0x7af   : > { %20098 = vst [vmem:[#allocation82_spill] sm:$0xff] %v18222_v17  ;;  %20099 = vst [vmem:[#allocation53_spill] sm:$0xff] %v18224_v55  ;;  %v6944_v8 = vsel %vm6688_vm14, %v6560_v19, %v6816_v33  ;;  %v18234_v27 = vadd.f32 %v17812_v44, %v6447_v23  ;;  %v18237_v36 = vadd.f32 %v17804_v59, %v6446_v30  ;;  %8877 = vmatprep.subr.bf16.mxu1 %v13775_v61  ;;  %v20105_v24 = vld [vmem:[#allocation44_spill] sm:$0xff] }
 0x7b0   : > { %20100 = vst [vmem:[#allocation54_spill] sm:$0xff] %v18230_v46  ;;  %v6414_v29 = vadd.f32 %v6286_v5, %v5994_v18  ;;  %v6415_v21 = vadd.f32 %v6287_v49, %v5995_v32  ;;  %v18239_v38 = vadd.f32 %v6288_v45, %v5996_v53  ;;  %v18241_v6 = vadd.f32 %v6289_v57, %v5997_v39  ;;  %v13787_v5 = vld [vmem:[#allocation19 + $0x574] ss:$24 sps:$4 sm:$0xff]   ;;  %v13785_v57 = vld [vmem:[#allocation19 + $0x570] ss:$24 sps:$4 sm:$0xff]  }
 0x7b1   : > { %8501 = vmatprep.subr.bf16.mxu0 %v13778_v3  ;;  %8356 = vmatprep.mubr.bf16.mxu0 %v18230_v46  ;;  %v18245_v19 = vpack.c.bf16 %v6944_v8, %v6940_v15  ;;  %v6290_v22 = vmul.f32 %v17787_v4, %v6128_v56  ;;  %v6291_v40 = vmul.f32 %v17795_v41, %v6128_v56  ;;  %v13784_v15 = vld [vmem:[#allocation19 + $0x4bc] ss:$24 sps:$4 sm:$0xff]   ;;  %v18262_v30 = vmul.f32 0.2, %v18118_v10 }
 0x7b2   : > { %20101 = vst [vmem:[#allocation83_spill] sm:$0xff] %v18239_v38  ;;  %20102 = vst [vmem:[#allocation84_spill] sm:$0xff] %v18241_v6  ;;  %8742 = vmatprep.mubr.bf16.mxu1 %v18230_v46  ;;  %v6292_v18 = vmul.f32 %v17798_v20, %v6128_v56  ;;  %v6293_v32 = vmul.f32 %v17801_v14, %v6128_v56  ;;  %v6565_v53 = vadd.f32 %v17812_v44, %v6415_v21 }
 0x7b3   : > { %20103 = vst [vmem:[#allocation85_spill] sm:$0xff] %v18245_v19  ;;  %v6564_v39 = vadd.f32 %v17804_v59, %v6414_v29  ;;  %8878 = vmatpush1.bf16.msra.mxu1 %v13773_v9  ;;  %8357 = vmatmul.mubr.bf16.gmra.mrb[144].mxu0 %v18245_v19  ;;  %v6418_v61 = vadd.f32 %v6290_v22, %v20104_v28  ;;  %vm6725_vm15 = vcmp.gt.f32.partialorder %v18234_v27, 0.0  ;;  %v6853_v45 = vmul.f32 0.2, %v18234_v27  ;;  %v5820_v9 = vpop.permute.xlu1 %5819  ;;  %v5865_v8 = vpop.permute.xlu0 %5864 }
 0x7b4   : > { %8743 = vmatmul.mubr.bf16.gmra.mrb[208].mxu1 %v18245_v19  ;;  %v6419_v33 = vadd.f32 %v6291_v40, %v20105_v24  ;;  %v18259_v3 = vadd.f32 %v17818_v63, %v18027_v16  ;;  %v18265_v23 = vadd.f32 %v6292_v18, %v18014_v58  ;;  %v18268_v49 = vadd.f32 %v6293_v32, %v18031_v26  ;;  %v13782_v58 = vld [vmem:[#allocation19 + $0x4b8] ss:$24 sps:$4 sm:$0xff]   ;;  %v13796_v26 = vld [vmem:[#allocation19 + $0x5a4] ss:$24 sps:$4 sm:$0xff]  }
 0x7b5   : > { %8879 = vmatprep.subr.bf16.mxu1 %v13781_v62  ;;  %8502 = vmatpush1.bf16.msra.mxu0 %v13776_v13  ;;  %vm6693_vm0 = vcmp.gt.f32.partialorder %v6565_v53, 0.0  ;;  %v6568_v29 = vadd.f32 %v17804_v59, %v6418_v61  ;;  %vm6724_vm1 = vcmp.gt.f32.partialorder %v18237_v36, 0.0  ;;  %v6002_v21 = vmul.f32 %v17750_v47, %v5820_v9  ;;  %v13790_v32 = vld [vmem:[#allocation19 + $0x4ec] ss:$24 sps:$4 sm:$0xff]   ;;  %v13794_v24 = vld [vmem:[#allocation19 + $0x5a0] ss:$24 sps:$4 sm:$0xff]  }
 0x7b6   : > { %20106 = vst [vmem:[#allocation86_spill] sm:$0xff] %v18265_v23  ;;  %20107 = vst [vmem:[#allocation55_spill] sm:$0xff] %v18268_v49  ;;  %v6569_v16 = vadd.f32 %v17812_v44, %v6419_v33  ;;  %8503 = vmatprep.subr.bf16.mxu0 %v13787_v5  ;;  %v6821_v56 = vmul.f32 0.2, %v6565_v53  ;;  %vm6692_vm2 = vcmp.gt.f32.partialorder %v6564_v39, 0.0  ;;  %v6003_v13 = vmul.f32 %v17753_v2, %v5820_v9 }
 0x7b7   : > { %v6820_v22 = vmul.f32 0.2, %v6564_v39  ;;  %8880 = vmatpush1.bf16.msra.mxu1 %v13779_v25  ;;  %v6004_v62 = vmul.f32 %v17759_v54, %v5820_v9  ;;  %v6005_v40 = vmul.f32 %v17773_v51, %v5820_v9  ;;  %v18280_v18 = vmul.f32 %v17750_v47, %v5865_v8  ;;  %v13805_v33 = vld [vmem:[#allocation19 + $0x5d4] ss:$24 sps:$4 sm:$0xff]   ;;  %v5870_v19 = vpop.permute.xlu0 %5869  ;;  %v13788_v23 = vld [vmem:[#allocation19 + $0x4e8] ss:$24 sps:$4 sm:$0xff]  }
 0x7b8   : > { %8881 = vmatprep.subr.bf16.mxu1 %v13784_v15  ;;  %v18283_v5 = vmul.f32 %v17753_v2, %v5865_v8  ;;  %v18286_v28 = vmul.f32 %v17759_v54, %v5865_v8  ;;  %v18289_v61 = vmul.f32 %v17773_v51, %v5865_v8  ;;  %v6825_v25 = vmul.f32 0.2, %v6569_v16  ;;  %v6132_v17 = vpop.permute.xlu1 %6131 }
 0x7b9   : > { %8504 = vmatpush1.bf16.msra.mxu0 %v13785_v57  ;;  %vm6697_vm3 = vcmp.gt.f32.partialorder %v6569_v16, 0.0  ;;  %vm6696_vm4 = vcmp.gt.f32.partialorder %v6568_v29, 0.0  ;;  %v6824_v9 = vmul.f32 0.2, %v6568_v29  ;;  %v6852_v15 = vmul.f32 0.2, %v18237_v36 }
 0x7ba   : > { %8505 = vmatprep.subr.bf16.mxu0 %v13796_v26  ;;  %v6042_v46 = vmul.f32 %v17750_v47, %v5870_v19  ;;  %v6949_v55 = vsel %vm6693_vm0, %v6565_v53, %v6821_v56  ;;  %v6948_v8 = vsel %vm6692_vm2, %v6564_v39, %v6820_v22  ;;  %v18299_v57 = vsel %vm6725_vm15, %v18234_v27, %v6853_v45 }
 0x7bb   : > { %8882 = vmatpush1.bf16.msra.mxu1 %v13782_v58  ;;  %v6294_v38 = vmul.f32 %v17787_v4, %v6132_v17  ;;  %v6295_v26 = vmul.f32 %v17795_v41, %v6132_v17  ;;  %v6296_v49 = vmul.f32 %v17798_v20, %v6132_v17  ;;  %v6297_v6 = vmul.f32 %v17801_v14, %v6132_v17 }
 0x7bc   : > { %8883 = vmatprep.subr.bf16.mxu1 %v13790_v32  ;;  %v6043_v53 = vmul.f32 %v17753_v2, %v5870_v19  ;;  %v6044_v39 = vmul.f32 %v17759_v54, %v5870_v19  ;;  %v6953_v56 = vsel %vm6697_vm3, %v6569_v16, %v6825_v25  ;;  %v6952_v27 = vsel %vm6696_vm4, %v6568_v29, %v6824_v9  ;;  %v6136_v29 = vpop.permute.xlu1 %6135  ;;  %v6172_v25 = vpop.permute.xlu0 %6171 }
 0x7bd   : > { %8506 = vmatpush1.bf16.msra.mxu0 %v13794_v24  ;;  %v6045_v45 = vmul.f32 %v17773_v51, %v5870_v19  ;;  %v18310_v58 = vadd.f32 %v6296_v49, %v6004_v62  ;;  %v18312_v22 = vadd.f32 %v6297_v6, %v6005_v40  ;;  %v18317_v17 = vsel %vm6724_vm1, %v18237_v36, %v6852_v15  ;;  %v13791_v19 = vld [vmem:[#allocation19 + $0x518] ss:$24 sps:$4 sm:$0xff]   ;;  %v13799_v40 = vld [vmem:[#allocation19 + $0x54c] ss:$24 sps:$4 sm:$0xff]  }
 0x7be   : > { %8507 = vmatprep.subr.bf16.mxu0 %v13805_v33  ;;  %v6422_v32 = vadd.f32 %v6294_v38, %v6002_v21  ;;  %v6423_v7 = vadd.f32 %v6295_v26, %v6003_v13  ;;  %v18319_v35 = vpack.c.bf16 %v6953_v56, %v6949_v55  ;;  %v18321_v16 = vpack.c.bf16 %v6952_v27, %v6948_v8  ;;  %v13803_v21 = vld [vmem:[#allocation19 + $0x5d0] ss:$24 sps:$4 sm:$0xff]   ;;  %v13814_v33 = vld [vmem:[#allocation19 + $0x14] ss:$24 sps:$4 sm:$0xff]  }
 0x7bf   : > { %20108 = vst [vmem:[#allocation56_spill] sm:$0xff] %v18310_v58  ;;  %8884 = vmatpush1.bf16.msra.mxu1 %v13788_v23  ;;  %v6298_v49 = vmul.f32 %v17787_v4, %v6136_v29  ;;  %v6299_v6 = vmul.f32 %v17795_v41, %v6136_v29  ;;  %v6300_v62 = vmul.f32 %v17798_v20, %v6136_v29  ;;  %vm6675_vm6 = vcmp.gt.f32.partialorder %v18259_v3, 0.0  ;;  %v13797_v27 = vld [vmem:[#allocation19 + $0x548] ss:$24 sps:$4 sm:$0xff]  }
 0x7c0   : > { %20109 = vst [vmem:[#allocation87_spill] sm:$0xff] %v18319_v35  ;;  %20110 = vst [vmem:[#allocation88_spill] sm:$0xff] %v18321_v16  ;;  %v6301_v36 = vmul.f32 %v17801_v14, %v6136_v29  ;;  %8885 = vmatprep.subr.bf16.mxu1 %v13793_v42  ;;  %8366 = vmatprep.mubr.bf16.mxu0 %v18319_v35  ;;  %v6334_v55 = vmul.f32 %v17787_v4, %v6172_v25  ;;  %v6803_v9 = vmul.f32 0.2, %v18259_v3 }
 0x7c1   : > { %8752 = vmatprep.mubr.bf16.mxu1 %v18319_v35  ;;  %v6335_v38 = vmul.f32 %v17795_v41, %v6172_v25  ;;  %v6336_v23 = vmul.f32 %v17798_v20, %v6172_v25  ;;  %8367 = vmatmul.mubr.bf16.gmra.mrb[148].mxu0 %v18321_v16  ;;  %v6426_v42 = vadd.f32 %v6298_v49, %v18046_v31  ;;  %v5835_v31 = vpop.permute.xlu1 %5834  ;;  %v13806_v35 = vld [vmem:[#allocation19 + $0x5a8] ss:$24 sps:$4 sm:$0xff]  }
 0x7c2   : > { %8753 = vmatmul.mubr.bf16.gmra.mrb[212].mxu1 %v18321_v16  ;;  %v6427_v13 = vadd.f32 %v6299_v6, %v18049_v1  ;;  %v18338_v24 = vadd.f32 %v6300_v62, %v18052_v12  ;;  %v18342_v15 = vadd.f32 %v6301_v36, %v18055_v50  ;;  %v6337_v8 = vmul.f32 %v17801_v14, %v6172_v25  ;;  %v13802_v6 = vld [vmem:[#allocation19 + $0x57c] ss:$24 sps:$4 sm:$0xff]   ;;  %v13800_v36 = vld [vmem:[#allocation19 + $0x578] ss:$24 sps:$4 sm:$0xff]  }
 0x7c3   : > { %v6462_v26 = vadd.f32 %v6334_v55, %v6042_v46  ;;  %v6463_v56 = vadd.f32 %v6335_v38, %v6043_v53  ;;  %8886 = vmatpush1.bf16.msra.mxu1 %v13791_v19  ;;  %v18345_v29 = vadd.f32 %v6336_v23, %v6044_v39  ;;  %v6573_v1 = vadd.f32 %v17812_v44, %v6423_v7 }
 0x7c4   : > { %20111 = vst [vmem:[#allocation89_spill] sm:$0xff] %v18338_v24  ;;  %20112 = vst [vmem:[#allocation90_spill] sm:$0xff] %v18342_v15  ;;  %v6577_v12 = vadd.f32 %v17812_v44, %v6427_v13  ;;  %v6572_v49 = vadd.f32 %v17804_v59, %v6422_v32  ;;  %8887 = vmatprep.subr.bf16.mxu1 %v13799_v40  ;;  %v18350_v62 = vadd.f32 %v6337_v8, %v6045_v45 }
 0x7c5   : > { %20113 = vst [vmem:[#allocation57_spill] sm:$0xff] %v18345_v29  ;;  %v6014_v50 = vmul.f32 %v17750_v47, %v5835_v31  ;;  %v6015_v46 = vmul.f32 %v17753_v2, %v5835_v31  ;;  %8508 = vmatpush1.bf16.msra.mxu0 %v13803_v21  ;;  %v18358_v53 = vsel %vm6671_vm5, %v18118_v10, %v18262_v30  ;;  %vm6701_vm7 = vcmp.gt.f32.partialorder %v6573_v1, 0.0  ;;  %v13808_v30 = vld [vmem:[#allocation19 + $0x5ac] ss:$24 sps:$4 sm:$0xff]  }
 0x7c6   : > { %20114 = vst [vmem:[#allocation58_spill] sm:$0xff] %v18350_v62  ;;  %v6016_v7 = vmul.f32 %v17759_v54, %v5835_v31  ;;  %vm6705_vm8 = vcmp.gt.f32.partialorder %v6577_v12, 0.0  ;;  %v6829_v39 = vmul.f32 0.2, %v6573_v1  ;;  %9056 = vmatprep.subr.bf16.mxu0 %v13814_v33  ;;  %v6017_v45 = vmul.f32 %v17773_v51, %v5835_v31  ;;  %v6144_v38 = vpop.permute.xlu1 %6143 }
 0x7c7   : > { %v6833_v32 = vmul.f32 0.2, %v6577_v12  ;;  %v6576_v25 = vadd.f32 %v17804_v59, %v6426_v42  ;;  %v6828_v19 = vmul.f32 0.2, %v6572_v49  ;;  %8888 = vmatpush1.bf16.msra.mxu1 %v13797_v27  ;;  %vm6700_vm9 = vcmp.gt.f32.partialorder %v6572_v49, 0.0 }
 0x7c8   : > { %v6957_v40 = vsel %vm6701_vm7, %v6573_v1, %v6829_v39  ;;  %v6613_v55 = vadd.f32 %v17812_v44, %v6463_v56  ;;  %v6612_v10 = vadd.f32 %v17804_v59, %v6462_v26  ;;  %8889 = vmatprep.subr.bf16.mxu1 %v13802_v6  ;;  %v6931_v42 = vsel %vm6675_vm6, %v18259_v3, %v6803_v9  ;;  %v5885_v26 = vpop.permute.xlu0 %5884 }
 0x7c9   : > { %v6961_v23 = vsel %vm6705_vm8, %v6577_v12, %v6833_v32  ;;  %vm6704_vm10 = vcmp.gt.f32.partialorder %v6576_v25, 0.0  ;;  %v6832_v21 = vmul.f32 0.2, %v6576_v25  ;;  %v6306_v13 = vmul.f32 %v17787_v4, %v6144_v38 }
 0x7ca   : > { %v6307_v33 = vmul.f32 %v17795_v41, %v6144_v38  ;;  %v6308_v8 = vmul.f32 %v17798_v20, %v6144_v38  ;;  %v6309_v56 = vmul.f32 %v17801_v14, %v6144_v38  ;;  %v18374_v27 = vmul.f32 %v17750_v47, %v5885_v26 }
 0x7cb   : > { %v18377_v31 = vmul.f32 %v17753_v2, %v5885_v26  ;;  %v18380_v1 = vmul.f32 %v17759_v54, %v5885_v26  ;;  %v6956_v3 = vsel %vm6700_vm9, %v6572_v49, %v6828_v19  ;;  %8890 = vmatpush1.bf16.msra.mxu1 %v13800_v36  ;;  %v6434_v9 = vadd.f32 %v6306_v13, %v6014_v50  ;;  %v5840_v49 = vpop.permute.xlu1 %5839 }
 0x7cc   : > { %v6435_v12 = vadd.f32 %v6307_v33, %v6015_v46  ;;  %v18383_v6 = vadd.f32 %v6308_v8, %v6016_v7  ;;  %v18385_v39 = vadd.f32 %v6309_v56, %v6017_v45  ;;  %8891 = vmatprep.subr.bf16.mxu1 %v13808_v30  ;;  %v18388_v32 = vmul.f32 %v17773_v51, %v5885_v26  ;;  %v5890_v19 = vpop.permute.xlu0 %5889  ;;  %v13811_v45 = vld [vmem:[#allocation19 + $0x5dc] ss:$24 sps:$4 sm:$0xff]   ;;  %v13809_v56 = vld [vmem:[#allocation19 + $0x5d8] ss:$24 sps:$4 sm:$0xff]  }
 0x7cd   : > { %v18390_v38 = vpack.c.bf16 %v6961_v23, %v6957_v40  ;;  %v6960_v16 = vsel %vm6704_vm10, %v6576_v25, %v6832_v21  ;;  %vm6741_vm11 = vcmp.gt.f32.partialorder %v6613_v55, 0.0  ;;  %v6584_v46 = vadd.f32 %v17804_v59, %v6434_v9 }
 0x7ce   : > { %20115 = vst [vmem:[#allocation33_spill] sm:$0xff] %v18383_v6  ;;  %20116 = vst [vmem:[#allocation91_spill] sm:$0xff] %v18385_v39  ;;  %v18393_v29 = vpack.c.bf16 %v6960_v16, %v6956_v3  ;;  %v6585_v50 = vadd.f32 %v17812_v44, %v6435_v12  ;;  %v6869_v7 = vmul.f32 0.2, %v6613_v55  ;;  %v6018_v36 = vmul.f32 %v17750_v47, %v5840_v49 }
 0x7cf   : > { %20117 = vst [vmem:[#allocation92_spill] sm:$0xff] %v18390_v38  ;;  %8376 = vmatprep.mubr.bf16.mxu0 %v18390_v38  ;;  %8762 = vmatprep.mubr.bf16.mxu1 %v18390_v38  ;;  %v6019_v25 = vmul.f32 %v17753_v2, %v5840_v49  ;;  %vm6740_vm12 = vcmp.gt.f32.partialorder %v6612_v10, 0.0  ;;  %v6868_v40 = vmul.f32 0.2, %v6612_v10  ;;  %v6020_v16 = vmul.f32 %v17759_v54, %v5840_v49 }
 0x7d0   : > { %20118 = vst [vmem:[#allocation94_spill] sm:$0xff] %v18393_v29  ;;  %8377 = vmatmul.mubr.bf16.gmra.mrb[152].mxu0 %v18393_v29  ;;  %8763 = vmatmul.mubr.bf16.gmra.mrb[216].mxu1 %v18393_v29  ;;  %v6021_v30 = vmul.f32 %v17773_v51, %v5840_v49  ;;  %v6058_v23 = vmul.f32 %v17750_v47, %v5890_v19  ;;  %vm6713_vm13 = vcmp.gt.f32.partialorder %v6585_v50, 0.0  ;;  %v6841_v8 = vmul.f32 0.2, %v6585_v50  ;;  %v6148_v12 = vpop.permute.xlu1 %6147  ;;  %v6188_v49 = vpop.permute.xlu0 %6187 }
 0x7d1   : > { %v6059_v21 = vmul.f32 %v17753_v2, %v5890_v19  ;;  %v6060_v13 = vmul.f32 %v17759_v54, %v5890_v19  ;;  %v6061_v33 = vmul.f32 %v17773_v51, %v5890_v19  ;;  %8892 = vmatpush1.bf16.msra.mxu1 %v13806_v35  ;;  %vm6712_vm14 = vcmp.gt.f32.partialorder %v6584_v46, 0.0  ;;  %v20120_v19 = vld [vmem:[#allocation38_spill] sm:$0xff]  ;;  %v20121_v35 = vld [vmem:[#allocation48_spill] sm:$0xff] }
 0x7d2   : > { %v6840_v26 = vmul.f32 0.2, %v6584_v46  ;;  %v18410_v3 = vsel %vm6741_vm11, %v6613_v55, %v6869_v7  ;;  %8893 = vmatprep.subr.bf16.mxu1 %v13811_v45  ;;  %v18413_v9 = vpack.c.bf16 %v6931_v42, %v18358_v53  ;;  %v6969_v29 = vsel %vm6713_vm13, %v6585_v50, %v6841_v8 }
 0x7d3   : > { %v18416_v38 = vsel %vm6740_vm12, %v6612_v10, %v6868_v40  ;;  %v18420_v62 = vadd.f32 %v20120_v19, %v17999_v48  ;;  %v18424_v6 = vadd.f32 %v20120_v19, %v20121_v35  ;;  %v6310_v55 = vmul.f32 %v17787_v4, %v6148_v12 }
 0x7d4   : > { %20119 = vst [vmem:[#allocation59_spill] sm:$0xff] %v18413_v9  ;;  %v6311_v7 = vmul.f32 %v17795_v41, %v6148_v12  ;;  %v6312_v53 = vmul.f32 %v17798_v20, %v6148_v12  ;;  %v6313_v42 = vmul.f32 %v17801_v14, %v6148_v12  ;;  %v6350_v50 = vmul.f32 %v17787_v4, %v6188_v49  ;;  %v6152_v15 = vpop.permute.xlu1 %6151 }
 0x7d5   : > { %v6352_v10 = vmul.f32 %v17798_v20, %v6188_v49  ;;  %v6353_v45 = vmul.f32 %v17801_v14, %v6188_v49  ;;  %8894 = vmatpush1.bf16.msra.mxu1 %v13809_v56  ;;  %v18435_v48 = vadd.f32 %v17818_v63, %v18084_v37  ;;  %v6438_v40 = vadd.f32 %v6310_v55, %v6018_v36 }
 0x7d6   : > { %v6439_v8 = vadd.f32 %v6311_v7, %v6019_v25  ;;  %v18437_v35 = vadd.f32 %v6312_v53, %v6020_v16  ;;  %v18439_v9 = vadd.f32 %v6313_v42, %v6021_v30  ;;  %v6351_v39 = vmul.f32 %v17795_v41, %v6188_v49 }
 0x7d7   : > { %v6478_v12 = vadd.f32 %v6350_v50, %v6058_v23  ;;  %v18442_v24 = vadd.f32 %v6352_v10, %v6060_v13  ;;  %v18444_v58 = vadd.f32 %v6353_v45, %v6061_v33  ;;  %v18447_v56 = vpack.c.bf16 %v6969_v29, %v18147_v60 }
 0x7d8   : > { %20122 = vst [vmem:[#allocation60_spill] sm:$0xff] %v18437_v35  ;;  %20123 = vst [vmem:[#allocation95_spill] sm:$0xff] %v18439_v9  ;;  %v6968_v37 = vsel %vm6712_vm14, %v6584_v46, %v6840_v26  ;;  %v6314_v36 = vmul.f32 %v17787_v4, %v6152_v15  ;;  %v6315_v25 = vmul.f32 %v17795_v41, %v6152_v15  ;;  %vm6670_vm7 = vcmp.gt.f32.partialorder %v18420_v62, 0.0 }
 0x7d9   : > { %20124 = vst [vmem:[#allocation96_spill] sm:$0xff] %v18442_v24  ;;  %20125 = vst [vmem:[#allocation97_spill] sm:$0xff] %v18444_v58  ;;  %v18453_v16 = vpack.c.bf16 %v6968_v37, %v18200_v0  ;;  %v6316_v30 = vmul.f32 %v17798_v20, %v6152_v15  ;;  %v6317_v23 = vmul.f32 %v17801_v14, %v6152_v15  ;;  %8386 = vmatprep.mubr.bf16.mxu0 %v18447_v56  ;;  %v5855_v49 = vpop.permute.xlu1 %5854 }
 0x7da   : > { %20126 = vst [vmem:[#allocation98_spill] sm:$0xff] %v18447_v56  ;;  %v6589_v13 = vadd.f32 %v17812_v44, %v6439_v8  ;;  %8772 = vmatprep.mubr.bf16.mxu1 %v18447_v56  ;;  %v6442_v60 = vadd.f32 %v6314_v36, %v18163_v43  ;;  %v6443_v29 = vadd.f32 %v6315_v25, %v18166_v52  ;;  %vm6674_vm9 = vcmp.gt.f32.partialorder %v18424_v6, 0.0 }
 0x7db   : > { %20127 = vst [vmem:[#allocation61_spill] sm:$0xff] %v18453_v16  ;;  %v6588_v46 = vadd.f32 %v17804_v59, %v6438_v40  ;;  %8387 = vmatmul.mubr.bf16.gmra.mrb[156].mxu0 %v18453_v16  ;;  %8773 = vmatmul.mubr.bf16.gmra.mrb[220].mxu1 %v18453_v16  ;;  %v18466_v0 = vadd.f32 %v6316_v30, %v18174_v11 }
 0x7dc   : > { %v18469_v15 = vadd.f32 %v6317_v23, %v18181_v34  ;;  %vm6717_vm15 = vcmp.gt.f32.partialorder %v6589_v13, 0.0  ;;  %v6845_v33 = vmul.f32 0.2, %v6589_v13  ;;  %v6479_v26 = vadd.f32 %v6351_v39, %v6059_v21  ;;  %v5905_v34 = vpop.permute.xlu0 %5904 }
 0x7dd   : > { %20128 = vst [vmem:[#allocation62_spill] sm:$0xff] %v18466_v0  ;;  %v6593_v43 = vadd.f32 %v17812_v44, %v6443_v29  ;;  %v6592_v52 = vadd.f32 %v17804_v59, %v6442_v60  ;;  %v6844_v55 = vmul.f32 0.2, %v6588_v46  ;;  %v6030_v7 = vmul.f32 %v17750_v47, %v5855_v49 }
 0x7de   : > { %20129 = vst [vmem:[#allocation63_spill] sm:$0xff] %v18469_v15  ;;  %v6031_v53 = vmul.f32 %v17753_v2, %v5855_v49  ;;  %v6032_v42 = vmul.f32 %v17759_v54, %v5855_v49  ;;  %vm6716_vm0 = vcmp.gt.f32.partialorder %v6588_v46, 0.0  ;;  %v6033_v11 = vmul.f32 %v17773_v51, %v5855_v49  ;;  %v6160_v25 = vpop.permute.xlu1 %6159 }
 0x7df   : > { %vm6721_vm1 = vcmp.gt.f32.partialorder %v6593_v43, 0.0  ;;  %v6849_v50 = vmul.f32 0.2, %v6593_v43  ;;  %v6973_v10 = vsel %vm6717_vm15, %v6589_v13, %v6845_v33  ;;  %v18478_v39 = vmul.f32 %v17750_v47, %v5905_v34 }
 0x7e0   : > { %v18481_v21 = vmul.f32 %v17753_v2, %v5905_v34  ;;  %v18484_v45 = vmul.f32 %v17759_v54, %v5905_v34  ;;  %vm6720_vm2 = vcmp.gt.f32.partialorder %v6592_v52, 0.0  ;;  %v18487_v40 = vmul.f32 %v17773_v51, %v5905_v34  ;;  %v5910_v34 = vpop.permute.xlu0 %5909 }
 0x7e1   : > { %v6977_v8 = vsel %vm6721_vm1, %v6593_v43, %v6849_v50  ;;  %v6848_v37 = vmul.f32 0.2, %v6592_v52  ;;  %v6972_v36 = vsel %vm6716_vm0, %v6588_v46, %v6844_v55  ;;  %v6629_v23 = vadd.f32 %v17812_v44, %v6479_v26 }
 0x7e2   : > { %20130 = vst [vmem:[#allocation64_spill] sm:$0xff] %v18487_v40  ;;  %v18489_v30 = vpack.c.bf16 %v6977_v8, %v6973_v10  ;;  %v6628_v13 = vadd.f32 %v17804_v59, %v6478_v12  ;;  %v18494_v60 = vmul.f32 0.2, %v18420_v62  ;;  %v6322_v29 = vmul.f32 %v17787_v4, %v6160_v25 }
 0x7e3   : > { %v6323_v33 = vmul.f32 %v17795_v41, %v6160_v25  ;;  %v6324_v49 = vmul.f32 %v17798_v20, %v6160_v25  ;;  %v6325_v43 = vmul.f32 %v17801_v14, %v6160_v25  ;;  %v6074_v46 = vmul.f32 %v17750_v47, %v5910_v34  ;;  %v5860_v58 = vpop.permute.xlu1 %5859 }
 0x7e4   : > { %20131 = vst [vmem:[#allocation65_spill] sm:$0xff] %v18489_v30  ;;  %v6075_v55 = vmul.f32 %v17753_v2, %v5910_v34  ;;  %v6076_v26 = vmul.f32 %v17759_v54, %v5910_v34  ;;  %v6077_v12 = vmul.f32 %v17773_v51, %v5910_v34  ;;  %8396 = vmatprep.mubr.bf16.mxu0 %v18489_v30  ;;  %vm6757_vm3 = vcmp.gt.f32.partialorder %v6629_v23, 0.0 }
 0x7e5   : > { %v6450_v50 = vadd.f32 %v6322_v29, %v6030_v7  ;;  %v6451_v10 = vadd.f32 %v6323_v33, %v6031_v53  ;;  %v18505_v8 = vadd.f32 %v6324_v49, %v6032_v42  ;;  %v18507_v16 = vadd.f32 %v6325_v43, %v6033_v11  ;;  %8782 = vmatprep.mubr.bf16.mxu1 %v18489_v30 }
 0x7e6   : > { %v6976_v25 = vsel %vm6720_vm2, %v6592_v52, %v6848_v37  ;;  %v6885_v56 = vmul.f32 0.2, %v6629_v23  ;;  %vm6756_vm4 = vcmp.gt.f32.partialorder %v6628_v13, 0.0  ;;  %v6884_v7 = vmul.f32 0.2, %v6628_v13  ;;  %v6204_v52 = vpop.permute.xlu0 %6203 }
 0x7e7   : > { %20132 = vst [vmem:[#allocation66_spill] sm:$0xff] %v18505_v8  ;;  %20133 = vst [vmem:[#allocation67_spill] sm:$0xff] %v18507_v16  ;;  %v18511_v24 = vpack.c.bf16 %v6976_v25, %v6972_v36  ;;  %v6601_v34 = vadd.f32 %v17812_v44, %v6451_v10  ;;  %v6600_v0 = vadd.f32 %v17804_v59, %v6450_v50  ;;  %vm6679_vm15 = vcmp.gt.f32.partialorder %v18435_v48, 0.0 }
 0x7e8   : > { %v6034_v53 = vmul.f32 %v17750_v47, %v5860_v58  ;;  %v6035_v42 = vmul.f32 %v17753_v2, %v5860_v58  ;;  %v6036_v11 = vmul.f32 %v17759_v54, %v5860_v58  ;;  %v6037_v29 = vmul.f32 %v17773_v51, %v5860_v58 }
 0x7e9   : > { %20134 = vst [vmem:[#allocation68_spill] sm:$0xff] %v18511_v24  ;;  %8397 = vmatmul.mubr.bf16.gmra.mrb[160].mxu0 %v18511_v24  ;;  %8783 = vmatmul.mubr.bf16.gmra.mrb[224].mxu1 %v18511_v24  ;;  %v6366_v37 = vmul.f32 %v17787_v4, %v6204_v52  ;;  %v6367_v36 = vmul.f32 %v17795_v41, %v6204_v52  ;;  %vm6729_vm5 = vcmp.gt.f32.partialorder %v6601_v34, 0.0  ;;  %v6857_v43 = vmul.f32 0.2, %v6601_v34  ;;  %v6164_v24 = vpop.permute.xlu1 %6163 }
 0x7ea   : > { %v6368_v33 = vmul.f32 %v17798_v20, %v6204_v52  ;;  %v6369_v49 = vmul.f32 %v17801_v14, %v6204_v52  ;;  %vm6728_vm6 = vcmp.gt.f32.partialorder %v6600_v0, 0.0  ;;  %v6856_v50 = vmul.f32 0.2, %v6600_v0 }
 0x7eb   : > { %v6494_v10 = vadd.f32 %v6366_v37, %v6074_v46  ;;  %v6495_v25 = vadd.f32 %v6367_v36, %v6075_v55  ;;  %v18526_v30 = vsel %vm6757_vm3, %v6629_v23, %v6885_v56  ;;  %v6985_v16 = vsel %vm6729_vm5, %v6601_v34, %v6857_v43 }
 0x7ec   : > { %v6496_v58 = vadd.f32 %v6368_v33, %v6076_v26  ;;  %v6497_v8 = vadd.f32 %v6369_v49, %v6077_v12  ;;  %v6984_v35 = vsel %vm6728_vm6, %v6600_v0, %v6856_v50  ;;  %v18529_v15 = vsel %vm6756_vm4, %v6628_v13, %v6884_v7 }
 0x7ed   : > { %v6644_v9 = vadd.f32 %v17804_v59, %v6494_v10  ;;  %v6645_v52 = vadd.f32 %v17812_v44, %v6495_v25  ;;  %v6326_v46 = vmul.f32 %v17787_v4, %v6164_v24  ;;  %v6327_v23 = vmul.f32 %v17795_v41, %v6164_v24  ;;  %v6168_v37 = vpop.permute.xlu1 %6167 }
 0x7ee   : > { %v18534_v40 = vadd.f32 %v20120_v19, %v6496_v58  ;;  %v18539_v56 = vadd.f32 %v17818_v63, %v6497_v8  ;;  %v6328_v0 = vmul.f32 %v17798_v20, %v6164_v24  ;;  %v6329_v13 = vmul.f32 %v17801_v14, %v6164_v24 }
 0x7ef   : > { %v6454_v55 = vadd.f32 %v6326_v46, %v6034_v53  ;;  %v18545_v26 = vpack.c.bf16 %v6985_v16, %v18299_v57  ;;  %v18548_v12 = vpack.c.bf16 %v6984_v35, %v18317_v17  ;;  %vm6773_vm8 = vcmp.gt.f32.partialorder %v6645_v52, 0.0 }
 0x7f0   : > { %v6455_v34 = vadd.f32 %v6327_v23, %v6035_v42  ;;  %v18551_v7 = vadd.f32 %v6328_v0, %v6036_v11  ;;  %v18553_v8 = vadd.f32 %v6329_v13, %v6037_v29  ;;  %v6901_v36 = vmul.f32 0.2, %v6645_v52 }
 0x7f1   : > { %20135 = vst [vmem:[#allocation69_spill] sm:$0xff] %v18545_v26  ;;  %20136 = vst [vmem:[#allocation70_spill] sm:$0xff] %v18548_v12  ;;  %8406 = vmatprep.mubr.bf16.mxu0 %v18545_v26  ;;  %8792 = vmatprep.mubr.bf16.mxu1 %v18545_v26  ;;  %v6330_v57 = vmul.f32 %v17787_v4, %v6168_v37  ;;  %v6331_v24 = vmul.f32 %v17795_v41, %v6168_v37  ;;  %vm6772_vm10 = vcmp.gt.f32.partialorder %v6644_v9, 0.0  ;;  %v5875_v10 = vpop.permute.xlu1 %5874 }
 0x7f2   : > { %v6332_v17 = vmul.f32 %v17798_v20, %v6168_v37  ;;  %8407 = vmatmul.mubr.bf16.gmra.mrb[164].mxu0 %v18548_v12  ;;  %8793 = vmatmul.mubr.bf16.gmra.mrb[228].mxu1 %v18548_v12  ;;  %v6333_v35 = vmul.f32 %v17801_v14, %v6168_v37  ;;  %v6605_v16 = vadd.f32 %v17812_v44, %v6455_v34  ;;  %v6900_v42 = vmul.f32 0.2, %v6644_v9 }
 0x7f3   : > { %v6604_v53 = vadd.f32 %v17804_v59, %v6454_v55  ;;  %v6458_v11 = vadd.f32 %v6330_v57, %v18280_v18  ;;  %v6459_v29 = vadd.f32 %v6331_v24, %v18283_v5  ;;  %v18571_v49 = vsel %vm6773_vm8, %v6645_v52, %v6901_v36  ;;  %v20137_v36 = vld [vmem:[#allocation76_spill] sm:$0xff] }
 0x7f4   : > { %v18568_v33 = vadd.f32 %v6332_v17, %v18286_v28  ;;  %v18574_v43 = vadd.f32 %v6333_v35, %v18289_v61  ;;  %vm6733_vm11 = vcmp.gt.f32.partialorder %v6605_v16, 0.0  ;;  %v6861_v50 = vmul.f32 0.2, %v6605_v16 }
 0x7f5   : > { %vm6732_vm12 = vcmp.gt.f32.partialorder %v6604_v53, 0.0  ;;  %v6609_v25 = vadd.f32 %v17812_v44, %v6459_v29  ;;  %v6608_v58 = vadd.f32 %v17804_v59, %v6458_v11  ;;  %v6860_v18 = vmul.f32 0.2, %v6604_v53 }
 0x7f6   : > { %v18579_v5 = vsel %vm6772_vm10, %v6644_v9, %v6900_v42  ;;  %v6046_v28 = vmul.f32 %v17750_v47, %v5875_v10  ;;  %v6047_v52 = vmul.f32 %v17753_v2, %v5875_v10  ;;  %v6048_v46 = vmul.f32 %v17759_v54, %v5875_v10  ;;  %v6176_v17 = vpop.permute.xlu1 %6175  ;;  %v20139_v42 = vld [vmem:[#allocation73_spill] sm:$0xff] }
 0x7f7   : > { %v6049_v61 = vmul.f32 %v17773_v51, %v5875_v10  ;;  %vm6737_vm13 = vcmp.gt.f32.partialorder %v6609_v25, 0.0  ;;  %v6865_v23 = vmul.f32 0.2, %v6609_v25  ;;  %v6989_v0 = vsel %vm6733_vm11, %v6605_v16, %v6861_v50 }
 0x7f8   : > { %vm6736_vm14 = vcmp.gt.f32.partialorder %v6608_v58, 0.0  ;;  %v6864_v13 = vmul.f32 0.2, %v6608_v58  ;;  %v6988_v55 = vsel %vm6732_vm12, %v6604_v53, %v6860_v18  ;;  %v6802_v34 = vmul.f32 0.2, %v18424_v6 }
 0x7f9   : > { %v6926_v9 = vsel %vm6670_vm7, %v18420_v62, %v18494_v60  ;;  %v6993_v37 = vsel %vm6737_vm13, %v6609_v25, %v6865_v23  ;;  %v6555_v57 = vadd.f32 %v17818_v63, %v20137_v36  ;;  %v6807_v24 = vmul.f32 0.2, %v18435_v48 }
 0x7fa   : > { %v18594_v35 = vpack.c.bf16 %v6993_v37, %v6989_v0  ;;  %v6992_v16 = vsel %vm6736_vm14, %v6608_v58, %v6864_v13  ;;  %v6930_v53 = vsel %vm6674_vm9, %v18424_v6, %v6802_v34  ;;  %v6550_v11 = vadd.f32 %v20120_v19, %v20139_v42  ;;  %v20141_v34 = vld [vmem:[#allocation75_spill] sm:$0xff] }
 0x7fb   : > { %v6338_v62 = vmul.f32 %v17787_v4, %v6176_v17  ;;  %v6339_v60 = vmul.f32 %v17795_v41, %v6176_v17  ;;  %v6340_v29 = vmul.f32 %v17798_v20, %v6176_v17  ;;  %v6341_v50 = vmul.f32 %v17801_v14, %v6176_v17  ;;  %v5880_v37 = vpop.permute.xlu1 %5879 }
 0x7fc   : > { %20138 = vst [vmem:[#allocation71_spill] sm:$0xff] %v18594_v35  ;;  %8416 = vmatprep.mubr.bf16.mxu0 %v18594_v35  ;;  %8802 = vmatprep.mubr.bf16.mxu1 %v18594_v35  ;;  %v18607_v10 = vpack.c.bf16 %v6992_v16, %v6988_v55  ;;  %v18609_v25 = vpack.c.bf16 %v6930_v53, %v6926_v9  ;;  %vm6683_vm0 = vcmp.gt.f32.partialorder %v6555_v57, 0.0  ;;  %v6811_v6 = vmul.f32 0.2, %v6555_v57  ;;  %v20150_v35 = vld [vmem:[#allocation55_spill] sm:$0xff] }
 0x7fd   : > { %v6466_v58 = vadd.f32 %v6338_v62, %v6046_v28  ;;  %v6467_v18 = vadd.f32 %v6339_v60, %v6047_v52  ;;  %v18611_v23 = vadd.f32 %v6340_v29, %v6048_v46  ;;  %v18613_v0 = vadd.f32 %v6341_v50, %v6049_v61  ;;  %v20142_v62 = vld [vmem:[#allocation52_spill] sm:$0xff] }
 0x7fe   : > { %20140 = vst [vmem:[#allocation43_spill] sm:$0xff] %v18607_v10  ;;  %8417 = vmatmul.mubr.bf16.gmra.mrb[168].mxu0 %v18607_v10  ;;  %8803 = vmatmul.mubr.bf16.gmra.mrb[232].mxu1 %v18607_v10  ;;  %v6935_v13 = vsel %vm6679_vm15, %v18435_v48, %v6807_v24  ;;  %v6939_v55 = vsel %vm6683_vm0, %v6555_v57, %v6811_v6  ;;  %vm6678_vm1 = vcmp.gt.f32.partialorder %v6550_v11, 0.0  ;;  %v6806_v61 = vmul.f32 0.2, %v6550_v11  ;;  %v20143_v6 = vld [vmem:[#allocation80_spill] sm:$0xff] }
 0x7ff   : > { %v6554_v9 = vadd.f32 %v20120_v19, %v20141_v34  ;;  %v6617_v28 = vadd.f32 %v17812_v44, %v6467_v18  ;;  %v6616_v52 = vadd.f32 %v17804_v59, %v6466_v58  ;;  %v18624_v46 = vpack.c.bf16 %v6939_v55, %v6935_v13  ;;  %v20144_v18 = vld [vmem:[#allocation51_spill] sm:$0xff] }
 0x800   : > { %v6050_v36 = vmul.f32 %v17750_v47, %v5880_v37  ;;  %v6051_v17 = vmul.f32 %v17753_v2, %v5880_v37  ;;  %v6052_v16 = vmul.f32 %v17759_v54, %v5880_v37  ;;  %v6053_v48 = vmul.f32 %v17773_v51, %v5880_v37  ;;  %v6180_v55 = vpop.permute.xlu1 %6179 }
 0x801   : > { %vm6745_vm2 = vcmp.gt.f32.partialorder %v6617_v28, 0.0  ;;  %v6873_v57 = vmul.f32 0.2, %v6617_v28  ;;  %vm6744_vm3 = vcmp.gt.f32.partialorder %v6616_v52, 0.0  ;;  %v6872_v24 = vmul.f32 0.2, %v6616_v52 }
 0x802   : > { %vm6682_vm4 = vcmp.gt.f32.partialorder %v6554_v9, 0.0  ;;  %v6810_v53 = vmul.f32 0.2, %v6554_v9  ;;  %v6934_v42 = vsel %vm6678_vm1, %v6550_v11, %v6806_v61  ;;  %v6559_v60 = vadd.f32 %v17818_v63, %v20142_v62 }
 0x803   : > { %v7001_v29 = vsel %vm6745_vm2, %v6617_v28, %v6873_v57  ;;  %v7000_v50 = vsel %vm6744_vm3, %v6616_v52, %v6872_v24  ;;  %v6563_v58 = vadd.f32 %v17818_v63, %v20143_v6  ;;  %v6558_v13 = vadd.f32 %v20120_v19, %v20144_v18  ;;  %v20147_v18 = vld [vmem:[#allocation79_spill] sm:$0xff] }
 0x804   : > { %v18638_v34 = vpack.c.bf16 %v7001_v29, %v18410_v3  ;;  %v18641_v37 = vpack.c.bf16 %v7000_v50, %v18416_v38  ;;  %v6938_v10 = vsel %vm6682_vm4, %v6554_v9, %v6810_v53  ;;  %vm6687_vm5 = vcmp.gt.f32.partialorder %v6559_v60, 0.0  ;;  %v6184_v29 = vpop.permute.xlu1 %6183 }
 0x805   : > { %v6342_v11 = vmul.f32 %v17787_v4, %v6180_v55  ;;  %v6343_v28 = vmul.f32 %v17795_v41, %v6180_v55  ;;  %v6344_v52 = vmul.f32 %v17798_v20, %v6180_v55  ;;  %v6345_v61 = vmul.f32 %v17801_v14, %v6180_v55 }
 0x806   : > { %20145 = vst [vmem:[#allocation44_spill] sm:$0xff] %v18638_v34  ;;  %20146 = vst [vmem:[#allocation38_spill] sm:$0xff] %v18641_v37  ;;  %8426 = vmatprep.mubr.bf16.mxu0 %v18638_v34  ;;  %8812 = vmatprep.mubr.bf16.mxu1 %v18638_v34  ;;  %v18649_v57 = vpack.c.bf16 %v6938_v10, %v6934_v42  ;;  %vm6691_vm6 = vcmp.gt.f32.partialorder %v6563_v58, 0.0  ;;  %v6815_v3 = vmul.f32 0.2, %v6559_v60  ;;  %vm6686_vm7 = vcmp.gt.f32.partialorder %v6558_v13, 0.0 }
 0x807   : > { %v6819_v38 = vmul.f32 0.2, %v6563_v58  ;;  %v6470_v24 = vadd.f32 %v6342_v11, %v6050_v36  ;;  %v6471_v9 = vadd.f32 %v6343_v28, %v6051_v17  ;;  %v18651_v53 = vadd.f32 %v6344_v52, %v6052_v16  ;;  %8427 = vmatmul.mubr.bf16.gmra.mrb[172].mxu0 %v18641_v37  ;;  %8813 = vmatmul.mubr.bf16.gmra.mrb[236].mxu1 %v18641_v37  ;;  %v20149_v37 = vld [vmem:[#allocation84_spill] sm:$0xff] }
 0x808   : > { %v18653_v62 = vadd.f32 %v6345_v61, %v6053_v48  ;;  %v6943_v50 = vsel %vm6687_vm5, %v6559_v60, %v6815_v3  ;;  %v6562_v10 = vadd.f32 %v20120_v19, %v20147_v18  ;;  %v6346_v42 = vmul.f32 %v17787_v4, %v6184_v29 }
 0x809   : > { %v6947_v6 = vsel %vm6691_vm6, %v6563_v58, %v6819_v38  ;;  %v6347_v36 = vmul.f32 %v17795_v41, %v6184_v29  ;;  %v6348_v17 = vmul.f32 %v17798_v20, %v6184_v29  ;;  %v6349_v16 = vmul.f32 %v17801_v14, %v6184_v29 }
 0x80a   : > { %v6621_v48 = vadd.f32 %v17812_v44, %v6471_v9  ;;  %v6620_v55 = vadd.f32 %v17804_v59, %v6470_v24  ;;  %v18666_v11 = vpack.c.bf16 %v6947_v6, %v6943_v50  ;;  %vm6690_vm8 = vcmp.gt.f32.partialorder %v6562_v10, 0.0  ;;  %v5895_v38 = vpop.permute.xlu1 %5894 }
 0x80b   : > { %v6474_v60 = vadd.f32 %v6346_v42, %v18374_v27  ;;  %v6475_v58 = vadd.f32 %v6347_v36, %v18377_v31  ;;  %v18671_v28 = vadd.f32 %v6348_v17, %v18380_v1  ;;  %v18674_v52 = vadd.f32 %v6349_v16, %v18388_v32 }
 0x80c   : > { %vm6749_vm9 = vcmp.gt.f32.partialorder %v6621_v48, 0.0  ;;  %v6877_v61 = vmul.f32 0.2, %v6621_v48  ;;  %vm6748_vm10 = vcmp.gt.f32.partialorder %v6620_v55, 0.0  ;;  %v6876_v3 = vmul.f32 0.2, %v6620_v55 }
 0x80d   : > { %v6625_v24 = vadd.f32 %v17812_v44, %v6475_v58  ;;  %v6624_v9 = vadd.f32 %v17804_v59, %v6474_v60  ;;  %v6814_v29 = vmul.f32 0.2, %v6558_v13  ;;  %v6818_v50 = vmul.f32 0.2, %v6562_v10 }
 0x80e   : > { %v6062_v27 = vmul.f32 %v17750_v47, %v5895_v38  ;;  %v6063_v31 = vmul.f32 %v17753_v2, %v5895_v38  ;;  %v6064_v1 = vmul.f32 %v17759_v54, %v5895_v38  ;;  %v6065_v32 = vmul.f32 %v17773_v51, %v5895_v38 }
 0x80f   : > { %vm6753_vm11 = vcmp.gt.f32.partialorder %v6625_v24, 0.0  ;;  %v6881_v6 = vmul.f32 0.2, %v6625_v24  ;;  %v7005_v18 = vsel %vm6749_vm9, %v6621_v48, %v6877_v61  ;;  %vm6752_vm12 = vcmp.gt.f32.partialorder %v6624_v9, 0.0  ;;  %v6192_v12 = vpop.permute.xlu1 %6191  ;;  %v20152_v61 = vld [vmem:[#allocation83_spill] sm:$0xff] }
 0x810   : > { %v6880_v42 = vmul.f32 0.2, %v6624_v9  ;;  %v7004_v36 = vsel %vm6748_vm10, %v6620_v55, %v6876_v3  ;;  %v6942_v17 = vsel %vm6686_vm7, %v6558_v13, %v6814_v29  ;;  %v6946_v16 = vsel %vm6690_vm8, %v6562_v10, %v6818_v50  ;;  %v20153_v3 = vld [vmem:[#allocation86_spill] sm:$0xff] }
 0x811   : > { %v7009_v60 = vsel %vm6753_vm11, %v6625_v24, %v6881_v6  ;;  %v18685_v58 = vpack.c.bf16 %v6946_v16, %v6942_v17  ;;  %v6567_v34 = vadd.f32 %v17818_v63, %v20149_v37  ;;  %v6571_v38 = vadd.f32 %v17818_v63, %v20150_v35 }
 0x812   : > { %v18691_v26 = vpack.c.bf16 %v7009_v60, %v7005_v18  ;;  %v7008_v48 = vsel %vm6752_vm12, %v6624_v9, %v6880_v42  ;;  %v6566_v55 = vadd.f32 %v20120_v19, %v20152_v61  ;;  %v6570_v13 = vadd.f32 %v20120_v19, %v20153_v3 }
 0x813   : > { %20148 = vst [vmem:[#allocation48_spill] sm:$0xff] %v18685_v58  ;;  %v6354_v10 = vmul.f32 %v17787_v4, %v6192_v12  ;;  %v6355_v24 = vmul.f32 %v17795_v41, %v6192_v12  ;;  %v6356_v29 = vmul.f32 %v17798_v20, %v6192_v12  ;;  %v6357_v37 = vmul.f32 %v17801_v14, %v6192_v12 }
 0x814   : > { %20151 = vst [vmem:[#allocation76_spill] sm:$0xff] %v18691_v26  ;;  %8436 = vmatprep.mubr.bf16.mxu0 %v18691_v26  ;;  %8822 = vmatprep.mubr.bf16.mxu1 %v18691_v26  ;;  %v18703_v35 = vpack.c.bf16 %v7008_v48, %v7004_v36  ;;  %vm6695_vm13 = vcmp.gt.f32.partialorder %v6567_v34, 0.0  ;;  %vm6699_vm14 = vcmp.gt.f32.partialorder %v6571_v38, 0.0  ;;  %v6823_v9 = vmul.f32 0.2, %v6567_v34  ;;  %v5900_v16 = vpop.permute.xlu1 %5899 }
 0x815   : > { %v6482_v50 = vadd.f32 %v6354_v10, %v6062_v27  ;;  %v6483_v6 = vadd.f32 %v6355_v24, %v6063_v31  ;;  %v18705_v18 = vadd.f32 %v6356_v29, %v6064_v1  ;;  %v18707_v42 = vadd.f32 %v6357_v37, %v6065_v32 }
 0x816   : > { %20154 = vst [vmem:[#allocation73_spill] sm:$0xff] %v18703_v35  ;;  %8437 = vmatmul.mubr.bf16.gmra.mrb[176].mxu0 %v18703_v35  ;;  %8823 = vmatmul.mubr.bf16.gmra.mrb[240].mxu1 %v18703_v35  ;;  %v6827_v12 = vmul.f32 0.2, %v6571_v38  ;;  %v6951_v17 = vsel %vm6695_vm13, %v6567_v34, %v6823_v9  ;;  %vm6694_vm15 = vcmp.gt.f32.partialorder %v6566_v55, 0.0  ;;  %vm6698_vm0 = vcmp.gt.f32.partialorder %v6570_v13, 0.0 }
 0x817   : > { %v6633_v36 = vadd.f32 %v17812_v44, %v6483_v6  ;;  %v6632_v60 = vadd.f32 %v17804_v59, %v6482_v50  ;;  %v6822_v48 = vmul.f32 0.2, %v6566_v55  ;;  %v6826_v27 = vmul.f32 0.2, %v6570_v13 }
 0x818   : > { %v6066_v31 = vmul.f32 %v17750_v47, %v5900_v16  ;;  %v6067_v1 = vmul.f32 %v17753_v2, %v5900_v16  ;;  %v6068_v32 = vmul.f32 %v17759_v54, %v5900_v16  ;;  %v6069_v61 = vmul.f32 %v17773_v51, %v5900_v16 }
 0x819   : > { %vm6761_vm1 = vcmp.gt.f32.partialorder %v6633_v36, 0.0  ;;  %v6889_v3 = vmul.f32 0.2, %v6633_v36  ;;  %vm6760_vm2 = vcmp.gt.f32.partialorder %v6632_v60, 0.0  ;;  %v6888_v34 = vmul.f32 0.2, %v6632_v60  ;;  %v6196_v16 = vpop.permute.xlu1 %6195 }
 0x81a   : > { %v6955_v10 = vsel %vm6699_vm14, %v6571_v38, %v6827_v12  ;;  %v6950_v24 = vsel %vm6694_vm15, %v6566_v55, %v6822_v48  ;;  %v6954_v29 = vsel %vm6698_vm0, %v6570_v13, %v6826_v27  ;;  %v6575_v37 = vadd.f32 %v17818_v63, %v18312_v22  ;;  %v20156_v38 = vld [vmem:[#allocation90_spill] sm:$0xff] }
 0x81b   : > { %v7017_v9 = vsel %vm6761_vm1, %v6633_v36, %v6889_v3  ;;  %v7016_v50 = vsel %vm6760_vm2, %v6632_v60, %v6888_v34  ;;  %v18722_v6 = vpack.c.bf16 %v6955_v10, %v6951_v17  ;;  %v18724_v35 = vpack.c.bf16 %v6954_v29, %v6950_v24  ;;  %v20157_v36 = vld [vmem:[#allocation56_spill] sm:$0xff] }
 0x81c   : > { %v18727_v26 = vpack.c.bf16 %v7017_v9, %v18526_v30  ;;  %v18730_v58 = vpack.c.bf16 %v7016_v50, %v18529_v15  ;;  %v6579_v55 = vadd.f32 %v17818_v63, %v20156_v38  ;;  %vm6703_vm3 = vcmp.gt.f32.partialorder %v6575_v37, 0.0  ;;  %v20158_v9 = vld [vmem:[#allocation89_spill] sm:$0xff] }
 0x81d   : > { %v6358_v13 = vmul.f32 %v17787_v4, %v6196_v16  ;;  %v6359_v22 = vmul.f32 %v17795_v41, %v6196_v16  ;;  %v6360_v12 = vmul.f32 %v17798_v20, %v6196_v16  ;;  %v6361_v17 = vmul.f32 %v17801_v14, %v6196_v16  ;;  %v6200_v10 = vpop.permute.xlu1 %6199 }
 0x81e   : > { %20155 = vst [vmem:[#allocation75_spill] sm:$0xff] %v18730_v58  ;;  %8446 = vmatprep.mubr.bf16.mxu0 %v18727_v26  ;;  %8832 = vmatprep.mubr.bf16.mxu1 %v18727_v26  ;;  %vm6707_vm4 = vcmp.gt.f32.partialorder %v6579_v55, 0.0  ;;  %v6831_v30 = vmul.f32 0.2, %v6575_v37  ;;  %v6835_v15 = vmul.f32 0.2, %v6579_v55  ;;  %v6574_v60 = vadd.f32 %v20120_v19, %v20157_v36 }
 0x81f   : > { %v6486_v48 = vadd.f32 %v6358_v13, %v6066_v31  ;;  %v6487_v27 = vadd.f32 %v6359_v22, %v6067_v1  ;;  %v18742_v3 = vadd.f32 %v6360_v12, %v6068_v32  ;;  %v18744_v34 = vadd.f32 %v6361_v17, %v6069_v61  ;;  %8447 = vmatmul.mubr.bf16.gmra.mrb[180].mxu0 %v18730_v58  ;;  %v20159_v12 = vld [vmem:[#allocation64_spill] sm:$0xff] }
 0x820   : > { %8833 = vmatmul.mubr.bf16.gmra.mrb[244].mxu1 %v18730_v58  ;;  %v6959_v24 = vsel %vm6703_vm3, %v6575_v37, %v6831_v30  ;;  %v6963_v29 = vsel %vm6707_vm4, %v6579_v55, %v6835_v15  ;;  %v6578_v50 = vadd.f32 %v20120_v19, %v20158_v9  ;;  %vm6702_vm5 = vcmp.gt.f32.partialorder %v6574_v60, 0.0 }
 0x821   : > { %v6362_v16 = vmul.f32 %v17787_v4, %v6200_v10  ;;  %v6363_v31 = vmul.f32 %v17795_v41, %v6200_v10  ;;  %v6364_v1 = vmul.f32 %v17798_v20, %v6200_v10  ;;  %v6365_v32 = vmul.f32 %v17801_v14, %v6200_v10 }
 0x822   : > { %v6637_v61 = vadd.f32 %v17812_v44, %v6487_v27  ;;  %v6636_v38 = vadd.f32 %v17804_v59, %v6486_v48  ;;  %v18757_v13 = vpack.c.bf16 %v6963_v29, %v6959_v24  ;;  %vm6706_vm6 = vcmp.gt.f32.partialorder %v6578_v50, 0.0 }
 0x823   : > { %v6490_v37 = vadd.f32 %v6362_v16, %v18478_v39  ;;  %v6491_v55 = vadd.f32 %v6363_v31, %v18481_v21  ;;  %v18762_v22 = vadd.f32 %v6364_v1, %v18484_v45  ;;  %v18765_v17 = vadd.f32 %v6365_v32, %v20159_v12  ;;  %v5915_v36 = vpop.permute.xlu1 %5914 }
 0x824   : > { %vm6765_vm7 = vcmp.gt.f32.partialorder %v6637_v61, 0.0  ;;  %v6893_v30 = vmul.f32 0.2, %v6637_v61  ;;  %vm6764_vm8 = vcmp.gt.f32.partialorder %v6636_v38, 0.0  ;;  %v6892_v15 = vmul.f32 0.2, %v6636_v38 }
 0x825   : > { %v6641_v48 = vadd.f32 %v17812_v44, %v6491_v55  ;;  %v6640_v27 = vadd.f32 %v17804_v59, %v6490_v37  ;;  %v6830_v10 = vmul.f32 0.2, %v6574_v60  ;;  %v6834_v24 = vmul.f32 0.2, %v6578_v50 }
 0x826   : > { %v6078_v39 = vmul.f32 %v17750_v47, %v5915_v36  ;;  %v6079_v21 = vmul.f32 %v17753_v2, %v5915_v36  ;;  %v6080_v45 = vmul.f32 %v17759_v54, %v5915_v36  ;;  %v6081_v29 = vmul.f32 %v17773_v51, %v5915_v36  ;;  %v20160_v47 = vld [vmem:[#allocation50_spill] sm:$0xff]  ;;  %v20161_v54 = vld [vmem:[#allocation91_spill] sm:$0xff] }
 0x827   : > { %vm6769_vm9 = vcmp.gt.f32.partialorder %v6641_v48, 0.0  ;;  %v6897_v9 = vmul.f32 0.2, %v6641_v48  ;;  %v7021_v16 = vsel %vm6765_vm7, %v6637_v61, %v6893_v30  ;;  %vm6768_vm10 = vcmp.gt.f32.partialorder %v6640_v27, 0.0  ;;  %v20162_v30 = vld [vmem:[#allocation49_spill] sm:$0xff] }
 0x828   : > { %v6896_v31 = vmul.f32 0.2, %v6640_v27  ;;  %v7020_v1 = vsel %vm6764_vm8, %v6636_v38, %v6892_v15  ;;  %v6958_v32 = vsel %vm6702_vm5, %v6574_v60, %v6830_v10  ;;  %v6962_v37 = vsel %vm6706_vm6, %v6578_v50, %v6834_v24  ;;  %v6208_v36 = vpop.permute.xlu1 %6207  ;;  %v20163_v15 = vld [vmem:[#allocation33_spill] sm:$0xff] }
 0x829   : > { %v7025_v55 = vsel %vm6769_vm9, %v6641_v48, %v6897_v9  ;;  %v18776_v12 = vpack.c.bf16 %v6962_v37, %v6958_v32  ;;  %v6583_v2 = vadd.f32 %v17818_v63, %v20160_v47  ;;  %v6587_v51 = vadd.f32 %v17818_v63, %v20161_v54 }
 0x82a   : > { %v18782_v58 = vpack.c.bf16 %v7025_v55, %v7021_v16  ;;  %v7024_v61 = vsel %vm6768_vm10, %v6640_v27, %v6896_v31  ;;  %v6582_v38 = vadd.f32 %v20120_v19, %v20162_v30  ;;  %v6586_v60 = vadd.f32 %v20120_v19, %v20163_v15  ;;  %v20164_v55 = vld [vmem:[#allocation95_spill] sm:$0xff] }
 0x82b   : > { %v6370_v50 = vmul.f32 %v17787_v4, %v6208_v36  ;;  %v6371_v48 = vmul.f32 %v17795_v41, %v6208_v36  ;;  %v6372_v10 = vmul.f32 %v17798_v20, %v6208_v36  ;;  %v6373_v24 = vmul.f32 %v17801_v14, %v6208_v36 }
 0x82c   : > { %8456 = vmatprep.mubr.bf16.mxu0 %v18782_v58  ;;  %8842 = vmatprep.mubr.bf16.mxu1 %v18782_v58  ;;  %v18794_v9 = vpack.c.bf16 %v7024_v61, %v7020_v1  ;;  %vm6711_vm11 = vcmp.gt.f32.partialorder %v6583_v2, 0.0  ;;  %vm6715_vm12 = vcmp.gt.f32.partialorder %v6587_v51, 0.0  ;;  %v6839_v27 = vmul.f32 0.2, %v6583_v2  ;;  %v20165_v61 = vld [vmem:[#allocation63_spill] sm:$0xff] }
 0x82d   : > { %v6498_v16 = vadd.f32 %v6370_v50, %v6078_v39  ;;  %v6499_v31 = vadd.f32 %v6371_v48, %v6079_v21  ;;  %v6500_v32 = vadd.f32 %v6372_v10, %v6080_v45  ;;  %v6501_v37 = vadd.f32 %v6373_v24, %v6081_v29 }
 0x82e   : > { %8457 = vmatmul.mubr.bf16.gmra.mrb[184].mxu0 %v18794_v9  ;;  %8843 = vmatmul.mubr.bf16.gmra.mrb[248].mxu1 %v18794_v9  ;;  %v6843_v4 = vmul.f32 0.2, %v6587_v51  ;;  %v6967_v41 = vsel %vm6711_vm11, %v6583_v2, %v6839_v27  ;;  %vm6710_vm13 = vcmp.gt.f32.partialorder %v6582_v38, 0.0  ;;  %vm6714_vm14 = vcmp.gt.f32.partialorder %v6586_v60, 0.0 }
 0x82f   : > { %v6648_v20 = vadd.f32 %v17804_v59, %v6498_v16  ;;  %v6649_v14 = vadd.f32 %v17812_v44, %v6499_v31  ;;  %v18801_v1 = vadd.f32 %v20120_v19, %v6500_v32  ;;  %v18804_v39 = vadd.f32 %v17818_v63, %v6501_v37  ;;  %v20166_v16 = vld [vmem:[#allocation60_spill] sm:$0xff]  ;;  %v20168_v32 = vld [vmem:[#allocation53_spill] sm:$0xff] }
 0x830   : > { %v6971_v21 = vsel %vm6715_vm12, %v6587_v51, %v6843_v4  ;;  %v6838_v45 = vmul.f32 0.2, %v6582_v38  ;;  %v6842_v29 = vmul.f32 0.2, %v6586_v60  ;;  %v6591_v47 = vadd.f32 %v17818_v63, %v20164_v55  ;;  %v20169_v4 = vld [vmem:[#allocation67_spill] sm:$0xff] }
 0x831   : > { %vm6777_vm15 = vcmp.gt.f32.partialorder %v6649_v14, 0.0  ;;  %v6905_v2 = vmul.f32 0.2, %v6649_v14  ;;  %vm6776_vm0 = vcmp.gt.f32.partialorder %v6648_v20, 0.0  ;;  %v6904_v54 = vmul.f32 0.2, %v6648_v20 }
 0x832   : > { %v18809_v59 = vpack.c.bf16 %v6971_v21, %v6967_v41  ;;  %v6966_v44 = vsel %vm6710_vm13, %v6582_v38, %v6838_v45  ;;  %v6970_v36 = vsel %vm6714_vm14, %v6586_v60, %v6842_v29  ;;  %v6595_v30 = vadd.f32 %v17818_v63, %v20165_v61  ;;  %v20167_v60 = vld [vmem:[#allocation62_spill] sm:$0xff] }
 0x833   : > { %v7033_v15 = vsel %vm6777_vm15, %v6649_v14, %v6905_v2  ;;  %v7032_v50 = vsel %vm6776_vm0, %v6648_v20, %v6904_v54  ;;  %v18813_v48 = vpack.c.bf16 %v6970_v36, %v6966_v44  ;;  %vm6719_vm1 = vcmp.gt.f32.partialorder %v6591_v47, 0.0  ;;  %v20170_v41 = vld [vmem:[#allocation82_spill] sm:$0xff] }
 0x834   : > { %v18816_v51 = vpack.c.bf16 %v7033_v15, %v18571_v49  ;;  %v18819_v10 = vpack.c.bf16 %v7032_v50, %v18579_v5  ;;  %vm6723_vm2 = vcmp.gt.f32.partialorder %v6595_v30, 0.0  ;;  %v6847_v24 = vmul.f32 0.2, %v6591_v47  ;;  %v20171_v45 = vld [vmem:[#allocation42_spill] sm:$0xff] }
 0x835   : > { %v6851_v27 = vmul.f32 0.2, %v6595_v30  ;;  %v6590_v38 = vadd.f32 %v20120_v19, %v20166_v16  ;;  %v6594_v31 = vadd.f32 %v20120_v19, %v20167_v60  ;;  %v6599_v37 = vadd.f32 %v17818_v63, %v20168_v32  ;;  %v20172_v44 = vld [vmem:[#allocation66_spill] sm:$0xff] }
 0x836   : > { %8466 = vmatprep.mubr.bf16.mxu0 %v18816_v51  ;;  %8852 = vmatprep.mubr.bf16.mxu1 %v18816_v51  ;;  %v6975_v49 = vsel %vm6719_vm1, %v6591_v47, %v6847_v24  ;;  %v6603_v5 = vadd.f32 %v17818_v63, %v20169_v4  ;;  %v6598_v20 = vadd.f32 %v20120_v19, %v20170_v41  ;;  %v13817_v41 = vld [vmem:[#allocation19 + $0x44] ss:$24 sps:$4 sm:$0xff]  }
 0x837   : > { %8467 = vmatmul.mubr.bf16.gmra.mrb[188].mxu0 %v18819_v10  ;;  %8853 = vmatmul.mubr.bf16.gmra.mrb[252].mxu1 %v18819_v10  ;;  %v6979_v14 = vsel %vm6723_vm2, %v6595_v30, %v6851_v27  ;;  %vm6718_vm3 = vcmp.gt.f32.partialorder %v6590_v38, 0.0  ;;  %vm6722_vm4 = vcmp.gt.f32.partialorder %v6594_v31, 0.0  ;;  %v6846_v21 = vmul.f32 0.2, %v6590_v38 }
 0x838   : > { %8509 = vmatprep.mubr.bf16.mxu0 %v20171_v45  ;;  %8895 = vmatprep.mubr.bf16.mxu1 %v20171_v45  ;;  %v18837_v29 = vpack.c.bf16 %v6979_v14, %v6975_v49  ;;  %v6850_v55 = vmul.f32 0.2, %v6594_v31  ;;  %vm6727_vm5 = vcmp.gt.f32.partialorder %v6599_v37, 0.0  ;;  %vm6731_vm6 = vcmp.gt.f32.partialorder %v6603_v5, 0.0  ;;  %v13812_v49 = vld [vmem:[#allocation19 + $0x10] ss:$24 sps:$4 sm:$0xff]  }
 0x839   : > { %v6974_v47 = vsel %vm6718_vm3, %v6590_v38, %v6846_v21  ;;  %v6855_v2 = vmul.f32 0.2, %v6599_v37  ;;  %v6859_v54 = vmul.f32 0.2, %v6603_v5  ;;  %v6602_v36 = vadd.f32 %v20120_v19, %v20172_v44  ;;  %v20175_v14 = vld [vmem:[#allocation58_spill] sm:$0xff] }
 0x83a   : > { %v6978_v61 = vsel %vm6722_vm4, %v6594_v31, %v6850_v55  ;;  %vm6726_vm7 = vcmp.gt.f32.partialorder %v6598_v20, 0.0  ;;  %v6854_v30 = vmul.f32 0.2, %v6598_v20  ;;  %v6607_v15 = vadd.f32 %v17818_v63, %v18553_v8  ;;  %v13815_v44 = vld [vmem:[#allocation19 + $0x40] ss:$24 sps:$4 sm:$0xff]  }
 0x83b   : > { %v18843_v50 = vpack.c.bf16 %v6978_v61, %v6974_v47  ;;  %v6983_v24 = vsel %vm6727_vm5, %v6599_v37, %v6855_v2  ;;  %v6987_v27 = vsel %vm6731_vm6, %v6603_v5, %v6859_v54  ;;  %vm6730_vm8 = vcmp.gt.f32.partialorder %v6602_v36, 0.0 }
 0x83c   : > { %v18845_v16 = vpack.c.bf16 %v6987_v27, %v6983_v24  ;;  %v6858_v60 = vmul.f32 0.2, %v6602_v36  ;;  %v6982_v38 = vsel %vm6726_vm7, %v6598_v20, %v6854_v30  ;;  %v6611_v32 = vadd.f32 %v17818_v63, %v18574_v43  ;;  %v20176_v20 = vld [vmem:[#allocation39_spill] sm:$0xff]  ;;  %v20180_v30 = vld [vmem:[#allocation57_spill] sm:$0xff] }
 0x83d   : > { %20173 = vst [vmem:[#allocation52_spill] sm:$0xff] %v18843_v50  ;;  %vm6735_vm9 = vcmp.gt.f32.partialorder %v6607_v15, 0.0  ;;  %v6863_v31 = vmul.f32 0.2, %v6607_v15  ;;  %v6606_v4 = vadd.f32 %v20120_v19, %v18551_v7  ;;  %v6610_v8 = vadd.f32 %v20120_v19, %v18568_v33  ;;  %v20178_v7 = vld [vmem:[#allocation47_spill] sm:$0xff] }
 0x83e   : > { %20174 = vst [vmem:[#allocation80_spill] sm:$0xff] %v18845_v16  ;;  %v6986_v37 = vsel %vm6730_vm8, %v6602_v36, %v6858_v60  ;;  %vm6739_vm10 = vcmp.gt.f32.partialorder %v6611_v32, 0.0  ;;  %v6867_v5 = vmul.f32 0.2, %v6611_v32  ;;  %v6615_v21 = vadd.f32 %v17818_v63, %v20175_v14  ;;  %v13820_v24 = vld [vmem:[#allocation19 + $0x74] ss:$24 sps:$4 sm:$0xff]  }
 0x83f   : > { %8510 = vmatmul.mubr.bf16.vlgmr.msra.gmra.mrb[128].mxu0 %v20176_v20  ;;  %8896 = vmatmul.mubr.bf16.vlgmr.msra.gmra.mrb[192].mxu1 %v20176_v20  ;;  %v18857_v43 = vpack.c.bf16 %v6986_v37, %v6982_v38  ;;  %v6991_v55 = vsel %vm6735_vm9, %v6607_v15, %v6863_v31  ;;  %vm6734_vm11 = vcmp.gt.f32.partialorder %v6606_v4, 0.0  ;;  %vm6738_vm12 = vcmp.gt.f32.partialorder %v6610_v8, 0.0 }
 0x840   : > { %8519 = vmatprep.mubr.bf16.mxu0 %v20178_v7  ;;  %8905 = vmatprep.mubr.bf16.mxu1 %v20178_v7  ;;  %v6995_v33 = vsel %vm6739_vm10, %v6611_v32, %v6867_v5  ;;  %v6862_v47 = vmul.f32 0.2, %v6606_v4  ;;  %v6866_v2 = vmul.f32 0.2, %v6610_v8  ;;  %v6619_v54 = vadd.f32 %v17818_v63, %v18613_v0 }
 0x841   : > { %20177 = vst [vmem:[#allocation51_spill] sm:$0xff] %v18857_v43  ;;  %9057 = vmatpush1.bf16.msra.mxu0 %v13812_v49  ;;  %v18863_v36 = vpack.c.bf16 %v6995_v33, %v6991_v55  ;;  %vm6743_vm13 = vcmp.gt.f32.partialorder %v6615_v21, 0.0  ;;  %v6871_v61 = vmul.f32 0.2, %v6615_v21  ;;  %v6614_v15 = vadd.f32 %v20120_v19, %v20180_v30  ;;  %v20186_v30 = vld [vmem:[#allocation97_spill] sm:$0xff] }
 0x842   : > { %9058 = vmatprep.subr.bf16.mxu0 %v13817_v41  ;;  %v6990_v27 = vsel %vm6734_vm11, %v6606_v4, %v6862_v47  ;;  %v6994_v60 = vsel %vm6738_vm12, %v6610_v8, %v6866_v2  ;;  %vm6747_vm14 = vcmp.gt.f32.partialorder %v6619_v54, 0.0  ;;  %v6875_v38 = vmul.f32 0.2, %v6619_v54  ;;  %v13818_v4 = vld [vmem:[#allocation19 + $0x70] ss:$24 sps:$4 sm:$0xff]  }
 0x843   : > { %20179 = vst [vmem:[#allocation79_spill] sm:$0xff] %v18863_v36  ;;  %v18869_v32 = vpack.c.bf16 %v6994_v60, %v6990_v27  ;;  %v6999_v0 = vsel %vm6743_vm13, %v6615_v21, %v6871_v61  ;;  %v6618_v49 = vadd.f32 %v20120_v19, %v18611_v23  ;;  %vm6742_vm15 = vcmp.gt.f32.partialorder %v6614_v15, 0.0  ;;  %v13823_v23 = vld [vmem:[#allocation19 + $0xa4] ss:$24 sps:$4 sm:$0xff]  }
 0x844   : > { %v7003_v31 = vsel %vm6747_vm14, %v6619_v54, %v6875_v38  ;;  %v6870_v37 = vmul.f32 0.2, %v6614_v15  ;;  %v6623_v5 = vadd.f32 %v17818_v63, %v18653_v62  ;;  %v6627_v41 = vadd.f32 %v17818_v63, %v18674_v52  ;;  %v20183_v47 = vld [vmem:[#allocation81_spill] sm:$0xff]  ;;  %v20184_v54 = vld [vmem:[#allocation59_spill] sm:$0xff] }
 0x845   : > { %20181 = vst [vmem:[#allocation84_spill] sm:$0xff] %v18869_v32  ;;  %9059 = vmatpush1.bf16.msra.mxu0 %v13815_v44  ;;  %v18877_v8 = vpack.c.bf16 %v7003_v31, %v6999_v0  ;;  %vm6746_vm0 = vcmp.gt.f32.partialorder %v6618_v49, 0.0  ;;  %v6874_v14 = vmul.f32 0.2, %v6618_v49  ;;  %v6622_v21 = vadd.f32 %v20120_v19, %v18651_v53  ;;  %v13826_v38 = vld [vmem:[#allocation19 + $0xd4] ss:$24 sps:$4 sm:$0xff]  }
 0x846   : > { %9060 = vmatprep.subr.bf16.mxu0 %v13820_v24  ;;  %v6998_v55 = vsel %vm6742_vm15, %v6614_v15, %v6870_v37  ;;  %vm6751_vm1 = vcmp.gt.f32.partialorder %v6623_v5, 0.0  ;;  %vm6755_vm2 = vcmp.gt.f32.partialorder %v6627_v41, 0.0  ;;  %v6879_v33 = vmul.f32 0.2, %v6623_v5  ;;  %v13821_v24 = vld [vmem:[#allocation19 + $0xa0] ss:$24 sps:$4 sm:$0xff]  }
 0x847   : > { %20182 = vst [vmem:[#allocation55_spill] sm:$0xff] %v18877_v8  ;;  %8520 = vmatmul.mubr.bf16.gmra.mrb[132].mxu0 %v20183_v47  ;;  %8906 = vmatmul.mubr.bf16.gmra.mrb[196].mxu1 %v20183_v47  ;;  %v7002_v62 = vsel %vm6746_vm0, %v6618_v49, %v6874_v14  ;;  %v6883_v52 = vmul.f32 0.2, %v6627_v41  ;;  %v6626_v2 = vadd.f32 %v20120_v19, %v18671_v28  ;;  %vm6750_vm3 = vcmp.gt.f32.partialorder %v6622_v21, 0.0 }
 0x848   : > { %8529 = vmatprep.mubr.bf16.mxu0 %v20184_v54  ;;  %8915 = vmatprep.mubr.bf16.mxu1 %v20184_v54  ;;  %v18887_v53 = vpack.c.bf16 %v7002_v62, %v6998_v55  ;;  %v7007_v44 = vsel %vm6751_vm1, %v6623_v5, %v6879_v33  ;;  %v6878_v61 = vmul.f32 0.2, %v6622_v21  ;;  %v6631_v15 = vadd.f32 %v17818_v63, %v20186_v30 }
 0x849   : > { %9061 = vmatpush1.bf16.msra.mxu0 %v13818_v4  ;;  %v7011_v27 = vsel %vm6755_vm2, %v6627_v41, %v6883_v52  ;;  %vm6754_vm4 = vcmp.gt.f32.partialorder %v6626_v2, 0.0  ;;  %v6882_v60 = vmul.f32 0.2, %v6626_v2  ;;  %v6635_v28 = vadd.f32 %v17818_v63, %v18707_v42  ;;  %v20188_v4 = vld [vmem:[#allocation96_spill] sm:$0xff] }
 0x84a   : > { %20185 = vst [vmem:[#allocation83_spill] sm:$0xff] %v18887_v53  ;;  %9062 = vmatprep.subr.bf16.mxu0 %v13823_v23  ;;  %v18894_v0 = vpack.c.bf16 %v7011_v27, %v7007_v44  ;;  %v7006_v49 = vsel %vm6750_vm3, %v6622_v21, %v6878_v61  ;;  %vm6759_vm5 = vcmp.gt.f32.partialorder %v6631_v15, 0.0  ;;  %v6887_v31 = vmul.f32 0.2, %v6631_v15  ;;  %v13824_v21 = vld [vmem:[#allocation19 + $0xd0] ss:$24 sps:$4 sm:$0xff]  }
 0x84b   : > { %vm6775_vm6 = vcmp.gt.f32.partialorder %v18539_v56, 0.0  ;;  %v7010_v37 = vsel %vm6754_vm4, %v6626_v2, %v6882_v60  ;;  %vm6763_vm7 = vcmp.gt.f32.partialorder %v6635_v28, 0.0  ;;  %v6891_v5 = vmul.f32 0.2, %v6635_v28  ;;  %v13829_v2 = vld [vmem:[#allocation19 + $0x104] ss:$24 sps:$4 sm:$0xff]  }
 0x84c   : > { %20187 = vst [vmem:[#allocation86_spill] sm:$0xff] %v18894_v0  ;;  %v6630_v41 = vadd.f32 %v20120_v19, %v20188_v4  ;;  %v18900_v14 = vpack.c.bf16 %v7010_v37, %v7006_v49  ;;  %v7015_v55 = vsel %vm6759_vm5, %v6631_v15, %v6887_v31  ;;  %v6634_v42 = vadd.f32 %v20120_v19, %v18705_v18  ;;  %v13832_v49 = vld [vmem:[#allocation19 + $0x134] ss:$24 sps:$4 sm:$0xff]   ;;  %v13830_v4 = vld [vmem:[#allocation19 + $0x130] ss:$24 sps:$4 sm:$0xff]  }
 0x84d   : > { %v6639_v23 = vadd.f32 %v17818_v63, %v18744_v34  ;;  %9063 = vmatpush1.bf16.msra.mxu0 %v13821_v24  ;;  %v7019_v33 = vsel %vm6763_vm7, %v6635_v28, %v6891_v5  ;;  %v6643_v52 = vadd.f32 %v17818_v63, %v18765_v17  ;;  %v6638_v17 = vadd.f32 %v20120_v19, %v18742_v3  ;;  %v13827_v24 = vld [vmem:[#allocation19 + $0x100] ss:$24 sps:$4 sm:$0xff]  }
 0x84e   : > { %20189 = vst [vmem:[#allocation90_spill] sm:$0xff] %v18900_v14  ;;  %vm6758_vm8 = vcmp.gt.f32.partialorder %v6630_v41, 0.0  ;;  %v6886_v62 = vmul.f32 0.2, %v6630_v41  ;;  %9064 = vmatprep.subr.bf16.mxu0 %v13826_v38  ;;  %v18908_v44 = vpack.c.bf16 %v7019_v33, %v7015_v55  ;;  %vm6762_vm9 = vcmp.gt.f32.partialorder %v6634_v42, 0.0 }
 0x84f   : > { %v6890_v61 = vmul.f32 0.2, %v6634_v42  ;;  %vm6767_vm10 = vcmp.gt.f32.partialorder %v6639_v23, 0.0  ;;  %8530 = vmatmul.mubr.bf16.gmra.mrb[136].mxu0 %v18609_v25  ;;  %8916 = vmatmul.mubr.bf16.gmra.mrb[200].mxu1 %v18609_v25  ;;  %vm6771_vm11 = vcmp.gt.f32.partialorder %v6643_v52, 0.0  ;;  %v6895_v34 = vmul.f32 0.2, %v6639_v23 }
 0x850   : > { %20190 = vst [vmem:[#allocation56_spill] sm:$0xff] %v18908_v44  ;;  %v7014_v18 = vsel %vm6758_vm8, %v6630_v41, %v6886_v62  ;;  %v6899_v30 = vmul.f32 0.2, %v6643_v52  ;;  %8539 = vmatprep.mubr.bf16.mxu0 %v18624_v46  ;;  %8925 = vmatprep.mubr.bf16.mxu1 %v18624_v46  ;;  %v6642_v15 = vadd.f32 %v20120_v19, %v18762_v22  ;;  %vm6779_vm12 = vcmp.gt.f32.partialorder %v18804_v39, 0.0 }
 0x851   : > { %v7018_v63 = vsel %vm6762_vm9, %v6634_v42, %v6890_v61  ;;  %9065 = vmatpush1.bf16.msra.mxu0 %v13824_v21  ;;  %v7023_v60 = vsel %vm6767_vm10, %v6639_v23, %v6895_v34  ;;  %v6903_v38 = vmul.f32 0.2, %v18539_v56  ;;  %vm6766_vm13 = vcmp.gt.f32.partialorder %v6638_v17, 0.0  ;;  %v13835_v21 = vld [vmem:[#allocation19 + $0x164] ss:$24 sps:$4 sm:$0xff]  }
 0x852   : > { %v18919_v27 = vpack.c.bf16 %v7018_v63, %v7014_v18  ;;  %v7027_v28 = vsel %vm6771_vm11, %v6643_v52, %v6899_v30  ;;  %9066 = vmatprep.subr.bf16.mxu0 %v13829_v2  ;;  %vm6770_vm14 = vcmp.gt.f32.partialorder %v6642_v15, 0.0  ;;  %v6894_v3 = vmul.f32 0.2, %v6638_v17  ;;  %v13836_v18 = vld [vmem:[#allocation19 + $0x190] ss:$24 sps:$4 sm:$0xff]   ;;  %v20196_v34 = vld [vmem:[#allocation48_spill] sm:$0xff] }
 0x853   : > { %v18923_v31 = vpack.c.bf16 %v7027_v28, %v7023_v60  ;;  %v6898_v37 = vmul.f32 0.2, %v6642_v15  ;;  %v6907_v19 = vmul.f32 0.2, %v18804_v39  ;;  %vm6774_vm15 = vcmp.gt.f32.partialorder %v18534_v40, 0.0 }
 0x854   : > { %20191 = vst [vmem:[#allocation89_spill] sm:$0xff] %v18919_v27  ;;  %vm6778_vm0 = vcmp.gt.f32.partialorder %v18801_v1, 0.0  ;;  %v6902_v22 = vmul.f32 0.2, %v18534_v40  ;;  %v6906_v5 = vmul.f32 0.2, %v18801_v1  ;;  %v7022_v41 = vsel %vm6766_vm13, %v6638_v17, %v6894_v3 }
 0x855   : > { %20192 = vst [vmem:[#allocation64_spill] sm:$0xff] %v18923_v31  ;;  %9067 = vmatpush1.bf16.msra.mxu0 %v13827_v24  ;;  %v7026_v55 = vsel %vm6770_vm14, %v6642_v15, %v6898_v37  ;;  %v7031_v42 = vsel %vm6775_vm6, %v18539_v56, %v6903_v38  ;;  %v7035_v23 = vsel %vm6779_vm12, %v18804_v39, %v6907_v19  ;;  %v13833_v56 = vld [vmem:[#allocation19 + $0x160] ss:$24 sps:$4 sm:$0xff]   ;;  %v13838_v39 = vld [vmem:[#allocation19 + $0x194] ss:$24 sps:$4 sm:$0xff]  }
 0x856   : > { %9068 = vmatprep.subr.bf16.mxu0 %v13832_v49  ;;  %v18936_v33 = vpack.c.bf16 %v7026_v55, %v7022_v41  ;;  %v18938_v62 = vpack.c.bf16 %v7035_v23, %v7031_v42  ;;  %v7030_v52 = vsel %vm6774_vm15, %v18534_v40, %v6902_v22  ;;  %v7034_v2 = vsel %vm6778_vm0, %v18801_v1, %v6906_v5  ;;  %v13841_v40 = vld [vmem:[#allocation19 + $0x1c4] ss:$24 sps:$4 sm:$0xff]   ;;  %v13839_v1 = vld [vmem:[#allocation19 + $0x1c0] ss:$24 sps:$4 sm:$0xff]   ;;  %v13844_v30 = vld [vmem:[#allocation19 + $0x1f4] ss:$24 sps:$4 sm:$0xff]  }
 0x857   : > { %8540 = vmatmul.mubr.bf16.gmra.mrb[140].mxu0 %v18649_v57  ;;  %8926 = vmatmul.mubr.bf16.gmra.mrb[204].mxu1 %v18649_v57  ;;  %v18944_v61 = vpack.c.bf16 %v7034_v2, %v7030_v52  ;;  %v13842_v63 = vld [vmem:[#allocation19 + $0x1f0] ss:$24 sps:$4 sm:$0xff]   ;;  %v13847_v17 = vld [vmem:[#allocation19 + $0x224] ss:$24 sps:$4 sm:$0xff]   ;;  %v13845_v15 = vld [vmem:[#allocation19 + $0x220] ss:$24 sps:$4 sm:$0xff]  }
 0x858   : > { %20193 = vst [vmem:[#allocation50_spill] sm:$0xff] %v18936_v33  ;;  %20194 = vst [vmem:[#allocation91_spill] sm:$0xff] %v18938_v62  ;;  %8549 = vmatprep.mubr.bf16.mxu0 %v18666_v11  ;;  %8935 = vmatprep.mubr.bf16.mxu1 %v18666_v11  ;;  %v13850_v24 = vld [vmem:[#allocation19 + $0x254] ss:$24 sps:$4 sm:$0xff]   ;;  %v13848_v60 = vld [vmem:[#allocation19 + $0x250] ss:$24 sps:$4 sm:$0xff]  }
 0x859   : > { %20195 = vst [vmem:[#allocation49_spill] sm:$0xff] %v18944_v61  ;;  %9069 = vmatpush1.bf16.msra.mxu0 %v13830_v4  ;;  %v13853_v28 = vld [vmem:[#allocation19 + $0x284] ss:$24 sps:$4 sm:$0xff]   ;;  %v13851_v38 = vld [vmem:[#allocation19 + $0x280] ss:$24 sps:$4 sm:$0xff]  }
 0x85a   : > { %9070 = vmatprep.subr.bf16.mxu0 %v13835_v21  ;;  %v13856_v49 = vld [vmem:[#allocation19 + $0x2b4] ss:$24 sps:$4 sm:$0xff]   ;;  %v13854_v3 = vld [vmem:[#allocation19 + $0x2b0] ss:$24 sps:$4 sm:$0xff]   ;;  %v13859_v37 = vld [vmem:[#allocation19 + $0x2e4] ss:$24 sps:$4 sm:$0xff]  }
 0x85b   : > { %v13857_v19 = vld [vmem:[#allocation19 + $0x2e0] ss:$24 sps:$4 sm:$0xff]   ;;  %v13862_v22 = vld [vmem:[#allocation19 + $0x314] ss:$24 sps:$4 sm:$0xff]   ;;  %v13860_v4 = vld [vmem:[#allocation19 + $0x310] ss:$24 sps:$4 sm:$0xff]  }
 0x85c   : > { %v20197_v5 = vld [vmem:[#allocation41_spill] sm:$0xff]  ;;  %v20198_v55 = vld [vmem:[#allocation40_spill] sm:$0xff] }
 0x85d   : > { %9071 = vmatpush1.bf16.msra.mxu0 %v13833_v56  ;;  %v13865_v41 = vld [vmem:[#allocation19 + $0x344] ss:$24 sps:$4 sm:$0xff]   ;;  %v13863_v23 = vld [vmem:[#allocation19 + $0x340] ss:$24 sps:$4 sm:$0xff]   ;;  %v13868_v21 = vld [vmem:[#allocation19 + $0x374] ss:$24 sps:$4 sm:$0xff]  }
 0x85e   : > { %9072 = vmatprep.subr.bf16.mxu0 %v13838_v39  ;;  %v20199_v42 = vld [vmem:[#allocation45_spill] sm:$0xff]  ;;  %v20200_v56 = vld [vmem:[#allocation46_spill] sm:$0xff]  ;;  %v20201_v39 = vld [vmem:[#allocation72_spill] sm:$0xff] }
 0x85f   : > { %8550 = vmatmul.mubr.bf16.gmra.mrb[144].mxu0 %v20196_v34  ;;  %8936 = vmatmul.mubr.bf16.gmra.mrb[208].mxu1 %v20196_v34  ;;  %v13866_v52 = vld [vmem:[#allocation19 + $0x370] ss:$24 sps:$4 sm:$0xff]   ;;  %v13871_v2 = vld [vmem:[#allocation19 + $0x3a4] ss:$24 sps:$4 sm:$0xff]  }
 0x860   : > { %8559 = vmatprep.mubr.bf16.mxu0 %v18722_v6  ;;  %8945 = vmatprep.mubr.bf16.mxu1 %v18722_v6 }
 0x861   : > { %9073 = vmatpush1.bf16.msra.mxu0 %v13836_v18  ;;  %v13869_v18 = vld [vmem:[#allocation19 + $0x3a0] ss:$24 sps:$4 sm:$0xff]  }
 0x862   : > { %9074 = vmatprep.subr.bf16.mxu0 %v13841_v40  ;;  %v13874_v40 = vld [vmem:[#allocation19 + $0x3d4] ss:$24 sps:$4 sm:$0xff]  }
 0x865   : > { %9075 = vmatpush1.bf16.msra.mxu0 %v13839_v1  ;;  %v13872_v1 = vld [vmem:[#allocation19 + $0x3d0] ss:$24 sps:$4 sm:$0xff]  }
 0x866   : > { %9076 = vmatprep.subr.bf16.mxu0 %v13844_v30  ;;  %v13877_v30 = vld [vmem:[#allocation19 + $0x404] ss:$24 sps:$4 sm:$0xff]  }
 0x867   : > { %8560 = vmatmul.mubr.bf16.gmra.mrb[148].mxu0 %v18724_v35  ;;  %8946 = vmatmul.mubr.bf16.gmra.mrb[212].mxu1 %v18724_v35 }
 0x868   : > { %8569 = vmatprep.mubr.bf16.mxu0 %v18757_v13  ;;  %8955 = vmatprep.mubr.bf16.mxu1 %v18757_v13 }
 0x869   : > { %9077 = vmatpush1.bf16.msra.mxu0 %v13842_v63  ;;  %v20202_v63 = vld [vmem:[#allocation74_spill] sm:$0xff] }
 0x86a   : > { %9078 = vmatprep.subr.bf16.mxu0 %v13847_v17  ;;  %v20203_v17 = vld [vmem:[#allocation77_spill] sm:$0xff] }
 0x86d   : > { %9079 = vmatpush1.bf16.msra.mxu0 %v13845_v15  ;;  %v13875_v15 = vld [vmem:[#allocation19 + $0x400] ss:$24 sps:$4 sm:$0xff]  }
 0x86e   : > { %9080 = vmatprep.subr.bf16.mxu0 %v13850_v24  ;;  %v13880_v24 = vld [vmem:[#allocation19 + $0x434] ss:$24 sps:$4 sm:$0xff]  }
 0x86f   : > { %8570 = vmatmul.mubr.bf16.gmra.mrb[152].mxu0 %v18776_v12  ;;  %8956 = vmatmul.mubr.bf16.gmra.mrb[216].mxu1 %v18776_v12 }
 0x870   : > { %8579 = vmatprep.mubr.bf16.mxu0 %v18809_v59  ;;  %8965 = vmatprep.mubr.bf16.mxu1 %v18809_v59 }
 0x871   : > { %9081 = vmatpush1.bf16.msra.mxu0 %v13848_v60  ;;  %v13878_v60 = vld [vmem:[#allocation19 + $0x430] ss:$24 sps:$4 sm:$0xff]  }
 0x872   : > { %9082 = vmatprep.subr.bf16.mxu0 %v13853_v28  ;;  %v13883_v28 = vld [vmem:[#allocation19 + $0x464] ss:$24 sps:$4 sm:$0xff]  }
 0x875   : > { %9083 = vmatpush1.bf16.msra.mxu0 %v13851_v38  ;;  %v20204_v38 = vld [vmem:[#allocation78_spill] sm:$0xff] }
 0x876   : > { %9084 = vmatprep.subr.bf16.mxu0 %v13856_v49  ;;  %v20205_v49 = vld [vmem:[#allocation54_spill] sm:$0xff] }
 0x877   : > { %8580 = vmatmul.mubr.bf16.gmra.mrb[156].mxu0 %v18813_v48  ;;  %8966 = vmatmul.mubr.bf16.gmra.mrb[220].mxu1 %v18813_v48 }
 0x878   : > { %8589 = vmatprep.mubr.bf16.mxu0 %v18837_v29  ;;  %8975 = vmatprep.mubr.bf16.mxu1 %v18837_v29 }
 0x879   : > { %9085 = vmatpush1.bf16.msra.mxu0 %v13854_v3  ;;  %v13881_v3 = vld [vmem:[#allocation19 + $0x460] ss:$24 sps:$4 sm:$0xff]  }
 0x87a   : > { %9086 = vmatprep.subr.bf16.mxu0 %v13859_v37  ;;  %v13886_v37 = vld [vmem:[#allocation19 + $0x494] ss:$24 sps:$4 sm:$0xff]  }
 0x87d   : > { %9087 = vmatpush1.bf16.msra.mxu0 %v13857_v19  ;;  %v13884_v19 = vld [vmem:[#allocation19 + $0x490] ss:$24 sps:$4 sm:$0xff]  }
 0x87e   : > { %9249 = vmatprep.subr.bf16.mxu0 %v13862_v22  ;;  %v13889_v22 = vld [vmem:[#allocation19 + $0x4c4] ss:$24 sps:$4 sm:$0xff]  }
 0x87f   : > { %8590 = vmatmul.mubr.bf16.gmra.mrb[160].mxu0 %v18843_v50  ;;  %8976 = vmatmul.mubr.bf16.gmra.mrb[224].mxu1 %v18843_v50 }
 0x880   : > { %8599 = vmatprep.mubr.bf16.mxu0 %v18845_v16  ;;  %8985 = vmatprep.mubr.bf16.mxu1 %v18845_v16 }
 0x887   : > { %8600 = vmatmul.mubr.bf16.gmra.mrb[164].mxu0 %v18857_v43  ;;  %8986 = vmatmul.mubr.bf16.gmra.mrb[228].mxu1 %v18857_v43 }
 0x888   : > { %8609 = vmatprep.mubr.bf16.mxu0 %v18863_v36  ;;  %8995 = vmatprep.mubr.bf16.mxu1 %v18863_v36 }
 0x88f   : > { %8610 = vmatmul.mubr.bf16.gmra.mrb[168].mxu0 %v18869_v32  ;;  %8996 = vmatmul.mubr.bf16.gmra.mrb[232].mxu1 %v18869_v32 }
 0x890   : > { %8619 = vmatprep.mubr.bf16.mxu0 %v18877_v8  ;;  %9005 = vmatprep.mubr.bf16.mxu1 %v18877_v8 }
 0x897   : > { %8620 = vmatmul.mubr.bf16.gmra.mrb[172].mxu0 %v18887_v53  ;;  %9006 = vmatmul.mubr.bf16.gmra.mrb[236].mxu1 %v18887_v53 }
 0x898   : > { %8629 = vmatprep.mubr.bf16.mxu0 %v18894_v0  ;;  %9015 = vmatprep.mubr.bf16.mxu1 %v18894_v0 }
 0x89f   : > { %8630 = vmatmul.mubr.bf16.gmra.mrb[176].mxu0 %v18900_v14  ;;  %9016 = vmatmul.mubr.bf16.gmra.mrb[240].mxu1 %v18900_v14 }
 0x8a0   : > { %8639 = vmatprep.mubr.bf16.mxu0 %v18908_v44  ;;  %9025 = vmatprep.mubr.bf16.mxu1 %v18908_v44 }
 0x8a7   : > { %8640 = vmatmul.mubr.bf16.gmra.mrb[180].mxu0 %v18919_v27  ;;  %9026 = vmatmul.mubr.bf16.gmra.mrb[244].mxu1 %v18919_v27 }
 0x8a8   : > { %8649 = vmatprep.mubr.bf16.mxu0 %v18923_v31  ;;  %9035 = vmatprep.mubr.bf16.mxu1 %v18923_v31 }
 0x8af   : > { %8650 = vmatmul.mubr.bf16.gmra.mrb[184].mxu0 %v18936_v33  ;;  %9036 = vmatmul.mubr.bf16.gmra.mrb[248].mxu1 %v18936_v33 }
 0x8b0   : > { %8659 = vmatprep.mubr.bf16.mxu0 %v18938_v62  ;;  %9045 = vmatprep.mubr.bf16.mxu1 %v18938_v62 }
 0x8b7   : > { %8660 = vmatmul.mubr.bf16.gmra.mrb[188].mxu0 %v18944_v61  ;;  %9046 = vmatmul.mubr.bf16.gmra.mrb[252].mxu1 %v18944_v61 }
 0x8b8   : > { %9088 = vmatprep.mubr.bf16.mxu0 %v20197_v5  ;;  %v20206_v5 = vld [vmem:[#allocation85_spill] sm:$0xff] }
 0x8bf   : > { %9089 = vmatmul.mubr.bf16.vlgmr.msra.gmra.mrb[192].mxu0 %v20198_v55  ;;  %v13892_v55 = vld [vmem:[#allocation19 + $0x4f4] ss:$24 sps:$4 sm:$0xff]  }
 0x8c0   : > { %9098 = vmatprep.mubr.bf16.mxu0 %v20199_v42  ;;  %9250 = vmatpush1.bf16.msra.mxu0 %v13860_v4  ;;  %v20207_v4 = vld [vmem:[#allocation87_spill] sm:$0xff]  ;;  %v13890_v42 = vld [vmem:[#allocation19 + $0x4f0] ss:$24 sps:$4 sm:$0xff]  }
 0x8c1   : > { %9251 = vmatprep.subr.bf16.mxu0 %v13865_v41  ;;  %v13887_v41 = vld [vmem:[#allocation19 + $0x4c0] ss:$24 sps:$4 sm:$0xff]  }
 0x8c4   : > { %9252 = vmatpush1.bf16.msra.mxu0 %v13863_v23  ;;  %v13895_v23 = vld [vmem:[#allocation19 + $0x524] ss:$24 sps:$4 sm:$0xff]  }
 0x8c5   : > { %9253 = vmatprep.subr.bf16.mxu0 %v13868_v21  ;;  %v20208_v21 = vld [vmem:[#allocation88_spill] sm:$0xff] }
 0x8c7   : > { %9099 = vmatmul.mubr.bf16.gmra.mrb[196].mxu0 %v20200_v56  ;;  %v13898_v56 = vld [vmem:[#allocation19 + $0x554] ss:$24 sps:$4 sm:$0xff]  }
 0x8c8   : > { %9108 = vmatprep.mubr.bf16.mxu0 %v20201_v39  ;;  %9254 = vmatpush1.bf16.msra.mxu0 %v13866_v52  ;;  %v20209_v52 = vld [vmem:[#allocation92_spill] sm:$0xff]  ;;  %v13896_v39 = vld [vmem:[#allocation19 + $0x550] ss:$24 sps:$4 sm:$0xff]  }
 0x8c9   : > { %9255 = vmatprep.subr.bf16.mxu0 %v13871_v2  ;;  %v13893_v2 = vld [vmem:[#allocation19 + $0x520] ss:$24 sps:$4 sm:$0xff]  }
 0x8cc   : > { %9256 = vmatpush1.bf16.msra.mxu0 %v13869_v18  ;;  %v13901_v18 = vld [vmem:[#allocation19 + $0x584] ss:$24 sps:$4 sm:$0xff]  }
 0x8cd   : > { %9257 = vmatprep.subr.bf16.mxu0 %v13874_v40  ;;  %v20210_v40 = vld [vmem:[#allocation94_spill] sm:$0xff] }
 0x8cf   : > { %9109 = vmatmul.mubr.bf16.gmra.mrb[200].mxu0 %v20202_v63  ;;  %v13904_v63 = vld [vmem:[#allocation19 + $0x5b4] ss:$24 sps:$4 sm:$0xff]  }
 0x8d0   : > { %9118 = vmatprep.mubr.bf16.mxu0 %v20203_v17  ;;  %9258 = vmatpush1.bf16.msra.mxu0 %v13872_v1  ;;  %v20211_v1 = vld [vmem:[#allocation98_spill] sm:$0xff] }
 0x8d1   : > { %9259 = vmatprep.subr.bf16.mxu0 %v13877_v30  ;;  %v13899_v30 = vld [vmem:[#allocation19 + $0x580] ss:$24 sps:$4 sm:$0xff]   ;;  %v13902_v17 = vld [vmem:[#allocation19 + $0x5b0] ss:$24 sps:$4 sm:$0xff]  }
 0x8d4   : > { %9260 = vmatpush1.bf16.msra.mxu0 %v13875_v15  ;;  %v20212_v15 = vld [vmem:[#allocation61_spill] sm:$0xff] }
 0x8d5   : > { %9261 = vmatprep.subr.bf16.mxu0 %v13880_v24  ;;  %v20213_v24 = vld [vmem:[#allocation65_spill] sm:$0xff] }
 0x8d7   : > { %9119 = vmatmul.mubr.bf16.gmra.mrb[204].mxu0 %v20204_v38  ;;  %v13905_v38 = vld [vmem:[#allocation19 + $0x5e0] ss:$24 sps:$4 sm:$0xff]  }
 0x8d8   : > { %9128 = vmatprep.mubr.bf16.mxu0 %v20205_v49  ;;  %9262 = vmatpush1.bf16.msra.mxu0 %v13878_v60  ;;  %v20214_v60 = vld [vmem:[#allocation68_spill] sm:$0xff] }
 0x8d9   : > { %9263 = vmatprep.subr.bf16.mxu0 %v13883_v28  ;;  %v20215_v28 = vld [vmem:[#allocation69_spill] sm:$0xff] }
 0x8da   : > { %v13907_v49 = vld [vmem:[#allocation19 + $0x5e4] ss:$24 sps:$4 sm:$0xff]  }
 0x8dc   : > { %9264 = vmatpush1.bf16.msra.mxu0 %v13881_v3  ;;  %v20216_v3 = vld [vmem:[#allocation70_spill] sm:$0xff] }
 0x8dd   : > { %9265 = vmatprep.subr.bf16.mxu0 %v13886_v37  ;;  %v20217_v37 = vld [vmem:[#allocation71_spill] sm:$0xff] }
 0x8df   : > { %9129 = vmatmul.mubr.bf16.gmra.mrb[208].mxu0 %v20206_v5  ;;  %v20219_v5 = vld [vmem:[#allocation34_spill] sm:$0xff] }
 0x8e0   : > { %9138 = vmatprep.mubr.bf16.mxu0 %v20207_v4  ;;  %9266 = vmatpush1.bf16.msra.mxu0 %v13884_v19  ;;  %v7292_v19 = vld [vmem:[#allocation20] sm:$0x3f] }
 0x8e1   : > { %9267 = vmatprep.subr.bf16.mxu0 %v13889_v22  ;;  %v20218_v22 = vld [vmem:[#allocation43_spill] sm:$0xff]  ;;  %v19017_v4 = vrot.slane %v7292_v19, %v20219_v5 }
 0x8e4   : > { %9268 = vmatpush1.bf16.msra.mxu0 %v13887_v41  ;;  %v20220_v41 = vld [vmem:[#allocation36_spill] sm:$0xff] }
 0x8e5   : > { %9269 = vmatprep.subr.bf16.mxu0 %v13892_v55  ;;  %v19020_v55 = vrot.slane %v7292_v19, %v20220_v41 }
 0x8e7   : > { %9139 = vmatmul.mubr.bf16.gmra.mrb[212].mxu0 %v20208_v21 }
 0x8e8   : > { %9148 = vmatprep.mubr.bf16.mxu0 %v20209_v52  ;;  %9270 = vmatpush1.bf16.msra.mxu0 %v13890_v42  ;;  %v20221_v42 = vld [vmem:[#allocation44_spill] sm:$0xff]  ;;  %v20223_v52 = vld [vmem:[#allocation37_spill] sm:$0xff] }
 0x8e9   : > { %9271 = vmatprep.subr.bf16.mxu0 %v13895_v23  ;;  %v20222_v23 = vld [vmem:[#allocation35_spill] sm:$0xff] }
 0x8ea   : > { %v19024_v21 = vrot.slane %v7292_v19, %v20222_v23 }
 0x8ec   : > { %9272 = vmatpush1.bf16.msra.mxu0 %v13893_v2  ;;  %v19027_v2 = vrot.slane %v7292_v19, %v20223_v52 }
 0x8ed   : > { %9273 = vmatprep.subr.bf16.mxu0 %v13898_v56 }
 0x8ef   : > { %9149 = vmatmul.mubr.bf16.gmra.mrb[216].mxu0 %v20210_v40 }
 0x8f0   : > { %9158 = vmatprep.mubr.bf16.mxu0 %v20211_v1  ;;  %9274 = vmatpush1.bf16.msra.mxu0 %v13896_v39 }
 0x8f1   : > { %9275 = vmatprep.subr.bf16.mxu0 %v13901_v18 }
 0x8f4   : > { %9276 = vmatpush1.bf16.msra.mxu0 %v13899_v30 }
 0x8f5   : > { %9277 = vmatprep.subr.bf16.mxu0 %v13904_v63 }
 0x8f7   : > { %9159 = vmatmul.mubr.bf16.gmra.mrb[220].mxu0 %v20212_v15 }
 0x8f8   : > { %9168 = vmatprep.mubr.bf16.mxu0 %v20213_v24  ;;  %9278 = vmatpush1.bf16.msra.mxu0 %v13902_v17 }
 0x8f9   : > { %9279 = vmatprep.subr.bf16.mxu0 %v13907_v49 }
 0x8fc   : > { %9280 = vmatpush1.bf16.msra.mxu0 %v13905_v38 }
 0x8ff   : > { %9169 = vmatmul.mubr.bf16.gmra.mrb[224].mxu0 %v20214_v60 }
 0x900   : > { %9178 = vmatprep.mubr.bf16.mxu0 %v20215_v28 }
 0x907   : > { %9179 = vmatmul.mubr.bf16.gmra.mrb[228].mxu0 %v20216_v3 }
 0x908   : > { %9188 = vmatprep.mubr.bf16.mxu0 %v20217_v37 }
 0x90f   : > { %9189 = vmatmul.mubr.bf16.gmra.mrb[232].mxu0 %v20218_v22 }
 0x910   : > { %9198 = vmatprep.mubr.bf16.mxu0 %v20221_v42 }
 0x912   : > { %v8511_v56 = vpop.f32.mrb[128].mxu0  ;;  %v8897_v39 = vpop.f32.mrb[192].mxu1 }
 0x913   : > { %v12411_v18 = vadd.f32 %v8511_v56, %v19017_v4  ;;  %v12475_v40 = vadd.f32 %v8897_v39, %v19020_v55  ;;  %v8513_v1 = vpop.f32.mrb[129].mxu0  ;;  %v8899_v30 = vpop.f32.mrb[193].mxu1  ;;  %v20224_v39 = vld [vmem:[#allocation38_spill] sm:$0xff] }
 0x914   : > { %v12412_v63 = vadd.f32 %v8513_v1, %v19024_v21  ;;  %v12476_v17 = vadd.f32 %v8899_v30, %v19027_v2  ;;  %v8515_v15 = vpop.f32.mrb[130].mxu0  ;;  %v8901_v24 = vpop.f32.mrb[194].mxu1 }
 0x915   : > { %v9442_v60 = vsub.f32 0.0, %v12411_v18  ;;  %v9444_v28 = vsub.f32 0.0, %v12475_v40  ;;  %v12413_v38 = vadd.f32 %v8515_v15, %v19017_v4  ;;  %v12477_v49 = vadd.f32 %v8901_v24, %v19020_v55  ;;  %v8517_v3 = vpop.f32.mrb[131].mxu0  ;;  %v8903_v37 = vpop.f32.mrb[195].mxu1  ;;  %v20225_v15 = vld [vmem:[#allocation76_spill] sm:$0xff] }
 0x916   : > { %v9443_v19 = vsub.f32 0.0, %v12412_v63  ;;  %v9445_v22 = vsub.f32 0.0, %v12476_v17  ;;  %v12414_v5 = vadd.f32 %v8517_v3, %v19024_v21  ;;  %v12478_v41 = vadd.f32 %v8903_v37, %v19027_v2 }
 0x917   : > { %v9634_v42 = vmul.f32 1.442695, %v9442_v60  ;;  %v9638_v23 = vmul.f32 1.442695, %v9444_v28  ;;  %v9448_v52 = vsub.f32 0.0, %v12413_v38  ;;  %v9450_v56 = vsub.f32 0.0, %v12477_v49  ;;  %9199 = vmatmul.mubr.bf16.gmra.mrb[236].mxu0 %v20224_v39 }
 0x918   : > { %v9636_v18 = vmul.f32 1.442695, %v9443_v19  ;;  %v9640_v40 = vmul.f32 1.442695, %v9445_v22  ;;  %v9449_v1 = vsub.f32 0.0, %v12414_v5  ;;  %v9451_v30 = vsub.f32 0.0, %v12478_v41  ;;  %9208 = vmatprep.mubr.bf16.mxu0 %v20225_v15 }
 0x919   : > { %13908 = vpow2.f32 %v9634_v42  ;;  %v9646_v24 = vmul.f32 1.442695, %v9448_v52  ;;  %v9650_v63 = vmul.f32 1.442695, %v9450_v56 }
 0x91a   : > { %13910 = vpow2.f32 %v9638_v23  ;;  %v8521_v17 = vpop.f32.mrb[132].mxu0  ;;  %v8907_v3 = vpop.f32.mrb[196].mxu1  ;;  %v9648_v37 = vmul.f32 1.442695, %v9449_v1  ;;  %v9652_v19 = vmul.f32 1.442695, %v9451_v30 }
 0x91b   : > { %13912 = vpow2.f32 %v9636_v18  ;;  %v12415_v60 = vadd.f32 %v8521_v17, %v19017_v4  ;;  %v12479_v28 = vadd.f32 %v8907_v3, %v19020_v55  ;;  %v8523_v38 = vpop.f32.mrb[133].mxu0  ;;  %v8909_v49 = vpop.f32.mrb[197].mxu1  ;;  %v20226_v3 = vld [vmem:[#allocation73_spill] sm:$0xff] }
 0x91c   : > { %13914 = vpow2.f32 %v9640_v40  ;;  %v12416_v22 = vadd.f32 %v8523_v38, %v19024_v21  ;;  %v12480_v5 = vadd.f32 %v8909_v49, %v19027_v2  ;;  %v8525_v41 = vpop.f32.mrb[134].mxu0  ;;  %v8911_v42 = vpop.f32.mrb[198].mxu1 }
 0x91d   : > { %13916 = vpow2.f32 %v9646_v24  ;;  %v9454_v23 = vsub.f32 0.0, %v12415_v60  ;;  %v9456_v52 = vsub.f32 0.0, %v12479_v28  ;;  %v12417_v56 = vadd.f32 %v8525_v41, %v19017_v4  ;;  %v8527_v39 = vpop.f32.mrb[135].mxu0  ;;  %v8913_v18 = vpop.f32.mrb[199].mxu1 }
 0x91e   : > { %13918 = vpow2.f32 %v9650_v63  ;;  %v9455_v1 = vsub.f32 0.0, %v12416_v22  ;;  %v9457_v15 = vsub.f32 0.0, %v12480_v5  ;;  %v12481_v63 = vadd.f32 %v8911_v42, %v19020_v55 }
 0x91f   : > { %13920 = vpow2.f32 %v9648_v37  ;;  %v9658_v17 = vmul.f32 1.442695, %v9454_v23  ;;  %v9662_v40 = vmul.f32 1.442695, %v9456_v52  ;;  %v9460_v30 = vsub.f32 0.0, %v12417_v56  ;;  %9209 = vmatmul.mubr.bf16.gmra.mrb[240].mxu0 %v20226_v3 }
 0x920   : > { %13922 = vpow2.f32 %v9652_v19  ;;  %v9660_v38 = vmul.f32 1.442695, %v9455_v1  ;;  %v9664_v49 = vmul.f32 1.442695, %v9457_v15  ;;  %9218 = vmatprep.mubr.bf16.mxu0 %v18727_v26  ;;  %v12418_v19 = vadd.f32 %v8527_v39, %v19024_v21 }
 0x921   : > { %13924 = vpow2.f32 %v9658_v17  ;;  %v9670_v24 = vmul.f32 1.442695, %v9460_v30 }
 0x922   : > { %13926 = vpow2.f32 %v9662_v40  ;;  %v8531_v60 = vpop.f32.mrb[136].mxu0  ;;  %v8917_v28 = vpop.f32.mrb[200].mxu1 }
 0x923   : > { %v13909_v41 = vpop.eup %13908  ;;  %13928 = vpow2.f32 %v9660_v38  ;;  %v8533_v37 = vpop.f32.mrb[137].mxu0  ;;  %v9462_v38 = vsub.f32 0.0, %v12481_v63  ;;  %v12483_v63 = vadd.f32 %v8917_v28, %v19020_v55 }
 0x924   : > { %v8919_v22 = vpop.f32.mrb[201].mxu1  ;;  %v13911_v5 = vpop.eup %13910  ;;  %v10018_v23 = vadd.f32 1.0, %v13909_v41  ;;  %13930 = vpow2.f32 %v9664_v49  ;;  %v12482_v49 = vadd.f32 %v8913_v18, %v19027_v2  ;;  %v20227_v41 = vld [vmem:[#allocation75_spill] sm:$0xff] }
 0x925   : > { %v8535_v52 = vpop.f32.mrb[138].mxu0  ;;  %v8921_v56 = vpop.f32.mrb[202].mxu1  ;;  %v10020_v26 = vadd.f32 1.0, %v13911_v5  ;;  %13932 = vpow2.f32 %v9670_v24  ;;  %v9461_v5 = vsub.f32 0.0, %v12418_v19 }
 0x926   : > { %v13913_v1 = vpop.eup %13912  ;;  %v19048_v15 = vpop.f32.mrb[139].mxu0  ;;  %13934 = vrcp.f32 %v10018_v23 }
 0x927   : > { %v13915_v17 = vpop.eup %13914  ;;  %v10019_v40 = vadd.f32 1.0, %v13913_v1  ;;  %v19050_v30 = vpop.f32.mrb[203].mxu1  ;;  %13936 = vrcp.f32 %v10020_v26  ;;  %9219 = vmatmul.mubr.bf16.gmra.mrb[244].mxu0 %v20227_v41  ;;  %v12419_v1 = vadd.f32 %v8531_v60, %v19017_v4  ;;  %v12422_v53 = vadd.f32 %v19048_v15, %v19024_v21 }
 0x928   : > { %v13917_v42 = vpop.eup %13916  ;;  %v10021_v3 = vadd.f32 1.0, %v13915_v17  ;;  %9228 = vmatprep.mubr.bf16.mxu0 %v18782_v58 }
 0x929   : > { %v13919_v39 = vpop.eup %13918  ;;  %13938 = vrcp.f32 %v10019_v40  ;;  %v10024_v61 = vadd.f32 1.0, %v13917_v42  ;;  %v9674_v40 = vmul.f32 1.442695, %v9462_v38  ;;  %v9463_v42 = vsub.f32 0.0, %v12482_v49 }
 0x92a   : > { %v13921_v24 = vpop.eup %13920  ;;  %13940 = vrcp.f32 %v10021_v3  ;;  %v10026_v23 = vadd.f32 1.0, %v13919_v39  ;;  %v8541_v17 = vpop.f32.mrb[140].mxu0  ;;  %v9672_v39 = vmul.f32 1.442695, %v9461_v5  ;;  %v9466_v38 = vsub.f32 0.0, %v12419_v1 }
 0x92b   : > { %v13923_v62 = vpop.eup %13922  ;;  %13942 = vrcp.f32 %v10024_v61  ;;  %v10025_v26 = vadd.f32 1.0, %v13921_v24  ;;  %v8927_v18 = vpop.f32.mrb[204].mxu1  ;;  %v12420_v61 = vadd.f32 %v8533_v37, %v19024_v21  ;;  %v12484_v49 = vadd.f32 %v8919_v22, %v19027_v2 }
 0x92c   : > { %v13925_v33 = vpop.eup %13924  ;;  %13944 = vrcp.f32 %v10026_v23  ;;  %v10027_v41 = vadd.f32 1.0, %v13923_v62  ;;  %v19057_v19 = vpop.f32.mrb[141].mxu0  ;;  %v9468_v5 = vsub.f32 0.0, %v12483_v63  ;;  %v12421_v37 = vadd.f32 %v8535_v52, %v19017_v4 }
 0x92d   : > { %v19059_v58 = vpop.f32.mrb[205].mxu1  ;;  %v13927_v3 = vpop.eup %13926  ;;  %13946 = vrcp.f32 %v10025_v26  ;;  %v10030_v60 = vadd.f32 1.0, %v13925_v33  ;;  %v9676_v0 = vmul.f32 1.442695, %v9463_v42  ;;  %v9682_v52 = vmul.f32 1.442695, %v9466_v38 }
 0x92e   : > { %v19062_v24 = vpop.f32.mrb[142].mxu0  ;;  %v19064_v28 = vpop.f32.mrb[206].mxu1  ;;  %13948 = vrcp.f32 %v10027_v41  ;;  %v10032_v62 = vadd.f32 1.0, %v13927_v3  ;;  %v12485_v41 = vadd.f32 %v8921_v56, %v19020_v55  ;;  %v9467_v3 = vsub.f32 0.0, %v12420_v61 }
 0x92f   : > { %v13929_v31 = vpop.eup %13928  ;;  %v19067_v23 = vpop.f32.mrb[143].mxu0  ;;  %13950 = vrcp.f32 %v10030_v60  ;;  %9229 = vmatmul.mubr.bf16.gmra.mrb[248].mxu0 %v18794_v9  ;;  %v9469_v63 = vsub.f32 0.0, %v12484_v49  ;;  %v9686_v56 = vmul.f32 1.442695, %v9468_v5  ;;  %v9472_v9 = vsub.f32 0.0, %v12421_v37 }
 0x930   : > { %v19069_v27 = vpop.f32.mrb[207].mxu1  ;;  %v13931_v44 = vpop.eup %13930  ;;  %v10031_v33 = vadd.f32 1.0, %v13929_v31  ;;  %13952 = vrcp.f32 %v10032_v62  ;;  %9238 = vmatprep.mubr.bf16.mxu0 %v18816_v51  ;;  %v12423_v60 = vadd.f32 %v8541_v17, %v19017_v4  ;;  %v12487_v38 = vadd.f32 %v8927_v18, %v19020_v55 }
 0x931   : > { %v13933_v26 = vpop.eup %13932  ;;  %v10033_v14 = vadd.f32 1.0, %v13931_v44  ;;  %v12486_v44 = vadd.f32 %v19050_v30, %v19027_v2  ;;  %v9684_v37 = vmul.f32 1.442695, %v9467_v3  ;;  %v9473_v17 = vsub.f32 0.0, %v12422_v53 }
 0x932   : > { %v13935_v22 = vpop.eup %13934  ;;  %13954 = vrcp.f32 %v10031_v33  ;;  %v10036_v1 = vadd.f32 1.0, %v13933_v26  ;;  %v19081_v62 = vpop.f32.mrb[144].mxu0  ;;  %v9688_v18 = vmul.f32 1.442695, %v9469_v63  ;;  %v9694_v53 = vmul.f32 1.442695, %v9472_v9 }
 0x933   : > { %v13937_v31 = vpop.eup %13936  ;;  %13956 = vrcp.f32 %v10033_v14  ;;  %v19083_v61 = vpop.f32.mrb[208].mxu1  ;;  %v9474_v14 = vsub.f32 0.0, %v12485_v41  ;;  %v9480_v32 = vsub.f32 0.0, %v12487_v38 }
 0x934   : > { %v13939_v42 = vpop.eup %13938  ;;  %13958 = vrcp.f32 %v10036_v1  ;;  %v19086_v49 = vpop.f32.mrb[145].mxu0  ;;  %v12491_v50 = vadd.f32 %v19083_v61, %v19020_v55 }
 0x935   : > { %v13941_v15 = vpop.eup %13940  ;;  %v11899_v51 = vpack.c.bf16 %v13939_v42, %v13935_v22  ;;  %13960 = vpow2.f32 %v9674_v40  ;;  %v19088_v30 = vpop.f32.mrb[209].mxu1  ;;  %v9475_v40 = vsub.f32 0.0, %v12486_v44  ;;  %v9696_v44 = vmul.f32 1.442695, %v9473_v17 }
 0x936   : > { %v13943_v33 = vpop.eup %13942  ;;  %v11900_v5 = vpack.c.bf16 %v13941_v15, %v13937_v31  ;;  %13962 = vpow2.f32 %v9672_v39  ;;  %v19090_v26 = vpop.f32.mrb[146].mxu0  ;;  %v9478_v39 = vsub.f32 0.0, %v12423_v60  ;;  %v9698_v15 = vmul.f32 1.442695, %v9474_v14 }
 0x937   : > { %v19092_v1 = vpop.f32.mrb[210].mxu1  ;;  %v13945_v8 = vpop.eup %13944  ;;  %10978 = vst [vmem:[%s19096_s25] sm:$0xff] %v11899_v51  ;;  %13964 = vpow2.f32 %v9676_v0  ;;  %9239 = vmatmul.mubr.bf16.gmra.mrb[252].mxu0 %v18819_v10  ;;  %v9700_v9 = vmul.f32 1.442695, %v9475_v40 }
 0x938   : > { %v19099_v41 = vpop.f32.mrb[147].mxu0  ;;  %v13947_v22 = vpop.eup %13946  ;;  %10979 = vst [vmem:[%s19096_s25 + $0x8] sm:$0xff] %v11900_v5  ;;  %13966 = vpow2.f32 %v9682_v52  ;;  %9281 = vmatprep.mubr.bf16.mxu0 %v20171_v45  ;;  %v9706_v51 = vmul.f32 1.442695, %v9478_v39 }
 0x939   : > { %v19102_v3 = vpop.f32.mrb[211].mxu1  ;;  %v13949_v31 = vpop.eup %13948  ;;  %v11902_v42 = vpack.c.bf16 %v13947_v22, %v13943_v33  ;;  %13968 = vpow2.f32 %v9686_v56  ;;  %v12424_v22 = vadd.f32 %v19057_v19, %v19024_v21  ;;  %v12425_v19 = vadd.f32 %v19062_v24, %v19017_v4 }
 0x93a   : > { %v13951_v0 = vpop.eup %13950  ;;  %v11903_v63 = vpack.c.bf16 %v13949_v31, %v13945_v8  ;;  %13970 = vpow2.f32 %v9684_v37  ;;  %v19108_v56 = vpop.f32.mrb[148].mxu0  ;;  %v9710_v8 = vmul.f32 1.442695, %v9480_v32  ;;  %v12489_v24 = vadd.f32 %v19064_v28, %v19020_v55 }
 0x93b   : > { %v13953_v52 = vpop.eup %13952  ;;  %10981 = vst [vmem:[%s19096_s25 + $0x18] sm:$0xff] %v11902_v42  ;;  %13972 = vpow2.f32 %v9688_v18  ;;  %v19110_v14 = vpop.f32.mrb[212].mxu1  ;;  %v12488_v42 = vadd.f32 %v19059_v58, %v19027_v2  ;;  %v12490_v28 = vadd.f32 %v19069_v27, %v19027_v2 }
 0x93c   : > { %v13955_v60 = vpop.eup %13954  ;;  %10982 = vst [vmem:[%s19096_s25 + $0x20] sm:$0xff] %v11903_v63  ;;  %13974 = vpow2.f32 %v9694_v53  ;;  %v19112_v33 = vpop.f32.mrb[149].mxu0 }
 0x93d   : > { %v13957_v10 = vpop.eup %13956  ;;  %v11905_v38 = vpack.c.bf16 %v13955_v60, %v13951_v0  ;;  %13976 = vpow2.f32 %v9698_v15  ;;  %v19114_v45 = vpop.f32.mrb[213].mxu1  ;;  %v9479_v60 = vsub.f32 0.0, %v12424_v22 }
 0x93e   : > { %v19116_v5 = vpop.eup %13958  ;;  %v11906_v37 = vpack.c.bf16 %v13957_v10, %v13953_v52  ;;  %13978 = vpow2.f32 %v9696_v44  ;;  %v19118_v17 = vpop.f32.mrb[150].mxu0  ;;  %v9481_v10 = vsub.f32 0.0, %v12488_v42  ;;  %v9484_v42 = vsub.f32 0.0, %v12425_v19 }
 0x93f   : > { %v19120_v18 = vpop.f32.mrb[214].mxu1  ;;  %v13961_v40 = vpop.eup %13960  ;;  %10984 = vst [vmem:[%s19096_s25 + $0x30] sm:$0xff] %v11905_v38  ;;  %13980 = vpow2.f32 %v9700_v9  ;;  %9282 = vmatmul.mubr.bf16.vlgmr.msra.gmra.mrb[192].mxu0 %v20176_v20  ;;  %v12427_v19 = vadd.f32 %v19081_v62, %v19017_v4  ;;  %v9487_v62 = vsub.f32 0.0, %v12490_v28  ;;  %v12429_v28 = vadd.f32 %v19090_v26, %v19017_v4 }
 0x940   : > { %v19125_v53 = vpop.f32.mrb[151].mxu0  ;;  %v19127_v32 = vpop.f32.mrb[215].mxu1  ;;  %10985 = vst [vmem:[%s19096_s25 + $0x38] sm:$0xff] %v11906_v37  ;;  %v10038_v31 = vadd.f32 1.0, %v13961_v40  ;;  %13982 = vpow2.f32 %v9706_v51  ;;  %9291 = vmatprep.mubr.bf16.mxu0 %v20178_v7  ;;  %v12426_v7 = vadd.f32 %v19067_v23, %v19024_v21  ;;  %v9718_v16 = vmul.f32 1.442695, %v9484_v42 }
 0x941   : > { %v13963_v39 = vpop.eup %13962  ;;  %13984 = vpow2.f32 %v9710_v8 }
 0x942   : > { %v13965_v15 = vpop.eup %13964  ;;  %v10037_v0 = vadd.f32 1.0, %v13963_v39  ;;  %13986 = vrcp.f32 %v10038_v31  ;;  %v19136_v38 = vpop.f32.mrb[152].mxu0 }
 0x943   : > { %v13967_v63 = vpop.eup %13966  ;;  %v10039_v44 = vadd.f32 1.0, %v13965_v15  ;;  %v19138_v8 = vpop.f32.mrb[216].mxu1 }
 0x944   : > { %v13969_v52 = vpop.eup %13968  ;;  %13988 = vrcp.f32 %v10037_v0  ;;  %v10042_v9 = vadd.f32 1.0, %v13967_v63  ;;  %v19144_v40 = vpop.f32.mrb[153].mxu0 }
 0x945   : > { %v13971_v51 = vpop.eup %13970  ;;  %13990 = vrcp.f32 %v10039_v44  ;;  %v10044_v58 = vadd.f32 1.0, %v13969_v52  ;;  %v19146_v22 = vpop.f32.mrb[217].mxu1  ;;  %v9708_v52 = vmul.f32 1.442695, %v9479_v60 }
 0x946   : > { %v13973_v20 = vpop.eup %13972  ;;  %13992 = vrcp.f32 %v10042_v9  ;;  %v10043_v37 = vadd.f32 1.0, %v13971_v51  ;;  %v19148_v15 = vpop.f32.mrb[154].mxu0 }
 0x947   : > { %v13975_v39 = vpop.eup %13974  ;;  %13994 = vrcp.f32 %v10044_v58  ;;  %v10045_v31 = vadd.f32 1.0, %v13973_v20  ;;  %v19150_v0 = vpop.f32.mrb[218].mxu1  ;;  %v9712_v20 = vmul.f32 1.442695, %v9481_v10  ;;  %9292 = vmatmul.mubr.bf16.gmra.mrb[196].mxu0 %v20183_v47  ;;  %v9490_v47 = vsub.f32 0.0, %v12427_v19 }
 0x948   : > { %v13977_v63 = vpop.eup %13976  ;;  %13996 = vrcp.f32 %v10043_v37  ;;  %v10048_v44 = vadd.f32 1.0, %v13975_v39  ;;  %v19154_v23 = vpop.f32.mrb[155].mxu0  ;;  %v9486_v37 = vsub.f32 0.0, %v12489_v24  ;;  %v9485_v39 = vsub.f32 0.0, %v12426_v7  ;;  %9301 = vmatprep.mubr.bf16.mxu0 %v20184_v54 }
 0x949   : > { %v19156_v9 = vpop.f32.mrb[219].mxu1  ;;  %v13979_v51 = vpop.eup %13978  ;;  %13998 = vrcp.f32 %v10045_v31  ;;  %v10050_v58 = vadd.f32 1.0, %v13977_v63  ;;  %v12428_v63 = vadd.f32 %v19086_v49, %v19024_v21 }
 0x94a   : > { %v13981_v36 = vpop.eup %13980  ;;  %14000 = vrcp.f32 %v10048_v44  ;;  %v10049_v43 = vadd.f32 1.0, %v13979_v51  ;;  %v19168_v42 = vpop.f32.mrb[156].mxu0  ;;  %v9722_v54 = vmul.f32 1.442695, %v9486_v37 }
 0x94b   : > { %v13983_v60 = vpop.eup %13982  ;;  %14002 = vrcp.f32 %v10050_v58  ;;  %v10051_v27 = vadd.f32 1.0, %v13981_v36  ;;  %v12492_v36 = vadd.f32 %v19088_v30, %v19027_v2  ;;  %v19170_v44 = vpop.f32.mrb[220].mxu1  ;;  %v9492_v30 = vsub.f32 0.0, %v12491_v50 }
 0x94c   : > { %v13985_v10 = vpop.eup %13984  ;;  %14004 = vrcp.f32 %v10049_v43  ;;  %v10054_v31 = vadd.f32 1.0, %v13983_v60  ;;  %v9720_v43 = vmul.f32 1.442695, %v9485_v39  ;;  %v19174_v51 = vpop.f32.mrb[157].mxu0  ;;  %v12493_v60 = vadd.f32 %v19092_v1, %v19020_v55 }
 0x94d   : > { %v13987_v24 = vpop.eup %13986  ;;  %14006 = vrcp.f32 %v10051_v27  ;;  %v10056_v7 = vadd.f32 1.0, %v13985_v10  ;;  %v19176_v49 = vpop.f32.mrb[221].mxu1  ;;  %v9491_v10 = vsub.f32 0.0, %v12428_v63  ;;  %v9724_v1 = vmul.f32 1.442695, %v9487_v62 }
 0x94e   : > { %v13989_v61 = vpop.eup %13988  ;;  %14008 = vrcp.f32 %v10054_v31  ;;  %20228 = vst [vmem:[#allocation33_spill] sm:$0xff] %v19176_v49  ;;  %v19181_v27 = vpop.f32.mrb[158].mxu0  ;;  %v12430_v31 = vadd.f32 %v19099_v41, %v19024_v21  ;;  %v9734_v41 = vmul.f32 1.442695, %v9492_v30 }
 0x94f   : > { %v13991_v58 = vpop.eup %13990  ;;  %v11908_v19 = vpack.c.bf16 %v13989_v61, %v19116_v5  ;;  %14010 = vrcp.f32 %v10056_v7  ;;  %v19183_v37 = vpop.f32.mrb[222].mxu1  ;;  %v9493_v7 = vsub.f32 0.0, %v12492_v36  ;;  %9302 = vmatmul.mubr.bf16.gmra.mrb[200].mxu0 %v18609_v25  ;;  %v9732_v62 = vmul.f32 1.442695, %v9491_v10 }
 0x950   : > { %20229 = vst [vmem:[#allocation95_spill] sm:$0xff] %v19183_v37  ;;  %v13993_v39 = vpop.eup %13992  ;;  %v11909_v26 = vpack.c.bf16 %v13991_v58, %v13987_v24  ;;  %14012 = vpow2.f32 %v9708_v52  ;;  %v19187_v49 = vpop.f32.mrb[159].mxu0  ;;  %v9730_v37 = vmul.f32 1.442695, %v9490_v47  ;;  %v9496_v24 = vsub.f32 0.0, %v12429_v28  ;;  %9311 = vmatprep.mubr.bf16.mxu0 %v18624_v46 }
 0x951   : > { %v19189_v5 = vpop.f32.mrb[223].mxu1  ;;  %v13995_v50 = vpop.eup %13994  ;;  %10987 = vst [vmem:[%s19096_s25 + $0x48] sm:$0xff] %v11908_v19  ;;  %14014 = vpow2.f32 %v9712_v20  ;;  %v9498_v58 = vsub.f32 0.0, %v12493_v60  ;;  %v9497_v36 = vsub.f32 0.0, %v12430_v31 }
 0x952   : > { %v13997_v61 = vpop.eup %13996  ;;  %10988 = vst [vmem:[%s19096_s25 + $0x50] sm:$0xff] %v11909_v26  ;;  %14016 = vpow2.f32 %v9718_v16  ;;  %v9736_v16 = vmul.f32 1.442695, %v9493_v7  ;;  %v19196_v47 = vpop.f32.mrb[160].mxu0 }
 0x953   : > { %v13999_v52 = vpop.eup %13998  ;;  %v11911_v63 = vpack.c.bf16 %v13997_v61, %v13993_v39  ;;  %14018 = vpow2.f32 %v9722_v54  ;;  %v19198_v25 = vpop.f32.mrb[224].mxu1  ;;  %v9742_v54 = vmul.f32 1.442695, %v9496_v24  ;;  %v9746_v39 = vmul.f32 1.442695, %v9498_v58 }
 0x954   : > { %v14001_v19 = vpop.eup %14000  ;;  %v11912_v20 = vpack.c.bf16 %v13999_v52, %v13995_v50  ;;  %14020 = vpow2.f32 %v9720_v43  ;;  %v19201_v30 = vpop.f32.mrb[161].mxu0 }
 0x955   : > { %v14003_v26 = vpop.eup %14002  ;;  %10990 = vst [vmem:[%s19096_s25 + $0x60] sm:$0xff] %v11911_v63  ;;  %14022 = vpow2.f32 %v9724_v1  ;;  %v19203_v46 = vpop.f32.mrb[225].mxu1  ;;  %v12494_v63 = vadd.f32 %v19102_v3, %v19027_v2 }
 0x956   : > { %v14005_v28 = vpop.eup %14004  ;;  %10991 = vst [vmem:[%s19096_s25 + $0x68] sm:$0xff] %v11912_v20  ;;  %14024 = vpow2.f32 %v9730_v37  ;;  %v19205_v10 = vpop.f32.mrb[162].mxu0  ;;  %v9744_v37 = vmul.f32 1.442695, %v9497_v36  ;;  %v12495_v36 = vadd.f32 %v19110_v14, %v19020_v55 }
 0x957   : > { %v14007_v43 = vpop.eup %14006  ;;  %v11914_v60 = vpack.c.bf16 %v14005_v28, %v14001_v19  ;;  %14026 = vpow2.f32 %v9734_v41  ;;  %v19207_v31 = vpop.f32.mrb[226].mxu1  ;;  %9312 = vmatmul.mubr.bf16.gmra.mrb[204].mxu0 %v18649_v57  ;;  %v12431_v19 = vadd.f32 %v19108_v56, %v19017_v4  ;;  %v12432_v57 = vadd.f32 %v19112_v33, %v19024_v21 }
 0x958   : > { %v19209_v50 = vpop.eup %14008  ;;  %v11915_v1 = vpack.c.bf16 %v14007_v43, %v14003_v26  ;;  %14028 = vpow2.f32 %v9732_v62  ;;  %v19211_v7 = vpop.f32.mrb[163].mxu0  ;;  %9321 = vmatprep.mubr.bf16.mxu0 %v18666_v11  ;;  %v9499_v56 = vsub.f32 0.0, %v12494_v63 }
 0x959   : > { %v19213_v61 = vpop.f32.mrb[227].mxu1  ;;  %v19215_v24 = vpop.eup %14010  ;;  %10993 = vst [vmem:[%s19096_s25 + $0x78] sm:$0xff] %v11914_v60  ;;  %14030 = vpow2.f32 %v9736_v16  ;;  %v9502_v14 = vsub.f32 0.0, %v12431_v19 }
 0x95a   : > { %v14013_v52 = vpop.eup %14012  ;;  %10994 = vst [vmem:[%s19096_s25 + $0x80] sm:$0xff] %v11915_v1  ;;  %14032 = vpow2.f32 %v9742_v54  ;;  %v19229_v3 = vpop.f32.mrb[164].mxu0 }
 0x95b   : > { %v14015_v41 = vpop.eup %14014  ;;  %v10055_v58 = vadd.f32 1.0, %v14013_v52  ;;  %14034 = vpow2.f32 %v9746_v39  ;;  %v19231_v43 = vpop.f32.mrb[228].mxu1 }
 0x95c   : > { %v14017_v20 = vpop.eup %14016  ;;  %v10057_v62 = vadd.f32 1.0, %v14015_v41  ;;  %14036 = vpow2.f32 %v9744_v37  ;;  %v19233_v11 = vpop.f32.mrb[165].mxu0  ;;  %v9504_v41 = vsub.f32 0.0, %v12495_v36 }
 0x95d   : > { %v14019_v26 = vpop.eup %14018  ;;  %14038 = vrcp.f32 %v10055_v58  ;;  %v10060_v16 = vadd.f32 1.0, %v14017_v20  ;;  %20230 = vst [vmem:[#allocation63_spill] sm:$0xff] %v19233_v11  ;;  %v19235_v1 = vpop.f32.mrb[229].mxu1 }
 0x95e   : > { %v14021_v28 = vpop.eup %14020  ;;  %14040 = vrcp.f32 %v10057_v62  ;;  %v10062_v54 = vadd.f32 1.0, %v14019_v26  ;;  %v19237_v37 = vpop.f32.mrb[166].mxu0  ;;  %v9503_v26 = vsub.f32 0.0, %v12432_v57 }
 0x95f   : > { %v14023_v60 = vpop.eup %14022  ;;  %14042 = vrcp.f32 %v10060_v16  ;;  %v10061_v39 = vadd.f32 1.0, %v14021_v28  ;;  %20231 = vst [vmem:[#allocation60_spill] sm:$0xff] %v19237_v37  ;;  %v19239_v58 = vpop.f32.mrb[230].mxu1  ;;  %v9748_v28 = vmul.f32 1.442695, %v9499_v56  ;;  %v12496_v37 = vadd.f32 %v19114_v45, %v19027_v2  ;;  %9322 = vmatmul.mubr.bf16.gmra.mrb[208].mxu0 %v20196_v34 }
 0x960   : > { %v14025_v52 = vpop.eup %14024  ;;  %14044 = vrcp.f32 %v10062_v54  ;;  %v10063_v33 = vadd.f32 1.0, %v14023_v60  ;;  %v19241_v20 = vpop.f32.mrb[167].mxu0  ;;  %v9754_v60 = vmul.f32 1.442695, %v9502_v14  ;;  %9331 = vmatprep.mubr.bf16.mxu0 %v18722_v6  ;;  %v12497_v56 = vadd.f32 %v19120_v18, %v19020_v55 }
 0x961   : > { %v14027_v63 = vpop.eup %14026  ;;  %14046 = vrcp.f32 %v10061_v39  ;;  %v10066_v62 = vadd.f32 1.0, %v14025_v52  ;;  %v19243_v11 = vpop.f32.mrb[231].mxu1  ;;  %v12433_v39 = vadd.f32 %v19118_v17, %v19017_v4  ;;  %v9756_v34 = vmul.f32 1.442695, %v9503_v26 }
 0x962   : > { %v14029_v16 = vpop.eup %14028  ;;  %14048 = vrcp.f32 %v10063_v33  ;;  %v10068_v19 = vadd.f32 1.0, %v14027_v63  ;;  %v9758_v33 = vmul.f32 1.442695, %v9504_v41  ;;  %v19255_v14 = vpop.f32.mrb[168].mxu0  ;;  %v12498_v41 = vadd.f32 %v19127_v32, %v19027_v2 }
 0x963   : > { %v14031_v36 = vpop.eup %14030  ;;  %14050 = vrcp.f32 %v10066_v62  ;;  %v10067_v54 = vadd.f32 1.0, %v14029_v16  ;;  %v12434_v62 = vadd.f32 %v19125_v53, %v19024_v21  ;;  %v19257_v16 = vpop.f32.mrb[232].mxu1  ;;  %v12435_v53 = vadd.f32 %v19136_v38, %v19017_v4 }
 0x964   : > { %v14033_v57 = vpop.eup %14032  ;;  %14052 = vrcp.f32 %v10068_v19  ;;  %v10069_v52 = vadd.f32 1.0, %v14031_v36  ;;  %20232 = vst [vmem:[#allocation62_spill] sm:$0xff] %v19257_v16  ;;  %v9505_v19 = vsub.f32 0.0, %v12496_v37  ;;  %v19261_v36 = vpop.f32.mrb[169].mxu0  ;;  %v9510_v32 = vsub.f32 0.0, %v12497_v56 }
 0x965   : > { %v14035_v63 = vpop.eup %14034  ;;  %14054 = vrcp.f32 %v10067_v54  ;;  %v10072_v45 = vadd.f32 1.0, %v14033_v57  ;;  %20233 = vst [vmem:[#allocation53_spill] sm:$0xff] %v19261_v36  ;;  %v19263_v18 = vpop.f32.mrb[233].mxu1  ;;  %v9508_v57 = vsub.f32 0.0, %v12433_v39  ;;  %v9511_v56 = vsub.f32 0.0, %v12498_v41 }
 0x966   : > { %v14037_v17 = vpop.eup %14036  ;;  %14056 = vrcp.f32 %v10069_v52  ;;  %v10074_v6 = vadd.f32 1.0, %v14035_v63  ;;  %20234 = vst [vmem:[#allocation67_spill] sm:$0xff] %v19263_v18  ;;  %v19267_v16 = vpop.f32.mrb[170].mxu0  ;;  %v12499_v18 = vadd.f32 %v19138_v8, %v19020_v55  ;;  %v12500_v8 = vadd.f32 %v19146_v22, %v19027_v2 }
 0x967   : > { %v14039_v54 = vpop.eup %14038  ;;  %14058 = vrcp.f32 %v10072_v45  ;;  %v10073_v26 = vadd.f32 1.0, %v14037_v17  ;;  %20235 = vst [vmem:[#allocation82_spill] sm:$0xff] %v19267_v16  ;;  %v19269_v52 = vpop.f32.mrb[234].mxu1  ;;  %v9509_v16 = vsub.f32 0.0, %v12434_v62  ;;  %9332 = vmatmul.mubr.bf16.gmra.mrb[212].mxu0 %v18724_v35 }
 0x968   : > { %20236 = vst [vmem:[#allocation42_spill] sm:$0xff] %v19269_v52  ;;  %v14041_v37 = vpop.eup %14040  ;;  %v11917_v63 = vpack.c.bf16 %v14039_v54, %v19209_v50  ;;  %14060 = vrcp.f32 %v10074_v6  ;;  %v19274_v45 = vpop.f32.mrb[171].mxu0  ;;  %v12436_v52 = vadd.f32 %v19144_v40, %v19024_v21  ;;  %v9760_v50 = vmul.f32 1.442695, %v9505_v19  ;;  %9341 = vmatprep.mubr.bf16.mxu0 %v18757_v13 }
 0x969   : > { %v19276_v39 = vpop.f32.mrb[235].mxu1  ;;  %v14043_v17 = vpop.eup %14042  ;;  %v11918_v38 = vpack.c.bf16 %v14041_v37, %v19215_v24  ;;  %14062 = vrcp.f32 %v10073_v26  ;;  %v9766_v54 = vmul.f32 1.442695, %v9508_v57  ;;  %v9514_v24 = vsub.f32 0.0, %v12435_v53 }
 0x96a   : > { %v14045_v36 = vpop.eup %14044  ;;  %10996 = vst [vmem:[%s19096_s25 + $0x90] sm:$0xff] %v11917_v63  ;;  %14064 = vpow2.f32 %v9748_v28  ;;  %v9770_v26 = vmul.f32 1.442695, %v9510_v32  ;;  %v9516_v28 = vsub.f32 0.0, %v12499_v18  ;;  %v9768_v22 = vmul.f32 1.442695, %v9509_v16 }
 0x96b   : > { %v14047_v6 = vpop.eup %14046  ;;  %10997 = vst [vmem:[%s19096_s25 + $0x98] sm:$0xff] %v11918_v38  ;;  %14066 = vpow2.f32 %v9754_v60  ;;  %v9515_v37 = vsub.f32 0.0, %v12436_v52  ;;  %v19287_v35 = vpop.f32.mrb[172].mxu0  ;;  %v9772_v57 = vmul.f32 1.442695, %v9511_v56  ;;  %v9517_v13 = vsub.f32 0.0, %v12500_v8 }
 0x96c   : > { %v14049_v62 = vpop.eup %14048  ;;  %v11920_v40 = vpack.c.bf16 %v14047_v6, %v14043_v17  ;;  %14068 = vpow2.f32 %v9758_v33  ;;  %v19289_v63 = vpop.f32.mrb[236].mxu1  ;;  %v9782_v17 = vmul.f32 1.442695, %v9516_v28  ;;  %v12437_v28 = vadd.f32 %v19148_v15, %v19017_v4 }
 0x96d   : > { %v14051_v19 = vpop.eup %14050  ;;  %v11921_v41 = vpack.c.bf16 %v14049_v62, %v14045_v36  ;;  %14070 = vpow2.f32 %v9756_v34  ;;  %v19292_v53 = vpop.f32.mrb[173].mxu0  ;;  %v9778_v34 = vmul.f32 1.442695, %v9514_v24  ;;  %v9780_v6 = vmul.f32 1.442695, %v9515_v37 }
 0x96e   : > { %v14053_v60 = vpop.eup %14052  ;;  %10999 = vst [vmem:[%s19096_s25 + $0xa8] sm:$0xff] %v11920_v40  ;;  %14072 = vpow2.f32 %v9760_v50  ;;  %v19294_v33 = vpop.f32.mrb[237].mxu1 }
 0x96f   : > { %v14055_v18 = vpop.eup %14054  ;;  %11000 = vst [vmem:[%s19096_s25 + $0xb0] sm:$0xff] %v11921_v41  ;;  %14074 = vpow2.f32 %v9766_v54  ;;  %v19297_v16 = vpop.f32.mrb[174].mxu0  ;;  %v9784_v54 = vmul.f32 1.442695, %v9517_v13  ;;  %9342 = vmatmul.mubr.bf16.gmra.mrb[216].mxu0 %v18776_v12 }
 0x970   : > { %v19299_v36 = vpop.f32.mrb[238].mxu1  ;;  %v14057_v52 = vpop.eup %14056  ;;  %v11923_v32 = vpack.c.bf16 %v14055_v18, %v14051_v19  ;;  %14076 = vpow2.f32 %v9770_v26  ;;  %9351 = vmatprep.mubr.bf16.mxu0 %v18809_v59 }
 0x971   : > { %v19301_v38 = vpop.f32.mrb[175].mxu0  ;;  %v19303_v50 = vpop.f32.mrb[239].mxu1  ;;  %v11924_v8 = vpack.c.bf16 %v14057_v52, %v14053_v60  ;;  %14078 = vpow2.f32 %v9768_v22  ;;  %v12501_v22 = vadd.f32 %v19150_v0, %v19020_v55 }
 0x972   : > { %v14059_v56 = vpop.eup %14058  ;;  %11002 = vst [vmem:[%s19096_s25 + $0xc0] sm:$0xff] %v11923_v32  ;;  %14080 = vpow2.f32 %v9772_v57  ;;  %v19315_v37 = vpop.f32.mrb[176].mxu0  ;;  %v9520_v32 = vsub.f32 0.0, %v12437_v28 }
 0x973   : > { %v19305_v62 = vpop.eup %14060  ;;  %11003 = vst [vmem:[%s19096_s25 + $0xc8] sm:$0xff] %v11924_v8  ;;  %14082 = vpow2.f32 %v9778_v34  ;;  %v19317_v12 = vpop.f32.mrb[240].mxu1 }
 0x974   : > { %v14063_v24 = vpop.eup %14062  ;;  %14084 = vpow2.f32 %v9782_v17  ;;  %v19320_v59 = vpop.f32.mrb[177].mxu0  ;;  %v12438_v17 = vadd.f32 %v19154_v23, %v19024_v21 }
 0x975   : > { %v14065_v40 = vpop.eup %14064  ;;  %v11926_v26 = vpack.c.bf16 %v14063_v24, %v14059_v56  ;;  %14086 = vpow2.f32 %v9780_v6  ;;  %v19322_v15 = vpop.f32.mrb[241].mxu1  ;;  %v9522_v24 = vsub.f32 0.0, %v12501_v22 }
 0x976   : > { %v14067_v19 = vpop.eup %14066  ;;  %v10075_v41 = vadd.f32 1.0, %v14065_v40  ;;  %14088 = vpow2.f32 %v9784_v54  ;;  %v19324_v34 = vpop.f32.mrb[178].mxu0 }
 0x977   : > { %v14069_v60 = vpop.eup %14068  ;;  %11005 = vst [vmem:[%s19096_s25 + $0xd8] sm:$0xff] %v11926_v26  ;;  %v10078_v57 = vadd.f32 1.0, %v14067_v19  ;;  %v19328_v56 = vpop.f32.mrb[242].mxu1  ;;  %9352 = vmatmul.mubr.bf16.gmra.mrb[220].mxu0 %v18813_v48  ;;  %v12503_v48 = vadd.f32 %v19170_v44, %v19020_v55 }
 0x978   : > { %v14071_v13 = vpop.eup %14070  ;;  %14090 = vrcp.f32 %v10075_v41  ;;  %v10080_v18 = vadd.f32 1.0, %v14069_v60  ;;  %v19330_v8 = vpop.f32.mrb[179].mxu0  ;;  %v12502_v41 = vadd.f32 %v19156_v9, %v19027_v2  ;;  %v12439_v60 = vadd.f32 %v19168_v42, %v19017_v4  ;;  %9361 = vmatprep.mubr.bf16.mxu0 %v18837_v29 }
 0x979   : > { %v14073_v52 = vpop.eup %14072  ;;  %14092 = vrcp.f32 %v10078_v57  ;;  %v10079_v0 = vadd.f32 1.0, %v14071_v13  ;;  %v19332_v40 = vpop.f32.mrb[243].mxu1  ;;  %v9790_v13 = vmul.f32 1.442695, %v9520_v32 }
 0x97a   : > { %v14075_v6 = vpop.eup %14074  ;;  %14094 = vrcp.f32 %v10080_v18  ;;  %v10081_v54 = vadd.f32 1.0, %v14073_v52  ;;  %20237 = vst [vmem:[#allocation66_spill] sm:$0xff] %v19332_v40  ;;  %v9521_v18 = vsub.f32 0.0, %v12438_v17  ;;  %v19342_v9 = vpop.f32.mrb[180].mxu0  ;;  %v9523_v29 = vsub.f32 0.0, %v12502_v41 }
 0x97b   : > { %v14077_v26 = vpop.eup %14076  ;;  %14096 = vrcp.f32 %v10079_v0  ;;  %v10084_v19 = vadd.f32 1.0, %v14075_v6  ;;  %v9794_v6 = vmul.f32 1.442695, %v9522_v24  ;;  %20238 = vst [vmem:[#allocation58_spill] sm:$0xff] %v19342_v9  ;;  %v19348_v32 = vpop.f32.mrb[181].mxu0  ;;  %v9526_v24 = vsub.f32 0.0, %v12439_v60 }
 0x97c   : > { %v14079_v28 = vpop.eup %14078  ;;  %14098 = vrcp.f32 %v10081_v54  ;;  %v10086_v23 = vadd.f32 1.0, %v14077_v26  ;;  %v19344_v54 = vpop.f32.mrb[244].mxu1  ;;  %20240 = vst [vmem:[#allocation47_spill] sm:$0xff] %v19348_v32  ;;  %v20242_v32 = vld [vmem:[#allocation95_spill] sm:$0xff] }
 0x97d   : > { %v14081_v57 = vpop.eup %14080  ;;  %14100 = vrcp.f32 %v10084_v19  ;;  %v10085_v22 = vadd.f32 1.0, %v14079_v28  ;;  %20239 = vst [vmem:[#allocation39_spill] sm:$0xff] %v19344_v54  ;;  %v12440_v19 = vadd.f32 %v19174_v51, %v19024_v21  ;;  %v9792_v54 = vmul.f32 1.442695, %v9521_v18  ;;  %v20243_v18 = vld [vmem:[#allocation52_spill] sm:$0xff] }
 0x97e   : > { %v14083_v52 = vpop.eup %14082  ;;  %14102 = vrcp.f32 %v10086_v23  ;;  %v10087_v0 = vadd.f32 1.0, %v14081_v57  ;;  %v20241_v23 = vld [vmem:[#allocation33_spill] sm:$0xff]  ;;  %v9528_v51 = vsub.f32 0.0, %v12503_v48  ;;  %v12506_v48 = vadd.f32 %v19189_v5, %v19027_v2 }
 0x97f   : > { %v14085_v26 = vpop.eup %14084  ;;  %14104 = vrcp.f32 %v10085_v22  ;;  %v10090_v42 = vadd.f32 1.0, %v14083_v52  ;;  %v12504_v44 = vadd.f32 %v20241_v23, %v19027_v2  ;;  %v12441_v22 = vadd.f32 %v19181_v27, %v19017_v4  ;;  %9362 = vmatmul.mubr.bf16.gmra.mrb[224].mxu0 %v20243_v18 }
 0x980   : > { %v14087_v17 = vpop.eup %14086  ;;  %14106 = vrcp.f32 %v10087_v0  ;;  %v10092_v28 = vadd.f32 1.0, %v14085_v26  ;;  %v12505_v0 = vadd.f32 %v20242_v32, %v19020_v55  ;;  %v9527_v23 = vsub.f32 0.0, %v12440_v19 }
 0x981   : > { %v14089_v57 = vpop.eup %14088  ;;  %14108 = vrcp.f32 %v10090_v42  ;;  %v10091_v9 = vadd.f32 1.0, %v14087_v17  ;;  %v12442_v42 = vadd.f32 %v19187_v49, %v19024_v21  ;;  %v9796_v27 = vmul.f32 1.442695, %v9523_v29 }
 0x982   : > { %v14091_v41 = vpop.eup %14090  ;;  %14110 = vrcp.f32 %v10092_v28  ;;  %v10093_v52 = vadd.f32 1.0, %v14089_v57  ;;  %v9529_v28 = vsub.f32 0.0, %v12504_v44  ;;  %v20244_v57 = vld [vmem:[#allocation80_spill] sm:$0xff]  ;;  %v12443_v49 = vadd.f32 %v19196_v47, %v19017_v4 }
 0x983   : > { %v14093_v26 = vpop.eup %14092  ;;  %v11927_v60 = vpack.c.bf16 %v14091_v41, %v19305_v62  ;;  %14112 = vrcp.f32 %v10091_v9  ;;  %9371 = vmatprep.mubr.bf16.mxu0 %v20244_v57  ;;  %v9802_v62 = vmul.f32 1.442695, %v9526_v24  ;;  %v9532_v9 = vsub.f32 0.0, %v12441_v22 }
 0x984   : > { %v14095_v17 = vpop.eup %14094  ;;  %14114 = vrcp.f32 %v10093_v52  ;;  %v9806_v29 = vmul.f32 1.442695, %v9528_v51  ;;  %v9534_v44 = vsub.f32 0.0, %v12505_v0  ;;  %v9804_v5 = vmul.f32 1.442695, %v9527_v23  ;;  %v19370_v0 = vpop.f32.mrb[182].mxu0 }
 0x985   : > { %v14097_v32 = vpop.eup %14096  ;;  %11006 = vst [vmem:[%s19096_s25 + $0xe0] sm:$0xff] %v11927_v60  ;;  %14116 = vpow2.f32 %v9790_v13  ;;  %v9533_v57 = vsub.f32 0.0, %v12442_v42  ;;  %v9808_v13 = vmul.f32 1.442695, %v9529_v28  ;;  %v9535_v24 = vsub.f32 0.0, %v12506_v48  ;;  %v19374_v28 = vpop.f32.mrb[183].mxu0 }
 0x986   : > { %v14099_v19 = vpop.eup %14098  ;;  %v11929_v41 = vpack.c.bf16 %v14097_v32, %v14093_v26  ;;  %14118 = vpow2.f32 %v9794_v6  ;;  %v9814_v47 = vmul.f32 1.442695, %v9532_v9  ;;  %v9538_v60 = vsub.f32 0.0, %v12443_v49  ;;  %v19368_v26 = vpop.f32.mrb[245].mxu1  ;;  %v20245_v48 = vld [vmem:[#allocation51_spill] sm:$0xff] }
 0x987   : > { %v14101_v52 = vpop.eup %14100  ;;  %v11930_v18 = vpack.c.bf16 %v14099_v19, %v14095_v17  ;;  %14120 = vpow2.f32 %v9792_v54  ;;  %v9818_v54 = vmul.f32 1.442695, %v9534_v44  ;;  %v19372_v23 = vpop.f32.mrb[246].mxu1  ;;  %9372 = vmatmul.mubr.bf16.gmra.mrb[228].mxu0 %v20245_v48  ;;  %v20246_v9 = vld [vmem:[#allocation79_spill] sm:$0xff] }
 0x988   : > { %v14103_v40 = vpop.eup %14102  ;;  %11008 = vst [vmem:[%s19096_s25 + $0xf0] sm:$0xff] %v11929_v41  ;;  %14122 = vpow2.f32 %v9796_v27  ;;  %v9816_v27 = vmul.f32 1.442695, %v9533_v57  ;;  %9381 = vmatprep.mubr.bf16.mxu0 %v20246_v9  ;;  %v9826_v19 = vmul.f32 1.442695, %v9538_v60  ;;  %v19380_v41 = vpop.f32.mrb[247].mxu1  ;;  %v12507_v57 = vadd.f32 %v19198_v25, %v19020_v55 }
 0x989   : > { %v14105_v22 = vpop.eup %14104  ;;  %11009 = vst [vmem:[%s19096_s25 + $0xf8] sm:$0xff] %v11930_v18  ;;  %14124 = vpow2.f32 %v9802_v62  ;;  %v9820_v62 = vmul.f32 1.442695, %v9535_v24  ;;  %v19382_v44 = vpop.f32.mrb[184].mxu0  ;;  %v20247_v9 = vld [vmem:[#allocation84_spill] sm:$0xff] }
 0x98a   : > { %v14107_v6 = vpop.eup %14106  ;;  %v11932_v51 = vpack.c.bf16 %v14105_v22, %v14101_v52  ;;  %14126 = vpow2.f32 %v9806_v29  ;;  %v19384_v52 = vpop.f32.mrb[248].mxu1 }
 0x98b   : > { %v14109_v42 = vpop.eup %14108  ;;  %v11933_v17 = vpack.c.bf16 %v14107_v6, %v14103_v40  ;;  %14128 = vpow2.f32 %v9804_v5  ;;  %v12444_v6 = vadd.f32 %v19201_v30, %v19024_v21 }
 0x98c   : > { %v14111_v32 = vpop.eup %14110  ;;  %11011 = vst [vmem:[%s19096_s25 + $0x108] sm:$0xff] %v11932_v51  ;;  %14130 = vpow2.f32 %v9808_v13  ;;  %v19388_v13 = vpop.f32.mrb[185].mxu0 }
 0x98d   : > { %v14113_v49 = vpop.eup %14112  ;;  %11012 = vst [vmem:[%s19096_s25 + $0x110] sm:$0xff] %v11933_v17  ;;  %14132 = vpow2.f32 %v9814_v47  ;;  %v19394_v51 = vpop.f32.mrb[249].mxu1 }
 0x98e   : > { %v14115_v40 = vpop.eup %14114  ;;  %v11935_v29 = vpack.c.bf16 %v14113_v49, %v14109_v42  ;;  %14134 = vpow2.f32 %v9818_v54  ;;  %v19396_v17 = vpop.f32.mrb[186].mxu0 }
 0x98f   : > { %v14117_v18 = vpop.eup %14116  ;;  %v11936_v5 = vpack.c.bf16 %v14115_v40, %v14111_v32  ;;  %14136 = vpow2.f32 %v9816_v27  ;;  %v19398_v25 = vpop.f32.mrb[250].mxu1  ;;  %v9540_v32 = vsub.f32 0.0, %v12507_v57  ;;  %9382 = vmatmul.mubr.bf16.gmra.mrb[232].mxu0 %v20247_v9 }
 0x990   : > { %v14119_v24 = vpop.eup %14118  ;;  %11014 = vst [vmem:[%s19096_s25 + $0x120] sm:$0xff] %v11935_v29  ;;  %v10096_v22 = vadd.f32 1.0, %v14117_v18  ;;  %14138 = vpow2.f32 %v9820_v62  ;;  %v12508_v62 = vadd.f32 %v19203_v46, %v19027_v2  ;;  %v19405_v40 = vpop.f32.mrb[187].mxu0  ;;  %v20249_v29 = vld [vmem:[#allocation55_spill] sm:$0xff]  ;;  %v12509_v46 = vadd.f32 %v19207_v31, %v19020_v55 }
 0x991   : > { %v14121_v47 = vpop.eup %14120  ;;  %11015 = vst [vmem:[%s19096_s25 + $0x128] sm:$0xff] %v11936_v5  ;;  %v10098_v60 = vadd.f32 1.0, %v14119_v24  ;;  %14140 = vpow2.f32 %v9826_v19  ;;  %v12445_v19 = vadd.f32 %v19205_v10, %v19017_v4  ;;  %20248 = vst [vmem:[#allocation57_spill] sm:$0xff] %v19405_v40  ;;  %9391 = vmatprep.mubr.bf16.mxu0 %v20249_v29  ;;  %v9539_v24 = vsub.f32 0.0, %v12444_v6 }
 0x992   : > { %v14123_v54 = vpop.eup %14122  ;;  %14142 = vrcp.f32 %v10096_v22  ;;  %v10097_v42 = vadd.f32 1.0, %v14121_v47  ;;  %v12510_v29 = vadd.f32 %v19213_v61, %v19027_v2 }
 0x993   : > { %v14125_v27 = vpop.eup %14124  ;;  %14144 = vrcp.f32 %v10098_v60  ;;  %v10099_v48 = vadd.f32 1.0, %v14123_v54  ;;  %v9830_v54 = vmul.f32 1.442695, %v9540_v32  ;;  %v9544_v9 = vsub.f32 0.0, %v12445_v19 }
 0x994   : > { %v14127_v49 = vpop.eup %14126  ;;  %14146 = vrcp.f32 %v10097_v42  ;;  %v10102_v30 = vadd.f32 1.0, %v14125_v27  ;;  %v9541_v42 = vsub.f32 0.0, %v12508_v62  ;;  %v12447_v32 = vadd.f32 %v19229_v3, %v19017_v4 }
 0x995   : > { %v14129_v18 = vpop.eup %14128  ;;  %14148 = vrcp.f32 %v10099_v48  ;;  %v10104_v5 = vadd.f32 1.0, %v14127_v49  ;;  %v12446_v48 = vadd.f32 %v19211_v7, %v19024_v21  ;;  %v12511_v7 = vadd.f32 %v19231_v43, %v19020_v55 }
 0x996   : > { %v14131_v57 = vpop.eup %14130  ;;  %14150 = vrcp.f32 %v10102_v30  ;;  %v10103_v22 = vadd.f32 1.0, %v14129_v18  ;;  %v9828_v30 = vmul.f32 1.442695, %v9539_v24  ;;  %v9838_v3 = vmul.f32 1.442695, %v9544_v9 }
 0x997   : > { %v14133_v47 = vpop.eup %14132  ;;  %14152 = vrcp.f32 %v10104_v5  ;;  %v10105_v60 = vadd.f32 1.0, %v14131_v57  ;;  %v9546_v5 = vsub.f32 0.0, %v12509_v46  ;;  %v9832_v57 = vmul.f32 1.442695, %v9541_v42  ;;  %v20252_v46 = vld [vmem:[#allocation86_spill] sm:$0xff] }
 0x998   : > { %v14135_v10 = vpop.eup %14134  ;;  %14154 = vrcp.f32 %v10103_v22  ;;  %v10108_v27 = vadd.f32 1.0, %v14133_v47  ;;  %v20250_v22 = vld [vmem:[#allocation83_spill] sm:$0xff]  ;;  %v9545_v61 = vsub.f32 0.0, %v12446_v48  ;;  %v12512_v42 = vadd.f32 %v19235_v1, %v19027_v2 }
 0x999   : > { %v14137_v49 = vpop.eup %14136  ;;  %14156 = vrcp.f32 %v10105_v60  ;;  %v10110_v6 = vadd.f32 1.0, %v14135_v10  ;;  %9392 = vmatmul.mubr.bf16.gmra.mrb[236].mxu0 %v20250_v22  ;;  %v20251_v60 = vld [vmem:[#allocation63_spill] sm:$0xff]  ;;  %v9842_v43 = vmul.f32 1.442695, %v9546_v5  ;;  %v12513_v9 = vadd.f32 %v19239_v58, %v19020_v55 }
 0x99a   : > { %v14139_v31 = vpop.eup %14138  ;;  %14158 = vrcp.f32 %v10108_v27  ;;  %v10109_v18 = vadd.f32 1.0, %v14137_v49  ;;  %v12448_v10 = vadd.f32 %v20251_v60, %v19024_v21  ;;  %9401 = vmatprep.mubr.bf16.mxu0 %v20252_v46  ;;  %v9547_v49 = vsub.f32 0.0, %v12510_v29 }
 0x99b   : > { %v14141_v62 = vpop.eup %14140  ;;  %14160 = vrcp.f32 %v10110_v6  ;;  %v10111_v19 = vadd.f32 1.0, %v14139_v31  ;;  %v9550_v31 = vsub.f32 0.0, %v12447_v32 }
 0x99c   : > { %v14143_v24 = vpop.eup %14142  ;;  %14162 = vrcp.f32 %v10109_v18  ;;  %v10114_v47 = vadd.f32 1.0, %v14141_v62  ;;  %v20253_v18 = vld [vmem:[#allocation60_spill] sm:$0xff]  ;;  %v19426_v62 = vpop.f32.mrb[251].mxu1  ;;  %v9551_v46 = vsub.f32 0.0, %v12448_v10  ;;  %v9844_v32 = vmul.f32 1.442695, %v9547_v49 }
 0x99d   : > { %v14145_v27 = vpop.eup %14144  ;;  %14164 = vrcp.f32 %v10111_v19  ;;  %v12449_v48 = vadd.f32 %v20253_v18, %v19017_v4  ;;  %20254 = vst [vmem:[#allocation81_spill] sm:$0xff] %v19426_v62  ;;  %v9552_v19 = vsub.f32 0.0, %v12511_v7  ;;  %v9553_v18 = vsub.f32 0.0, %v12512_v42 }
 0x99e   : > { %v14147_v6 = vpop.eup %14146  ;;  %14166 = vrcp.f32 %v10114_v47  ;;  %v9840_v47 = vmul.f32 1.442695, %v9545_v61  ;;  %v9850_v62 = vmul.f32 1.442695, %v9550_v31  ;;  %v20255_v61 = vld [vmem:[#allocation90_spill] sm:$0xff]  ;;  %v20256_v31 = vld [vmem:[#allocation56_spill] sm:$0xff] }
 0x99f   : > { %v14149_v22 = vpop.eup %14148  ;;  %v11938_v60 = vpack.c.bf16 %v14147_v6, %v14143_v24  ;;  %14168 = vpow2.f32 %v9830_v54  ;;  %v9556_v24 = vsub.f32 0.0, %v12449_v48  ;;  %v9854_v58 = vmul.f32 1.442695, %v9552_v19 }
 0x9a0   : > { %v14151_v29 = vpop.eup %14150  ;;  %v11939_v1 = vpack.c.bf16 %v14149_v22, %v14145_v27  ;;  %14170 = vpow2.f32 %v9828_v30  ;;  %v9558_v6 = vsub.f32 0.0, %v12513_v9  ;;  %v19432_v27 = vpop.f32.mrb[188].mxu0  ;;  %v9852_v49 = vmul.f32 1.442695, %v9551_v46 }
 0x9a1   : > { %v14153_v5 = vpop.eup %14152  ;;  %11017 = vst [vmem:[%s19096_s25 + $0x138] sm:$0xff] %v11938_v60  ;;  %14172 = vpow2.f32 %v9832_v57  ;;  %v19434_v30 = vpop.f32.mrb[252].mxu1  ;;  %9402 = vmatmul.mubr.bf16.gmra.mrb[240].mxu0 %v20255_v61  ;;  %v9862_v19 = vmul.f32 1.442695, %v9556_v24 }
 0x9a2   : > { %v14155_v40 = vpop.eup %14154  ;;  %11018 = vst [vmem:[%s19096_s25 + $0x140] sm:$0xff] %v11939_v1  ;;  %14174 = vpow2.f32 %v9838_v3  ;;  %v19437_v3 = vpop.f32.mrb[189].mxu0  ;;  %9411 = vmatprep.mubr.bf16.mxu0 %v20256_v31  ;;  %v9866_v46 = vmul.f32 1.442695, %v9558_v6  ;;  %v20258_v6 = vld [vmem:[#allocation89_spill] sm:$0xff]  ;;  %v20259_v31 = vld [vmem:[#allocation64_spill] sm:$0xff] }
 0x9a3   : > { %v14157_v54 = vpop.eup %14156  ;;  %v11941_v7 = vpack.c.bf16 %v14155_v40, %v14151_v29  ;;  %14176 = vpow2.f32 %v9842_v43  ;;  %v19439_v42 = vpop.f32.mrb[253].mxu1  ;;  %v9856_v43 = vmul.f32 1.442695, %v9553_v18 }
 0x9a4   : > { %v14159_v57 = vpop.eup %14158  ;;  %v11942_v10 = vpack.c.bf16 %v14157_v54, %v14153_v5  ;;  %14178 = vpow2.f32 %v9840_v47  ;;  %v19443_v48 = vpop.f32.mrb[190].mxu0 }
 0x9a5   : > { %v14161_v40 = vpop.eup %14160  ;;  %11020 = vst [vmem:[%s19096_s25 + $0x150] sm:$0xff] %v11941_v7  ;;  %14180 = vpow2.f32 %v9844_v32  ;;  %v19445_v22 = vpop.f32.mrb[254].mxu1  ;;  %v12514_v7 = vadd.f32 %v19243_v11, %v19027_v2 }
 0x9a6   : > { %v14163_v60 = vpop.eup %14162  ;;  %11021 = vst [vmem:[%s19096_s25 + $0x158] sm:$0xff] %v11942_v10  ;;  %14182 = vpow2.f32 %v9850_v62  ;;  %v19448_v9 = vpop.f32.mrb[191].mxu0  ;;  %v12450_v62 = vadd.f32 %v19241_v20, %v19024_v21 }
 0x9a7   : > { %v19450_v29 = vpop.f32.mrb[255].mxu1  ;;  %v14165_v1 = vpop.eup %14164  ;;  %v11944_v47 = vpack.c.bf16 %v14163_v60, %v14159_v57  ;;  %14184 = vpow2.f32 %v9854_v58 }
 0x9a8   : > { %20257 = vst [vmem:[#allocation59_spill] sm:$0xff] %v19450_v29  ;;  %v19452_v5 = vpop.eup %14166  ;;  %v11945_v32 = vpack.c.bf16 %v14165_v1, %v14161_v40  ;;  %14186 = vpow2.f32 %v9852_v49  ;;  %v12451_v49 = vadd.f32 %v19255_v14, %v19017_v4  ;;  %v20260_v1 = vld [vmem:[#allocation62_spill] sm:$0xff] }
 0x9a9   : > { %v14169_v18 = vpop.eup %14168  ;;  %11023 = vst [vmem:[%s19096_s25 + $0x168] sm:$0xff] %v11944_v47  ;;  %14188 = vpow2.f32 %v9856_v43  ;;  %9412 = vmatmul.mubr.bf16.gmra.mrb[244].mxu0 %v20258_v6  ;;  %v9557_v43 = vsub.f32 0.0, %v12450_v62  ;;  %v12515_v47 = vadd.f32 %v20260_v1, %v19020_v55 }
 0x9aa   : > { %v14171_v54 = vpop.eup %14170  ;;  %11024 = vst [vmem:[%s19096_s25 + $0x170] sm:$0xff] %v11945_v32  ;;  %v10116_v24 = vadd.f32 1.0, %v14169_v18  ;;  %14190 = vpow2.f32 %v9862_v19  ;;  %9421 = vmatprep.mubr.bf16.mxu0 %v20259_v31  ;;  %v9559_v19 = vsub.f32 0.0, %v12514_v7  ;;  %v20261_v18 = vld [vmem:[#allocation53_spill] sm:$0xff] }
 0x9ab   : > { %v14173_v61 = vpop.eup %14172  ;;  %v10115_v58 = vadd.f32 1.0, %v14171_v54  ;;  %14192 = vpow2.f32 %v9866_v46  ;;  %v12452_v54 = vadd.f32 %v20261_v18, %v19024_v21  ;;  %v9864_v6 = vmul.f32 1.442695, %v9557_v43 }
 0x9ac   : > { %v14175_v57 = vpop.eup %14174  ;;  %14194 = vrcp.f32 %v10116_v24  ;;  %v10117_v10 = vadd.f32 1.0, %v14173_v61  ;;  %v9562_v61 = vsub.f32 0.0, %v12451_v49  ;;  %v20264_v49 = vld [vmem:[#allocation50_spill] sm:$0xff] }
 0x9ad   : > { %v14177_v20 = vpop.eup %14176  ;;  %14196 = vrcp.f32 %v10115_v58  ;;  %v10120_v40 = vadd.f32 1.0, %v14175_v57  ;;  %v20262_v57 = vld [vmem:[#allocation67_spill] sm:$0xff]  ;;  %v9563_v18 = vsub.f32 0.0, %v12452_v54  ;;  %v12454_v54 = vadd.f32 %v19274_v45, %v19024_v21 }
 0x9ae   : > { %v14179_v60 = vpop.eup %14178  ;;  %14198 = vrcp.f32 %v10117_v10  ;;  %v10122_v11 = vadd.f32 1.0, %v14177_v20  ;;  %v12516_v7 = vadd.f32 %v20262_v57, %v19027_v2  ;;  %v9868_v20 = vmul.f32 1.442695, %v9559_v19  ;;  %v20265_v57 = vld [vmem:[#allocation42_spill] sm:$0xff] }
 0x9af   : > { %v14181_v46 = vpop.eup %14180  ;;  %14200 = vrcp.f32 %v10120_v40  ;;  %v10121_v32 = vadd.f32 1.0, %v14179_v60  ;;  %v9564_v40 = vsub.f32 0.0, %v12515_v47  ;;  %v12517_v29 = vadd.f32 %v20265_v57, %v19020_v55 }
 0x9b0   : > { %v14183_v14 = vpop.eup %14182  ;;  %14202 = vrcp.f32 %v10122_v11  ;;  %v10123_v24 = vadd.f32 1.0, %v14181_v46  ;;  %v20263_v11 = vld [vmem:[#allocation82_spill] sm:$0xff] }
 0x9b1   : > { %v14185_v58 = vpop.eup %14184  ;;  %14204 = vrcp.f32 %v10121_v32  ;;  %v10126_v62 = vadd.f32 1.0, %v14183_v14  ;;  %v12453_v46 = vadd.f32 %v20263_v11, %v19017_v4  ;;  %9422 = vmatmul.mubr.bf16.gmra.mrb[248].mxu0 %v20264_v49  ;;  %v9874_v14 = vmul.f32 1.442695, %v9562_v61 }
 0x9b2   : > { %v14187_v10 = vpop.eup %14186  ;;  %14206 = vrcp.f32 %v10123_v24  ;;  %v10128_v31 = vadd.f32 1.0, %v14185_v58  ;;  %v20266_v24 = vld [vmem:[#allocation91_spill] sm:$0xff]  ;;  %v9565_v58 = vsub.f32 0.0, %v12516_v7  ;;  %v9878_v11 = vmul.f32 1.442695, %v9564_v40 }
 0x9b3   : > { %v14189_v60 = vpop.eup %14188  ;;  %14208 = vrcp.f32 %v10126_v62  ;;  %v10127_v1 = vadd.f32 1.0, %v14187_v10  ;;  %9431 = vmatprep.mubr.bf16.mxu0 %v20266_v24  ;;  %v9568_v49 = vsub.f32 0.0, %v12453_v46  ;;  %v9570_v45 = vsub.f32 0.0, %v12517_v29 }
 0x9b4   : > { %v14191_v32 = vpop.eup %14190  ;;  %14210 = vrcp.f32 %v10128_v31  ;;  %v10129_v43 = vadd.f32 1.0, %v14189_v60  ;;  %v12518_v31 = vadd.f32 %v19276_v39, %v19027_v2  ;;  %v9876_v60 = vmul.f32 1.442695, %v9563_v18 }
 0x9b5   : > { %v14193_v19 = vpop.eup %14192  ;;  %14212 = vrcp.f32 %v10127_v1  ;;  %v10132_v47 = vadd.f32 1.0, %v14191_v32  ;;  %v12455_v1 = vadd.f32 %v19287_v35, %v19017_v4  ;;  %v12519_v40 = vadd.f32 %v19289_v63, %v19020_v55 }
 0x9b6   : > { %v14195_v62 = vpop.eup %14194  ;;  %14214 = vrcp.f32 %v10129_v43  ;;  %v10134_v10 = vadd.f32 1.0, %v14193_v19  ;;  %v9569_v39 = vsub.f32 0.0, %v12454_v54  ;;  %v12456_v18 = vadd.f32 %v19292_v53, %v19024_v21 }
 0x9b7   : > { %v14197_v61 = vpop.eup %14196  ;;  %14216 = vrcp.f32 %v10132_v47  ;;  %v9880_v35 = vmul.f32 1.442695, %v9565_v58  ;;  %v9571_v24 = vsub.f32 0.0, %v12518_v31  ;;  %v9886_v29 = vmul.f32 1.442695, %v9568_v49  ;;  %v20267_v47 = vld [vmem:[#allocation49_spill] sm:$0xff] }
 0x9b8   : > { %v14199_v32 = vpop.eup %14198  ;;  %v11947_v7 = vpack.c.bf16 %v14197_v61, %v19452_v5  ;;  %14218 = vrcp.f32 %v10134_v10  ;;  %v9574_v5 = vsub.f32 0.0, %v12455_v1  ;;  %v9890_v54 = vmul.f32 1.442695, %v9570_v45 }
 0x9b9   : > { %v14201_v43 = vpop.eup %14200  ;;  %v11948_v57 = vpack.c.bf16 %v14199_v32, %v14195_v62  ;;  %14220 = vpow2.f32 %v9864_v6  ;;  %9432 = vmatmul.mubr.bf16.gmra.mrb[252].mxu0 %v20267_v47  ;;  %v9576_v62 = vsub.f32 0.0, %v12519_v40  ;;  %v9575_v58 = vsub.f32 0.0, %v12456_v18 }
 0x9ba   : > { %v14203_v46 = vpop.eup %14202  ;;  %11026 = vst [vmem:[%s19096_s25 + $0x180] sm:$0xff] %v11947_v7  ;;  %14222 = vpow2.f32 %v9868_v20  ;;  %v9888_v20 = vmul.f32 1.442695, %v9569_v39  ;;  %v9898_v49 = vmul.f32 1.442695, %v9574_v5  ;;  %v12458_v47 = vadd.f32 %v19301_v38, %v19024_v21 }
 0x9bb   : > { %v14205_v19 = vpop.eup %14204  ;;  %11027 = vst [vmem:[%s19096_s25 + $0x188] sm:$0xff] %v11948_v57  ;;  %14224 = vpow2.f32 %v9874_v14  ;;  %v9892_v14 = vmul.f32 1.442695, %v9571_v24  ;;  %v12520_v57 = vadd.f32 %v19294_v33, %v19027_v2 }
 0x9bc   : > { %v14207_v63 = vpop.eup %14206  ;;  %v11950_v6 = vpack.c.bf16 %v14205_v19, %v14201_v43  ;;  %14226 = vpow2.f32 %v9878_v11  ;;  %v9902_v11 = vmul.f32 1.442695, %v9576_v62  ;;  %v12521_v19 = vadd.f32 %v19299_v36, %v19020_v55 }
 0x9bd   : > { %v14209_v53 = vpop.eup %14208  ;;  %v11951_v10 = vpack.c.bf16 %v14207_v63, %v14203_v46  ;;  %14228 = vpow2.f32 %v9876_v60  ;;  %v9900_v60 = vmul.f32 1.442695, %v9575_v58  ;;  %v12457_v46 = vadd.f32 %v19297_v16, %v19017_v4 }
 0x9be   : > { %v14211_v31 = vpop.eup %14210  ;;  %11029 = vst [vmem:[%s19096_s25 + $0x198] sm:$0xff] %v11950_v6  ;;  %14230 = vpow2.f32 %v9880_v35  ;;  %v9577_v6 = vsub.f32 0.0, %v12520_v57 }
 0x9bf   : > { %v14213_v61 = vpop.eup %14212  ;;  %11030 = vst [vmem:[%s19096_s25 + $0x1a0] sm:$0xff] %v11951_v10  ;;  %14232 = vpow2.f32 %v9886_v29  ;;  %v9580_v16 = vsub.f32 0.0, %v12457_v46 }
 0x9c0   : > { %v14215_v1 = vpop.eup %14214  ;;  %v11953_v32 = vpack.c.bf16 %v14213_v61, %v14209_v53  ;;  %14234 = vpow2.f32 %v9890_v54  ;;  %v9904_v38 = vmul.f32 1.442695, %v9577_v6 }
 0x9c1   : > { %v19492_v7 = vpop.eup %14216  ;;  %v11954_v45 = vpack.c.bf16 %v14215_v1, %v14211_v31  ;;  %14236 = vpow2.f32 %v9888_v20  ;;  %v9582_v20 = vsub.f32 0.0, %v12521_v19  ;;  %v9581_v31 = vsub.f32 0.0, %v12458_v47 }
 0x9c2   : > { %v19494_v40 = vpop.eup %14218  ;;  %11032 = vst [vmem:[%s19096_s25 + $0x1b0] sm:$0xff] %v11953_v32  ;;  %14238 = vpow2.f32 %v9892_v14 }
 0x9c3   : > { %v14221_v43 = vpop.eup %14220  ;;  %11033 = vst [vmem:[%s19096_s25 + $0x1b8] sm:$0xff] %v11954_v45  ;;  %14240 = vpow2.f32 %v9898_v49  ;;  %v12522_v49 = vadd.f32 %v19303_v50, %v19027_v2  ;;  %v12459_v45 = vadd.f32 %v19315_v37, %v19017_v4  ;;  %v9914_v57 = vmul.f32 1.442695, %v9582_v20 }
 0x9c4   : > { %v14223_v39 = vpop.eup %14222  ;;  %v10133_v18 = vadd.f32 1.0, %v14221_v43  ;;  %14242 = vpow2.f32 %v9902_v11  ;;  %v9910_v11 = vmul.f32 1.442695, %v9580_v16  ;;  %v12460_v50 = vadd.f32 %v19320_v59, %v19024_v21 }
 0x9c5   : > { %v14225_v35 = vpop.eup %14224  ;;  %v10135_v24 = vadd.f32 1.0, %v14223_v39  ;;  %14244 = vpow2.f32 %v9900_v60  ;;  %v12523_v39 = vadd.f32 %v19317_v12, %v19020_v55  ;;  %v12524_v37 = vadd.f32 %v19322_v15, %v19027_v2 }
 0x9c6   : > { %v14227_v29 = vpop.eup %14226  ;;  %14246 = vrcp.f32 %v10133_v18  ;;  %v10138_v5 = vadd.f32 1.0, %v14225_v35  ;;  %v9912_v35 = vmul.f32 1.442695, %v9581_v31  ;;  %v12461_v12 = vadd.f32 %v19324_v34, %v19017_v4 }
 0x9c7   : > { %v14229_v63 = vpop.eup %14228  ;;  %14248 = vrcp.f32 %v10135_v24  ;;  %v10140_v33 = vadd.f32 1.0, %v14227_v29  ;;  %v9583_v29 = vsub.f32 0.0, %v12522_v49  ;;  %v9588_v59 = vsub.f32 0.0, %v12523_v39 }
 0x9c8   : > { %v14231_v54 = vpop.eup %14230  ;;  %14250 = vrcp.f32 %v10138_v5  ;;  %v10139_v62 = vadd.f32 1.0, %v14229_v63  ;;  %v9586_v63 = vsub.f32 0.0, %v12459_v45  ;;  %v9587_v16 = vsub.f32 0.0, %v12460_v50 }
 0x9c9   : > { %v14233_v53 = vpop.eup %14232  ;;  %14252 = vrcp.f32 %v10140_v33  ;;  %v10141_v10 = vadd.f32 1.0, %v14231_v54  ;;  %v12525_v54 = vadd.f32 %v19328_v56, %v19020_v55  ;;  %v9916_v34 = vmul.f32 1.442695, %v9583_v29 }
 0x9ca   : > { %v14235_v58 = vpop.eup %14234  ;;  %14254 = vrcp.f32 %v10139_v62  ;;  %v10144_v36 = vadd.f32 1.0, %v14233_v53  ;;  %v12462_v53 = vadd.f32 %v19330_v8, %v19024_v21  ;;  %v9589_v20 = vsub.f32 0.0, %v12524_v37 }
 0x9cb   : > { %v14237_v14 = vpop.eup %14236  ;;  %14256 = vrcp.f32 %v10141_v10  ;;  %v10146_v61 = vadd.f32 1.0, %v14235_v58  ;;  %v9922_v56 = vmul.f32 1.442695, %v9586_v63  ;;  %v9592_v31 = vsub.f32 0.0, %v12461_v12  ;;  %v20269_v63 = vld [vmem:[#allocation58_spill] sm:$0xff] }
 0x9cc   : > { %v14239_v1 = vpop.eup %14238  ;;  %14258 = vrcp.f32 %v10144_v36  ;;  %v10145_v32 = vadd.f32 1.0, %v14237_v14  ;;  %v9594_v8 = vsub.f32 0.0, %v12525_v54  ;;  %v12463_v12 = vadd.f32 %v20269_v63, %v19017_v4 }
 0x9cd   : > { %v14241_v60 = vpop.eup %14240  ;;  %14260 = vrcp.f32 %v10146_v61  ;;  %v10147_v43 = vadd.f32 1.0, %v14239_v1  ;;  %v9926_v61 = vmul.f32 1.442695, %v9588_v59  ;;  %v9934_v39 = vmul.f32 1.442695, %v9592_v31  ;;  %v20270_v59 = vld [vmem:[#allocation39_spill] sm:$0xff] }
 0x9ce   : > { %v14243_v18 = vpop.eup %14242  ;;  %14262 = vrcp.f32 %v10145_v32  ;;  %v10150_v46 = vadd.f32 1.0, %v14241_v60  ;;  %v9593_v32 = vsub.f32 0.0, %v12462_v53  ;;  %v9928_v60 = vmul.f32 1.442695, %v9589_v20 }
 0x9cf   : > { %v14245_v24 = vpop.eup %14244  ;;  %14264 = vrcp.f32 %v10147_v43  ;;  %v10152_v19 = vadd.f32 1.0, %v14243_v18  ;;  %v12527_v54 = vadd.f32 %v20270_v59, %v19020_v55 }
 0x9d0   : > { %v14247_v5 = vpop.eup %14246  ;;  %14266 = vrcp.f32 %v10150_v46  ;;  %v10151_v47 = vadd.f32 1.0, %v14245_v24  ;;  %v9938_v46 = vmul.f32 1.442695, %v9594_v8 }
 0x9d1   : > { %v14249_v33 = vpop.eup %14248  ;;  %v11956_v6 = vpack.c.bf16 %v14247_v5, %v19492_v7  ;;  %14268 = vrcp.f32 %v10152_v19  ;;  %v20268_v7 = vld [vmem:[#allocation66_spill] sm:$0xff]  ;;  %v9600_v31 = vsub.f32 0.0, %v12527_v54  ;;  %v12468_v54 = vadd.f32 %v19388_v13, %v19024_v21 }
 0x9d2   : > { %v14251_v62 = vpop.eup %14250  ;;  %v11957_v15 = vpack.c.bf16 %v14249_v33, %v19494_v40  ;;  %14270 = vrcp.f32 %v10151_v47  ;;  %v12526_v58 = vadd.f32 %v20268_v7, %v19027_v2 }
 0x9d3   : > { %v14253_v10 = vpop.eup %14252  ;;  %11035 = vst [vmem:[%s19096_s25 + $0x1c8] sm:$0xff] %v11956_v6  ;;  %14272 = vpow2.f32 %v9904_v38  ;;  %v9924_v38 = vmul.f32 1.442695, %v9587_v16  ;;  %v20271_v16 = vld [vmem:[#allocation47_spill] sm:$0xff] }
 0x9d4   : > { %v14255_v36 = vpop.eup %14254  ;;  %11036 = vst [vmem:[%s19096_s25 + $0x1d0] sm:$0xff] %v11957_v15  ;;  %14274 = vpow2.f32 %v9910_v11  ;;  %v9595_v43 = vsub.f32 0.0, %v12526_v58  ;;  %v12464_v53 = vadd.f32 %v20271_v16, %v19024_v21  ;;  %v9598_v58 = vsub.f32 0.0, %v12463_v12 }
 0x9d5   : > { %v14257_v40 = vpop.eup %14256  ;;  %v11959_v14 = vpack.c.bf16 %v14255_v36, %v14251_v62  ;;  %14276 = vpow2.f32 %v9914_v57  ;;  %v12532_v16 = vadd.f32 %v19394_v51, %v19027_v2  ;;  %v9611_v51 = vsub.f32 0.0, %v12468_v54 }
 0x9d6   : > { %v14259_v49 = vpop.eup %14258  ;;  %v11960_v1 = vpack.c.bf16 %v14257_v40, %v14253_v10  ;;  %14278 = vpow2.f32 %v9912_v35  ;;  %v9936_v35 = vmul.f32 1.442695, %v9593_v32  ;;  %v9940_v29 = vmul.f32 1.442695, %v9595_v43 }
 0x9d7   : > { %v14261_v45 = vpop.eup %14260  ;;  %11038 = vst [vmem:[%s19096_s25 + $0x1e0] sm:$0xff] %v11959_v14  ;;  %14280 = vpow2.f32 %v9916_v34 }
 0x9d8   : > { %v14263_v11 = vpop.eup %14262  ;;  %11039 = vst [vmem:[%s19096_s25 + $0x1e8] sm:$0xff] %v11960_v1  ;;  %14282 = vpow2.f32 %v9922_v56  ;;  %v12528_v1 = vadd.f32 %v19368_v26, %v19027_v2  ;;  %v12466_v26 = vadd.f32 %v19374_v28, %v19024_v21  ;;  %v12531_v28 = vadd.f32 %v19384_v52, %v19020_v55 }
 0x9d9   : > { %v14265_v18 = vpop.eup %14264  ;;  %v11962_v57 = vpack.c.bf16 %v14263_v11, %v14259_v49  ;;  %14284 = vpow2.f32 %v9926_v61  ;;  %v9599_v61 = vsub.f32 0.0, %v12464_v53 }
 0x9da   : > { %v14267_v50 = vpop.eup %14266  ;;  %v11963_v24 = vpack.c.bf16 %v14265_v18, %v14261_v45  ;;  %14286 = vpow2.f32 %v9924_v38  ;;  %v9946_v45 = vmul.f32 1.442695, %v9598_v58  ;;  %v12529_v18 = vadd.f32 %v19372_v23, %v19020_v55 }
 0x9db   : > { %v19530_v19 = vpop.eup %14268  ;;  %11041 = vst [vmem:[%s19096_s25 + $0x1f8] sm:$0xff] %v11962_v57  ;;  %14288 = vpow2.f32 %v9928_v60  ;;  %v12465_v60 = vadd.f32 %v19370_v0, %v19017_v4  ;;  %v12530_v0 = vadd.f32 %v19380_v41, %v19027_v2  ;;  %v12467_v23 = vadd.f32 %v19382_v44, %v19017_v4 }
 0x9dc   : > { %v14271_v37 = vpop.eup %14270  ;;  %11042 = vst [vmem:[%s19096_s25 + $0x200] sm:$0xff] %v11963_v24  ;;  %14290 = vpow2.f32 %v9934_v39  ;;  %v9950_v39 = vmul.f32 1.442695, %v9600_v31  ;;  %v9605_v41 = vsub.f32 0.0, %v12466_v26 }
 0x9dd   : > { %v14273_v5 = vpop.eup %14272  ;;  %v11965_v47 = vpack.c.bf16 %v14271_v37, %v14267_v50  ;;  %14292 = vpow2.f32 %v9938_v46  ;;  %v9948_v50 = vmul.f32 1.442695, %v9599_v61  ;;  %v9607_v44 = vsub.f32 0.0, %v12530_v0 }
 0x9de   : > { %v14275_v33 = vpop.eup %14274  ;;  %v10153_v6 = vadd.f32 1.0, %v14273_v5  ;;  %14294 = vpow2.f32 %v9936_v35 }
 0x9df   : > { %v14277_v62 = vpop.eup %14276  ;;  %11044 = vst [vmem:[%s19096_s25 + $0x210] sm:$0xff] %v11965_v47  ;;  %v10156_v15 = vadd.f32 1.0, %v14275_v33  ;;  %14296 = vpow2.f32 %v9940_v29  ;;  %v9601_v29 = vsub.f32 0.0, %v12528_v1  ;;  %v9604_v47 = vsub.f32 0.0, %v12465_v60 }
 0x9e0   : > { %v14279_v10 = vpop.eup %14278  ;;  %14298 = vrcp.f32 %v10153_v6  ;;  %v10158_v34 = vadd.f32 1.0, %v14277_v62  ;;  %v9606_v33 = vsub.f32 0.0, %v12529_v18  ;;  %v9972_v60 = vmul.f32 1.442695, %v9611_v51 }
 0x9e1   : > { %v14281_v20 = vpop.eup %14280  ;;  %14300 = vrcp.f32 %v10156_v15  ;;  %v10157_v7 = vadd.f32 1.0, %v14279_v10  ;;  %v9952_v15 = vmul.f32 1.442695, %v9601_v29  ;;  %v9958_v52 = vmul.f32 1.442695, %v9604_v47 }
 0x9e2   : > { %v14283_v36 = vpop.eup %14282  ;;  %14302 = vrcp.f32 %v10158_v34  ;;  %v10159_v56 = vadd.f32 1.0, %v14281_v20  ;;  %v9610_v10 = vsub.f32 0.0, %v12467_v23  ;;  %v9962_v13 = vmul.f32 1.442695, %v9606_v33 }
 0x9e3   : > { %v14285_v40 = vpop.eup %14284  ;;  %14304 = vrcp.f32 %v10157_v7  ;;  %v10162_v14 = vadd.f32 1.0, %v14283_v36  ;;  %v9612_v7 = vsub.f32 0.0, %v12531_v28 }
 0x9e4   : > { %v14287_v8 = vpop.eup %14286  ;;  %14306 = vrcp.f32 %v10159_v56  ;;  %v10164_v49 = vadd.f32 1.0, %v14285_v40  ;;  %v9960_v56 = vmul.f32 1.442695, %v9605_v41  ;;  %v9964_v40 = vmul.f32 1.442695, %v9607_v44 }
 0x9e5   : > { %v14289_v38 = vpop.eup %14288  ;;  %14308 = vrcp.f32 %v10162_v14  ;;  %v10163_v32 = vadd.f32 1.0, %v14287_v8  ;;  %v9613_v14 = vsub.f32 0.0, %v12532_v16  ;;  %v12471_v16 = vadd.f32 %v19432_v27, %v19017_v4 }
 0x9e6   : > { %v14291_v43 = vpop.eup %14290  ;;  %14310 = vrcp.f32 %v10164_v49  ;;  %v10165_v11 = vadd.f32 1.0, %v14289_v38  ;;  %v9974_v38 = vmul.f32 1.442695, %v9612_v7  ;;  %v12472_v7 = vadd.f32 %v19437_v3, %v19024_v21 }
 0x9e7   : > { %v14293_v57 = vpop.eup %14292  ;;  %14312 = vrcp.f32 %v10163_v32  ;;  %v10168_v46 = vadd.f32 1.0, %v14291_v43  ;;  %v12536_v27 = vadd.f32 %v19439_v42, %v19027_v2  ;;  %v12537_v3 = vadd.f32 %v19445_v22, %v19020_v55 }
 0x9e8   : > { %v14295_v24 = vpop.eup %14294  ;;  %14314 = vrcp.f32 %v10165_v11  ;;  %v10170_v35 = vadd.f32 1.0, %v14293_v57  ;;  %v9976_v11 = vmul.f32 1.442695, %v9613_v14  ;;  %v12474_v42 = vadd.f32 %v19448_v9, %v19024_v21 }
 0x9e9   : > { %v14297_v37 = vpop.eup %14296  ;;  %14316 = vrcp.f32 %v10168_v46  ;;  %v10169_v5 = vadd.f32 1.0, %v14295_v24 }
 0x9ea   : > { %v14299_v63 = vpop.eup %14298  ;;  %14318 = vrcp.f32 %v10170_v35  ;;  %v10171_v12 = vadd.f32 1.0, %v14297_v37  ;;  %v12533_v37 = vadd.f32 %v19398_v25, %v19020_v55  ;;  %v9629_v9 = vsub.f32 0.0, %v12474_v42 }
 0x9eb   : > { %v14301_v6 = vpop.eup %14300  ;;  %v11966_v59 = vpack.c.bf16 %v14299_v63, %v19530_v19  ;;  %14320 = vrcp.f32 %v10169_v5  ;;  %v12469_v19 = vadd.f32 %v19396_v17, %v19017_v4  ;;  %v9970_v17 = vmul.f32 1.442695, %v9610_v10 }
 0x9ec   : > { %v14303_v62 = vpop.eup %14302  ;;  %14322 = vrcp.f32 %v10171_v12  ;;  %v20272_v12 = vld [vmem:[#allocation57_spill] sm:$0xff] }
 0x9ed   : > { %v14305_v53 = vpop.eup %14304  ;;  %11045 = vst [vmem:[%s19096_s25 + $0x218] sm:$0xff] %v11966_v59  ;;  %14324 = vpow2.f32 %v9946_v45  ;;  %v9616_v8 = vsub.f32 0.0, %v12469_v19  ;;  %v12470_v33 = vadd.f32 %v20272_v12, %v19024_v21  ;;  %v20273_v59 = vld [vmem:[#allocation81_spill] sm:$0xff]  ;;  %v12535_v19 = vadd.f32 %v19434_v30, %v19020_v55 }
 0x9ee   : > { %v14307_v34 = vpop.eup %14306  ;;  %v11968_v20 = vpack.c.bf16 %v14305_v53, %v14301_v6  ;;  %14326 = vpow2.f32 %v9950_v39  ;;  %v12534_v41 = vadd.f32 %v20273_v59, %v19027_v2  ;;  %v12473_v30 = vadd.f32 %v19443_v48, %v19017_v4  ;;  %v20274_v4 = vld [vmem:[#allocation59_spill] sm:$0xff] }
 0x9ef   : > { %v14309_v58 = vpop.eup %14308  ;;  %v11969_v36 = vpack.c.bf16 %v14307_v34, %v14303_v62  ;;  %14328 = vpow2.f32 %v9948_v50  ;;  %v9982_v18 = vmul.f32 1.442695, %v9616_v8  ;;  %v9617_v10 = vsub.f32 0.0, %v12470_v33 }
 0x9f0   : > { %v14311_v31 = vpop.eup %14310  ;;  %11047 = vst [vmem:[%s19096_s25 + $0x228] sm:$0xff] %v11968_v20  ;;  %14330 = vpow2.f32 %v9952_v15  ;;  %v9618_v15 = vsub.f32 0.0, %v12533_v37  ;;  %v12538_v48 = vadd.f32 %v20274_v4, %v19027_v2 }
 0x9f1   : > { %v14313_v61 = vpop.eup %14312  ;;  %11048 = vst [vmem:[%s19096_s25 + $0x230] sm:$0xff] %v11969_v36  ;;  %14332 = vpow2.f32 %v9958_v52 }
 0x9f2   : > { %v14315_v49 = vpop.eup %14314  ;;  %v11971_v1 = vpack.c.bf16 %v14313_v61, %v14309_v58  ;;  %14334 = vpow2.f32 %v9962_v13  ;;  %v9619_v13 = vsub.f32 0.0, %v12534_v41  ;;  %v9631_v2 = vsub.f32 0.0, %v12538_v48 }
 0x9f3   : > { %v14317_v32 = vpop.eup %14316  ;;  %v11972_v45 = vpack.c.bf16 %v14315_v49, %v14311_v31  ;;  %14336 = vpow2.f32 %v9960_v56  ;;  %v9986_v56 = vmul.f32 1.442695, %v9618_v15  ;;  %v9984_v49 = vmul.f32 1.442695, %v9617_v10 }
 0x9f4   : > { %v14319_v43 = vpop.eup %14318  ;;  %11050 = vst [vmem:[%s19096_s25 + $0x240] sm:$0xff] %v11971_v1  ;;  %14338 = vpow2.f32 %v9964_v40  ;;  %v9622_v40 = vsub.f32 0.0, %v12471_v16  ;;  %v9623_v1 = vsub.f32 0.0, %v12472_v7  ;;  %v10012_v12 = vmul.f32 1.442695, %v9631_v2 }
 0x9f5   : > { %v14321_v39 = vpop.eup %14320  ;;  %11051 = vst [vmem:[%s19096_s25 + $0x248] sm:$0xff] %v11972_v45  ;;  %14340 = vpow2.f32 %v9970_v17  ;;  %v9624_v17 = vsub.f32 0.0, %v12535_v19  ;;  %v9625_v45 = vsub.f32 0.0, %v12536_v27  ;;  %v14678_v16 = vld [vmem:[#allocation20] sm:$0x3f] }
 0x9f6   : > { %v14323_v57 = vpop.eup %14322  ;;  %v11974_v46 = vpack.c.bf16 %v14321_v39, %v14317_v32  ;;  %14342 = vpow2.f32 %v9974_v38  ;;  %v9988_v32 = vmul.f32 1.442695, %v9619_v13  ;;  %v9996_v21 = vmul.f32 1.442695, %v9623_v1 }
 0x9f7   : > { %v14325_v50 = vpop.eup %14324  ;;  %v11975_v26 = vpack.c.bf16 %v14323_v57, %v14319_v43  ;;  %14344 = vpow2.f32 %v9972_v60  ;;  %v9994_v43 = vmul.f32 1.442695, %v9622_v40  ;;  %v9998_v22 = vmul.f32 1.442695, %v9624_v17 }
 0x9f8   : > { %v14327_v24 = vpop.eup %14326  ;;  %11053 = vst [vmem:[%s19096_s25 + $0x258] sm:$0xff] %v11974_v46  ;;  %v10174_v35 = vadd.f32 1.0, %v14325_v50  ;;  %14346 = vpow2.f32 %v9976_v11  ;;  %v9628_v11 = vsub.f32 0.0, %v12473_v30 }
 0x9f9   : > { %v14329_v29 = vpop.eup %14328  ;;  %11054 = vst [vmem:[%s19096_s25 + $0x260] sm:$0xff] %v11975_v26  ;;  %v10176_v0 = vadd.f32 1.0, %v14327_v24  ;;  %14348 = vpow2.f32 %v9982_v18  ;;  %v9630_v18 = vsub.f32 0.0, %v12537_v3  ;;  %v10000_v26 = vmul.f32 1.442695, %v9625_v45 }
 0x9fa   : > { %v14331_v5 = vpop.eup %14330  ;;  %14350 = vrcp.f32 %v10174_v35  ;;  %v10175_v47 = vadd.f32 1.0, %v14329_v29  ;;  %v10006_v35 = vmul.f32 1.442695, %v9628_v11 }
 0x9fb   : > { %v14333_v23 = vpop.eup %14332  ;;  %14352 = vrcp.f32 %v10176_v0  ;;  %v10177_v63 = vadd.f32 1.0, %v14331_v5  ;;  %v10010_v37 = vmul.f32 1.442695, %v9630_v18 }
 0x9fc   : > { %v14335_v28 = vpop.eup %14334  ;;  %14354 = vrcp.f32 %v10175_v47  ;;  %v10180_v6 = vadd.f32 1.0, %v14333_v23  ;;  %v10008_v23 = vmul.f32 1.442695, %v9629_v9 }
 0x9fd   : > { %v14337_v54 = vpop.eup %14336  ;;  %14356 = vrcp.f32 %v10177_v63  ;;  %v10182_v62 = vadd.f32 1.0, %v14335_v28 }
 0x9fe   : > { %v14339_v25 = vpop.eup %14338  ;;  %14358 = vrcp.f32 %v10180_v6  ;;  %v10181_v44 = vadd.f32 1.0, %v14337_v54 }
 0x9ff   : > { %v14341_v53 = vpop.eup %14340  ;;  %14360 = vrcp.f32 %v10182_v62  ;;  %v10183_v52 = vadd.f32 1.0, %v14339_v25 }
 0xa00   : > { %v14343_v34 = vpop.eup %14342  ;;  %14362 = vrcp.f32 %v10181_v44  ;;  %v10186_v20 = vadd.f32 1.0, %v14341_v53  ;;  %v20275_v53 = vld [vmem:[#allocation93_spill] sm:$0xff] }
 0xa01   : > { %v14345_v58 = vpop.eup %14344  ;;  %14364 = vrcp.f32 %v10183_v52  ;;  %v10188_v36 = vadd.f32 1.0, %v14343_v34  ;;  %v20276_v52 = vsub.s32 4, %v20275_v53 }
 0xa02   : > { %v14347_v51 = vpop.eup %14346  ;;  %14366 = vrcp.f32 %v10186_v20  ;;  %v10187_v31 = vadd.f32 1.0, %v14345_v58  ;;  %v20277_v20 = vsub.s32 5, %v20275_v53 }
 0xa03   : > { %v14349_v14 = vpop.eup %14348  ;;  %14368 = vrcp.f32 %v10188_v36  ;;  %v10189_v61 = vadd.f32 1.0, %v14347_v51  ;;  %v19599_v10 = vrot.slane %v14678_v16, %v20276_v52 }
 0xa04   : > { %v14351_v8 = vpop.eup %14350  ;;  %14370 = vrcp.f32 %v10187_v31  ;;  %v10192_v59 = vadd.f32 1.0, %v14349_v14  ;;  %v19603_v13 = vrot.slane %v14678_v16, %v20277_v20 }
 0xa05   : > { %v14353_v38 = vpop.eup %14352  ;;  %14372 = vrcp.f32 %v10189_v61 }
 0xa06   : > { %v14355_v60 = vpop.eup %14354  ;;  %14374 = vpow2.f32 %v9986_v56 }
 0xa07   : > { %v14357_v39 = vpop.eup %14356  ;;  %v11977_v55 = vpack.c.bf16 %v14355_v60, %v14351_v8  ;;  %14376 = vpow2.f32 %v9984_v49 }
 0xa08   : > { %v14359_v57 = vpop.eup %14358  ;;  %v11978_v46 = vpack.c.bf16 %v14357_v39, %v14353_v38  ;;  %14378 = vpow2.f32 %v9988_v32 }
 0xa09   : > { %v14361_v50 = vpop.eup %14360  ;;  %11056 = vst [vmem:[%s19096_s25 + $0x270] sm:$0xff] %v11977_v55  ;;  %14380 = vpow2.f32 %v9994_v43 }
 0xa0a   : > { %v14363_v24 = vpop.eup %14362  ;;  %11057 = vst [vmem:[%s19096_s25 + $0x278] sm:$0xff] %v11978_v46  ;;  %14382 = vpow2.f32 %v9998_v22 }
 0xa0b   : > { %v14365_v29 = vpop.eup %14364  ;;  %v11980_v0 = vpack.c.bf16 %v14363_v24, %v14359_v57  ;;  %14384 = vpow2.f32 %v9996_v21 }
 0xa0c   : > { %v14367_v5 = vpop.eup %14366  ;;  %v11981_v47 = vpack.c.bf16 %v14365_v29, %v14361_v50  ;;  %14386 = vpow2.f32 %v10000_v26 }
 0xa0d   : > { %v14369_v63 = vpop.eup %14368  ;;  %11059 = vst [vmem:[%s19096_s25 + $0x288] sm:$0xff] %v11980_v0  ;;  %14388 = vpow2.f32 %v10006_v35 }
 0xa0e   : > { %v14371_v33 = vpop.eup %14370  ;;  %11060 = vst [vmem:[%s19096_s25 + $0x290] sm:$0xff] %v11981_v47  ;;  %14390 = vpow2.f32 %v10010_v37 }
 0xa0f   : > { %v14373_v28 = vpop.eup %14372  ;;  %v11983_v6 = vpack.c.bf16 %v14371_v33, %v14367_v5  ;;  %14392 = vpow2.f32 %v10008_v23 }
 0xa10   : > { %v11984_v41 = vpack.c.bf16 %v14373_v28, %v14369_v63  ;;  %v14375_v54 = vpop.eup %14374  ;;  %14394 = vpow2.f32 %v10012_v12 }
 0xa11   : > { %11062 = vst [vmem:[%s19096_s25 + $0x2a0] sm:$0xff] %v11983_v6  ;;  %v14377_v62 = vpop.eup %14376  ;;  %v10194_v15 = vadd.f32 1.0, %v14375_v54  ;;  %14396 = vrcp.f32 %v10192_v59 }
 0xa12   : > { %11063 = vst [vmem:[%s19096_s25 + $0x2a8] sm:$0xff] %v11984_v41  ;;  %v14379_v25 = vpop.eup %14378  ;;  %v10193_v44 = vadd.f32 1.0, %v14377_v62  ;;  %v9283_v27 = vpop.f32.mrb[192].mxu0 }
 0xa13   : > { %v14381_v19 = vpop.eup %14380  ;;  %14398 = vrcp.f32 %v10194_v15  ;;  %v10195_v34 = vadd.f32 1.0, %v14379_v25  ;;  %v12539_v40 = vadd.f32 %v9283_v27, %v19599_v10  ;;  %v9285_v30 = vpop.f32.mrb[193].mxu0 }
 0xa14   : > { %v14383_v7 = vpop.eup %14382  ;;  %14400 = vrcp.f32 %v10193_v44  ;;  %v10198_v58 = vadd.f32 1.0, %v14381_v19  ;;  %v12540_v17 = vadd.f32 %v9285_v30, %v19603_v13  ;;  %v9287_v3 = vpop.f32.mrb[194].mxu0 }
 0xa15   : > { %v14385_v36 = vpop.eup %14384  ;;  %14402 = vrcp.f32 %v10195_v34  ;;  %v10200_v56 = vadd.f32 1.0, %v14383_v7  ;;  %v9446_v1 = vsub.f32 0.0, %v12539_v40  ;;  %v12541_v42 = vadd.f32 %v9287_v3, %v19599_v10  ;;  %v9289_v38 = vpop.f32.mrb[195].mxu0 }
 0xa16   : > { %v14387_v51 = vpop.eup %14386  ;;  %14404 = vrcp.f32 %v10198_v58  ;;  %v10199_v31 = vadd.f32 1.0, %v14385_v36  ;;  %v9447_v4 = vsub.f32 0.0, %v12540_v17  ;;  %v12542_v48 = vadd.f32 %v9289_v38, %v19603_v13 }
 0xa17   : > { %v14389_v14 = vpop.eup %14388  ;;  %14406 = vrcp.f32 %v10200_v56  ;;  %v10201_v61 = vadd.f32 1.0, %v14387_v51  ;;  %v9642_v11 = vmul.f32 1.442695, %v9446_v1  ;;  %v9452_v39 = vsub.f32 0.0, %v12541_v42 }
 0xa18   : > { %v14391_v8 = vpop.eup %14390  ;;  %14408 = vrcp.f32 %v10199_v31  ;;  %v10204_v49 = vadd.f32 1.0, %v14389_v14  ;;  %v9644_v22 = vmul.f32 1.442695, %v9447_v4  ;;  %v9453_v18 = vsub.f32 0.0, %v12542_v48 }
 0xa19   : > { %v14393_v32 = vpop.eup %14392  ;;  %14410 = vrcp.f32 %v10201_v61  ;;  %v10206_v45 = vadd.f32 1.0, %v14391_v8  ;;  %v9654_v46 = vmul.f32 1.442695, %v9452_v39 }
 0xa1a   : > { %v14395_v60 = vpop.eup %14394  ;;  %14412 = vrcp.f32 %v10204_v49  ;;  %v10205_v43 = vadd.f32 1.0, %v14393_v32  ;;  %v9656_v9 = vmul.f32 1.442695, %v9453_v18  ;;  %v9293_v50 = vpop.f32.mrb[196].mxu0 }
 0xa1b   : > { %14414 = vrcp.f32 %v10206_v45  ;;  %v10207_v55 = vadd.f32 1.0, %v14395_v60  ;;  %v14397_v57 = vpop.eup %14396  ;;  %v12543_v2 = vadd.f32 %v9293_v50, %v19599_v10  ;;  %v9295_v24 = vpop.f32.mrb[197].mxu0 }
 0xa1c   : > { %14416 = vrcp.f32 %v10205_v43  ;;  %v12544_v0 = vadd.f32 %v9295_v24, %v19603_v13  ;;  %v9297_v37 = vpop.f32.mrb[198].mxu0 }
 0xa1d   : > { %v14399_v21 = vpop.eup %14398  ;;  %14418 = vrcp.f32 %v10207_v55  ;;  %v9458_v23 = vsub.f32 0.0, %v12543_v2  ;;  %v12545_v63 = vadd.f32 %v9297_v37, %v19599_v10  ;;  %v9299_v12 = vpop.f32.mrb[199].mxu0 }
 0xa1e   : > { %v14401_v26 = vpop.eup %14400  ;;  %14420 = vpow2.f32 %v9642_v11  ;;  %v9459_v28 = vsub.f32 0.0, %v12544_v0  ;;  %v12546_v6 = vadd.f32 %v9299_v12, %v19603_v13 }
 0xa1f   : > { %v14403_v35 = vpop.eup %14402  ;;  %v11986_v29 = vpack.c.bf16 %v14401_v26, %v14397_v57  ;;  %14422 = vpow2.f32 %v9644_v22  ;;  %v9666_v41 = vmul.f32 1.442695, %v9458_v23  ;;  %v9464_v54 = vsub.f32 0.0, %v12545_v63 }
 0xa20   : > { %v14405_v5 = vpop.eup %14404  ;;  %v11987_v47 = vpack.c.bf16 %v14403_v35, %v14399_v21  ;;  %14424 = vpow2.f32 %v9654_v46  ;;  %v9668_v25 = vmul.f32 1.442695, %v9459_v28  ;;  %v9465_v44 = vsub.f32 0.0, %v12546_v6 }
 0xa21   : > { %v14407_v33 = vpop.eup %14406  ;;  %11065 = vst [vmem:[%s19096_s25 + $0x2b8] sm:$0xff] %v11986_v29  ;;  %14426 = vpow2.f32 %v9656_v9  ;;  %v9678_v52 = vmul.f32 1.442695, %v9464_v54 }
 0xa22   : > { %v14409_v59 = vpop.eup %14408  ;;  %11066 = vst [vmem:[%s19096_s25 + $0x2c0] sm:$0xff] %v11987_v47  ;;  %14428 = vpow2.f32 %v9666_v41  ;;  %v9680_v34 = vmul.f32 1.442695, %v9465_v44  ;;  %v9303_v20 = vpop.f32.mrb[200].mxu0 }
 0xa23   : > { %v14411_v62 = vpop.eup %14410  ;;  %v11989_v15 = vpack.c.bf16 %v14409_v59, %v14405_v5  ;;  %14430 = vpow2.f32 %v9668_v25  ;;  %v12547_v58 = vadd.f32 %v9303_v20, %v19599_v10  ;;  %v9305_v36 = vpop.f32.mrb[201].mxu0 }
 0xa24   : > { %v14413_v16 = vpop.eup %14412  ;;  %v11990_v53 = vpack.c.bf16 %v14411_v62, %v14407_v33  ;;  %14432 = vpow2.f32 %v9678_v52  ;;  %v12548_v51 = vadd.f32 %v9305_v36, %v19603_v13  ;;  %v9307_v31 = vpop.f32.mrb[202].mxu0 }
 0xa25   : > { %v14415_v19 = vpop.eup %14414  ;;  %11068 = vst [vmem:[%s19096_s25 + $0x2d0] sm:$0xff] %v11989_v15  ;;  %14434 = vpow2.f32 %v9680_v34  ;;  %v9470_v14 = vsub.f32 0.0, %v12547_v58  ;;  %v12549_v61 = vadd.f32 %v9307_v31, %v19599_v10  ;;  %v9309_v17 = vpop.f32.mrb[203].mxu0 }
 0xa26   : > { %v14417_v7 = vpop.eup %14416  ;;  %11069 = vst [vmem:[%s19096_s25 + $0x2d8] sm:$0xff] %v11990_v53  ;;  %v9471_v49 = vsub.f32 0.0, %v12548_v51  ;;  %v12550_v38 = vadd.f32 %v9309_v17, %v19603_v13 }
 0xa27   : > { %v14419_v56 = vpop.eup %14418  ;;  %v11992_v27 = vpack.c.bf16 %v14417_v7, %v14413_v16  ;;  %v9690_v4 = vmul.f32 1.442695, %v9470_v14  ;;  %v9476_v48 = vsub.f32 0.0, %v12549_v61 }
 0xa28   : > { %v14421_v40 = vpop.eup %14420  ;;  %v11993_v30 = vpack.c.bf16 %v14419_v56, %v14415_v19  ;;  %v9692_v43 = vmul.f32 1.442695, %v9471_v49  ;;  %v9477_v55 = vsub.f32 0.0, %v12550_v38 }
 0xa29   : > { %v14423_v3 = vpop.eup %14422  ;;  %11071 = vst [vmem:[%s19096_s25 + $0x2e8] sm:$0xff] %v11992_v27  ;;  %v10022_v8 = vadd.f32 1.0, %v14421_v40  ;;  %v9702_v21 = vmul.f32 1.442695, %v9476_v48 }
 0xa2a   : > { %v14425_v1 = vpop.eup %14424  ;;  %11072 = vst [vmem:[%s19096_s25 + $0x2f0] sm:$0xff] %v11993_v30  ;;  %v10023_v42 = vadd.f32 1.0, %v14423_v3  ;;  %v9313_v11 = vpop.f32.mrb[204].mxu0  ;;  %v9704_v63 = vmul.f32 1.442695, %v9477_v55 }
 0xa2b   : > { %v14427_v32 = vpop.eup %14426  ;;  %14436 = vrcp.f32 %v10022_v8  ;;  %v10028_v45 = vadd.f32 1.0, %v14425_v1  ;;  %v12551_v22 = vadd.f32 %v9313_v11, %v19599_v10  ;;  %v9315_v18 = vpop.f32.mrb[205].mxu0 }
 0xa2c   : > { %14438 = vrcp.f32 %v10023_v42  ;;  %v10029_v60 = vadd.f32 1.0, %v14427_v32  ;;  %v14429_v39 = vpop.eup %14428  ;;  %v12552_v9 = vadd.f32 %v9315_v18, %v19603_v13  ;;  %v9317_v50 = vpop.f32.mrb[206].mxu0 }
 0xa2d   : > { %14440 = vrcp.f32 %v10028_v45  ;;  %v14431_v57 = vpop.eup %14430  ;;  %v10034_v46 = vadd.f32 1.0, %v14429_v39  ;;  %v9482_v24 = vsub.f32 0.0, %v12551_v22  ;;  %v12553_v35 = vadd.f32 %v9317_v50, %v19599_v10  ;;  %v9319_v29 = vpop.f32.mrb[207].mxu0 }
 0xa2e   : > { %14442 = vrcp.f32 %v10029_v60  ;;  %v14433_v26 = vpop.eup %14432  ;;  %v10035_v2 = vadd.f32 1.0, %v14431_v57  ;;  %v9483_v5 = vsub.f32 0.0, %v12552_v9  ;;  %v12554_v47 = vadd.f32 %v9319_v29, %v19603_v13 }
 0xa2f   : > { %14444 = vpow2.f32 %v9690_v4  ;;  %v14435_v0 = vpop.eup %14434  ;;  %v10040_v37 = vadd.f32 1.0, %v14433_v26  ;;  %v9488_v12 = vsub.f32 0.0, %v12553_v35  ;;  %v9714_v33 = vmul.f32 1.442695, %v9482_v24 }
 0xa30   : > { %14446 = vpow2.f32 %v9692_v43  ;;  %v10041_v23 = vadd.f32 1.0, %v14435_v0  ;;  %v9489_v28 = vsub.f32 0.0, %v12554_v47  ;;  %v9716_v6 = vmul.f32 1.442695, %v9483_v5 }
 0xa31   : > { %14448 = vrcp.f32 %v10034_v46  ;;  %v9726_v41 = vmul.f32 1.442695, %v9488_v12 }
 0xa32   : > { %14450 = vrcp.f32 %v10035_v2  ;;  %v9323_v54 = vpop.f32.mrb[208].mxu0  ;;  %v9728_v15 = vmul.f32 1.442695, %v9489_v28 }
 0xa33   : > { %14452 = vrcp.f32 %v10040_v37  ;;  %v12555_v25 = vadd.f32 %v9323_v54, %v19599_v10  ;;  %v9325_v44 = vpop.f32.mrb[209].mxu0 }
 0xa34   : > { %14454 = vrcp.f32 %v10041_v23  ;;  %v12556_v52 = vadd.f32 %v9325_v44, %v19603_v13  ;;  %v9327_v19 = vpop.f32.mrb[210].mxu0 }
 0xa35   : > { %v14437_v59 = vpop.eup %14436  ;;  %14456 = vpow2.f32 %v9702_v21  ;;  %v9494_v20 = vsub.f32 0.0, %v12555_v25  ;;  %v12557_v7 = vadd.f32 %v9327_v19, %v19599_v10  ;;  %v9329_v58 = vpop.f32.mrb[211].mxu0 }
 0xa36   : > { %v14439_v62 = vpop.eup %14438  ;;  %14458 = vpow2.f32 %v9704_v63  ;;  %v9495_v27 = vsub.f32 0.0, %v12556_v52  ;;  %v12558_v51 = vadd.f32 %v9329_v58, %v19603_v13 }
 0xa37   : > { %v14441_v16 = vpop.eup %14440  ;;  %v11901_v53 = vpack.c.bf16 %v14439_v62, %v14437_v59  ;;  %14460 = vpow2.f32 %v9714_v33  ;;  %v9738_v30 = vmul.f32 1.442695, %v9494_v20  ;;  %v9500_v14 = vsub.f32 0.0, %v12557_v7 }
 0xa38   : > { %v14443_v34 = vpop.eup %14442  ;;  %14462 = vpow2.f32 %v9716_v6  ;;  %v9740_v3 = vmul.f32 1.442695, %v9495_v27  ;;  %v9501_v8 = vsub.f32 0.0, %v12558_v51 }
 0xa39   : > { %v14445_v36 = vpop.eup %14444  ;;  %10980 = vst [vmem:[%s19096_s25 + $0x10] sm:$0xff] %v11901_v53  ;;  %v11904_v56 = vpack.c.bf16 %v14443_v34, %v14441_v16  ;;  %14464 = vpow2.f32 %v9726_v41  ;;  %v9750_v1 = vmul.f32 1.442695, %v9500_v14 }
 0xa3a   : > { %v14447_v31 = vpop.eup %14446  ;;  %v10046_v40 = vadd.f32 1.0, %v14445_v36  ;;  %14466 = vpow2.f32 %v9728_v15  ;;  %v9752_v32 = vmul.f32 1.442695, %v9501_v8  ;;  %v9333_v45 = vpop.f32.mrb[212].mxu0 }
 0xa3b   : > { %v14449_v61 = vpop.eup %14448  ;;  %10983 = vst [vmem:[%s19096_s25 + $0x28] sm:$0xff] %v11904_v56  ;;  %v10047_v17 = vadd.f32 1.0, %v14447_v31  ;;  %v12559_v48 = vadd.f32 %v9333_v45, %v19599_v10  ;;  %v9335_v60 = vpop.f32.mrb[213].mxu0 }
 0xa3c   : > { %v14451_v49 = vpop.eup %14450  ;;  %14468 = vrcp.f32 %v10046_v40  ;;  %v12560_v39 = vadd.f32 %v9335_v60, %v19603_v13  ;;  %v9337_v55 = vpop.f32.mrb[214].mxu0 }
 0xa3d   : > { %v14453_v42 = vpop.eup %14452  ;;  %v11907_v38 = vpack.c.bf16 %v14451_v49, %v14449_v61  ;;  %14470 = vrcp.f32 %v10047_v17  ;;  %v9506_v57 = vsub.f32 0.0, %v12559_v48  ;;  %v12561_v46 = vadd.f32 %v9337_v55, %v19599_v10  ;;  %v9339_v21 = vpop.f32.mrb[215].mxu0 }
 0xa3e   : > { %v14455_v4 = vpop.eup %14454  ;;  %14472 = vpow2.f32 %v9738_v30  ;;  %v9507_v26 = vsub.f32 0.0, %v12560_v39  ;;  %v12562_v37 = vadd.f32 %v9339_v21, %v19603_v13 }
 0xa3f   : > { %v14457_v43 = vpop.eup %14456  ;;  %10986 = vst [vmem:[%s19096_s25 + $0x40] sm:$0xff] %v11907_v38  ;;  %v11910_v11 = vpack.c.bf16 %v14455_v4, %v14453_v42  ;;  %14474 = vpow2.f32 %v9740_v3  ;;  %v9512_v35 = vsub.f32 0.0, %v12561_v46  ;;  %v9762_v23 = vmul.f32 1.442695, %v9506_v57 }
 0xa40   : > { %v14459_v22 = vpop.eup %14458  ;;  %v10052_v18 = vadd.f32 1.0, %v14457_v43  ;;  %14476 = vpow2.f32 %v9750_v1  ;;  %v9764_v12 = vmul.f32 1.442695, %v9507_v26  ;;  %v9513_v62 = vsub.f32 0.0, %v12562_v37 }
 0xa41   : > { %v14461_v9 = vpop.eup %14460  ;;  %10989 = vst [vmem:[%s19096_s25 + $0x58] sm:$0xff] %v11910_v11  ;;  %v10053_v50 = vadd.f32 1.0, %v14459_v22  ;;  %14478 = vpow2.f32 %v9752_v32  ;;  %v9774_v6 = vmul.f32 1.442695, %v9512_v35 }
 0xa42   : > { %v14463_v2 = vpop.eup %14462  ;;  %14480 = vrcp.f32 %v10052_v18  ;;  %v10058_v24 = vadd.f32 1.0, %v14461_v9  ;;  %v9343_v33 = vpop.f32.mrb[216].mxu0  ;;  %v9776_v40 = vmul.f32 1.442695, %v9513_v62 }
 0xa43   : > { %v14465_v29 = vpop.eup %14464  ;;  %14482 = vrcp.f32 %v10053_v50  ;;  %v10059_v0 = vadd.f32 1.0, %v14463_v2  ;;  %v12563_v59 = vadd.f32 %v9343_v33, %v19599_v10  ;;  %v9345_v41 = vpop.f32.mrb[217].mxu0 }
 0xa44   : > { %v14467_v5 = vpop.eup %14466  ;;  %14484 = vrcp.f32 %v10058_v24  ;;  %v10064_v47 = vadd.f32 1.0, %v14465_v29  ;;  %v12564_v15 = vadd.f32 %v9345_v41, %v19603_v13  ;;  %v9347_v25 = vpop.f32.mrb[218].mxu0 }
 0xa45   : > { %14486 = vrcp.f32 %v10059_v0  ;;  %v10065_v63 = vadd.f32 1.0, %v14467_v5  ;;  %v9518_v53 = vsub.f32 0.0, %v12563_v59  ;;  %v12565_v52 = vadd.f32 %v9347_v25, %v19599_v10  ;;  %v9349_v19 = vpop.f32.mrb[219].mxu0 }
 0xa46   : > { %v14469_v28 = vpop.eup %14468  ;;  %14488 = vrcp.f32 %v10064_v47  ;;  %v9519_v7 = vsub.f32 0.0, %v12564_v15  ;;  %v12566_v58 = vadd.f32 %v9349_v19, %v19603_v13 }
 0xa47   : > { %v14471_v54 = vpop.eup %14470  ;;  %14490 = vrcp.f32 %v10065_v63  ;;  %v9524_v27 = vsub.f32 0.0, %v12565_v52  ;;  %v9786_v17 = vmul.f32 1.442695, %v9518_v53 }
 0xa48   : > { %v14473_v44 = vpop.eup %14472  ;;  %v11913_v16 = vpack.c.bf16 %v14471_v54, %v14469_v28  ;;  %14492 = vpow2.f32 %v9762_v23  ;;  %v9525_v30 = vsub.f32 0.0, %v12566_v58  ;;  %v9788_v8 = vmul.f32 1.442695, %v9519_v7 }
 0xa49   : > { %v14475_v34 = vpop.eup %14474  ;;  %v10070_v20 = vadd.f32 1.0, %v14473_v44  ;;  %14494 = vpow2.f32 %v9764_v12  ;;  %v9798_v38 = vmul.f32 1.442695, %v9524_v27 }
 0xa4a   : > { %v14477_v36 = vpop.eup %14476  ;;  %10992 = vst [vmem:[%s19096_s25 + $0x70] sm:$0xff] %v11913_v16  ;;  %v10071_v56 = vadd.f32 1.0, %v14475_v34  ;;  %14496 = vpow2.f32 %v9774_v6  ;;  %v9353_v49 = vpop.f32.mrb[220].mxu0  ;;  %v9800_v48 = vmul.f32 1.442695, %v9525_v30 }
 0xa4b   : > { %v14479_v51 = vpop.eup %14478  ;;  %14498 = vrcp.f32 %v10070_v20  ;;  %v10076_v31 = vadd.f32 1.0, %v14477_v36  ;;  %v12567_v32 = vadd.f32 %v9353_v49, %v19599_v10  ;;  %v9355_v45 = vpop.f32.mrb[221].mxu0 }
 0xa4c   : > { %v14481_v14 = vpop.eup %14480  ;;  %14500 = vrcp.f32 %v10071_v56  ;;  %v10077_v61 = vadd.f32 1.0, %v14479_v51  ;;  %v12568_v60 = vadd.f32 %v9355_v45, %v19603_v13  ;;  %v9357_v43 = vpop.f32.mrb[222].mxu0 }
 0xa4d   : > { %v14483_v3 = vpop.eup %14482  ;;  %14502 = vrcp.f32 %v10076_v31  ;;  %v9530_v55 = vsub.f32 0.0, %v12567_v32  ;;  %v12569_v22 = vadd.f32 %v9357_v43, %v19599_v10  ;;  %v9359_v18 = vpop.f32.mrb[223].mxu0 }
 0xa4e   : > { %v14485_v1 = vpop.eup %14484  ;;  %v11916_v42 = vpack.c.bf16 %v14483_v3, %v14481_v14  ;;  %14504 = vrcp.f32 %v10077_v61  ;;  %v9531_v46 = vsub.f32 0.0, %v12568_v60  ;;  %v12570_v21 = vadd.f32 %v9359_v18, %v19603_v13 }
 0xa4f   : > { %v14487_v4 = vpop.eup %14486  ;;  %14506 = vpow2.f32 %v9776_v40  ;;  %v9810_v26 = vmul.f32 1.442695, %v9530_v55  ;;  %v9536_v2 = vsub.f32 0.0, %v12569_v22 }
 0xa50   : > { %v14489_v11 = vpop.eup %14488  ;;  %10995 = vst [vmem:[%s19096_s25 + $0x88] sm:$0xff] %v11916_v42  ;;  %v11919_v39 = vpack.c.bf16 %v14487_v4, %v14485_v1  ;;  %14508 = vpow2.f32 %v9786_v17  ;;  %v9537_v29 = vsub.f32 0.0, %v12570_v21  ;;  %v9812_v5 = vmul.f32 1.442695, %v9531_v46 }
 0xa51   : > { %v14491_v57 = vpop.eup %14490  ;;  %14510 = vpow2.f32 %v9788_v8  ;;  %v9822_v63 = vmul.f32 1.442695, %v9536_v2 }
 0xa52   : > { %v14493_v9 = vpop.eup %14492  ;;  %10998 = vst [vmem:[%s19096_s25 + $0xa0] sm:$0xff] %v11919_v39  ;;  %v11922_v50 = vpack.c.bf16 %v14491_v57, %v14489_v11  ;;  %14512 = vpow2.f32 %v9798_v38  ;;  %v9363_v12 = vpop.f32.mrb[224].mxu0  ;;  %v9824_v28 = vmul.f32 1.442695, %v9537_v29 }
 0xa53   : > { %v14495_v24 = vpop.eup %14494  ;;  %v10082_v35 = vadd.f32 1.0, %v14493_v9  ;;  %14514 = vpow2.f32 %v9800_v48  ;;  %v12571_v6 = vadd.f32 %v9363_v12, %v19599_v10  ;;  %v9365_v59 = vpop.f32.mrb[225].mxu0 }
 0xa54   : > { %v14497_v0 = vpop.eup %14496  ;;  %11001 = vst [vmem:[%s19096_s25 + $0xb8] sm:$0xff] %v11922_v50  ;;  %v10083_v37 = vadd.f32 1.0, %v14495_v24  ;;  %14516 = vpow2.f32 %v9810_v26  ;;  %v12572_v62 = vadd.f32 %v9365_v59, %v19603_v13  ;;  %v9367_v15 = vpop.f32.mrb[226].mxu0 }
 0xa55   : > { %v14499_v47 = vpop.eup %14498  ;;  %14518 = vrcp.f32 %v10082_v35  ;;  %v10088_v23 = vadd.f32 1.0, %v14497_v0  ;;  %v12573_v44 = vadd.f32 %v9367_v15, %v19599_v10  ;;  %v9369_v16 = vpop.f32.mrb[227].mxu0  ;;  %v9542_v20 = vsub.f32 0.0, %v12571_v6 }
 0xa56   : > { %v14501_v33 = vpop.eup %14500  ;;  %14520 = vrcp.f32 %v10083_v37  ;;  %v9543_v36 = vsub.f32 0.0, %v12572_v62  ;;  %v12574_v31 = vadd.f32 %v9369_v16, %v19603_v13 }
 0xa57   : > { %v14503_v41 = vpop.eup %14502  ;;  %v11925_v54 = vpack.c.bf16 %v14501_v33, %v14499_v47  ;;  %14522 = vrcp.f32 %v10088_v23  ;;  %v9548_v51 = vsub.f32 0.0, %v12573_v44  ;;  %v9834_v3 = vmul.f32 1.442695, %v9542_v20 }
 0xa58   : > { %v14505_v25 = vpop.eup %14504  ;;  %14524 = vpow2.f32 %v9812_v5  ;;  %v9836_v38 = vmul.f32 1.442695, %v9543_v36  ;;  %v9549_v60 = vsub.f32 0.0, %v12574_v31 }
 0xa59   : > { %v14507_v53 = vpop.eup %14506  ;;  %11004 = vst [vmem:[%s19096_s25 + $0xd0] sm:$0xff] %v11925_v54  ;;  %v11928_v52 = vpack.c.bf16 %v14505_v25, %v14503_v41  ;;  %14526 = vpow2.f32 %v9822_v63  ;;  %v9846_v48 = vmul.f32 1.442695, %v9548_v51 }
 0xa5a   : > { %v14509_v19 = vpop.eup %14508  ;;  %v10089_v34 = vadd.f32 1.0, %v14507_v53  ;;  %14528 = vpow2.f32 %v9824_v28  ;;  %v9373_v14 = vpop.f32.mrb[228].mxu0  ;;  %v9848_v24 = vmul.f32 1.442695, %v9549_v60 }
 0xa5b   : > { %v14511_v7 = vpop.eup %14510  ;;  %11007 = vst [vmem:[%s19096_s25 + $0xe8] sm:$0xff] %v11928_v52  ;;  %v10094_v58 = vadd.f32 1.0, %v14509_v19  ;;  %v12575_v8 = vadd.f32 %v9373_v14, %v19599_v10  ;;  %v9375_v49 = vpop.f32.mrb[229].mxu0 }
 0xa5c   : > { %v14513_v56 = vpop.eup %14512  ;;  %14530 = vrcp.f32 %v10089_v34  ;;  %v10095_v27 = vadd.f32 1.0, %v14511_v7  ;;  %v12576_v32 = vadd.f32 %v9375_v49, %v19603_v13  ;;  %v9377_v45 = vpop.f32.mrb[230].mxu0 }
 0xa5d   : > { %v14515_v40 = vpop.eup %14514  ;;  %14532 = vrcp.f32 %v10094_v58  ;;  %v10100_v30 = vadd.f32 1.0, %v14513_v56  ;;  %v12577_v43 = vadd.f32 %v9377_v45, %v19599_v10  ;;  %v9379_v11 = vpop.f32.mrb[231].mxu0  ;;  %v9554_v22 = vsub.f32 0.0, %v12575_v8 }
 0xa5e   : > { %v14517_v61 = vpop.eup %14516  ;;  %14534 = vrcp.f32 %v10095_v27  ;;  %v10101_v17 = vadd.f32 1.0, %v14515_v40  ;;  %v12578_v18 = vadd.f32 %v9379_v11, %v19603_v13  ;;  %v9555_v46 = vsub.f32 0.0, %v12576_v32 }
 0xa5f   : > { %v14519_v1 = vpop.eup %14518  ;;  %14536 = vrcp.f32 %v10100_v30  ;;  %v10106_v42 = vadd.f32 1.0, %v14517_v61  ;;  %v9560_v50 = vsub.f32 0.0, %v12577_v43  ;;  %v9858_v0 = vmul.f32 1.442695, %v9554_v22 }
 0xa60   : > { %v14521_v4 = vpop.eup %14520  ;;  %14538 = vrcp.f32 %v10101_v17  ;;  %v9561_v35 = vsub.f32 0.0, %v12578_v18  ;;  %v9860_v47 = vmul.f32 1.442695, %v9555_v46 }
 0xa61   : > { %v14523_v39 = vpop.eup %14522  ;;  %v11931_v55 = vpack.c.bf16 %v14521_v4, %v14519_v1  ;;  %14540 = vrcp.f32 %v10106_v42  ;;  %v9870_v28 = vmul.f32 1.442695, %v9560_v50 }
 0xa62   : > { %v14525_v57 = vpop.eup %14524  ;;  %14542 = vpow2.f32 %v9834_v3  ;;  %v9383_v37 = vpop.f32.mrb[232].mxu0  ;;  %v9872_v54 = vmul.f32 1.442695, %v9561_v35 }
 0xa63   : > { %v14527_v21 = vpop.eup %14526  ;;  %11010 = vst [vmem:[%s19096_s25 + $0x100] sm:$0xff] %v11931_v55  ;;  %v10107_v9 = vadd.f32 1.0, %v14525_v57  ;;  %14544 = vpow2.f32 %v9836_v38  ;;  %v12579_v23 = vadd.f32 %v9383_v37, %v19599_v10  ;;  %v9385_v63 = vpop.f32.mrb[233].mxu0 }
 0xa64   : > { %v14529_v26 = vpop.eup %14528  ;;  %v10112_v2 = vadd.f32 1.0, %v14527_v21  ;;  %14546 = vpow2.f32 %v9846_v48  ;;  %v12580_v6 = vadd.f32 %v9385_v63, %v19603_v13  ;;  %v9387_v59 = vpop.f32.mrb[234].mxu0 }
 0xa65   : > { %14548 = vrcp.f32 %v10107_v9  ;;  %v10113_v29 = vadd.f32 1.0, %v14529_v26  ;;  %v9566_v62 = vsub.f32 0.0, %v12579_v23  ;;  %v12581_v15 = vadd.f32 %v9387_v59, %v19599_v10  ;;  %v9389_v25 = vpop.f32.mrb[235].mxu0 }
 0xa66   : > { %v14531_v5 = vpop.eup %14530  ;;  %14550 = vrcp.f32 %v10112_v2  ;;  %v9567_v53 = vsub.f32 0.0, %v12580_v6  ;;  %v12582_v52 = vadd.f32 %v9389_v25, %v19603_v13 }
 0xa67   : > { %v14533_v12 = vpop.eup %14532  ;;  %v11934_v33 = vpack.c.bf16 %v14531_v5, %v14523_v39  ;;  %14552 = vrcp.f32 %v10113_v29  ;;  %v9882_v34 = vmul.f32 1.442695, %v9566_v62  ;;  %v9572_v20 = vsub.f32 0.0, %v12581_v15 }
 0xa68   : > { %v14535_v41 = vpop.eup %14534  ;;  %14554 = vpow2.f32 %v9848_v24  ;;  %v9884_v36 = vmul.f32 1.442695, %v9567_v53  ;;  %v9573_v56 = vsub.f32 0.0, %v12582_v52 }
 0xa69   : > { %v14537_v44 = vpop.eup %14536  ;;  %11013 = vst [vmem:[%s19096_s25 + $0x118] sm:$0xff] %v11934_v33  ;;  %v11937_v16 = vpack.c.bf16 %v14535_v41, %v14533_v12  ;;  %14556 = vpow2.f32 %v9858_v0  ;;  %v9894_v61 = vmul.f32 1.442695, %v9572_v20 }
 0xa6a   : > { %v14539_v19 = vpop.eup %14538  ;;  %14558 = vpow2.f32 %v9860_v47  ;;  %v9896_v1 = vmul.f32 1.442695, %v9573_v56 }
 0xa6b   : > { %v14541_v7 = vpop.eup %14540  ;;  %11016 = vst [vmem:[%s19096_s25 + $0x130] sm:$0xff] %v11937_v16  ;;  %v11940_v58 = vpack.c.bf16 %v14539_v19, %v14537_v44  ;;  %14560 = vpow2.f32 %v9870_v28 }
 0xa6c   : > { %v14543_v27 = vpop.eup %14542  ;;  %14562 = vpow2.f32 %v9872_v54  ;;  %v9393_v40 = vpop.f32.mrb[236].mxu0 }
 0xa6d   : > { %v14545_v51 = vpop.eup %14544  ;;  %11019 = vst [vmem:[%s19096_s25 + $0x148] sm:$0xff] %v11940_v58  ;;  %v10118_v31 = vadd.f32 1.0, %v14543_v27  ;;  %14564 = vpow2.f32 %v9882_v34  ;;  %v12583_v17 = vadd.f32 %v9393_v40, %v19599_v10  ;;  %v9395_v3 = vpop.f32.mrb[237].mxu0 }
 0xa6e   : > { %v14547_v30 = vpop.eup %14546  ;;  %v10119_v14 = vadd.f32 1.0, %v14545_v51  ;;  %14566 = vpow2.f32 %v9884_v36  ;;  %v12584_v42 = vadd.f32 %v9395_v3, %v19603_v13  ;;  %v9397_v38 = vpop.f32.mrb[238].mxu0 }
 0xa6f   : > { %v14549_v8 = vpop.eup %14548  ;;  %14568 = vrcp.f32 %v10118_v31  ;;  %v10124_v49 = vadd.f32 1.0, %v14547_v30  ;;  %v9578_v4 = vsub.f32 0.0, %v12583_v17  ;;  %v12585_v48 = vadd.f32 %v9397_v38, %v19599_v10  ;;  %v9399_v60 = vpop.f32.mrb[239].mxu0 }
 0xa70   : > { %v14551_v32 = vpop.eup %14550  ;;  %v11943_v45 = vpack.c.bf16 %v14549_v8, %v14541_v7  ;;  %14570 = vrcp.f32 %v10119_v14  ;;  %v12586_v22 = vadd.f32 %v9399_v60, %v19603_v13  ;;  %v9579_v46 = vsub.f32 0.0, %v12584_v42 }
 0xa71   : > { %v14553_v43 = vpop.eup %14552  ;;  %14572 = vrcp.f32 %v10124_v49  ;;  %v9906_v55 = vmul.f32 1.442695, %v9578_v4  ;;  %v9584_v50 = vsub.f32 0.0, %v12585_v48 }
 0xa72   : > { %v14555_v11 = vpop.eup %14554  ;;  %11022 = vst [vmem:[%s19096_s25 + $0x160] sm:$0xff] %v11943_v45  ;;  %v11946_v39 = vpack.c.bf16 %v14553_v43, %v14551_v32  ;;  %14574 = vpow2.f32 %v9894_v61  ;;  %v9585_v0 = vsub.f32 0.0, %v12586_v22  ;;  %v9908_v63 = vmul.f32 1.442695, %v9579_v46 }
 0xa73   : > { %v14557_v18 = vpop.eup %14556  ;;  %v10125_v57 = vadd.f32 1.0, %v14555_v11  ;;  %14576 = vpow2.f32 %v9896_v1  ;;  %v9918_v59 = vmul.f32 1.442695, %v9584_v50 }
 0xa74   : > { %v14559_v21 = vpop.eup %14558  ;;  %11025 = vst [vmem:[%s19096_s25 + $0x178] sm:$0xff] %v11946_v39  ;;  %v10130_v9 = vadd.f32 1.0, %v14557_v18  ;;  %14578 = vpow2.f32 %v9906_v55  ;;  %v9403_v24 = vpop.f32.mrb[240].mxu0  ;;  %v9920_v53 = vmul.f32 1.442695, %v9585_v0 }
 0xa75   : > { %v14561_v26 = vpop.eup %14560  ;;  %14580 = vrcp.f32 %v10125_v57  ;;  %v10131_v2 = vadd.f32 1.0, %v14559_v21  ;;  %v12587_v37 = vadd.f32 %v9403_v24, %v19599_v10  ;;  %v9405_v5 = vpop.f32.mrb[241].mxu0 }
 0xa76   : > { %v14563_v35 = vpop.eup %14562  ;;  %14582 = vrcp.f32 %v10130_v9  ;;  %v10136_v29 = vadd.f32 1.0, %v14561_v26  ;;  %v12588_v12 = vadd.f32 %v9405_v5, %v19603_v13  ;;  %v9407_v33 = vpop.f32.mrb[242].mxu0 }
 0xa77   : > { %v14565_v47 = vpop.eup %14564  ;;  %14584 = vrcp.f32 %v10131_v2  ;;  %v10137_v23 = vadd.f32 1.0, %v14563_v35  ;;  %v12589_v41 = vadd.f32 %v9407_v33, %v19599_v10  ;;  %v9409_v54 = vpop.f32.mrb[243].mxu0  ;;  %v9590_v25 = vsub.f32 0.0, %v12587_v37 }
 0xa78   : > { %v14567_v28 = vpop.eup %14566  ;;  %14586 = vrcp.f32 %v10136_v29  ;;  %v10142_v6 = vadd.f32 1.0, %v14565_v47  ;;  %v12590_v44 = vadd.f32 %v9409_v54, %v19603_v13  ;;  %v9591_v52 = vsub.f32 0.0, %v12588_v12 }
 0xa79   : > { %v14569_v62 = vpop.eup %14568  ;;  %14588 = vrcp.f32 %v10137_v23  ;;  %v10143_v15 = vadd.f32 1.0, %v14567_v28  ;;  %v9596_v20 = vsub.f32 0.0, %v12589_v41  ;;  %v9930_v56 = vmul.f32 1.442695, %v9590_v25 }
 0xa7a   : > { %v14571_v16 = vpop.eup %14570  ;;  %14590 = vrcp.f32 %v10142_v6  ;;  %v9597_v27 = vsub.f32 0.0, %v12590_v44  ;;  %v9932_v30 = vmul.f32 1.442695, %v9591_v52 }
 0xa7b   : > { %v14573_v19 = vpop.eup %14572  ;;  %v11949_v34 = vpack.c.bf16 %v14571_v16, %v14569_v62  ;;  %14592 = vrcp.f32 %v10143_v15  ;;  %v9942_v8 = vmul.f32 1.442695, %v9596_v20 }
 0xa7c   : > { %v14575_v7 = vpop.eup %14574  ;;  %14594 = vpow2.f32 %v9908_v63  ;;  %v9413_v51 = vpop.f32.mrb[244].mxu0  ;;  %v9944_v60 = vmul.f32 1.442695, %v9597_v27 }
 0xa7d   : > { %v14577_v58 = vpop.eup %14576  ;;  %11028 = vst [vmem:[%s19096_s25 + $0x190] sm:$0xff] %v11949_v34  ;;  %v10148_v36 = vadd.f32 1.0, %v14575_v7  ;;  %14596 = vpow2.f32 %v9918_v59  ;;  %v12591_v14 = vadd.f32 %v9413_v51, %v19599_v10  ;;  %v9415_v61 = vpop.f32.mrb[245].mxu0 }
 0xa7e   : > { %v14579_v31 = vpop.eup %14578  ;;  %v10149_v40 = vadd.f32 1.0, %v14577_v58  ;;  %14598 = vpow2.f32 %v9920_v53  ;;  %v12592_v49 = vadd.f32 %v9415_v61, %v19603_v13  ;;  %v9417_v1 = vpop.f32.mrb[246].mxu0 }
 0xa7f   : > { %v14581_v17 = vpop.eup %14580  ;;  %14600 = vrcp.f32 %v10148_v36  ;;  %v10154_v3 = vadd.f32 1.0, %v14579_v31  ;;  %v9602_v32 = vsub.f32 0.0, %v12591_v14  ;;  %v12593_v45 = vadd.f32 %v9417_v1, %v19599_v10  ;;  %v9419_v4 = vpop.f32.mrb[247].mxu0 }
 0xa80   : > { %v14583_v42 = vpop.eup %14582  ;;  %v11952_v38 = vpack.c.bf16 %v14581_v17, %v14573_v19  ;;  %14602 = vrcp.f32 %v10149_v40  ;;  %v9603_v43 = vsub.f32 0.0, %v12592_v49  ;;  %v12594_v11 = vadd.f32 %v9419_v4, %v19603_v13 }
 0xa81   : > { %v14585_v48 = vpop.eup %14584  ;;  %14604 = vrcp.f32 %v10154_v3  ;;  %v9954_v22 = vmul.f32 1.442695, %v9602_v32  ;;  %v9608_v18 = vsub.f32 0.0, %v12593_v45 }
 0xa82   : > { %v14587_v39 = vpop.eup %14586  ;;  %11031 = vst [vmem:[%s19096_s25 + $0x1a8] sm:$0xff] %v11952_v38  ;;  %v11955_v55 = vpack.c.bf16 %v14585_v48, %v14583_v42  ;;  %14606 = vpow2.f32 %v9930_v56  ;;  %v9956_v46 = vmul.f32 1.442695, %v9603_v43  ;;  %v9609_v26 = vsub.f32 0.0, %v12594_v11 }
 0xa83   : > { %v14589_v57 = vpop.eup %14588  ;;  %14608 = vpow2.f32 %v9932_v30  ;;  %v9966_v50 = vmul.f32 1.442695, %v9608_v18 }
 0xa84   : > { %v14591_v21 = vpop.eup %14590  ;;  %11034 = vst [vmem:[%s19096_s25 + $0x1c0] sm:$0xff] %v11955_v55  ;;  %v11958_v9 = vpack.c.bf16 %v14589_v57, %v14587_v39  ;;  %14610 = vpow2.f32 %v9942_v8  ;;  %v9423_v24 = vpop.f32.mrb[248].mxu0  ;;  %v9968_v28 = vmul.f32 1.442695, %v9609_v26 }
 0xa85   : > { %v14593_v2 = vpop.eup %14592  ;;  %14612 = vpow2.f32 %v9944_v60  ;;  %v12595_v0 = vadd.f32 %v9423_v24, %v19599_v10  ;;  %v9425_v37 = vpop.f32.mrb[249].mxu0 }
 0xa86   : > { %v14595_v35 = vpop.eup %14594  ;;  %11037 = vst [vmem:[%s19096_s25 + $0x1d8] sm:$0xff] %v11958_v9  ;;  %v11961_v29 = vpack.c.bf16 %v14593_v2, %v14591_v21  ;;  %14614 = vpow2.f32 %v9954_v22  ;;  %v12596_v23 = vadd.f32 %v9425_v37, %v19603_v13  ;;  %v9427_v63 = vpop.f32.mrb[250].mxu0 }
 0xa87   : > { %v14597_v5 = vpop.eup %14596  ;;  %v10155_v47 = vadd.f32 1.0, %v14595_v35  ;;  %14616 = vpow2.f32 %v9956_v46  ;;  %v9614_v6 = vsub.f32 0.0, %v12595_v0  ;;  %v9429_v59 = vpop.f32.mrb[251].mxu0  ;;  %v12597_v44 = vadd.f32 %v9427_v63, %v19599_v10 }
 0xa88   : > { %v14599_v12 = vpop.eup %14598  ;;  %11040 = vst [vmem:[%s19096_s25 + $0x1f0] sm:$0xff] %v11961_v29  ;;  %v10160_v33 = vadd.f32 1.0, %v14597_v5  ;;  %14618 = vpow2.f32 %v9966_v50  ;;  %v9615_v62 = vsub.f32 0.0, %v12596_v23  ;;  %v12598_v19 = vadd.f32 %v9429_v59, %v19603_v13 }
 0xa89   : > { %v14601_v41 = vpop.eup %14600  ;;  %14620 = vrcp.f32 %v10155_v47  ;;  %v10161_v54 = vadd.f32 1.0, %v14599_v12  ;;  %v9978_v25 = vmul.f32 1.442695, %v9614_v6  ;;  %v9620_v27 = vsub.f32 0.0, %v12597_v44 }
 0xa8a   : > { %v14603_v15 = vpop.eup %14602  ;;  %14622 = vrcp.f32 %v10160_v33  ;;  %v9980_v52 = vmul.f32 1.442695, %v9615_v62  ;;  %v9621_v14 = vsub.f32 0.0, %v12598_v19 }
 0xa8b   : > { %v14605_v16 = vpop.eup %14604  ;;  %v11964_v53 = vpack.c.bf16 %v14603_v15, %v14601_v41  ;;  %14624 = vrcp.f32 %v10161_v54  ;;  %v9990_v48 = vmul.f32 1.442695, %v9620_v27 }
 0xa8c   : > { %v14607_v34 = vpop.eup %14606  ;;  %14626 = vpow2.f32 %v9968_v28  ;;  %v9433_v58 = vpop.f32.mrb[252].mxu0  ;;  %v9992_v39 = vmul.f32 1.442695, %v9621_v14 }
 0xa8d   : > { %v14609_v20 = vpop.eup %14608  ;;  %11043 = vst [vmem:[%s19096_s25 + $0x208] sm:$0xff] %v11964_v53  ;;  %v10166_v7 = vadd.f32 1.0, %v14607_v34  ;;  %14628 = vpow2.f32 %v9978_v25  ;;  %v12599_v51 = vadd.f32 %v9433_v58, %v19599_v10  ;;  %v9435_v31 = vpop.f32.mrb[253].mxu0 }
 0xa8e   : > { %v14611_v36 = vpop.eup %14610  ;;  %v10167_v56 = vadd.f32 1.0, %v14609_v20  ;;  %14630 = vpow2.f32 %v9980_v52  ;;  %v9437_v61 = vpop.f32.mrb[254].mxu0  ;;  %v12600_v49 = vadd.f32 %v9435_v31, %v19603_v13 }
 0xa8f   : > { %v14613_v40 = vpop.eup %14612  ;;  %14632 = vrcp.f32 %v10166_v7  ;;  %v10172_v30 = vadd.f32 1.0, %v14611_v36  ;;  %v9626_v8 = vsub.f32 0.0, %v12599_v51  ;;  %v9439_v1 = vpop.f32.mrb[255].mxu0  ;;  %v12601_v32 = vadd.f32 %v9437_v61, %v19599_v10 }
 0xa90   : > { %v14615_v17 = vpop.eup %14614  ;;  %14634 = vrcp.f32 %v10167_v56  ;;  %v10173_v3 = vadd.f32 1.0, %v14613_v40  ;;  %v12602_v60 = vadd.f32 %v9439_v1, %v19603_v13  ;;  %v9627_v57 = vsub.f32 0.0, %v12600_v49 }
 0xa91   : > { %v14617_v42 = vpop.eup %14616  ;;  %14636 = vrcp.f32 %v10172_v30  ;;  %v10178_v38 = vadd.f32 1.0, %v14615_v17  ;;  %v10002_v18 = vmul.f32 1.442695, %v9626_v8  ;;  %v9632_v10 = vsub.f32 0.0, %v12601_v32 }
 0xa92   : > { %v14619_v45 = vpop.eup %14618  ;;  %14638 = vrcp.f32 %v10173_v3  ;;  %v10179_v4 = vadd.f32 1.0, %v14617_v42  ;;  %v9633_v50 = vsub.f32 0.0, %v12602_v60  ;;  %v10004_v35 = vmul.f32 1.442695, %v9627_v57 }
 0xa93   : > { %v14621_v43 = vpop.eup %14620  ;;  %14640 = vrcp.f32 %v10178_v38  ;;  %v10184_v11 = vadd.f32 1.0, %v14619_v45  ;;  %v10014_v37 = vmul.f32 1.442695, %v9632_v10 }
 0xa94   : > { %v14623_v55 = vpop.eup %14622  ;;  %v11967_v22 = vpack.c.bf16 %v14621_v43, %v14605_v16  ;;  %14642 = vrcp.f32 %v10179_v4  ;;  %v10016_v47 = vmul.f32 1.442695, %v9633_v50 }
 0xa95   : > { %v14625_v46 = vpop.eup %14624  ;;  %14644 = vrcp.f32 %v10184_v11 }
 0xa96   : > { %v14627_v21 = vpop.eup %14626  ;;  %11046 = vst [vmem:[%s19096_s25 + $0x220] sm:$0xff] %v11967_v22  ;;  %v11970_v9 = vpack.c.bf16 %v14625_v46, %v14623_v55  ;;  %14646 = vpow2.f32 %v9990_v48 }
 0xa97   : > { %v14629_v26 = vpop.eup %14628  ;;  %v10185_v13 = vadd.f32 1.0, %v14627_v21  ;;  %14648 = vpow2.f32 %v9992_v39 }
 0xa98   : > { %v14631_v2 = vpop.eup %14630  ;;  %11049 = vst [vmem:[%s19096_s25 + $0x238] sm:$0xff] %v11970_v9  ;;  %v10190_v24 = vadd.f32 1.0, %v14629_v26  ;;  %14650 = vpow2.f32 %v10002_v18 }
 0xa99   : > { %v14633_v29 = vpop.eup %14632  ;;  %14652 = vrcp.f32 %v10185_v13  ;;  %v10191_v0 = vadd.f32 1.0, %v14631_v2 }
 0xa9a   : > { %v14635_v5 = vpop.eup %14634  ;;  %14654 = vrcp.f32 %v10190_v24 }
 0xa9b   : > { %v14637_v23 = vpop.eup %14636  ;;  %v11973_v63 = vpack.c.bf16 %v14635_v5, %v14633_v29  ;;  %14656 = vrcp.f32 %v10191_v0 }
 0xa9c   : > { %v14639_v12 = vpop.eup %14638  ;;  %14658 = vpow2.f32 %v10004_v35 }
 0xa9d   : > { %v14641_v33 = vpop.eup %14640  ;;  %11052 = vst [vmem:[%s19096_s25 + $0x250] sm:$0xff] %v11973_v63  ;;  %v11976_v28 = vpack.c.bf16 %v14639_v12, %v14637_v23  ;;  %14660 = vpow2.f32 %v10014_v37 }
 0xa9e   : > { %v14643_v6 = vpop.eup %14642  ;;  %14662 = vpow2.f32 %v10016_v47 }
 0xa9f   : > { %v14645_v59 = vpop.eup %14644  ;;  %11055 = vst [vmem:[%s19096_s25 + $0x268] sm:$0xff] %v11976_v28  ;;  %v11979_v41 = vpack.c.bf16 %v14643_v6, %v14641_v33 }
 0xaa0   : > { %v14647_v54 = vpop.eup %14646 }
 0xaa1   : > { %v14649_v62 = vpop.eup %14648  ;;  %11058 = vst [vmem:[%s19096_s25 + $0x280] sm:$0xff] %v11979_v41  ;;  %v10196_v15 = vadd.f32 1.0, %v14647_v54 }
 0xaa2   : > { %v14651_v25 = vpop.eup %14650  ;;  %v10197_v44 = vadd.f32 1.0, %v14649_v62 }
 0xaa3   : > { %v14653_v16 = vpop.eup %14652  ;;  %14664 = vrcp.f32 %v10196_v15  ;;  %v10202_v53 = vadd.f32 1.0, %v14651_v25 }
 0xaa4   : > { %v14655_v52 = vpop.eup %14654  ;;  %v11982_v19 = vpack.c.bf16 %v14653_v16, %v14645_v59  ;;  %14666 = vrcp.f32 %v10197_v44 }
 0xaa5   : > { %v14657_v34 = vpop.eup %14656  ;;  %14668 = vrcp.f32 %v10202_v53 }
 0xaa6   : > { %v14659_v20 = vpop.eup %14658  ;;  %11061 = vst [vmem:[%s19096_s25 + $0x298] sm:$0xff] %v11982_v19  ;;  %v11985_v7 = vpack.c.bf16 %v14657_v34, %v14655_v52 }
 0xaa7   : > { %v14661_v58 = vpop.eup %14660  ;;  %v10203_v36 = vadd.f32 1.0, %v14659_v20 }
 0xaa8   : > { %v14663_v56 = vpop.eup %14662  ;;  %11064 = vst [vmem:[%s19096_s25 + $0x2b0] sm:$0xff] %v11985_v7  ;;  %v10208_v27 = vadd.f32 1.0, %v14661_v58 }
 0xaa9   : > { %14670 = vrcp.f32 %v10203_v36  ;;  %v10209_v51 = vadd.f32 1.0, %v14663_v56 }
 0xaaa   : > { %14672 = vrcp.f32 %v10208_v27 }
 0xaab   : > { %14674 = vrcp.f32 %v10209_v51 }
 0xaad   : > { %v14665_v31 = vpop.eup %14664 }
 0xaae   : > { %v14667_v40 = vpop.eup %14666 }
 0xaaf   : > { %v11988_v30 = vpack.c.bf16 %v14667_v40, %v14665_v31  ;;  %v14669_v14 = vpop.eup %14668 }
 0xab1   : > { %11067 = vst [vmem:[%s19096_s25 + $0x2c8] sm:$0xff] %v11988_v30 }
 0xab3   : > { %v14671_v61 = vpop.eup %14670 }
 0xab4   : > { %v14673_v17 = vpop.eup %14672  ;;  %v11991_v3 = vpack.c.bf16 %v14671_v61, %v14669_v14 }
 0xab5   : > { %v14675_v8 = vpop.eup %14674 }
 0xab6   : > { %11070 = vst [vmem:[%s19096_s25 + $0x2e0] sm:$0xff] %v11991_v3  ;;  %v11994_v49 = vpack.c.bf16 %v14675_v8, %v14673_v17 }
 0xab8   : > { %11073 = vst [vmem:[%s19096_s25 + $0x2f8] sm:$0xff] %v11994_v49 }
 0xab9   : > { %15030 = shalt.err (!%p15027_p7)
}
 0xaba   : > { %s15031_s25 = scalar_lea.hbm %s19710_s22, 12288  ;;  %s15035_s5 = scalar_lea.hbm %s20278_s23, 24576 }
 0xabb   : > { %p15032_p4 = scmp.ne.s32.totalorder %s19710_s22, %s15031_s25  ;;  %p15036_p1 = scmp.lt.u32.totalorder %s19710_s22, %s20278_s23 }
 0xabc   : > { %p15037_p3 = scmp.lt.u32.totalorder %s15035_s5, %s15031_s25  ;;  %p15039_p8 = scmp.lt.u32.totalorder %s15031_s25, %s19710_s22 }
 0xabd   : > { %p15033_p12 = pnand %p15032_p4, %p20279_p6 }
 0xabe   : > { %p15038_p2 = por %p15037_p3, %p15036_p1 }
 0xabf   : > { %p15034_p13 = pneg %p15033_p12 }
 0xac0   : > { %p15040_p10 = por %p15039_p8, %p15038_p2 }
 0xac2   : > { %p15041_p11 = pnand %p15040_p10, %p15034_p13 }
 0xac4   : > { %15044 = shalt.err (!%p15041_p11)
}
 0xac5   : > { %s15132_s17 = smov 384   ;;  %s15133_s16 = smov 24  }
 0xac6   : > { %13038 = dma.vmem_to_hbm [thread:$0]  (%p20279_p6), %s19713_s3, 12288, %s19710_s22, %s11108_s4, %s15132_s17, %s15132_s17, %s15133_s16  }
 0xac7 PF: > { %s11146_s24 = sand.u32 1, %s15095_s18   ;;  %p20280_p0 = scmp.ne.s32.totalorder %s19910_s1, 0 }
 0xac8   : > { %p20281_p5 = scmp.ge.s32.totalorder %s15107_s21, 2  ;;  %s11147_s25 = scalar_lea.sflag [#allocation4], %s11146_s24 }
 0xaca   : > { %p13079_p9 = pnand %p20281_p5, %p20280_p0 }
 0xacc   : > { %15090 = dma.done.wait (!%p13079_p9), %s11147_s25, 12288  }
 0xacd   : > { %15092 = vsyncadd (!%p13079_p9), %s11147_s25, 4294955008  ;;  %p35_p7 = scmp.ge.s32.totalorder %s15482_s28, 4   ;;  %s20282_s18 = smov %s15099_s19 }
 0xace   : > { %s20283_s19 = smov %s15103_s20  ;;  %s20284_s20 = smov %s15494_s15 }
 0xacf   : > { %s20285_s21 = smov %s15482_s28  ;;  %37 = sbr.rel (!%p35_p7) target bundleno = 20 (0x14), region = 180 }
 0xad6   :  { %11160 = vsyncpa [#allocation3], 1 }
 0xad7   :  { %11162 = vsyncpa [#allocation3 + $0x1], 1 }
 0xad8   :  { %11163 = vsyncpa [#allocation6], 1 }
 0xad9   :  { %11164 = vsyncpa [#allocation9], 1 }
 0xada   :  { %11165 = vsyncpa [#allocation12], 1 }
 0xadb   :  { %11166 = vsyncpa [#allocation15], 1 }
 0xadc   :  { %11167 = vsyncpa [#allocation18], 1 }
 0xadd   :  { %11168 = vsyncpa [#allocation21], 1 }
 0xade   :  { %11169 = vsyncpa [#allocation4], 1 }
 0xadf   :  { %11171 = vsyncpa [#allocation4 + $0x1], 1 }

</bundles_post_ra>
